<compile_context>
chip_gen: v6e
topology: v6e:2x2x1
jax: 0.10.0
libtpu: 0.0.40
codegen_flags: <defaults>
</compile_context>

<pallas_src>
import functools

import numpy as np
import jax
import jax.numpy as jnp
from jax.experimental import pallas as pl
from jax.experimental.pallas import tpu as pltpu


# ----------------------------------------------------------------------------
# Parameter / buffer construction (plain JAX / numpy glue)
# ----------------------------------------------------------------------------
def sinusoid_encoding_table(n_position: int, d_hid: int) -> np.ndarray:
    """Matches _get_sinusoid_encoding_table: (n_position, d_hid) float32."""
    hid_j = np.arange(d_hid)
    denom = 1.0 / np.power(10000.0, 2.0 * (hid_j // 2) / d_hid)   # (d_hid,)
    pos = np.arange(n_position, dtype=np.float32)[:, None]        # (n_pos, 1)
    table = pos * denom[None, :]
    table[:, 0::2] = np.sin(table[:, 0::2])
    table[:, 1::2] = np.cos(table[:, 1::2])
    return table.astype(np.float32)


def xavier_normal(key, fan_out: int, fan_in: int) -> jnp.ndarray:
    """nn.init.xavier_normal_ for a (fan_out, fan_in, 1, 1) conv weight."""
    std = np.sqrt(2.0 / (fan_in + fan_out))
    return jax.random.normal(key, (fan_out, fan_in), dtype=jnp.float32) * std


# ----------------------------------------------------------------------------
# Pallas kernel: one grid step per Bt-sized batch chunk.
#   x / out   : (Bt, C, HWp)  HWp lane-dense (multiple of 128), may be padded
#   hpe / wpe : (C, HWp)      pre-flattened PE planes, VMEM-resident
#   w1 / b1   : (C, 2C), (1, 2C)    fused layer-1 of both scale MLPs
#   w2 / b2   : (2C, 2C), (1, 2C)   block-diagonal layer-2 of both MLPs
# ----------------------------------------------------------------------------
def ape_kernel(x_ref, hpe_ref, wpe_ref, w1_ref, b1_ref, w2_ref, b2_ref,
               out_ref, *, inv_hw, c):
    xf = x_ref[...].astype(jnp.float32)                     # (Bt, C, HWp)

    # Adaptive average pool to 1x1: lane-axis sum * 1/(H*W).  Zero-padded
    # lanes contribute nothing, so the mean is exact.
    pooled = xf.sum(axis=2) * inv_hw                        # (Bt, C)

    # Fused h/w scale MLPs: exactly 2 MXU matmuls per grid step.
    hid = jnp.dot(pooled, w1_ref[...],
                  preferred_element_type=jnp.float32) + b1_ref[...]
    hid = jnp.maximum(hid, 0.0)                             # ReLU, (Bt, 2C)
    s = jnp.dot(hid, w2_ref[...],
                preferred_element_type=jnp.float32) + b2_ref[...]
    s = jax.nn.sigmoid(s)                                   # (Bt, 2C)

    h_scale = s[:, :c]                                      # (Bt, C)
    w_scale = s[:, c:]                                      # (Bt, C)

    # One tiny lane->sublane relayout per scale tile; hidden under block DMA.
    out = (xf
           + h_scale[:, :, None] * hpe_ref[...].astype(jnp.float32)
           + w_scale[:, :, None] * wpe_ref[...].astype(jnp.float32))
    out_ref[...] = out.astype(out_ref.dtype)


# ----------------------------------------------------------------------------
# Generation-aware tuning
# ----------------------------------------------------------------------------
def _tpu_generation_params():
    try:
        kind = jax.devices()[0].device_kind.lower()
    except Exception:
        kind = ""
    if "v7" in kind:
        # 64 MiB VMEM / TC, 2 TensorCores: smaller blocks, >=2 steps per core.
        return dict(max_block_bytes=5 << 20, vmem_cap=48 << 20, min_steps=4)
    # v5e / v6e (and fallback): 128 MiB VMEM, single TensorCore.
    return dict(max_block_bytes=10 << 20, vmem_cap=80 << 20, min_steps=2)


def _pick_block_batch(B, per_batch_bytes, gen, invariant_bytes):
    """Largest batch block that (a) fits the per-generation byte cap,
    (b) leaves VMEM for double-buffered in+out plus resident invariants,
    (c) keeps >= min_steps grid steps (when B allows) for pipelining /
    megacore sharding."""
    avail = gen["vmem_cap"] - invariant_bytes - (2 << 20)
    cap_bytes = min(gen["max_block_bytes"], max(per_batch_bytes, avail // 4))
    bt = max(1, int(cap_bytes // per_batch_bytes))
    if B >= gen["min_steps"]:
        bt = min(bt, max(1, B // gen["min_steps"]))
    return max(1, min(bt, B))


# ----------------------------------------------------------------------------
# One-time "module init": flatten PE tables and fuse the two scale MLPs.
# Hoisted out of the per-call hot path (static for a given H, W, dtype).
# ----------------------------------------------------------------------------
def precompute_static(h_pe_full, w_pe_full,
                      w1h, b1h, w2h, b2h, w1w, b1w, w2w, b2w,
                      H, W, io_dtype=jnp.float32):
    C = h_pe_full.shape[1]
    HW = H * W
    HW_pad = ((HW + 127) // 128) * 128          # lane-dense last dim

    # hpe_flat[c, h*W + w] = h_pe[c, h];  wpe_flat[c, h*W + w] = w_pe[c, w]
    hpe = h_pe_full[0, :, :H, 0]                                  # (C, H)
    wpe = w_pe_full[0, :, 0, :W]                                  # (C, W)
    hpe_flat = jnp.broadcast_to(hpe[:, :, None], (C, H, W)).reshape(C, HW)
    wpe_flat = jnp.broadcast_to(wpe[:, None, :], (C, H, W)).reshape(C, HW)
    if HW_pad != HW:
        hpe_flat = jnp.pad(hpe_flat, ((0, 0), (0, HW_pad - HW)))
        wpe_flat = jnp.pad(wpe_flat, ((0, 0), (0, HW_pad - HW)))
    hpe_flat = hpe_flat.astype(io_dtype)
    wpe_flat = wpe_flat.astype(io_dtype)

    # Fuse the two 1x1-conv MLPs (weights pre-transposed to (C_in, C_out)).
    w1f = jnp.concatenate([w1h.T, w1w.T], axis=1)                 # (C, 2C)
    b1f = jnp.concatenate([b1h, b1w]).reshape(1, 2 * C)           # (1, 2C)
    zeros = jnp.zeros((C, C), dtype=w2h.dtype)
    w2f = jnp.concatenate(
        [jnp.concatenate([w2h.T, zeros], axis=1),
         jnp.concatenate([zeros, w2w.T], axis=1)], axis=0)        # (2C, 2C)
    b2f = jnp.concatenate([b2h, b2w]).reshape(1, 2 * C)           # (1, 2C)

    static = dict(hpe_flat=hpe_flat, wpe_flat=wpe_flat,
                  w1f=w1f, b1f=b1f, w2f=w2f, b2f=b2f,
                  C=C, H=H, W=W, hw=HW, hw_pad=HW_pad, io_dtype=io_dtype)
    jax.block_until_ready(static["hpe_flat"])
    return static


# ----------------------------------------------------------------------------
# Forward wrapper (hot path)
# ----------------------------------------------------------------------------
def adaptive_2d_positional_encoding(x, static, *, block_batch=None):
    """x: (B, C, H, W). Returns (B, C, H, W) in static['io_dtype']."""
    B, C, H, W = x.shape
    assert (C, H, W) == (static["C"], static["H"], static["W"])
    HW, HW_pad = static["hw"], static["hw_pad"]
    io_dtype = static["io_dtype"]

    # Lane-dense layout: flatten spatial (free reshape), cast/pad if needed.
    x3 = x.reshape(B, C, HW)
    if x3.dtype != io_dtype:
        x3 = x3.astype(io_dtype)
    if HW_pad != HW:
        x3 = jnp.pad(x3, ((0, 0), (0, 0), (0, HW_pad - HW)))

    itemsize = np.dtype(io_dtype).itemsize
    per_batch_bytes = C * HW_pad * itemsize
    invariant_bytes = (2 * C * HW_pad * itemsize                  # PE tables
                       + (C * 2 * C + 4 * C * C + 4 * C) * 4)     # fused MLP
    gen = _tpu_generation_params()
    if block_batch is None:
        block_batch = _pick_block_batch(B, per_batch_bytes, gen, invariant_bytes)

    # Pad batch to a multiple of the block (zeros -> padded rows are cropped).
    B_pad = pl.cdiv(B, block_batch) * block_batch
    if B_pad != B:
        x3 = jnp.pad(x3, ((0, B_pad - B), (0, 0), (0, 0)))
    grid = (B_pad // block_batch,)

    # VMEM budget: double-buffered in+out blocks + (worst case 2x) invariants.
    vmem_needed = (4 * block_batch * per_batch_bytes
                   + 2 * invariant_bytes + (1 << 20))
    vmem_limit = int(min(gen["vmem_cap"], max(32 << 20, vmem_needed)))

    kernel = functools.partial(ape_kernel, inv_hw=1.0 / float(HW), c=C)
    const = lambda g: (0, 0)

    def _call(single_buffer_invariants):
        if single_buffer_invariants:
            # Grid-invariant inputs are fetched once; drop their 2nd buffer.
            inv_spec = lambda shape: pl.BlockSpec(
                shape, const, pipeline_mode=pl.Buffered(1))
        else:
            inv_spec = lambda shape: pl.BlockSpec(shape, const)

        in_specs = [
            pl.BlockSpec((block_batch, C, HW_pad), lambda g: (g, 0, 0)),  # x
            inv_spec((C, HW_pad)),                                        # h PE
            inv_spec((C, HW_pad)),                                        # w PE
            inv_spec((C, 2 * C)),                                         # W1
            inv_spec((1, 2 * C)),                                         # b1
            inv_spec((2 * C, 2 * C)),                                     # W2
            inv_spec((1, 2 * C)),                                         # b2
        ]
        return pl.pallas_call(
            kernel,
            out_shape=jax.ShapeDtypeStruct((B_pad, C, HW_pad), io_dtype),
            grid_spec=pltpu.PrefetchScalarGridSpec(
                num_scalar_prefetch=0,
                grid=grid,
                in_specs=in_specs,
                out_specs=pl.BlockSpec((block_batch, C, HW_pad),
                                       lambda g: (g, 0, 0)),
            ),
            compiler_params=pltpu.CompilerParams(
                dimension_semantics=("parallel",),
                vmem_limit_bytes=vmem_limit),
        )(x3, static["hpe_flat"], static["wpe_flat"],
          static["w1f"], static["b1f"], static["w2f"], static["b2f"])

    try:
        out3 = _call(True)
    except Exception:
        # Fallback: default double-buffered invariants (always supported).
        out3 = _call(False)

    out3 = out3[:B, :, :HW]
    return out3.reshape(B, C, H, W)


# ----------------------------------------------------------------------------
# Pure-JAX reference (for verification)
# ----------------------------------------------------------------------------
def reference(x, h_pe_full, w_pe_full, w1h, b1h, w2h, b2h, w1w, b1w, w2w, b2w):
    B, C, H, W = x.shape
    pooled = jnp.mean(x, axis=(2, 3))                                  # (B, C)

    def mlp(p, w1, b1, w2, b2):
        h = jnp.maximum(p @ w1.T + b1, 0.0)
        return jax.nn.sigmoid(h @ w2.T + b2)                           # (B, C)

    hs = mlp(pooled, w1h, b1h, w2h, b2h)[:, :, None, None]             # (B,C,1,1)
    ws = mlp(pooled, w1w, b1w, w2w, b2w)[:, :, None, None]
    h_term = hs * h_pe_full[:, :, :H, :]
    w_term = ws * w_pe_full[:, :, :, :W]
    return x + h_term + w_term


def build_module(key, C, n_height, n_width):
    k1, k2, k3, k4 = jax.random.split(key, 4)
    h_table = sinusoid_encoding_table(n_height, C)          # (n_h, C)
    w_table = sinusoid_encoding_table(n_width, C)           # (n_w, C)
    h_pe_full = jnp.asarray(h_table.T.reshape(1, C, n_height, 1))
    w_pe_full = jnp.asarray(w_table.T.reshape(1, C, 1, n_width))
    w1h, w2h = xavier_normal(k1, C, C), xavier_normal(k2, C, C)
    w1w, w2w = xavier_normal(k3, C, C), xavier_normal(k4, C, C)
    b = jnp.zeros((C,), dtype=jnp.float32)
    return h_pe_full, w_pe_full, (w1h, b, w2h, b, w1w, b, w2w, b)


# ----------------------------------------------------------------------------
# Main
# ----------------------------------------------------------------------------
if __name__ == "__main__":
    key = jax.random.PRNGKey(0)
    kx1, kx2, km1, km2 = jax.random.split(key, 4)

    # ---- Test 1: lane-dense shapes, f32 exact check ------------------------
    B, C, H, W = 8, 128, 16, 16
    h_pe_full, w_pe_full, params = build_module(km1, C, 32, 32)
    x = jax.random.normal(kx1, (B, C, H, W), dtype=jnp.float32)

    static_f32 = precompute_static(h_pe_full, w_pe_full, *params, H=H, W=W,
                                   io_dtype=jnp.float32)
    out = adaptive_2d_positional_encoding(x, static_f32)
    out = jax.block_until_ready(out)
    ref = reference(x, h_pe_full, w_pe_full, *params)
    np.testing.assert_allclose(np.asarray(out), np.asarray(ref),
                               rtol=1e-5, atol=1e-5)

    # ---- Test 2: ragged shapes exercise the HW / batch padding paths -------
    B2, C2, H2, W2 = 5, 64, 10, 12                       # HW = 120 -> pad 128
    h_pe2, w_pe2, params2 = build_module(km2, C2, 20, 20)
    x2 = jax.random.normal(kx2, (B2, C2, H2, W2), dtype=jnp.float32)

    static2 = precompute_static(h_pe2, w_pe2, *params2, H=H2, W=W2,
                                io_dtype=jnp.float32)
    out2 = adaptive_2d_positional_encoding(x2, static2)
    out2 = jax.block_until_ready(out2)
    ref2 = reference(x2, h_pe2, w_pe2, *params2)
    np.testing.assert_allclose(np.asarray(out2), np.asarray(ref2),
                               rtol=1e-5, atol=1e-5)

    # ---- Test 3: bf16 I/O path (halves HBM traffic; math stays f32) --------
    static_bf16 = precompute_static(h_pe_full, w_pe_full, *params, H=H, W=W,
                                    io_dtype=jnp.bfloat16)
    out_bf = adaptive_2d_positional_encoding(x.astype(jnp.bfloat16),
                                             static_bf16)
    out_bf = jax.block_until_ready(out_bf)
    np.testing.assert_allclose(np.asarray(out_bf.astype(jnp.float32)),
                               np.asarray(ref), rtol=0.05, atol=0.1)

    print("KERNEL_OK")
</pallas_src>

<mosaic_0001>
module attributes {stable_mosaic.version = 11 : i64} {
  func.func @ape_kernel(%arg0: i32, %arg1: memref<4x128x256xf32, #tpu.memory_space<vmem>>, %arg2: memref<128x256xf32, #tpu.memory_space<vmem>>, %arg3: memref<128x256xf32, #tpu.memory_space<vmem>>, %arg4: memref<128x256xf32, #tpu.memory_space<vmem>>, %arg5: memref<1x256xf32, #tpu.memory_space<vmem>>, %arg6: memref<256x256xf32, #tpu.memory_space<vmem>>, %arg7: memref<1x256xf32, #tpu.memory_space<vmem>>, %arg8: memref<4x128x256xf32, #tpu.memory_space<vmem>>) attributes {dimension_semantics = [#tpu.dimension_semantics<parallel>], iteration_bounds = array<i64: 2>, scalar_prefetch = 0 : i64, scratch_operands = 0 : i64, tpu.core_type = #tpu.core_type<tc>, window_params = [{transform_indices = @transform_0, window_bounds = array<i64: 4, 128, 256>}, {pipeline_mode = #tpu.pipeline_mode<synchronous>, transform_indices = @transform_1, window_bounds = array<i64: 128, 256>}, {pipeline_mode = #tpu.pipeline_mode<synchronous>, transform_indices = @transform_2, window_bounds = array<i64: 128, 256>}, {pipeline_mode = #tpu.pipeline_mode<synchronous>, transform_indices = @transform_3, window_bounds = array<i64: 128, 256>}, {pipeline_mode = #tpu.pipeline_mode<synchronous>, transform_indices = @transform_4, window_bounds = array<i64: 1, 256>}, {pipeline_mode = #tpu.pipeline_mode<synchronous>, transform_indices = @transform_5, window_bounds = array<i64: 256, 256>}, {pipeline_mode = #tpu.pipeline_mode<synchronous>, transform_indices = @transform_6, window_bounds = array<i64: 1, 256>}, {transform_indices = @transform_7, window_bounds = array<i64: 4, 128, 256>}]} {
    %c0 = arith.constant 0 : index
    %c0_0 = arith.constant 0 : index
    %c0_1 = arith.constant 0 : index
    %0 = vector.load %arg1[%c0, %c0_0, %c0_1] : memref<4x128x256xf32, #tpu.memory_space<vmem>>, vector<4x128x256xf32>
    %cst = arith.constant dense<0.000000e+00> : vector<4x128xf32>
    %1 = vector.multi_reduction <add>, %0, %cst [2] : vector<4x128x256xf32> to vector<4x128xf32>
    %cst_2 = arith.constant 3.906250e-03 : f32
    %2 = vector.broadcast %cst_2 : f32 to vector<4x128xf32>
    %3 = arith.mulf %1, %2 : vector<4x128xf32>
    %c0_3 = arith.constant 0 : index
    %c0_4 = arith.constant 0 : index
    %4 = vector.load %arg4[%c0_3, %c0_4] : memref<128x256xf32, #tpu.memory_space<vmem>>, vector<128x256xf32>
    %cst_5 = arith.constant dense<0.000000e+00> : vector<4x256xf32>
    %5 = tpu.matmul %3, %4, %cst_5 {dimension_numbers = #tpu.dot_dimension_numbers<[1], [0], [0], [1], [0, 0, 1, 1], [], []>} : vector<4x128xf32>, vector<128x256xf32>, vector<4x256xf32> -> vector<4x256xf32>
    %c0_6 = arith.constant 0 : index
    %c0_7 = arith.constant 0 : index
    %6 = vector.load %arg5[%c0_6, %c0_7] : memref<1x256xf32, #tpu.memory_space<vmem>>, vector<1x256xf32>
    %7 = vector.broadcast %6 : vector<1x256xf32> to vector<4x256xf32>
    %8 = arith.addf %5, %7 : vector<4x256xf32>
    %cst_8 = arith.constant 0.000000e+00 : f32
    %9 = vector.broadcast %cst_8 : f32 to vector<4x256xf32>
    %10 = arith.maximumf %8, %9 : vector<4x256xf32>
    %c0_9 = arith.constant 0 : index
    %c0_10 = arith.constant 0 : index
    %11 = vector.load %arg6[%c0_9, %c0_10] : memref<256x256xf32, #tpu.memory_space<vmem>>, vector<256x256xf32>
    %cst_11 = arith.constant dense<0.000000e+00> : vector<4x256xf32>
    %12 = tpu.matmul %10, %11, %cst_11 {dimension_numbers = #tpu.dot_dimension_numbers<[1], [0], [0], [1], [0, 0, 1, 1], [], []>} : vector<4x256xf32>, vector<256x256xf32>, vector<4x256xf32> -> vector<4x256xf32>
    %c0_12 = arith.constant 0 : index
    %c0_13 = arith.constant 0 : index
    %13 = vector.load %arg7[%c0_12, %c0_13] : memref<1x256xf32, #tpu.memory_space<vmem>>, vector<1x256xf32>
    %14 = vector.broadcast %13 : vector<1x256xf32> to vector<4x256xf32>
    %15 = arith.addf %12, %14 : vector<4x256xf32>
    %16 = arith.negf %15 : vector<4x256xf32>
    %17 = math.exp %16 : vector<4x256xf32>
    %cst_14 = arith.constant 1.000000e+00 : f32
    %18 = vector.broadcast %cst_14 : f32 to vector<4x256xf32>
    %19 = arith.addf %18, %17 : vector<4x256xf32>
    %20 = arith.divf %18, %19 : vector<4x256xf32>
    %21 = vector.extract_strided_slice %20 {offsets = [0, 0], sizes = [4, 128], strides = [1, 1]} : vector<4x256xf32> to vector<4x128xf32>
    %22 = vector.extract_strided_slice %20 {offsets = [0, 128], sizes = [4, 128], strides = [1, 1]} : vector<4x256xf32> to vector<4x128xf32>
    %23 = vector.shape_cast %21 : vector<4x128xf32> to vector<4x128x1xf32>
    %c0_15 = arith.constant 0 : index
    %c0_16 = arith.constant 0 : index
    %24 = vector.load %arg2[%c0_15, %c0_16] : memref<128x256xf32, #tpu.memory_space<vmem>>, vector<128x256xf32>
    %25 = vector.shape_cast %24 : vector<128x256xf32> to vector<1x128x256xf32>
    %26 = vector.broadcast %23 : vector<4x128x1xf32> to vector<4x128x256xf32>
    %27 = vector.broadcast %25 : vector<1x128x256xf32> to vector<4x128x256xf32>
    %28 = arith.mulf %26, %27 : vector<4x128x256xf32>
    %29 = arith.addf %0, %28 : vector<4x128x256xf32>
    %30 = vector.shape_cast %22 : vector<4x128xf32> to vector<4x128x1xf32>
    %c0_17 = arith.constant 0 : index
    %c0_18 = arith.constant 0 : index
    %31 = vector.load %arg3[%c0_17, %c0_18] : memref<128x256xf32, #tpu.memory_space<vmem>>, vector<128x256xf32>
    %32 = vector.shape_cast %31 : vector<128x256xf32> to vector<1x128x256xf32>
    %33 = vector.broadcast %30 : vector<4x128x1xf32> to vector<4x128x256xf32>
    %34 = vector.broadcast %32 : vector<1x128x256xf32> to vector<4x128x256xf32>
    %35 = arith.mulf %33, %34 : vector<4x128x256xf32>
    %36 = arith.addf %29, %35 : vector<4x128x256xf32>
    %c0_19 = arith.constant 0 : index
    %c0_20 = arith.constant 0 : index
    %c0_21 = arith.constant 0 : index
    %37 = vector.load %arg8[%c0_19, %c0_20, %c0_21] : memref<4x128x256xf32, #tpu.memory_space<vmem>>, vector<4x128x256xf32>
    tpu.vector_store %arg8[%c0_19, %c0_20, %c0_21], %36 {strides = array<i32>} : memref<4x128x256xf32, #tpu.memory_space<vmem>>, vector<4x128x256xf32>,
    return
  }
  func.func @transform_0(%arg0: i32) -> (i32, i32, i32) {
    %c0_i32 = arith.constant 0 : i32
    %c0_i32_0 = arith.constant 0 : i32
    %c0_i32_1 = arith.constant 0 : i32
    return %arg0, %c0_i32, %c0_i32_0 : i32, i32, i32
  }
  func.func @transform_1(%arg0: i32) -> (i32, i32) {
    %c0_i32 = arith.constant 0 : i32
    %c0_i32_0 = arith.constant 0 : i32
    %c0_i32_1 = arith.constant 0 : i32
    return %c0_i32, %c0_i32_0 : i32, i32
  }
  func.func @transform_2(%arg0: i32) -> (i32, i32) {
    %c0_i32 = arith.constant 0 : i32
    %c0_i32_0 = arith.constant 0 : i32
    %c0_i32_1 = arith.constant 0 : i32
    return %c0_i32, %c0_i32_0 : i32, i32
  }
  func.func @transform_3(%arg0: i32) -> (i32, i32) {
    %c0_i32 = arith.constant 0 : i32
    %c0_i32_0 = arith.constant 0 : i32
    %c0_i32_1 = arith.constant 0 : i32
    return %c0_i32, %c0_i32_0 : i32, i32
  }
  func.func @transform_4(%arg0: i32) -> (i32, i32) {
    %c0_i32 = arith.constant 0 : i32
    %c0_i32_0 = arith.constant 0 : i32
    %c0_i32_1 = arith.constant 0 : i32
    return %c0_i32, %c0_i32_0 : i32, i32
  }
  func.func @transform_5(%arg0: i32) -> (i32, i32) {
    %c0_i32 = arith.constant 0 : i32
    %c0_i32_0 = arith.constant 0 : i32
    %c0_i32_1 = arith.constant 0 : i32
    return %c0_i32, %c0_i32_0 : i32, i32
  }
  func.func @transform_6(%arg0: i32) -> (i32, i32) {
    %c0_i32 = arith.constant 0 : i32
    %c0_i32_0 = arith.constant 0 : i32
    %c0_i32_1 = arith.constant 0 : i32
    return %c0_i32, %c0_i32_0 : i32, i32
  }
  func.func @transform_7(%arg0: i32) -> (i32, i32, i32) {
    %c0_i32 = arith.constant 0 : i32
    %c0_i32_0 = arith.constant 0 : i32
    %c0_i32_1 = arith.constant 0 : i32
    return %arg0, %c0_i32, %c0_i32_0 : i32, i32, i32
  }
}

module attributes {stable_mosaic.version = 11 : i64} {
  func.func @ape_kernel(%arg0: i32, %arg1: memref<4x128x256xf32, #tpu.memory_space<vmem>>, %arg2: memref<128x256xf32, #tpu.memory_space<vmem>>, %arg3: memref<128x256xf32, #tpu.memory_space<vmem>>, %arg4: memref<128x256xf32, #tpu.memory_space<vmem>>, %arg5: memref<1x256xf32, #tpu.memory_space<vmem>>, %arg6: memref<256x256xf32, #tpu.memory_space<vmem>>, %arg7: memref<1x256xf32, #tpu.memory_space<vmem>>, %arg8: memref<4x128x256xf32, #tpu.memory_space<vmem>>) attributes {dimension_semantics = [#tpu.dimension_semantics<parallel>], iteration_bounds = array<i64: 2>, scalar_prefetch = 0 : i64, scratch_operands = 0 : i64, tpu.core_type = #tpu.core_type<tc>, window_params = [{transform_indices = @transform_0, window_bounds = array<i64: 4, 128, 256>}, {pipeline_mode = #tpu.pipeline_mode<synchronous>, transform_indices = @transform_1, window_bounds = array<i64: 128, 256>}, {pipeline_mode = #tpu.pipeline_mode<synchronous>, transform_indices = @transform_2, window_bounds = array<i64: 128, 256>}, {pipeline_mode = #tpu.pipeline_mode<synchronous>, transform_indices = @transform_3, window_bounds = array<i64: 128, 256>}, {pipeline_mode = #tpu.pipeline_mode<synchronous>, transform_indices = @transform_4, window_bounds = array<i64: 1, 256>}, {pipeline_mode = #tpu.pipeline_mode<synchronous>, transform_indices = @transform_5, window_bounds = array<i64: 256, 256>}, {pipeline_mode = #tpu.pipeline_mode<synchronous>, transform_indices = @transform_6, window_bounds = array<i64: 1, 256>}, {transform_indices = @transform_7, window_bounds = array<i64: 4, 128, 256>}]} {
    %c0 = arith.constant 0 : index
    %c0_0 = arith.constant 0 : index
    %c0_1 = arith.constant 0 : index
    %0 = vector.load %arg1[%c0, %c0_0, %c0_1] : memref<4x128x256xf32, #tpu.memory_space<vmem>>, vector<4x128x256xf32>
    %cst = arith.constant dense<0.000000e+00> : vector<4x128xf32>
    %1 = vector.multi_reduction <add>, %0, %cst [2] : vector<4x128x256xf32> to vector<4x128xf32>
    %cst_2 = arith.constant 3.906250e-03 : f32
    %2 = vector.broadcast %cst_2 : f32 to vector<4x128xf32>
    %3 = arith.mulf %1, %2 : vector<4x128xf32>
    %c0_3 = arith.constant 0 : index
    %c0_4 = arith.constant 0 : index
    %4 = vector.load %arg4[%c0_3, %c0_4] : memref<128x256xf32, #tpu.memory_space<vmem>>, vector<128x256xf32>
    %cst_5 = arith.constant dense<0.000000e+00> : vector<4x256xf32>
    %5 = tpu.matmul %3, %4, %cst_5 {dimension_numbers = #tpu.dot_dimension_numbers<[1], [0], [0], [1], [0, 0, 1, 1], [], []>} : vector<4x128xf32>, vector<128x256xf32>, vector<4x256xf32> -> vector<4x256xf32>
    %c0_6 = arith.constant 0 : index
    %c0_7 = arith.constant 0 : index
    %6 = vector.load %arg5[%c0_6, %c0_7] : memref<1x256xf32, #tpu.memory_space<vmem>>, vector<1x256xf32>
    %7 = vector.broadcast %6 : vector<1x256xf32> to vector<4x256xf32>
    %8 = arith.addf %5, %7 : vector<4x256xf32>
    %cst_8 = arith.constant 0.000000e+00 : f32
    %9 = vector.broadcast %cst_8 : f32 to vector<4x256xf32>
    %10 = arith.maximumf %8, %9 : vector<4x256xf32>
    %c0_9 = arith.constant 0 : index
    %c0_10 = arith.constant 0 : index
    %11 = vector.load %arg6[%c0_9, %c0_10] : memref<256x256xf32, #tpu.memory_space<vmem>>, vector<256x256xf32>
    %cst_11 = arith.constant dense<0.000000e+00> : vector<4x256xf32>
    %12 = tpu.matmul %10, %11, %cst_11 {dimension_numbers = #tpu.dot_dimension_numbers<[1], [0], [0], [1], [0, 0, 1, 1], [], []>} : vector<4x256xf32>, vector<256x256xf32>, vector<4x256xf32> -> vector<4x256xf32>
    %c0_12 = arith.constant 0 : index
    %c0_13 = arith.constant 0 : index
    %13 = vector.load %arg7[%c0_12, %c0_13] : memref<1x256xf32, #tpu.memory_space<vmem>>, vector<1x256xf32>
    %14 = vector.broadcast %13 : vector<1x256xf32> to vector<4x256xf32>
    %15 = arith.addf %12, %14 : vector<4x256xf32>
    %16 = arith.negf %15 : vector<4x256xf32>
    %17 = math.exp %16 : vector<4x256xf32>
    %cst_14 = arith.constant 1.000000e+00 : f32
    %18 = vector.broadcast %cst_14 : f32 to vector<4x256xf32>
    %19 = arith.addf %18, %17 : vector<4x256xf32>
    %20 = arith.divf %18, %19 : vector<4x256xf32>
    %21 = vector.extract_strided_slice %20 {offsets = [0, 0], sizes = [4, 128], strides = [1, 1]} : vector<4x256xf32> to vector<4x128xf32>
    %22 = vector.extract_strided_slice %20 {offsets = [0, 128], sizes = [4, 128], strides = [1, 1]} : vector<4x256xf32> to vector<4x128xf32>
    %23 = vector.shape_cast %21 : vector<4x128xf32> to vector<4x128x1xf32>
    %c0_15 = arith.constant 0 : index
    %c0_16 = arith.constant 0 : index
    %24 = vector.load %arg2[%c0_15, %c0_16] : memref<128x256xf32, #tpu.memory_space<vmem>>, vector<128x256xf32>
    %25 = vector.shape_cast %24 : vector<128x256xf32> to vector<1x128x256xf32>
    %26 = vector.broadcast %23 : vector<4x128x1xf32> to vector<4x128x256xf32>
    %27 = vector.broadcast %25 : vector<1x128x256xf32> to vector<4x128x256xf32>
    %28 = arith.mulf %26, %27 : vector<4x128x256xf32>
    %29 = arith.addf %0, %28 : vector<4x128x256xf32>
    %30 = vector.shape_cast %22 : vector<4x128xf32> to vector<4x128x1xf32>
    %c0_17 = arith.constant 0 : index
    %c0_18 = arith.constant 0 : index
    %31 = vector.load %arg3[%c0_17, %c0_18] : memref<128x256xf32, #tpu.memory_space<vmem>>, vector<128x256xf32>
    %32 = vector.shape_cast %31 : vector<128x256xf32> to vector<1x128x256xf32>
    %33 = vector.broadcast %30 : vector<4x128x1xf32> to vector<4x128x256xf32>
    %34 = vector.broadcast %32 : vector<1x128x256xf32> to vector<4x128x256xf32>
    %35 = arith.mulf %33, %34 : vector<4x128x256xf32>
    %36 = arith.addf %29, %35 : vector<4x128x256xf32>
    %c0_19 = arith.constant 0 : index
    %c0_20 = arith.constant 0 : index
    %c0_21 = arith.constant 0 : index
    %37 = vector.load %arg8[%c0_19, %c0_20, %c0_21] : memref<4x128x256xf32, #tpu.memory_space<vmem>>, vector<4x128x256xf32>
    tpu.vector_store %arg8[%c0_19, %c0_20, %c0_21], %36 {strides = array<i32>} : memref<4x128x256xf32, #tpu.memory_space<vmem>>, vector<4x128x256xf32>,
    return
  }
  func.func @transform_0(%arg0: i32) -> (i32, i32, i32) {
    %c0_i32 = arith.constant 0 : i32
    %c0_i32_0 = arith.constant 0 : i32
    %c0_i32_1 = arith.constant 0 : i32
    return %arg0, %c0_i32, %c0_i32_0 : i32, i32, i32
  }
  func.func @transform_1(%arg0: i32) -> (i32, i32) {
    %c0_i32 = arith.constant 0 : i32
    %c0_i32_0 = arith.constant 0 : i32
    %c0_i32_1 = arith.constant 0 : i32
    return %c0_i32, %c0_i32_0 : i32, i32
  }
  func.func @transform_2(%arg0: i32) -> (i32, i32) {
    %c0_i32 = arith.constant 0 : i32
    %c0_i32_0 = arith.constant 0 : i32
    %c0_i32_1 = arith.constant 0 : i32
    return %c0_i32, %c0_i32_0 : i32, i32
  }
  func.func @transform_3(%arg0: i32) -> (i32, i32) {
    %c0_i32 = arith.constant 0 : i32
    %c0_i32_0 = arith.constant 0 : i32
    %c0_i32_1 = arith.constant 0 : i32
    return %c0_i32, %c0_i32_0 : i32, i32
  }
  func.func @transform_4(%arg0: i32) -> (i32, i32) {
    %c0_i32 = arith.constant 0 : i32
    %c0_i32_0 = arith.constant 0 : i32
    %c0_i32_1 = arith.constant 0 : i32
    return %c0_i32, %c0_i32_0 : i32, i32
  }
  func.func @transform_5(%arg0: i32) -> (i32, i32) {
    %c0_i32 = arith.constant 0 : i32
    %c0_i32_0 = arith.constant 0 : i32
    %c0_i32_1 = arith.constant 0 : i32
    return %c0_i32, %c0_i32_0 : i32, i32
  }
  func.func @transform_6(%arg0: i32) -> (i32, i32) {
    %c0_i32 = arith.constant 0 : i32
    %c0_i32_0 = arith.constant 0 : i32
    %c0_i32_1 = arith.constant 0 : i32
    return %c0_i32, %c0_i32_0 : i32, i32
  }
  func.func @transform_7(%arg0: i32) -> (i32, i32, i32) {
    %c0_i32 = arith.constant 0 : i32
    %c0_i32_0 = arith.constant 0 : i32
    %c0_i32_1 = arith.constant 0 : i32
    return %arg0, %c0_i32, %c0_i32_0 : i32, i32, i32
  }
}

</mosaic_0001>

<bundles_post_ra>
// kernel: tpu_custom_call.1
= control target key start
LH: loop header
LB: loop body
LE: loop exit
PB: predicated region body
PF: predicated region fallthrough
CT: control target
= control target key end

     0   :  { %s4976_s0 = inlined_call_operand.hbm [shape: f32[8,128,256], index: 0, kind: input, shape index: {}]   ;;  %s4977_s1 = inlined_call_operand.hbm [shape: f32[128,256], index: 1, kind: input, shape index: {}]   ;;  %s4978_s2 = inlined_call_operand.hbm [shape: f32[128,256], index: 2, kind: input, shape index: {}]   ;;  %s4979_s3 = inlined_call_operand.hbm [shape: f32[128,256], index: 3, kind: input, shape index: {}]   ;;  %s4980_s4 = inlined_call_operand.vmem [shape: f32[1,256], index: 4, kind: input, shape index: {}]   ;;  %s4981_s5 = inlined_call_operand.hbm [shape: f32[256,256], index: 5, kind: input, shape index: {}]   ;;  %s4982_s6 = inlined_call_operand.vmem [shape: f32[1,256], index: 6, kind: input, shape index: {}]   ;;  %s4983_s7 = inlined_call_operand.hbm [shape: f32[8,128,256], index: 7, kind: output, shape index: {}]  }
   0x1   :  { %5099 = sst [smem:[#allocation91_spill]] %s4977_s1 }
   0x2   :  { %12 = vsyncpa [#allocation3], 0 }
   0x3   :  { %14 = vsyncpa [#allocation3 + $0x1], 0 }
   0x4   :  { %15 = vsyncpa [#allocation6], 0 }
   0x5   :  { %16 = vsyncpa [#allocation9], 0 }
   0x6   :  { %17 = vsyncpa [#allocation4], 0 }
   0x7   :  { %19 = vsyncpa [#allocation4 + $0x1], 0  ;;  %s3382_s24 = smov 0   ;;  %s3384_s25 = smov 0  }
   0x8   :  { %s3386_s26 = smov 0   ;;  %s3388_s27 = smov 0  }
   0x9 LB: > { %s3403_s28 = sadd.s32 4294967295, %s3329_s27   ;;  %s2803_s29 = sadd.s32 4294967294, %s3329_s27   ;;  %s3329_s27 = sphi %s3388_s27, %s5311_s27   ;;  %s3325_s26 = sphi %s3386_s26, %s5310_s26   ;;  %s3321_s25 = sphi %s3384_s25, %s5309_s25   ;;  %s3317_s24 = sphi %s3382_s24, %s5308_s24  }
   0xa   : > { %p45_p0 = scmp.ne.s32.totalorder %s3321_s25, %s3317_s24  ;;  %p4984_p1 = scmp.eq.s32.totalorder %s3403_s28, 0 }
   0xb   : > { %p195_p2 = scmp.eq.s32.totalorder %s3403_s28, 1  ;;  %p201_p3 = scmp.eq.s32.totalorder %s2803_s29, 1 }
   0xc   : > { %p3412_p4 = por %p4984_p1, %p45_p0  ;;  %p2804_p5 = scmp.ge.s32.totalorder %s3329_s27, 1 }
   0xd   : > { %p3417_p6 = por %p201_p3, %p45_p0  ;;  %p208_p7 = scmp.lt.s32.totalorder %s3329_s27, 3 }
   0xe   : > { %s5100_s30 = scalar_select %p3412_p4, 1, 0 }
   0xf   : > { %s5101_s8 = scalar_select %p3417_p6, 1, 0 }
  0x10   : > { %p3422_p8 = pnand %p2804_p5, %p208_p7  ;;  %s3331_s10 = smov [#allocation5]  }
  0x11   : > { %s220_s11 = sshll.u32 %s3331_s10, 4  ;;  %s3332_s13 = smov [#allocation8]   ;;  %s221_s11 = int_to_ptr.vmem [resolvable:$true] %s220_s11 }
  0x12   : > { %s5102_s9 = scalar_select %p3422_p8, 1, 0 }
  0x13   : > { %p2853_p9 = pneg %p3422_p8  ;;  %s246_s14 = sshll.u32 %s3332_s13, 4  ;;  %s247_s14 = int_to_ptr.vmem [resolvable:$true] %s246_s14 }
  0x14   : > { %s3333_s15 = smov [#allocation7]   ;;  %s3136_s17 = scalar_lea.vmem %s221_s11, 4096 }
  0x15   : > { %p3431_p11 = pnand %p2853_p9, %p4984_p1  ;;  %s233_s16 = sshll.u32 %s3333_s15, 4  ;;  %s234_s16 = int_to_ptr.vmem [resolvable:$true] %s233_s16 }
  0x16   : > { %p3137_p13 = scmp.ne.s32.totalorder %s221_s11, %s3136_s17  ;;  %p3144_p5 = scmp.lt.s32.totalorder %s221_s11, %s221_s11 }
  0x17   : > { %p3127_p12 = pneg %p3431_p11  ;;  %p3145_p7 = scmp.lt.s32.totalorder %s3136_s17, %s3136_s17 }
  0x19   : > { %p3139_p0 = pnand %p3137_p13, %p3127_p12  ;;  %p3146_p9 = por %p3145_p7, %p3144_p5 }
  0x1b   : > { %p3140_p3 = pneg %p3139_p0 }
  0x1d   : > { %p3147_p10 = pnand %p3146_p9, %p3140_p3 }
  0x1f   : > { %3150 = shalt.err (!%p3147_p10)
}
  0x20   : > { %s4985_s18 = smov 256   ;;  %s4986_s19 = smov 16  }
  0x21   : > { %s5104_s1 = sld [smem:[#allocation91_spill]]  ;;  %s3162_s22 = scalar_lea.vmem %s247_s14, 4096 }
  0x22   : > { %p3163_p13 = scmp.ne.s32.totalorder %s247_s14, %s3162_s22  ;;  %p3170_p3 = scmp.lt.s32.totalorder %s247_s14, %s247_s14 }
  0x23   : > { %p3171_p10 = scmp.lt.s32.totalorder %s3162_s22, %s3162_s22 }
  0x24   : > { %p3165_p0 = pnand %p3163_p13, %p3127_p12 }
  0x25   : > { %p3172_p7 = por %p3171_p10, %p3170_p3 }
  0x26   : > { %p3166_p5 = pneg %p3165_p0 }
  0x27   : > { %2856 = dma.hbm_to_vmem [thread:$0]  (!%p3431_p11), %s5104_s1, 4096, %s221_s11, [#allocation6], %s4985_s18, %s4985_s18, %s4986_s19  }
  0x28   : > { %p3173_p9 = pnand %p3172_p7, %p3166_p5 }
  0x2a   : > { %3176 = shalt.err (!%p3173_p9)
}
  0x2b   : > { %2862 = dma.hbm_to_vmem [thread:$0]  (!%p3431_p11), %s4979_s3, 4096, %s247_s14, [#allocation9], %s4985_s18, %s4985_s18, %s4986_s19  }
  0x2c   : > { %s3188_s10 = scalar_lea.vmem %s234_s16, 4096  ;;  %p3196_p3 = scmp.lt.s32.totalorder %s234_s16, %s234_s16 }
  0x2d   : > { %p3189_p1 = scmp.ne.s32.totalorder %s234_s16, %s3188_s10  ;;  %p3197_p5 = scmp.lt.s32.totalorder %s3188_s10, %s3188_s10 }
  0x2f   : > { %p3191_p13 = pnand %p3189_p1, %p3127_p12  ;;  %p3198_p10 = por %p3197_p5, %p3196_p3 }
  0x31   : > { %p3192_p0 = pneg %p3191_p13 }
  0x33   : > { %p3199_p7 = pnand %p3198_p10, %p3192_p0 }
  0x35   : > { %3202 = shalt.err (!%p3199_p7)
}
  0x36   : > { %2859 = dma.hbm_to_vmem [thread:$0]  (!%p3431_p11), %s4978_s2, 4096, %s234_s16, [#allocation6], %s4985_s18, %s4985_s18, %s4986_s19  }
  0x37   : > { %s3336_s14 = smov [#allocation10]  }
  0x38   : > { %s262_s15 = sshll.u32 %s3336_s14, 4  ;;  %s263_s15 = int_to_ptr.vmem [resolvable:$true] %s262_s15 }
  0x39   : > { %s3214_s17 = scalar_lea.vmem %s263_s15, 8192  ;;  %p3222_p0 = scmp.lt.s32.totalorder %s263_s15, %s263_s15 }
  0x3a   : > { %p3215_p1 = scmp.ne.s32.totalorder %s263_s15, %s3214_s17  ;;  %p3223_p3 = scmp.lt.s32.totalorder %s3214_s17, %s3214_s17 }
  0x3c   : > { %p3217_p9 = pnand %p3215_p1, %p3127_p12  ;;  %p3224_p5 = por %p3223_p3, %p3222_p0 }
  0x3e   : > { %p3218_p13 = pneg %p3217_p9 }
  0x40   : > { %p3225_p10 = pnand %p3224_p5, %p3218_p13 }
  0x42   : > { %3228 = shalt.err (!%p3225_p10)
}
  0x43   : > { %2865 = dma.hbm_to_vmem [thread:$0]  (!%p3431_p11), %s4981_s5, 8192, %s263_s15, [#allocation9], %s4985_s18, %s4985_s18, %s4986_s19  }
  0x44   : > { %s3482_s21 = sadd.s32 1, %s3329_s27   ;;  %s32_s12 = sadd.s32 1, %s3325_s26 }
  0x45   : > { %s29_s22 = ssub.s32 %s3329_s27, %s3482_s21  ;;  %p39_p12 = scmp.ne.s32.totalorder %s3325_s26, %s3321_s25 }
  0x46   : > { %p30_p7 = scmp.eq.s32.totalorder %s29_s22, 0  ;;  %p40_p1 = scmp.eq.s32.totalorder %s3329_s27, 0 }
  0x47   : > { %p3492_p9 = por %p195_p2, %p39_p12  ;;  %p2878_p13 = scmp.lt.s32.totalorder %s3329_s27, 2 }
  0x48   : > { %s3498_s29 = scalar_select %p30_p7, %s3325_s26, %s32_s12  }
  0x49   : > { %s5105_s23 = scalar_select %p3492_p9, 1, 0 }
  0x4a   : > { %p41_p0 = por %p40_p1, %p39_p12  ;;  %s279_s10 = sand.u32 1, %s3325_s26  }
  0x4b   : > { %s2810_s11 = sshll.u32 %s279_s10, 10  ;;  %s2830_s13 = sshll.u32 %s3329_s27, 14 }
  0x4c   : > { %s3505_s17 = scalar_lea.hbm %s4976_s0, %s2830_s13  ;;  %s283_s16 = scalar_lea.vmem [#allocation2], %s2810_s11 }
  0x4d   : > { %s291_s20 = sshll.u32 %s283_s16, 4  ;;  %p3509_p2 = pnand %p2878_p13, %p41_p0  ;;  %s3507_s20 = int_to_ptr.vmem [resolvable:$true] %s291_s20 }
  0x4e   : > { %s3513_s12 = scalar_lea.sflag [#allocation3], %s279_s10  ;;  %s3229_s18 = scalar_lea.hbm %s3505_s17, 16384 }
  0x4f   : > { %p3230_p11 = scmp.ne.s32.totalorder %s3505_s17, %s3229_s18  ;;  %p3231_p3 = pneg %p3509_p2 }
  0x50   : > { %s3234_s11 = scalar_lea.hbm %s4976_s0, 32768  ;;  %p3235_p12 = scmp.lt.s32.totalorder %s3505_s17, %s4976_s0 }
  0x51   : > { %p3232_p5 = pnand %p3231_p3, %p3230_p11  ;;  %p3236_p7 = scmp.lt.s32.totalorder %s3234_s11, %s3229_s18 }
  0x53   : > { %p3233_p10 = pneg %p3232_p5  ;;  %p3237_p1 = por %p3236_p7, %p3235_p12 }
  0x55   : > { %p3238_p13 = pnand %p3237_p1, %p3233_p10 }
  0x57   : > { %3241 = shalt.err (!%p3238_p13)
}
  0x58   : > { %s3242_s10 = scalar_lea.vmem %s3507_s20, 16384  ;;  %s3337_s19 = smov [#allocation2]  }
  0x59   : > { %p3243_p0 = scmp.ne.s32.totalorder %s3507_s20, %s3242_s10  ;;  %s3247_s1 = sshll.u32 %s3337_s19, 4  ;;  %s3248_s1 = int_to_ptr.vmem [resolvable:$false] %s3247_s1 }
  0x5a   : > { %s3249_s13 = scalar_lea.vmem %s3248_s1, 32768  ;;  %p3250_p5 = scmp.lt.s32.totalorder %s3507_s20, %s3248_s1 }
  0x5b   : > { %p3245_p6 = pnand %p3243_p0, %p3231_p3  ;;  %p3251_p9 = scmp.lt.s32.totalorder %s3249_s13, %s3242_s10 }
  0x5d   : > { %p3246_p11 = pneg %p3245_p6  ;;  %p3252_p4 = por %p3251_p9, %p3250_p5 }
  0x5f   : > { %p3253_p8 = pnand %p3252_p4, %p3246_p11 }
  0x61   : > { %3256 = shalt.err (!%p3253_p8)
}
  0x62   : > { %s5107_s18 = smov 16   ;;  %s5108_s14 = smov 256  }
  0x63   : > { %2869 = dma.hbm_to_vmem [thread:$0]  (!%p3509_p2), %s3505_s17, 16384, %s3507_s20, %s3513_s12, %s5108_s14, %s5108_s14, %s5107_s18  }
  0x64   : > { %p5109_p6 = scmp.ne.s32.totalorder %s5102_s9, 0 }
  0x66   : > { %303 = sbr.rel (%p5109_p6) target bundleno = 1223 (0x4c7), region = 48 }
  0x6b   : > { %s3540_s19 = sand.u32 1, %s3321_s25   ;;  %p5110_p4 = scmp.ne.s32.totalorder %s5100_s30, 0 }
  0x6c   : > { %s2815_s1 = sshll.u32 %s3540_s19, 10  ;;  %s306_s11 = scalar_lea.sflag [#allocation3], %s3540_s19 }
  0x6d   : > { %s3546_s22 = scalar_lea.vmem [#allocation2], %s2815_s1 }
  0x6e   : > { %3300 = dma.done.wait (%p5110_p4), %s306_s11, 16384  }
  0x6f   : > { %3302 = vsyncadd (%p5110_p4), %s306_s11, 4294950912  ;;  %p5111_p8 = scmp.eq.s32.totalorder %s3403_s28, 0 }
  0x71   : > { %3304 = dma.done.wait (%p5111_p8), [#allocation6], 8192   ;;  %p5112_p9 = pmov %p5111_p8 }
  0x72   : > { %p5113_p2 = pmov %p5111_p8 }
  0x73   : > { %3306 = vsyncadd (%p5112_p9), [#allocation6], 4294959104 }
  0x74   : > { %3308 = dma.done.wait (%p5113_p2), [#allocation9], 12288   ;;  %p5114_p3 = pmov %p5113_p2 }
  0x75   : > { %v390_v0 = vld [vmem:[%s3546_s22 + $0x100] sm:$0xff]  ;;  %v391_v1 = vld [vmem:[%s3546_s22 + $0x108] sm:$0xff]  ;;  %v392_v5 = vld [vmem:[%s3546_s22 + $0x110] sm:$0xff]  ;;  %vm861_vm0 = vcmask 130112   ;;  %vm868_vm1 = vcmask 195712   ;;  %vm875_vm2 = vcmask 261312  }
  0x76   : > { %3310 = vsyncadd (%p5114_p3), [#allocation9], 4294955008  ;;  %v358_v2 = vld [vmem:[%s3546_s22] sm:$0xff]  ;;  %v534_v3 = vadd.f32 %v391_v1, %v390_v0  ;;  %v359_v4 = vld [vmem:[%s3546_s22 + $0x8] sm:$0xff]  ;;  %vm882_vm3 = vcmask 326912   ;;  %vm889_vm4 = vcmask 392512  }
  0x77   : > { %v393_v6 = vld [vmem:[%s3546_s22 + $0x118] sm:$0xff]  ;;  %v486_v7 = vadd.f32 %v359_v4, %v358_v2  ;;  %v360_v8 = vld [vmem:[%s3546_s22 + $0x10] sm:$0xff]  ;;  %v394_v12 = vld [vmem:[%s3546_s22 + $0x120] sm:$0xff]  ;;  %vm896_vm5 = vcmask 458112   ;;  %vm903_vm6 = vcmask 523712   ;;  %vm910_vm7 = vcmask 589312  }
  0x78   : > { %v361_v9 = vld [vmem:[%s3546_s22 + $0x18] sm:$0xff]  ;;  %535 = vadd.xlane.f32.xlu1 %v534_v3  ;;  %v537_v10 = vadd.f32 %v393_v6, %v392_v5  ;;  %v395_v13 = vld [vmem:[%s3546_s22 + $0x128] sm:$0xff]  ;;  %v362_v14 = vld [vmem:[%s3546_s22 + $0x20] sm:$0xff]  ;;  %vm917_vm8 = vcmask 654912   ;;  %vm924_vm9 = vcmask 720512   ;;  %vm931_vm10 = vcmask 786112  }
  0x79   : > { %487 = vadd.xlane.f32.xlu0 %v486_v7  ;;  %v489_v11 = vadd.f32 %v361_v9, %v360_v8  ;;  %v363_v15 = vld [vmem:[%s3546_s22 + $0x28] sm:$0xff]  ;;  %v540_v16 = vadd.f32 %v395_v13, %v394_v12  ;;  %v424_v18 = vld [vmem:[%s3546_s22 + $0x210] sm:$0xff]  ;;  %v425_v19 = vld [vmem:[%s3546_s22 + $0x218] sm:$0xff]  ;;  %vm938_vm11 = vcmask 851712   ;;  %vm945_vm12 = vcmask 917312   ;;  %s4266_s12 = scalar_lea.vmem [#allocation11], %s2815_s1 }
  0x7a   : > { %v492_v17 = vadd.f32 %v363_v15, %v362_v14  ;;  %v422_v20 = vld [vmem:[%s3546_s22 + $0x200] sm:$0xff]  ;;  %v423_v21 = vld [vmem:[%s3546_s22 + $0x208] sm:$0xff]  ;;  %v585_v22 = vadd.f32 %v425_v19, %v424_v18  ;;  %v396_v24 = vld [vmem:[%s3546_s22 + $0x130] sm:$0xff]  ;;  %vm952_vm13 = vcmask 982912   ;;  %vm959_vm14 = vcmask 1048512   ;;  %s2832_s15 = sshll.u32 %s3403_s28, 14 }
  0x7b   : > { %v582_v23 = vadd.f32 %v423_v21, %v422_v20  ;;  %v397_v25 = vld [vmem:[%s3546_s22 + $0x138] sm:$0xff]  ;;  %v364_v26 = vld [vmem:[%s3546_s22 + $0x30] sm:$0xff]  ;;  %v454_v30 = vld [vmem:[%s3546_s22 + $0x300] sm:$0xff]  ;;  %vm1198_vm15 = vcmask 1041409   ;;  %s2692_s16 = sshll.u32 %s4266_s12, 4  ;;  %s4929_s28 = scalar_lea.hbm %s4983_s7, %s2832_s15  ;;  %s4931_s16 = int_to_ptr.vmem [resolvable:$true] %s2692_s16 }
  0x7c   : > { %538 = vadd.xlane.f32.xlu1 %v537_v10  ;;  %v365_v27 = vld [vmem:[%s3546_s22 + $0x38] sm:$0xff]  ;;  %v543_v28 = vadd.f32 %v397_v25, %v396_v24  ;;  %v455_v31 = vld [vmem:[%s3546_s22 + $0x308] sm:$0xff]  ;;  %v426_v32 = vld [vmem:[%s3546_s22 + $0x220] sm:$0xff]  ;;  %s2678_s18 = scalar_lea.sflag [#allocation4], %s3540_s19  ;;  %s3257_s14 = scalar_lea.vmem %s4931_s16, 16384 }
  0x7d   : > { %490 = vadd.xlane.f32.xlu0 %v489_v11  ;;  %v495_v29 = vadd.f32 %v365_v27, %v364_v26  ;;  %v427_v33 = vld [vmem:[%s3546_s22 + $0x228] sm:$0xff]  ;;  %v630_v34 = vadd.f32 %v455_v31, %v454_v30  ;;  %v366_v36 = vld [vmem:[%s3546_s22 + $0x40] sm:$0xff]  ;;  %v456_v38 = vld [vmem:[%s3546_s22 + $0x310] sm:$0xff]  ;;  %p3258_p10 = scmp.ne.s32.totalorder %s4931_s16, %s3257_s14  ;;  %p5305_p12 = scmp.ne.s32.totalorder %s5105_s23, 0 }
  0x7e   : > { %v588_v35 = vadd.f32 %v427_v33, %v426_v32  ;;  %v367_v37 = vld [vmem:[%s3546_s22 + $0x48] sm:$0xff]  ;;  %v457_v39 = vld [vmem:[%s3546_s22 + $0x318] sm:$0xff]  ;;  %v428_v42 = vld [vmem:[%s3546_s22 + $0x230] sm:$0xff]  ;;  %s3339_s1 = smov [#allocation11]  }
  0x7f   : > { %v498_v40 = vadd.f32 %v367_v37, %v366_v36  ;;  %v633_v41 = vadd.f32 %v457_v39, %v456_v38  ;;  %v429_v43 = vld [vmem:[%s3546_s22 + $0x238] sm:$0xff]  ;;  %v398_v44 = vld [vmem:[%s3546_s22 + $0x140] sm:$0xff]  ;;  %v399_v45 = vld [vmem:[%s3546_s22 + $0x148] sm:$0xff]  ;;  %p3259_p7 = pnand %p3258_p10, %p5305_p12  ;;  %s3261_s11 = sshll.u32 %s3339_s1, 4  ;;  %s3262_s11 = int_to_ptr.vmem [resolvable:$false] %s3261_s11 }
  0x80   : > { %541 = vadd.xlane.f32.xlu1 %v540_v16  ;;  %v591_v46 = vadd.f32 %v429_v43, %v428_v42  ;;  %v546_v47 = vadd.f32 %v399_v45, %v398_v44  ;;  %v368_v48 = vld [vmem:[%s3546_s22 + $0x50] sm:$0xff]  ;;  %v369_v49 = vld [vmem:[%s3546_s22 + $0x58] sm:$0xff]  ;;  %v458_v50 = vld [vmem:[%s3546_s22 + $0x320] sm:$0xff]  ;;  %p3264_p13 = scmp.lt.s32.totalorder %s4931_s16, %s3262_s11 }
  0x81   : > { %493 = vadd.xlane.f32.xlu0 %v492_v17  ;;  %v459_v51 = vld [vmem:[%s3546_s22 + $0x328] sm:$0xff]  ;;  %v501_v52 = vadd.f32 %v369_v49, %v368_v48  ;;  %v430_v54 = vld [vmem:[%s3546_s22 + $0x240] sm:$0xff]  ;;  %v400_v56 = vld [vmem:[%s3546_s22 + $0x150] sm:$0xff]  ;;  %p3260_p1 = pneg %p3259_p7 }
  0x82   : > { %v636_v53 = vadd.f32 %v459_v51, %v458_v50  ;;  %v431_v55 = vld [vmem:[%s3546_s22 + $0x248] sm:$0xff]  ;;  %v401_v57 = vld [vmem:[%s3546_s22 + $0x158] sm:$0xff]  ;;  %v370_v60 = vld [vmem:[%s3546_s22 + $0x60] sm:$0xff] }
  0x83   : > { %v594_v58 = vadd.f32 %v431_v55, %v430_v54  ;;  %v549_v59 = vadd.f32 %v401_v57, %v400_v56  ;;  %v371_v61 = vld [vmem:[%s3546_s22 + $0x68] sm:$0xff]  ;;  %v460_v62 = vld [vmem:[%s3546_s22 + $0x330] sm:$0xff]  ;;  %v461_v63 = vld [vmem:[%s3546_s22 + $0x338] sm:$0xff] }
  0x84   : > { %586 = vadd.xlane.f32.xlu1 %v585_v22  ;;  %v504_v0 = vadd.f32 %v371_v61, %v370_v60  ;;  %v639_v1 = vadd.f32 %v461_v63, %v460_v62  ;;  %v432_v2 = vld [vmem:[%s3546_s22 + $0x250] sm:$0xff]  ;;  %v433_v3 = vld [vmem:[%s3546_s22 + $0x258] sm:$0xff]  ;;  %v402_v4 = vld [vmem:[%s3546_s22 + $0x160] sm:$0xff] }
  0x85   : > { %583 = vadd.xlane.f32.xlu0 %v582_v23  ;;  %v403_v5 = vld [vmem:[%s3546_s22 + $0x168] sm:$0xff]  ;;  %v597_v6 = vadd.f32 %v433_v3, %v432_v2  ;;  %v372_v8 = vld [vmem:[%s3546_s22 + $0x70] sm:$0xff]  ;;  %v373_v9 = vld [vmem:[%s3546_s22 + $0x78] sm:$0xff] }
  0x86   : > { %v552_v7 = vadd.f32 %v403_v5, %v402_v4  ;;  %v462_v10 = vld [vmem:[%s3546_s22 + $0x340] sm:$0xff]  ;;  %v463_v11 = vld [vmem:[%s3546_s22 + $0x348] sm:$0xff]  ;;  %v507_v12 = vadd.f32 %v373_v9, %v372_v8  ;;  %v404_v16 = vld [vmem:[%s3546_s22 + $0x170] sm:$0xff] }
  0x87   : > { %v642_v13 = vadd.f32 %v463_v11, %v462_v10  ;;  %v434_v14 = vld [vmem:[%s3546_s22 + $0x260] sm:$0xff]  ;;  %v435_v15 = vld [vmem:[%s3546_s22 + $0x268] sm:$0xff]  ;;  %v405_v17 = vld [vmem:[%s3546_s22 + $0x178] sm:$0xff] }
  0x88   : > { %544 = vadd.xlane.f32.xlu1 %v543_v28  ;;  %v600_v18 = vadd.f32 %v435_v15, %v434_v14  ;;  %v555_v19 = vadd.f32 %v405_v17, %v404_v16  ;;  %v374_v20 = vld [vmem:[%s3546_s22 + $0x80] sm:$0xff]  ;;  %v375_v21 = vld [vmem:[%s3546_s22 + $0x88] sm:$0xff]  ;;  %v464_v22 = vld [vmem:[%s3546_s22 + $0x350] sm:$0xff] }
  0x89   : > { %496 = vadd.xlane.f32.xlu0 %v495_v29  ;;  %v465_v23 = vld [vmem:[%s3546_s22 + $0x358] sm:$0xff]  ;;  %v510_v24 = vadd.f32 %v375_v21, %v374_v20  ;;  %v436_v26 = vld [vmem:[%s3546_s22 + $0x270] sm:$0xff]  ;;  %v406_v28 = vld [vmem:[%s3546_s22 + $0x180] sm:$0xff] }
  0x8a   : > { %v645_v25 = vadd.f32 %v465_v23, %v464_v22  ;;  %v437_v27 = vld [vmem:[%s3546_s22 + $0x278] sm:$0xff]  ;;  %v407_v29 = vld [vmem:[%s3546_s22 + $0x188] sm:$0xff]  ;;  %v376_v32 = vld [vmem:[%s3546_s22 + $0x90] sm:$0xff] }
  0x8b   : > { %v603_v30 = vadd.f32 %v437_v27, %v436_v26  ;;  %v558_v31 = vadd.f32 %v407_v29, %v406_v28  ;;  %v377_v33 = vld [vmem:[%s3546_s22 + $0x98] sm:$0xff]  ;;  %v438_v38 = vld [vmem:[%s3546_s22 + $0x280] sm:$0xff]  ;;  %v439_v39 = vld [vmem:[%s3546_s22 + $0x288] sm:$0xff] }
  0x8c   : > { %631 = vadd.xlane.f32.xlu1 %v630_v34  ;;  %v466_v34 = vld [vmem:[%s3546_s22 + $0x360] sm:$0xff]  ;;  %v513_v36 = vadd.f32 %v377_v33, %v376_v32  ;;  %v606_v42 = vadd.f32 %v439_v39, %v438_v38  ;;  %v379_v45 = vld [vmem:[%s3546_s22 + $0xa8] sm:$0xff]  ;;  %v440_v50 = vld [vmem:[%s3546_s22 + $0x290] sm:$0xff] }
  0x8d   : > { %589 = vadd.xlane.f32.xlu0 %v588_v35  ;;  %v467_v35 = vld [vmem:[%s3546_s22 + $0x368] sm:$0xff]  ;;  %v378_v44 = vld [vmem:[%s3546_s22 + $0xa0] sm:$0xff]  ;;  %v441_v51 = vld [vmem:[%s3546_s22 + $0x298] sm:$0xff] }
  0x8e   : > { %v648_v37 = vadd.f32 %v467_v35, %v466_v34  ;;  %v516_v48 = vadd.f32 %v379_v45, %v378_v44  ;;  %v609_v54 = vadd.f32 %v441_v51, %v440_v50  ;;  %v380_v56 = vld [vmem:[%s3546_s22 + $0xb0] sm:$0xff]  ;;  %v381_v57 = vld [vmem:[%s3546_s22 + $0xb8] sm:$0xff]  ;;  %v442_v62 = vld [vmem:[%s3546_s22 + $0x2a0] sm:$0xff] }
  0x8f   : > { %v519_v60 = vadd.f32 %v381_v57, %v380_v56  ;;  %v443_v63 = vld [vmem:[%s3546_s22 + $0x2a8] sm:$0xff]  ;;  %v382_v4 = vld [vmem:[%s3546_s22 + $0xc0] sm:$0xff]  ;;  %v444_v10 = vld [vmem:[%s3546_s22 + $0x2b0] sm:$0xff] }
  0x90   : > { %499 = vadd.xlane.f32.xlu1 %v498_v40  ;;  %v408_v40 = vld [vmem:[%s3546_s22 + $0x190] sm:$0xff]  ;;  %v612_v2 = vadd.f32 %v443_v63, %v442_v62  ;;  %v383_v5 = vld [vmem:[%s3546_s22 + $0xc8] sm:$0xff]  ;;  %v445_v11 = vld [vmem:[%s3546_s22 + $0x2b8] sm:$0xff] }
  0x91   : > { %634 = vadd.xlane.f32.xlu0 %v633_v41  ;;  %v409_v41 = vld [vmem:[%s3546_s22 + $0x198] sm:$0xff]  ;;  %v522_v8 = vadd.f32 %v383_v5, %v382_v4  ;;  %v615_v14 = vadd.f32 %v445_v11, %v444_v10  ;;  %v384_v16 = vld [vmem:[%s3546_s22 + $0xd0] sm:$0xff]  ;;  %v446_v22 = vld [vmem:[%s3546_s22 + $0x2c0] sm:$0xff] }
  0x92   : > { %v561_v43 = vadd.f32 %v409_v41, %v408_v40  ;;  %v385_v17 = vld [vmem:[%s3546_s22 + $0xd8] sm:$0xff]  ;;  %v447_v23 = vld [vmem:[%s3546_s22 + $0x2c8] sm:$0xff]  ;;  %v386_v28 = vld [vmem:[%s3546_s22 + $0xe0] sm:$0xff] }
  0x93   : > { %v525_v20 = vadd.f32 %v385_v17, %v384_v16  ;;  %v618_v26 = vadd.f32 %v447_v23, %v446_v22  ;;  %v387_v29 = vld [vmem:[%s3546_s22 + $0xe8] sm:$0xff]  ;;  %v448_v34 = vld [vmem:[%s3546_s22 + $0x2d0] sm:$0xff]  ;;  %v449_v35 = vld [vmem:[%s3546_s22 + $0x2d8] sm:$0xff] }
  0x94   : > { %592 = vadd.xlane.f32.xlu1 %v591_v46  ;;  %v468_v46 = vld [vmem:[%s3546_s22 + $0x370] sm:$0xff]  ;;  %v528_v32 = vadd.f32 %v387_v29, %v386_v28  ;;  %v621_v38 = vadd.f32 %v449_v35, %v448_v34  ;;  %v389_v41 = vld [vmem:[%s3546_s22 + $0xf8] sm:$0xff]  ;;  %v767_v62 = vld [vmem:[#allocation8 + $0xc8] sm:$0xff]  ;;  %v3338_v34 = vmov 0.0  }
  0x95   : > { %547 = vadd.xlane.f32.xlu0 %v546_v47  ;;  %v469_v47 = vld [vmem:[%s3546_s22 + $0x378] sm:$0xff]  ;;  %v388_v40 = vld [vmem:[%s3546_s22 + $0xf0] sm:$0xff]  ;;  %v482_v5 = vld [vmem:[%s3546_s22 + $0x3e0] sm:$0xff]  ;;  %1269 = vmatprep.mubr.f32.mxu0 %v3338_v34 }
  0x96   : > { %v651_v49 = vadd.f32 %v469_v47, %v468_v46  ;;  %v531_v44 = vadd.f32 %v389_v41, %v388_v40  ;;  %v450_v46 = vld [vmem:[%s3546_s22 + $0x2e0] sm:$0xff]  ;;  %v451_v47 = vld [vmem:[%s3546_s22 + $0x2e8] sm:$0xff]  ;;  %v421_v50 = vld [vmem:[%s3546_s22 + $0x1f8] sm:$0xff] }
  0x97   : > { %v772_v51 = vld [vmem:[#allocation8 + $0xf0] sm:$0xff]  ;;  %v453_v57 = vld [vmem:[%s3546_s22 + $0x2f8] sm:$0xff]  ;;  %v762_v10 = vld [vmem:[#allocation8 + $0xa0] sm:$0xff] }
  0x98   : > { %502 = vadd.xlane.f32.xlu1 %v501_v52  ;;  %v410_v52 = vld [vmem:[%s3546_s22 + $0x1a0] sm:$0xff]  ;;  %v452_v56 = vld [vmem:[%s3546_s22 + $0x2f0] sm:$0xff]  ;;  %v765_v4 = vld [vmem:[#allocation8 + $0xb8] sm:$0xff] }
  0x99   : > { %637 = vadd.xlane.f32.xlu0 %v636_v53  ;;  %v411_v53 = vld [vmem:[%s3546_s22 + $0x1a8] sm:$0xff]  ;;  %v627_v63 = vadd.f32 %v453_v57, %v452_v56  ;;  %v757_v16 = vld [vmem:[#allocation8 + $0x78] sm:$0xff]  ;;  %v756_v17 = vld [vmem:[#allocation8 + $0x70] sm:$0xff] }
  0x9a   : > { %v564_v55 = vadd.f32 %v411_v53, %v410_v52  ;;  %v771_v52 = vld [vmem:[#allocation8 + $0xe8] sm:$0xff]  ;;  %v624_v53 = vadd.f32 %v451_v47, %v450_v46  ;;  %v750_v23 = vld [vmem:[#allocation8 + $0x40] sm:$0xff]  ;;  %v745_v29 = vld [vmem:[#allocation8 + $0x18] sm:$0xff] }
  0x9b   : > { %v751_v22 = vld [vmem:[#allocation8 + $0x48] sm:$0xff]  ;;  %v1306_v40 = vld [vmem:[#allocation10 + $0xe0] sm:$0xff]  ;;  %v1305_v41 = vld [vmem:[#allocation10 + $0xd8] sm:$0xff] }
  0x9c   : > { %595 = vadd.xlane.f32.xlu1 %v594_v58  ;;  %v470_v58 = vld [vmem:[%s3546_s22 + $0x380] sm:$0xff]  ;;  %v1301_v47 = vld [vmem:[#allocation10 + $0xb8] sm:$0xff]  ;;  %v1295_v57 = vld [vmem:[#allocation10 + $0x88] sm:$0xff] }
  0x9d   : > { %550 = vadd.xlane.f32.xlu0 %v549_v59  ;;  %v471_v59 = vld [vmem:[%s3546_s22 + $0x388] sm:$0xff]  ;;  %v1302_v46 = vld [vmem:[#allocation10 + $0xc0] sm:$0xff] }
  0x9e   : > { %v654_v61 = vadd.f32 %v471_v59, %v470_v58  ;;  %v769_v58 = vld [vmem:[#allocation8 + $0xd8] sm:$0xff]  ;;  %v480_v59 = vld [vmem:[%s3546_s22 + $0x3d0] sm:$0xff] }
  0xa0   : > { %505 = vadd.xlane.f32.xlu1 %v504_v0  ;;  %v412_v0 = vld [vmem:[%s3546_s22 + $0x1b0] sm:$0xff] }
  0xa1   : > { %640 = vadd.xlane.f32.xlu0 %v639_v1  ;;  %v413_v1 = vld [vmem:[%s3546_s22 + $0x1b8] sm:$0xff] }
  0xa2   : > { %v567_v3 = vadd.f32 %v413_v1, %v412_v0  ;;  %v766_v0 = vld [vmem:[#allocation8 + $0xc0] sm:$0xff] }
  0xa4   : > { %598 = vadd.xlane.f32.xlu1 %v597_v6  ;;  %v472_v6 = vld [vmem:[%s3546_s22 + $0x390] sm:$0xff] }
  0xa5   : > { %553 = vadd.xlane.f32.xlu0 %v552_v7  ;;  %v473_v7 = vld [vmem:[%s3546_s22 + $0x398] sm:$0xff] }
  0xa6   : > { %v657_v9 = vadd.f32 %v473_v7, %v472_v6  ;;  %v483_v6 = vld [vmem:[%s3546_s22 + $0x3e8] sm:$0xff]  ;;  %v764_v7 = vld [vmem:[#allocation8 + $0xb0] sm:$0xff] }
  0xa7   : > { %v672_v11 = vadd.f32 %v483_v6, %v482_v5  ;;  %v1287_v5 = vld [vmem:[#allocation10 + $0x48] sm:$0xff]  ;;  %v1286_v6 = vld [vmem:[#allocation10 + $0x40] sm:$0xff] }
  0xa8   : > { %508 = vadd.xlane.f32.xlu1 %v507_v12  ;;  %v414_v12 = vld [vmem:[%s3546_s22 + $0x1c0] sm:$0xff] }
  0xa9   : > { %643 = vadd.xlane.f32.xlu0 %v642_v13  ;;  %v415_v13 = vld [vmem:[%s3546_s22 + $0x1c8] sm:$0xff] }
  0xaa   : > { %v570_v15 = vadd.f32 %v415_v13, %v414_v12  ;;  %v761_v12 = vld [vmem:[#allocation8 + $0x98] sm:$0xff]  ;;  %v760_v13 = vld [vmem:[#allocation8 + $0x90] sm:$0xff] }
  0xac   : > { %601 = vadd.xlane.f32.xlu1 %v600_v18  ;;  %v474_v18 = vld [vmem:[%s3546_s22 + $0x3a0] sm:$0xff] }
  0xad   : > { %556 = vadd.xlane.f32.xlu0 %v555_v19  ;;  %v475_v19 = vld [vmem:[%s3546_s22 + $0x3a8] sm:$0xff] }
  0xae   : > { %v660_v21 = vadd.f32 %v475_v19, %v474_v18  ;;  %v755_v18 = vld [vmem:[#allocation8 + $0x68] sm:$0xff]  ;;  %v754_v19 = vld [vmem:[#allocation8 + $0x60] sm:$0xff] }
  0xb0   : > { %511 = vadd.xlane.f32.xlu1 %v510_v24  ;;  %v416_v24 = vld [vmem:[%s3546_s22 + $0x1d0] sm:$0xff] }
  0xb1   : > { %646 = vadd.xlane.f32.xlu0 %v645_v25  ;;  %v417_v25 = vld [vmem:[%s3546_s22 + $0x1d8] sm:$0xff] }
  0xb2   : > { %v573_v27 = vadd.f32 %v417_v25, %v416_v24  ;;  %v749_v24 = vld [vmem:[#allocation8 + $0x38] sm:$0xff]  ;;  %v748_v25 = vld [vmem:[#allocation8 + $0x30] sm:$0xff] }
  0xb4   : > { %604 = vadd.xlane.f32.xlu1 %v603_v30  ;;  %v476_v30 = vld [vmem:[%s3546_s22 + $0x3b0] sm:$0xff] }
  0xb5   : > { %559 = vadd.xlane.f32.xlu0 %v558_v31  ;;  %v477_v31 = vld [vmem:[%s3546_s22 + $0x3b8] sm:$0xff] }
  0xb6   : > { %v663_v33 = vadd.f32 %v477_v31, %v476_v30  ;;  %v744_v30 = vld [vmem:[#allocation8 + $0x10] sm:$0xff]  ;;  %v743_v31 = vld [vmem:[#allocation8 + $0x8] sm:$0xff] }
  0xb8   : > { %514 = vadd.xlane.f32.xlu1 %v513_v36  ;;  %v418_v36 = vld [vmem:[%s3546_s22 + $0x1e0] sm:$0xff] }
  0xb9   : > { %649 = vadd.xlane.f32.xlu0 %v648_v37  ;;  %v419_v37 = vld [vmem:[%s3546_s22 + $0x1e8] sm:$0xff] }
  0xba   : > { %v576_v39 = vadd.f32 %v419_v37, %v418_v36  ;;  %v1309_v37 = vld [vmem:[#allocation10 + $0xf8] sm:$0xff] }
  0xbb   : > { %1354 = vmatprep.subr.mxu1 %v1309_v37  ;;  %v1332_v37 = vld [vmem:[#allocation10 + $0x1b0] sm:$0xff] }
  0xbc   : > { %607 = vadd.xlane.f32.xlu1 %v606_v42  ;;  %v478_v42 = vld [vmem:[%s3546_s22 + $0x3c0] sm:$0xff] }
  0xbd   : > { %562 = vadd.xlane.f32.xlu0 %v561_v43  ;;  %v479_v43 = vld [vmem:[%s3546_s22 + $0x3c8] sm:$0xff] }
  0xbe   : > { %v666_v45 = vadd.f32 %v479_v43, %v478_v42  ;;  %v1304_v43 = vld [vmem:[#allocation10 + $0xd0] sm:$0xff] }
  0xc0   : > { %517 = vadd.xlane.f32.xlu1 %v516_v48  ;;  %v773_v48 = vld [vmem:[#allocation8 + $0xf8] sm:$0xff] }
  0xc1   : > { %652 = vadd.xlane.f32.xlu0 %v651_v49  ;;  %v420_v49 = vld [vmem:[%s3546_s22 + $0x1f0] sm:$0xff]  ;;  %1205 = vmatprep.subr.mxu0 %v773_v48 }
  0xc2   : > { %1206 = vmatpush1.msra.mxu0 %v772_v51  ;;  %v1299_v51 = vld [vmem:[#allocation10 + $0xa8] sm:$0xff] }
  0xc3   : > { %1207 = vmatprep.subr.mxu0 %v771_v52  ;;  %v1298_v52 = vld [vmem:[#allocation10 + $0xa0] sm:$0xff] }
  0xc4   : > { %610 = vadd.xlane.f32.xlu1 %v609_v54  ;;  %v770_v54 = vld [vmem:[#allocation8 + $0xe0] sm:$0xff] }
  0xc5   : > { %565 = vadd.xlane.f32.xlu0 %v564_v55  ;;  %v579_v55 = vadd.f32 %v421_v50, %v420_v49  ;;  %1208 = vmatpush1.msra.mxu0 %v770_v54  ;;  %v1300_v49 = vld [vmem:[#allocation10 + $0xb0] sm:$0xff] }
  0xc6   : > { %1209 = vmatprep.subr.mxu0 %v769_v58  ;;  %v1294_v58 = vld [vmem:[#allocation10 + $0x80] sm:$0xff] }
  0xc8   : > { %520 = vadd.xlane.f32.xlu1 %v519_v60  ;;  %v481_v60 = vld [vmem:[%s3546_s22 + $0x3d8] sm:$0xff] }
  0xc9   : > { %655 = vadd.xlane.f32.xlu0 %v654_v61  ;;  %v768_v61 = vld [vmem:[#allocation8 + $0xd0] sm:$0xff]  ;;  %v669_v1 = vadd.f32 %v481_v60, %v480_v59  ;;  %v1293_v59 = vld [vmem:[#allocation10 + $0x78] sm:$0xff] }
  0xca   : > { %1210 = vmatpush1.msra.mxu0 %v768_v61  ;;  %v1292_v61 = vld [vmem:[#allocation10 + $0x70] sm:$0xff] }
  0xcb   : > { %1211 = vmatprep.subr.mxu0 %v767_v62 }
  0xcc   : > { %613 = vadd.xlane.f32.xlu1 %v612_v2  ;;  %v484_v2 = vld [vmem:[%s3546_s22 + $0x3f0] sm:$0xff]  ;;  %1212 = vmatpush1.msra.mxu0 %v766_v0  ;;  %v1290_v0 = vld [vmem:[#allocation10 + $0x60] sm:$0xff] }
  0xcd   : > { %568 = vadd.xlane.f32.xlu0 %v567_v3  ;;  %v485_v3 = vld [vmem:[%s3546_s22 + $0x3f8] sm:$0xff]  ;;  %1213 = vmatprep.subr.mxu0 %v765_v4 }
  0xce   : > { %1214 = vmatpush1.msra.mxu0 %v764_v7  ;;  %v1285_v7 = vld [vmem:[#allocation10 + $0x38] sm:$0xff] }
  0xd0   : > { %523 = vadd.xlane.f32.xlu1 %v522_v8  ;;  %v763_v8 = vld [vmem:[#allocation8 + $0xa8] sm:$0xff] }
  0xd1   : > { %658 = vadd.xlane.f32.xlu0 %v657_v9  ;;  %v675_v9 = vadd.f32 %v485_v3, %v484_v2  ;;  %1215 = vmatprep.subr.mxu0 %v763_v8  ;;  %v1288_v3 = vld [vmem:[#allocation10 + $0x50] sm:$0xff] }
  0xd2   : > { %1216 = vmatpush1.msra.mxu0 %v762_v10 }
  0xd3   : > { %1217 = vmatprep.subr.mxu0 %v761_v12  ;;  %v1282_v12 = vld [vmem:[#allocation10 + $0x20] sm:$0xff] }
  0xd4   : > { %616 = vadd.xlane.f32.xlu1 %v615_v14  ;;  %1218 = vmatpush1.msra.mxu0 %v760_v13  ;;  %v759_v14 = vld [vmem:[#allocation8 + $0x88] sm:$0xff]  ;;  %v1281_v13 = vld [vmem:[#allocation10 + $0x18] sm:$0xff] }
  0xd5   : > { %571 = vadd.xlane.f32.xlu0 %v570_v15  ;;  %1219 = vmatprep.subr.mxu0 %v759_v14  ;;  %v758_v15 = vld [vmem:[#allocation8 + $0x80] sm:$0xff] }
  0xd6   : > { %1220 = vmatpush1.msra.mxu0 %v758_v15  ;;  %v1280_v15 = vld [vmem:[#allocation10 + $0x10] sm:$0xff] }
  0xd7   : > { %1221 = vmatprep.subr.mxu0 %v757_v16 }
  0xd8   : > { %526 = vadd.xlane.f32.xlu1 %v525_v20  ;;  %1222 = vmatpush1.msra.mxu0 %v756_v17  ;;  %v753_v20 = vld [vmem:[#allocation8 + $0x58] sm:$0xff]  ;;  %v1279_v17 = vld [vmem:[#allocation10 + $0x8] sm:$0xff] }
  0xd9   : > { %661 = vadd.xlane.f32.xlu0 %v660_v21  ;;  %1223 = vmatprep.subr.mxu0 %v755_v18  ;;  %v752_v21 = vld [vmem:[#allocation8 + $0x50] sm:$0xff]  ;;  %v1278_v18 = vld [vmem:[#allocation10] sm:$0xff] }
  0xda   : > { %1224 = vmatpush1.msra.mxu0 %v754_v19  ;;  %v1341_v19 = vld [vmem:[#allocation10 + $0x1f8] sm:$0xff] }
  0xdb   : > { %1225 = vmatprep.subr.mxu0 %v753_v20 }
  0xdc   : > { %619 = vadd.xlane.f32.xlu1 %v618_v26  ;;  %1226 = vmatpush1.msra.mxu0 %v752_v21  ;;  %v747_v26 = vld [vmem:[#allocation8 + $0x28] sm:$0xff]  ;;  %v1340_v21 = vld [vmem:[#allocation10 + $0x1f0] sm:$0xff] }
  0xdd   : > { %574 = vadd.xlane.f32.xlu0 %v573_v27  ;;  %1227 = vmatprep.subr.mxu0 %v751_v22  ;;  %v746_v27 = vld [vmem:[#allocation8 + $0x20] sm:$0xff] }
  0xde   : > { %1228 = vmatpush1.msra.mxu0 %v750_v23  ;;  %v1339_v23 = vld [vmem:[#allocation10 + $0x1e8] sm:$0xff] }
  0xdf   : > { %1229 = vmatprep.subr.mxu0 %v749_v24  ;;  %v1338_v24 = vld [vmem:[#allocation10 + $0x1e0] sm:$0xff] }
  0xe0   : > { %529 = vadd.xlane.f32.xlu1 %v528_v32  ;;  %1230 = vmatpush1.msra.mxu0 %v748_v25  ;;  %v1337_v25 = vld [vmem:[#allocation10 + $0x1d8] sm:$0xff] }
  0xe1   : > { %664 = vadd.xlane.f32.xlu0 %v663_v33  ;;  %1231 = vmatprep.subr.mxu0 %v747_v26  ;;  %v742_v33 = vld [vmem:[#allocation8] sm:$0xff] }
  0xe2   : > { %1232 = vmatpush1.msra.mxu0 %v746_v27  ;;  %v1336_v27 = vld [vmem:[#allocation10 + $0x1d0] sm:$0xff] }
  0xe3   : > { %1233 = vmatprep.subr.mxu0 %v745_v29 }
  0xe4   : > { %622 = vadd.xlane.f32.xlu1 %v621_v38  ;;  %1234 = vmatpush1.msra.mxu0 %v744_v30  ;;  %v1308_v38 = vld [vmem:[#allocation10 + $0xf0] sm:$0xff]  ;;  %v1335_v30 = vld [vmem:[#allocation10 + $0x1c8] sm:$0xff] }
  0xe5   : > { %577 = vadd.xlane.f32.xlu0 %v576_v39  ;;  %1235 = vmatprep.subr.mxu0 %v743_v31  ;;  %v1307_v39 = vld [vmem:[#allocation10 + $0xe8] sm:$0xff]  ;;  %v1334_v31 = vld [vmem:[#allocation10 + $0x1c0] sm:$0xff] }
  0xe6   : > { %1236 = vmatpush1.msra.mxu0 %v742_v33  ;;  %1355 = vmatpush1.msra.mxu1 %v1308_v38  ;;  %v1333_v33 = vld [vmem:[#allocation10 + $0x1b8] sm:$0xff] }
  0xe7   : > { %1356 = vmatprep.subr.mxu1 %v1307_v39  ;;  %v1331_v39 = vld [vmem:[#allocation10 + $0x1a8] sm:$0xff] }
  0xe8   : > { %532 = vadd.xlane.f32.xlu1 %v531_v44  ;;  %1357 = vmatpush1.msra.mxu1 %v1306_v40  ;;  %v1330_v40 = vld [vmem:[#allocation10 + $0x1a0] sm:$0xff] }
  0xe9   : > { %667 = vadd.xlane.f32.xlu0 %v666_v45  ;;  %v1303_v45 = vld [vmem:[#allocation10 + $0xc8] sm:$0xff]  ;;  %1358 = vmatprep.subr.mxu1 %v1305_v41  ;;  %v1329_v41 = vld [vmem:[#allocation10 + $0x198] sm:$0xff] }
  0xea   : > { %1359 = vmatpush1.msra.mxu1 %v1304_v43 }
  0xeb   : > { %1360 = vmatprep.subr.mxu1 %v1303_v45  ;;  %v1328_v45 = vld [vmem:[#allocation10 + $0x190] sm:$0xff] }
  0xec   : > { %625 = vadd.xlane.f32.xlu1 %v624_v53  ;;  %1361 = vmatpush1.msra.mxu1 %v1302_v46  ;;  %v1297_v53 = vld [vmem:[#allocation10 + $0x98] sm:$0xff] }
  0xed   : > { %580 = vadd.xlane.f32.xlu0 %v579_v55  ;;  %1362 = vmatprep.subr.mxu1 %v1301_v47  ;;  %v1296_v55 = vld [vmem:[#allocation10 + $0x90] sm:$0xff]  ;;  %v1327_v47 = vld [vmem:[#allocation10 + $0x188] sm:$0xff] }
  0xee   : > { %1363 = vmatpush1.msra.mxu1 %v1300_v49  ;;  %v1326_v49 = vld [vmem:[#allocation10 + $0x180] sm:$0xff] }
  0xef   : > { %1364 = vmatprep.subr.mxu1 %v1299_v51  ;;  %v1325_v51 = vld [vmem:[#allocation10 + $0x178] sm:$0xff] }
  0xf0   : > { %628 = vadd.xlane.f32.xlu1 %v627_v63  ;;  %1365 = vmatpush1.msra.mxu1 %v1298_v52  ;;  %v1291_v63 = vld [vmem:[#allocation10 + $0x68] sm:$0xff] }
  0xf1   : > { %670 = vadd.xlane.f32.xlu0 %v669_v1  ;;  %1366 = vmatprep.subr.mxu1 %v1297_v53  ;;  %v1289_v1 = vld [vmem:[#allocation10 + $0x58] sm:$0xff]  ;;  %v1324_v53 = vld [vmem:[#allocation10 + $0x170] sm:$0xff] }
  0xf2   : > { %1367 = vmatpush1.msra.mxu1 %v1296_v55 }
  0xf3   : > { %1368 = vmatprep.subr.mxu1 %v1295_v57  ;;  %v1323_v57 = vld [vmem:[#allocation10 + $0x168] sm:$0xff] }
  0xf4   : > { %676 = vadd.xlane.f32.xlu1 %v675_v9  ;;  %1369 = vmatpush1.msra.mxu1 %v1294_v58  ;;  %v1284_v9 = vld [vmem:[#allocation10 + $0x30] sm:$0xff]  ;;  %v1322_v58 = vld [vmem:[#allocation10 + $0x160] sm:$0xff] }
  0xf5   : > { %673 = vadd.xlane.f32.xlu0 %v672_v11  ;;  %1370 = vmatprep.subr.mxu1 %v1293_v59  ;;  %v1283_v11 = vld [vmem:[#allocation10 + $0x28] sm:$0xff]  ;;  %v1321_v59 = vld [vmem:[#allocation10 + $0x158] sm:$0xff] }
  0xf6   : > { %1371 = vmatpush1.msra.mxu1 %v1292_v61 }
  0xf7   : > { %1372 = vmatprep.subr.mxu1 %v1291_v63  ;;  %v1320_v63 = vld [vmem:[#allocation10 + $0x150] sm:$0xff] }
  0xf8   : > { %1373 = vmatpush1.msra.mxu1 %v1290_v0 }
  0xf9   : > { %1374 = vmatprep.subr.mxu1 %v1289_v1  ;;  %v1319_v1 = vld [vmem:[#allocation10 + $0x148] sm:$0xff] }
  0xfa   : > { %1375 = vmatpush1.msra.mxu1 %v1288_v3  ;;  %v1318_v3 = vld [vmem:[#allocation10 + $0x140] sm:$0xff] }
  0xfb   : > { %1376 = vmatprep.subr.mxu1 %v1287_v5 }
  0xfc   : > { %1377 = vmatpush1.msra.mxu1 %v1286_v6 }
  0xfd   : > { %1378 = vmatprep.subr.mxu1 %v1285_v7 }
  0xfe   : > { %1379 = vmatpush1.msra.mxu1 %v1284_v9 }
  0xff   : > { %1380 = vmatprep.subr.mxu1 %v1283_v11  ;;  %v776_v11 = vlaneseq }
 0x100   : > { %1381 = vmatpush1.msra.mxu1 %v1282_v12 }
 0x101   : > { %v3688_v28 = vpop.xlane.xlu1 %535  ;;  %1382 = vmatprep.subr.mxu1 %v1281_v13 }
 0x102   : > { %v3690_v32 = vpop.xlane.xlu0 %487  ;;  %1383 = vmatpush1.msra.mxu1 %v1280_v15  ;;  %v851_v15 = vand.u32 127, %v776_v11 }
 0x103   : > { %1384 = vmatprep.subr.mxu1 %v1279_v17 }
 0x104   : > { %1385 = vmatpush1.msra.mxu1 %v1278_v18  ;;  %v3762_v18 = vshrl.u32 %v776_v11, 7 }
 0x105   : > { %v3692_v35 = vpop.xlane.xlu1 %538  ;;  %1386 = vmatprep.subr.mxu1 %v1341_v19 }
 0x106   : > { %v3694_v36 = vpop.xlane.xlu0 %490  ;;  %1387 = vmatpush2.msra.mxu1 %v1340_v21  ;;  %v856_v21 = vadd.s32 4294967288, %v851_v15 }
 0x107   : > { %1388 = vmatprep.subr.mxu1 %v1339_v23  ;;  %v863_v23 = vadd.s32 4294967280, %v851_v15 }
 0x108   : > { %1389 = vmatpush2.msra.mxu1 %v1338_v24  ;;  %v870_v24 = vadd.s32 4294967272, %v851_v15 }
 0x109   : > { %v3696_v42 = vpop.xlane.xlu1 %541  ;;  %1390 = vmatprep.subr.mxu1 %v1337_v25  ;;  %v877_v25 = vadd.s32 4294967264, %v851_v15 }
 0x10a   : > { %v3698_v44 = vpop.xlane.xlu0 %493  ;;  %1391 = vmatpush2.msra.mxu1 %v1336_v27  ;;  %v884_v27 = vadd.s32 4294967256, %v851_v15 }
 0x10b   : > { %1392 = vmatprep.subr.mxu1 %v1335_v30  ;;  %v891_v30 = vadd.s32 4294967248, %v851_v15 }
 0x10c   : > { %1393 = vmatpush2.msra.mxu1 %v1334_v31  ;;  %v898_v31 = vadd.s32 4294967240, %v851_v15 }
 0x10d   : > { %v3700_v48 = vpop.xlane.xlu1 %586  ;;  %1394 = vmatprep.subr.mxu1 %v1333_v33  ;;  %v905_v33 = vadd.s32 4294967232, %v851_v15 }
 0x10e   : > { %v3702_v50 = vpop.xlane.xlu0 %583  ;;  %1395 = vmatpush2.msra.mxu1 %v1332_v37 }
 0x10f   : > { %1396 = vmatprep.subr.mxu1 %v1331_v39  ;;  %v3769_v39 = vsub.s32 %v851_v15, %v3762_v18 }
 0x110   : > { %1397 = vmatpush2.msra.mxu1 %v1330_v40  ;;  %v912_v40 = vadd.s32 4294967224, %v851_v15 }
 0x111   : > { %v3704_v54 = vpop.xlane.xlu1 %544  ;;  %1398 = vmatprep.subr.mxu1 %v1329_v41  ;;  %v919_v41 = vadd.s32 4294967216, %v851_v15 }
 0x112   : > { %v3706_v56 = vpop.xlane.xlu0 %496  ;;  %1399 = vmatpush2.msra.mxu1 %v1328_v45 }
 0x113   : > { %1400 = vmatprep.subr.mxu1 %v1327_v47  ;;  %v926_v47 = vadd.s32 4294967208, %v851_v15 }
 0x114   : > { %1401 = vmatpush2.msra.mxu1 %v1326_v49  ;;  %v3774_v49 = vsub.s32 %v856_v21, %v3762_v18  ;;  %v940_v21 = vadd.s32 4294967192, %v851_v15 }
 0x115   : > { %v3708_v60 = vpop.xlane.xlu1 %631  ;;  %1402 = vmatprep.subr.mxu1 %v1325_v51  ;;  %v3777_v51 = vsub.s32 %v863_v23, %v3762_v18  ;;  %v947_v23 = vadd.s32 4294967184, %v851_v15 }
 0x116   : > { %v3710_v62 = vpop.xlane.xlu0 %589  ;;  %1403 = vmatpush2.msra.mxu1 %v1324_v53  ;;  %v933_v53 = vadd.s32 4294967200, %v851_v15 }
 0x117   : > { %1404 = vmatprep.subr.mxu1 %v1323_v57  ;;  %v3780_v57 = vsub.s32 %v870_v24, %v3762_v18  ;;  %v695_v24 = vmul.f32 0.00390625, %v3692_v35 }
 0x118   : > { %1405 = vmatpush2.msra.mxu1 %v1322_v58  ;;  %v3783_v58 = vsub.s32 %v877_v25, %v3762_v18  ;;  %v3801_v25 = vsub.s32 %v912_v40, %v3762_v18  ;;  %v3815_v35 = vsub.s32 %v933_v53, %v3762_v18  ;;  %v680_v40 = vmul.f32 0.00390625, %v3698_v44 }
 0x119   : > { %v3712_v2 = vpop.xlane.xlu1 %499  ;;  %1406 = vmatprep.subr.mxu1 %v1321_v59  ;;  %v3786_v59 = vsub.s32 %v884_v27, %v3762_v18  ;;  %v3804_v27 = vsub.s32 %v919_v41, %v3762_v18  ;;  %v711_v41 = vmul.f32 0.00390625, %v3700_v48  ;;  %v968_v44 = vrot.slane %v695_v24, %v3774_v49 }
 0x11a   : > { %v3714_v4 = vpop.xlane.xlu0 %634  ;;  %1407 = vmatpush2.msra.mxu1 %v1320_v63  ;;  %v3789_v63 = vsub.s32 %v891_v30, %v3762_v18  ;;  %v3807_v30 = vsub.s32 %v926_v47, %v3762_v18  ;;  %5120 = vst [vmem:[#allocation21_spill] sm:$0xff] %v3815_v35  ;;  %v697_v47 = vmul.f32 0.00390625, %v3704_v54  ;;  %v712_v48 = vmul.f32 0.00390625, %v3710_v62 }
 0x11b   : > { %1408 = vmatprep.subr.mxu1 %v1319_v1  ;;  %v3792_v1 = vsub.s32 %v898_v31, %v3762_v18  ;;  %5117 = vst [vmem:[#allocation18_spill] sm:$0xff] %v3804_v27  ;;  %v710_v27 = vmul.f32 0.00390625, %v3702_v50  ;;  %v682_v50 = vmul.f32 0.00390625, %v3712_v2  ;;  %v954_v54 = vadd.s32 4294967176, %v851_v15 }
 0x11c   : > { %1409 = vmatpush2.msra.mxu1 %v1318_v3  ;;  %v3795_v3 = vsub.s32 %v905_v33, %v3762_v18  ;;  %5118 = vst [vmem:[#allocation19_spill] sm:$0xff] %v3807_v30  ;;  %v694_v33 = vmul.f32 0.00390625, %v3688_v28  ;;  %v678_v30 = vmul.f32 0.00390625, %v3690_v32  ;;  %v681_v28 = vmul.f32 0.00390625, %v3706_v56 }
 0x11d   : > { %v3716_v8 = vpop.xlane.xlu1 %592  ;;  %v1043_v24 = vrot.slane %v710_v27, %v3769_v39  ;;  %v978_v62 = vrot.slane %v697_v47, %v3780_v57 }
 0x11e   : > { %v3718_v10 = vpop.xlane.xlu0 %547  ;;  %v964_v32 = vrot.slane %v694_v33, %v3769_v39  ;;  %v855_v2 = vrot.slane %v678_v30, %v3769_v39  ;;  %v874_v15 = vrot.slane %v681_v28, %v3780_v57  ;;  %v726_v33 = vmul.f32 0.00390625, %v3708_v60 }
 0x11f   : > { %v698_v27 = vmul.f32 0.00390625, %v3718_v10 }
 0x121   : > { %v3720_v14 = vpop.xlane.xlu1 %502 }
 0x122   : > { %v3722_v16 = vpop.xlane.xlu0 %637 }
 0x125   : > { %v3724_v20 = vpop.xlane.xlu1 %595 }
 0x126   : > { %v3726_v22 = vpop.xlane.xlu0 %550 }
 0x129   : > { %v3728_v26 = vpop.xlane.xlu1 %505 }
 0x12a   : > { %v3730_v29 = vpop.xlane.xlu0 %640 }
 0x12d   : > { %v3732_v34 = vpop.xlane.xlu1 %598 }
 0x12e   : > { %v3734_v38 = vpop.xlane.xlu0 %553 }
 0x131   : > { %v3736_v43 = vpop.xlane.xlu1 %508 }
 0x132   : > { %v3738_v46 = vpop.xlane.xlu0 %643 }
 0x135   : > { %v3740_v52 = vpop.xlane.xlu1 %601 }
 0x136   : > { %v3742_v55 = vpop.xlane.xlu0 %556 }
 0x139   : > { %v3744_v61 = vpop.xlane.xlu1 %511 }
 0x13a   : > { %v3746_v0 = vpop.xlane.xlu0 %646 }
 0x13d   : > { %v3748_v5 = vpop.xlane.xlu1 %604 }
 0x13e   : > { %v3750_v6 = vpop.xlane.xlu0 %559 }
 0x141   : > { %v3752_v7 = vpop.xlane.xlu1 %514 }
 0x142   : > { %v3754_v9 = vpop.xlane.xlu0 %649 }
 0x145   : > { %v3756_v12 = vpop.xlane.xlu1 %607 }
 0x146   : > { %v3758_v13 = vpop.xlane.xlu0 %562 }
 0x149   : > { %v3760_v17 = vpop.xlane.xlu1 %517 }
 0x14a   : > { %v3764_v19 = vpop.xlane.xlu0 %652 }
 0x14d   : > { %v3766_v37 = vpop.xlane.xlu1 %610 }
 0x14e   : > { %v3771_v45 = vpop.xlane.xlu0 %565 }
 0x14f   : > { %5115 = vst [vmem:[#allocation16_spill] sm:$0xff] %v3771_v45  ;;  %v679_v45 = vmul.f32 0.00390625, %v3694_v36  ;;  %v3826_v36 = vsub.s32 %v940_v21, %v3762_v18  ;;  %v727_v21 = vmul.f32 0.00390625, %v3714_v4  ;;  %v969_v4 = vsel %vm861_vm0, %v968_v44, %v964_v32 }
 0x150   : > { %v1122_v32 = vrot.slane %v726_v33, %v3769_v39  ;;  %v699_v39 = vmul.f32 0.00390625, %v3726_v22  ;;  %v685_v33 = vmul.f32 0.00390625, %v3736_v43  ;;  %v716_v22 = vmul.f32 0.00390625, %v3740_v52 }
 0x151   : > { %v3797_v11 = vpop.xlane.xlu1 %520  ;;  %5121 = vst [vmem:[#allocation22_spill] sm:$0xff] %v3826_v36  ;;  %v860_v56 = vrot.slane %v679_v45, %v3774_v49  ;;  %v713_v45 = vmul.f32 0.00390625, %v3716_v8  ;;  %v1126_v60 = vrot.slane %v727_v21, %v3774_v49  ;;  %v3860_v8 = vsub.s32 %v954_v54, %v3762_v18 }
 0x152   : > { %5116 = vst [vmem:[#allocation17_spill] sm:$0xff] %v3797_v11  ;;  %v3809_v31 = vpop.xlane.xlu0 %655  ;;  %v696_v11 = vmul.f32 0.00390625, %v3696_v42  ;;  %v3829_v42 = vsub.s32 %v947_v23, %v3762_v18  ;;  %v867_v23 = vrot.slane %v680_v40, %v3777_v51  ;;  %v1052_v40 = vrot.slane %v712_v48, %v3777_v51 }
 0x153   : > { %5119 = vst [vmem:[#allocation20_spill] sm:$0xff] %v3809_v31  ;;  %v862_v30 = vsel %vm861_vm0, %v860_v56, %v855_v2  ;;  %v983_v21 = vrot.slane %v698_v27, %v3783_v58  ;;  %v715_v2 = vmul.f32 0.00390625, %v3732_v34  ;;  %v701_v34 = vmul.f32 0.00390625, %v3742_v55 }
 0x154   : > { %5122 = vst [vmem:[#allocation23_spill] sm:$0xff] %v3829_v42  ;;  %v973_v35 = vrot.slane %v696_v11, %v3777_v51  ;;  %v1047_v42 = vrot.slane %v711_v41, %v3774_v49  ;;  %v881_v41 = vrot.slane %v682_v50, %v3783_v58  ;;  %v869_v36 = vsel %vm868_vm1, %v867_v23, %v862_v30 }
 0x155   : > { %v3823_v31 = vpop.xlane.xlu1 %613  ;;  %v683_v50 = vmul.f32 0.00390625, %v3720_v14  ;;  %v876_v10 = vsel %vm875_vm2, %v874_v15, %v869_v36  ;;  %v728_v49 = vmul.f32 0.00390625, %v3722_v16  ;;  %v714_v14 = vmul.f32 0.00390625, %v3724_v20 }
 0x156   : > { %v3834_v53 = vpop.xlane.xlu0 %568  ;;  %v974_v28 = vsel %vm868_vm1, %v973_v35, %v969_v4  ;;  %v1048_v44 = vsel %vm861_vm0, %v1047_v42, %v1043_v24  ;;  %v1057_v35 = vrot.slane %v713_v45, %v3780_v57  ;;  %v883_v42 = vsel %vm882_vm3, %v881_v41, %v876_v10 }
 0x157   : > { %v979_v48 = vsel %vm875_vm2, %v978_v62, %v974_v28  ;;  %v1053_v56 = vsel %vm868_vm1, %v1052_v40, %v1048_v44  ;;  %v1127_v36 = vsel %vm861_vm0, %v1126_v60, %v1122_v32  ;;  %v684_v24 = vmul.f32 0.00390625, %v3728_v26 }
 0x158   : > { %v729_v16 = vmul.f32 0.00390625, %v3730_v29  ;;  %v888_v62 = vrot.slane %v683_v50, %v3786_v59  ;;  %v700_v15 = vmul.f32 0.00390625, %v3734_v38  ;;  %v1058_v20 = vsel %vm875_vm2, %v1057_v35, %v1053_v56 }
 0x159   : > { %v3848_v11 = vpop.xlane.xlu1 %523  ;;  %v1131_v45 = vrot.slane %v728_v49, %v3777_v51  ;;  %v730_v4 = vmul.f32 0.00390625, %v3738_v46  ;;  %v984_v29 = vsel %vm882_vm3, %v983_v21, %v979_v48  ;;  %v1062_v40 = vrot.slane %v714_v14, %v3783_v58 }
 0x15a   : > { %v3854_v47 = vpop.xlane.xlu0 %658  ;;  %v686_v38 = vmul.f32 0.00390625, %v3744_v61  ;;  %v988_v43 = vrot.slane %v699_v39, %v3786_v59  ;;  %v895_v51 = vrot.slane %v684_v24, %v3789_v63  ;;  %v1136_v46 = vrot.slane %v729_v16, %v3780_v57 }
 0x15b   : > { %v731_v52 = vmul.f32 0.00390625, %v3746_v0  ;;  %v890_v27 = vsel %vm889_vm4, %v888_v62, %v883_v42  ;;  %v1067_v30 = vrot.slane %v715_v2, %v3786_v59  ;;  %v993_v28 = vrot.slane %v700_v15, %v3789_v63 }
 0x15c   : > { %v902_v55 = vrot.slane %v685_v33, %v3792_v1  ;;  %v1132_v61 = vsel %vm868_vm1, %v1131_v45, %v1127_v36  ;;  %v1141_v60 = vrot.slane %v730_v4, %v3783_v58  ;;  %v1072_v44 = vrot.slane %v716_v22, %v3789_v63 }
 0x15d   : > { %v3870_v54 = vpop.xlane.xlu1 %616  ;;  %v717_v48 = vmul.f32 0.00390625, %v3748_v5  ;;  %v1063_v0 = vsel %vm882_vm3, %v1062_v40, %v1058_v20  ;;  %v998_v50 = vrot.slane %v701_v34, %v3792_v1  ;;  %v909_v10 = vrot.slane %v686_v38, %v3795_v3  ;;  %v5123_v40 = vld [vmem:[#allocation16_spill] sm:$0xff]  ;;  %v5124_v38 = vld [vmem:[#allocation17_spill] sm:$0xff] }
 0x15e   : > { %v3876_v23 = vpop.xlane.xlu0 %571  ;;  %v702_v32 = vmul.f32 0.00390625, %v3750_v6  ;;  %v989_v49 = vsel %vm889_vm4, %v988_v43, %v984_v29  ;;  %v897_v58 = vsel %vm896_vm5, %v895_v51, %v890_v27  ;;  %v1137_v56 = vsel %vm875_vm2, %v1136_v46, %v1132_v61  ;;  %v5125_v46 = vld [vmem:[#allocation20_spill] sm:$0xff]  ;;  %v5126_v61 = vld [vmem:[#allocation18_spill] sm:$0xff] }
 0x15f   : > { %v1146_v5 = vrot.slane %v731_v52, %v3786_v59  ;;  %v1068_v42 = vsel %vm889_vm4, %v1067_v30, %v1063_v0  ;;  %v994_v21 = vsel %vm896_vm5, %v993_v28, %v989_v49  ;;  %v904_v14 = vsel %vm903_vm6, %v902_v55, %v897_v58 }
 0x160   : > { %v687_v36 = vmul.f32 0.00390625, %v3752_v7  ;;  %v1142_v6 = vsel %vm882_vm3, %v1141_v60, %v1137_v56  ;;  %v1073_v39 = vsel %vm896_vm5, %v1072_v44, %v1068_v42  ;;  %v1077_v24 = vrot.slane %v717_v48, %v3792_v1  ;;  %v5128_v56 = vld [vmem:[#allocation21_spill] sm:$0xff] }
 0x161   : > { %v3890_v26 = vpop.xlane.xlu1 %526  ;;  %v732_v16 = vmul.f32 0.00390625, %v3754_v9  ;;  %v999_v59 = vsel %vm903_vm6, %v998_v50, %v994_v21  ;;  %v911_v2 = vsel %vm910_vm7, %v909_v10, %v904_v14  ;;  %v1003_v15 = vrot.slane %v702_v32, %v3795_v3  ;;  %v5127_v50 = vld [vmem:[#allocation19_spill] sm:$0xff] }
 0x162   : > { %v3896_v41 = vpop.xlane.xlu0 %661  ;;  %v718_v7 = vmul.f32 0.00390625, %v3756_v12  ;;  %v1147_v20 = vsel %vm889_vm4, %v1146_v5, %v1142_v6  ;;  %v703_v45 = vmul.f32 0.00390625, %v3758_v13  ;;  %v688_v4 = vmul.f32 0.00390625, %v3760_v17 }
 0x163   : > { %v733_v9 = vmul.f32 0.00390625, %v3764_v19  ;;  %v916_v22 = vrot.slane %v687_v36, %v3801_v25  ;;  %v719_v29 = vmul.f32 0.00390625, %v3766_v37  ;;  %v704_v34 = vmul.f32 0.00390625, %v5123_v40 }
 0x164   : > { %v689_v43 = vmul.f32 0.00390625, %v5124_v38  ;;  %v1078_v12 = vsel %vm903_vm6, %v1077_v24, %v1073_v39  ;;  %v1151_v51 = vrot.slane %v732_v16, %v3789_v63  ;;  %v734_v52 = vmul.f32 0.00390625, %v5125_v46 }
 0x165   : > { %v3910_v57 = vpop.xlane.xlu1 %619  ;;  %v720_v13 = vmul.f32 0.00390625, %v3823_v31  ;;  %v1004_v19 = vsel %vm910_vm7, %v1003_v15, %v999_v59  ;;  %v1082_v27 = vrot.slane %v718_v7, %v3795_v3  ;;  %v705_v30 = vmul.f32 0.00390625, %v3834_v53 }
 0x166   : > { %v3916_v35 = vpop.xlane.xlu0 %574  ;;  %v690_v37 = vmul.f32 0.00390625, %v3848_v11  ;;  %v1008_v55 = vrot.slane %v703_v45, %v3801_v25  ;;  %v923_v60 = vrot.slane %v688_v4, %v5126_v61  ;;  %v1156_v63 = vrot.slane %v733_v9, %v3792_v1 }
 0x167   : > { %v735_v44 = vmul.f32 0.00390625, %v3854_v47  ;;  %v918_v31 = vsel %vm917_vm8, %v916_v22, %v911_v2  ;;  %v1087_v48 = vrot.slane %v719_v29, %v3801_v25  ;;  %v1013_v0 = vrot.slane %v704_v34, %v5126_v61  ;;  %v5129_v34 = vld [vmem:[#allocation22_spill] sm:$0xff] }
 0x168   : > { %v930_v10 = vrot.slane %v689_v43, %v5127_v50  ;;  %v1152_v53 = vsel %vm896_vm5, %v1151_v51, %v1147_v20  ;;  %v1161_v11 = vrot.slane %v734_v52, %v3795_v3  ;;  %v1092_v32 = vrot.slane %v720_v13, %v5126_v61 }
 0x169   : > { %v3930_v62 = vpop.xlane.xlu1 %529  ;;  %v721_v49 = vmul.f32 0.00390625, %v3870_v54  ;;  %v1083_v47 = vsel %vm910_vm7, %v1082_v27, %v1078_v12  ;;  %v1018_v58 = vrot.slane %v705_v30, %v5127_v50  ;;  %v937_v5 = vrot.slane %v690_v37, %v5128_v56 }
 0x16a   : > { %v3936_v33 = vpop.xlane.xlu0 %664  ;;  %v706_v42 = vmul.f32 0.00390625, %v3876_v23  ;;  %v1009_v14 = vsel %vm917_vm8, %v1008_v55, %v1004_v19  ;;  %v925_v36 = vsel %vm924_vm9, %v923_v60, %v918_v31  ;;  %v1157_v3 = vsel %vm903_vm6, %v1156_v63, %v1152_v53 }
 0x16b   : > { %v1166_v6 = vrot.slane %v735_v44, %v3801_v25  ;;  %v1088_v54 = vsel %vm917_vm8, %v1087_v48, %v1083_v47  ;;  %v1014_v39 = vsel %vm924_vm9, %v1013_v0, %v1009_v14  ;;  %v932_v24 = vsel %vm931_vm10, %v930_v10, %v925_v36 }
 0x16c   : > { %v691_v16 = vmul.f32 0.00390625, %v3890_v26  ;;  %v1162_v59 = vsel %vm910_vm7, %v1161_v11, %v1157_v3  ;;  %v1093_v23 = vsel %vm924_vm9, %v1092_v32, %v1088_v54  ;;  %v1097_v2 = vrot.slane %v721_v49, %v5127_v50 }
 0x16d   : > { %v623_v17 = vpop.xlane.xlu1 %622  ;;  %v722_v15 = vmul.f32 0.00390625, %v3910_v57  ;;  %v1019_v20 = vsel %vm931_vm10, %v1018_v58, %v1014_v39  ;;  %v939_v25 = vsel %vm938_vm11, %v937_v5, %v932_v24  ;;  %v1023_v45 = vrot.slane %v706_v42, %v5128_v56 }
 0x16e   : > { %v578_v28 = vpop.xlane.xlu0 %577  ;;  %v707_v4 = vmul.f32 0.00390625, %v3916_v35  ;;  %v1167_v26 = vsel %vm917_vm8, %v1166_v6, %v1162_v59  ;;  %v736_v22 = vmul.f32 0.00390625, %v3896_v41  ;;  %v723_v29 = vmul.f32 0.00390625, %v623_v17 }
 0x16f   : > { %v708_v40 = vmul.f32 0.00390625, %v578_v28  ;;  %v944_v57 = vrot.slane %v691_v16, %v5129_v34  ;;  %v737_v38 = vmul.f32 0.00390625, %v3936_v33  ;;  %v1098_v51 = vsel %vm931_vm10, %v1097_v2, %v1093_v23  ;;  %v5130_v28 = vld [vmem:[#allocation23_spill] sm:$0xff] }
 0x170   : > { %v1102_v35 = vrot.slane %v722_v15, %v5128_v56  ;;  %v692_v46 = vmul.f32 0.00390625, %v3930_v62  ;;  %vm1200_vm0 = vcmask 1042434   ;;  %v1024_v41 = vsel %vm938_vm11, %v1023_v45, %v1019_v20  ;;  %v1316_v20 = vld [vmem:[#allocation10 + $0x130] sm:$0xff]  ;;  %v1314_v45 = vld [vmem:[#allocation10 + $0x120] sm:$0xff] }
 0x171   : > { %v533_v1 = vpop.xlane.xlu1 %532  ;;  %v1028_v17 = vrot.slane %v707_v4, %v5129_v34  ;;  %v1171_v33 = vrot.slane %v736_v22, %v5126_v61  ;;  %v1107_v37 = vrot.slane %v723_v29, %v5129_v34  ;;  %v1033_v55 = vrot.slane %v708_v40, %v5130_v28  ;;  %v1313_v4 = vld [vmem:[#allocation10 + $0x118] sm:$0xff]  ;;  %v1310_v22 = vld [vmem:[#allocation10 + $0x100] sm:$0xff] }
 0x172   : > { %v668_v21 = vpop.xlane.xlu0 %667  ;;  %v693_v19 = vmul.f32 0.00390625, %v533_v1  ;;  %v946_v63 = vsel %vm945_vm12, %v944_v57, %v939_v25  ;;  %v1176_v62 = vrot.slane %v737_v38, %v5127_v50  ;;  %v1103_v48 = vsel %vm938_vm11, %v1102_v35, %v1098_v51  ;;  %v1315_v25 = vld [vmem:[#allocation10 + $0x128] sm:$0xff]  ;;  %v774_v40 = vld [vmem:[%s4980_s4] sm:$0x3] }
 0x173   : > { %v738_v52 = vmul.f32 0.00390625, %v668_v21  ;;  %v951_v0 = vrot.slane %v692_v46, %v5130_v28  ;;  %v1029_v11 = vsel %vm945_vm12, %v1028_v17, %v1024_v41  ;;  %v1172_v47 = vsel %vm924_vm9, %v1171_v33, %v1167_v26  ;;  %v1311_v26 = vld [vmem:[#allocation10 + $0x108] sm:$0xff] }
 0x174   : > { %v958_v32 = vrot.slane %v693_v19, %v3860_v8  ;;  %v1108_v58 = vsel %vm945_vm12, %v1107_v37, %v1103_v48  ;;  %v1034_v5 = vsel %vm952_vm13, %v1033_v55, %v1029_v11  ;;  %vm1202_vm1 = vcmask 1043459  }
 0x175   : > { %v626_v7 = vpop.xlane.xlu1 %625  ;;  %v1181_v10 = vrot.slane %v738_v52, %v5128_v56  ;;  %v1177_v56 = vsel %vm931_vm10, %v1176_v62, %v1172_v47  ;;  %v953_v3 = vsel %vm952_vm13, %v951_v0, %v946_v63  ;;  %v4027_v29 = vsub.s32 0, %v3762_v18 }
 0x176   : > { %v581_v9 = vpop.xlane.xlu0 %580  ;;  %v724_v43 = vmul.f32 0.00390625, %v626_v7  ;;  %v960_v16 = vsel %vm959_vm14, %v958_v32, %v953_v3  ;;  %v1317_v7 = vld [vmem:[#allocation10 + $0x138] sm:$0xff]  ;;  %v1573_v48 = vsub.s32 2, %v3762_v18  ;;  %v1640_v0 = vsub.s32 3, %v3762_v18 }
 0x177   : > { %v709_v12 = vmul.f32 0.00390625, %v581_v9  ;;  %v1182_v6 = vsel %vm938_vm11, %v1181_v10, %v1177_v56  ;;  %1410 = vmatprep.subr.mxu1 %v1317_v7  ;;  %v1312_v9 = vld [vmem:[#allocation10 + $0x110] sm:$0xff]  ;;  %v779_v57 = vrot.slane %v774_v40, %v4027_v29 }
 0x178   : > { %v1112_v44 = vrot.slane %v724_v43, %v5130_v28  ;;  %1411 = vmatpush2.msra.mxu1 %v1316_v20 }
 0x179   : > { %v629_v13 = vpop.xlane.xlu1 %628  ;;  %v1038_v31 = vrot.slane %v709_v12, %v3860_v8  ;;  %1412 = vmatprep.subr.mxu1 %v1315_v25 }
 0x17a   : > { %v725_v27 = vmul.f32 0.00390625, %v629_v13  ;;  %v671_v30 = vpop.xlane.xlu0 %670  ;;  %v1113_v21 = vsel %vm952_vm13, %v1112_v44, %v1108_v58  ;;  %1413 = vmatpush2.msra.mxu1 %v1314_v45  ;;  %v1342_v13 = vld [vmem:[%s4982_s6] sm:$0x3] }
 0x17b   : > { %v739_v60 = vmul.f32 0.00390625, %v671_v30  ;;  %v1039_v36 = vsel %vm959_vm14, %v1038_v31, %v1034_v5  ;;  %1414 = vmatprep.subr.mxu1 %v1313_v4  ;;  %v1347_v41 = vrot.slane %v1342_v13, %v4027_v29 }
 0x17c   : > { %v1117_v61 = vrot.slane %v725_v27, %v3860_v8  ;;  %v1199_v23 = vsel %vm1198_vm15, %v1039_v36, %v960_v16  ;;  %1415 = vmatpush2.msra.mxu1 %v1312_v9 }
 0x17d   : > { %v677_v53 = vpop.xlane.xlu1 %676  ;;  %v1186_v49 = vrot.slane %v739_v60, %v5129_v34  ;;  %1416 = vmatprep.subr.mxu1 %v1311_v26  ;;  %v4033_v34 = vsub.s32 1, %v3762_v18 }
 0x17e   : > { %v674_v50 = vpop.xlane.xlu0 %673  ;;  %v741_v1 = vmul.f32 0.00390625, %v677_v53  ;;  %v1118_v39 = vsel %vm959_vm14, %v1117_v61, %v1113_v21  ;;  %1417 = vmatpush2.msra.mxu1 %v1310_v22 }
 0x17f   : > { %v740_v42 = vmul.f32 0.00390625, %v674_v50  ;;  %v1187_v24 = vsel %vm945_vm12, %v1186_v49, %v1182_v6  ;;  %v1201_v2 = vsel %vm1200_vm0, %v1118_v39, %v1199_v23  ;;  %v783_v38 = vrot.slane %v774_v40, %v4033_v34 }
 0x180   : > { %v1196_v14 = vrot.slane %v741_v1, %v3860_v8  ;;  %v1351_v17 = vrot.slane %v1342_v13, %v4033_v34 }
 0x181   : > { %v1191_v54 = vrot.slane %v740_v42, %v5130_v28 }
 0x183   : > { %v1192_v59 = vsel %vm952_vm13, %v1191_v54, %v1187_v24 }
 0x184   : > { %v1197_v8 = vsel %vm959_vm14, %v1196_v14, %v1192_v59 }
 0x185   : > { %v1203_v15 = vsel %vm1202_vm1, %v1197_v8, %v1201_v2 }
 0x186   : > { %1270 = vmatmul.mubr.f32.vlgmr.msra.gmra.mxu0 %v1203_v15 }
 0x246   : > { %v1271_v43 = vpop.f32.mrf.mxu0 }
 0x247   : > { %v1272_v12 = vadd.f32 %v1271_v43, %v779_v57 }
 0x248   : > { %v1273_v51 = vpop.f32.mrf.mxu0 }
 0x249   : > { %v1274_v35 = vadd.f32 %v1273_v51, %v783_v38  ;;  %v1276_v52 = vmax.f32 %v1272_v12, 0.0 }
 0x24b   : > { %v1277_v46 = vmax.f32 %v1274_v35, 0.0 }
 0x24d   : > { %1418 = vmatprep.mubr.f32.mxu1 %v1277_v46 }
 0x24e   : > { %1419 = vmatmul.mubr.f32.vlgmr.msra.gmra.mxu1 %v1276_v52 }
 0x30e   : > { %v1420_v19 = vpop.f32.mrf.mxu1 }
 0x30f   : > { %v1421_v27 = vadd.f32 %v1420_v19, %v1347_v41 }
 0x310   : > { %v1422_v30 = vpop.f32.mrf.mxu1 }
 0x311   : > { %v2821_v33 = vmul.f32 -1.442695, %v1421_v27  ;;  %v1423_v37 = vadd.f32 %v1422_v30, %v1351_v17 }
 0x313   : > { %2925 = vpow2.f32 %v2821_v33  ;;  %v2822_v28 = vmul.f32 -1.442695, %v1423_v37 }
 0x315   : > { %2927 = vpow2.f32 %v2822_v28 }
 0x320   : > { %v2926_v55 = vpop.eup %2925 }
 0x321   : > { %v1431_v60 = vadd.f32 1.0, %v2926_v55 }
 0x322   : > { %v2928_v63 = vpop.eup %2927 }
 0x323   : > { %2929 = vrcp.f32 %v1431_v60  ;;  %v1432_v62 = vadd.f32 1.0, %v2928_v63 }
 0x325   : > { %2931 = vrcp.f32 %v1432_v62 }
 0x330   : > { %v2930_v44 = vpop.eup %2929 }
 0x331   : > { %v1440_v31 = vrot.slane %v2930_v44, %v4027_v29  ;;  %v1507_v18 = vrot.slane %v2930_v44, %v4033_v34  ;;  %v1574_v11 = vrot.slane %v2930_v44, %v1573_v48  ;;  %v1641_v32 = vrot.slane %v2930_v44, %v1640_v0 }
 0x332   : > { %v4045_v10 = vpop.eup %2931 }
 0x333   : > { %v4048_v61 = vrot.slane %v4045_v10, %v1573_v48  ;;  %v4051_v53 = vrot.slane %v4045_v10, %v1640_v0  ;;  %1446 = vbcast.lane.b32.xlu1 %v1440_v31, 264  ;;  %1442 = vbcast.lane.b32.xlu0 %v1440_v31, 256  ;;  %v1996_v5 = vrot.slane %v4045_v10, %v4027_v29 }
 0x334   : > { %v2063_v7 = vrot.slane %v4045_v10, %v4033_v34 }
 0x337   : > { %1450 = vbcast.lane.b32.xlu1 %v1440_v31, 272  ;;  %1458 = vbcast.lane.b32.xlu0 %v1440_v31, 288 }
 0x33b   : > { %1454 = vbcast.lane.b32.xlu1 %v1440_v31, 280  ;;  %1466 = vbcast.lane.b32.xlu0 %v1440_v31, 304 }
 0x33f   : > { %1462 = vbcast.lane.b32.xlu1 %v1440_v31, 296  ;;  %1474 = vbcast.lane.b32.xlu0 %v1440_v31, 320 }
 0x343   : > { %1470 = vbcast.lane.b32.xlu1 %v1440_v31, 312  ;;  %1482 = vbcast.lane.b32.xlu0 %v1440_v31, 336 }
 0x347   : > { %1478 = vbcast.lane.b32.xlu1 %v1440_v31, 328  ;;  %1490 = vbcast.lane.b32.xlu0 %v1440_v31, 352 }
 0x34b   : > { %1486 = vbcast.lane.b32.xlu1 %v1440_v31, 344  ;;  %1498 = vbcast.lane.b32.xlu0 %v1440_v31, 368 }
 0x34f   : > { %1494 = vbcast.lane.b32.xlu1 %v1440_v31, 360  ;;  %1509 = vbcast.lane.b32.xlu0 %v1507_v18, 256 }
 0x353   : > { %1502 = vbcast.lane.b32.xlu1 %v1440_v31, 376  ;;  %1517 = vbcast.lane.b32.xlu0 %v1507_v18, 272 }
 0x357   : > { %1513 = vbcast.lane.b32.xlu1 %v1507_v18, 264  ;;  %1525 = vbcast.lane.b32.xlu0 %v1507_v18, 288 }
 0x35b   : > { %1521 = vbcast.lane.b32.xlu1 %v1507_v18, 280  ;;  %1533 = vbcast.lane.b32.xlu0 %v1507_v18, 304 }
 0x35f   : > { %1529 = vbcast.lane.b32.xlu1 %v1507_v18, 296  ;;  %1541 = vbcast.lane.b32.xlu0 %v1507_v18, 320 }
 0x363   : > { %1537 = vbcast.lane.b32.xlu1 %v1507_v18, 312  ;;  %1549 = vbcast.lane.b32.xlu0 %v1507_v18, 336 }
 0x367   : > { %1545 = vbcast.lane.b32.xlu1 %v1507_v18, 328  ;;  %1557 = vbcast.lane.b32.xlu0 %v1507_v18, 352 }
 0x36b   : > { %1553 = vbcast.lane.b32.xlu1 %v1507_v18, 344  ;;  %1565 = vbcast.lane.b32.xlu0 %v1507_v18, 368 }
 0x36f   : > { %1561 = vbcast.lane.b32.xlu1 %v1507_v18, 360  ;;  %1576 = vbcast.lane.b32.xlu0 %v1574_v11, 256 }
 0x373   : > { %1569 = vbcast.lane.b32.xlu1 %v1507_v18, 376  ;;  %1584 = vbcast.lane.b32.xlu0 %v1574_v11, 272 }
 0x377   : > { %1580 = vbcast.lane.b32.xlu1 %v1574_v11, 264  ;;  %1592 = vbcast.lane.b32.xlu0 %v1574_v11, 288 }
 0x37b   : > { %1588 = vbcast.lane.b32.xlu1 %v1574_v11, 280  ;;  %1600 = vbcast.lane.b32.xlu0 %v1574_v11, 304 }
 0x37f   : > { %1596 = vbcast.lane.b32.xlu1 %v1574_v11, 296  ;;  %1608 = vbcast.lane.b32.xlu0 %v1574_v11, 320 }
 0x383   : > { %1604 = vbcast.lane.b32.xlu1 %v1574_v11, 312  ;;  %1616 = vbcast.lane.b32.xlu0 %v1574_v11, 336 }
 0x387   : > { %1612 = vbcast.lane.b32.xlu1 %v1574_v11, 328  ;;  %1624 = vbcast.lane.b32.xlu0 %v1574_v11, 352 }
 0x38b   : > { %1620 = vbcast.lane.b32.xlu1 %v1574_v11, 344  ;;  %1632 = vbcast.lane.b32.xlu0 %v1574_v11, 368 }
 0x38f   : > { %1628 = vbcast.lane.b32.xlu1 %v1574_v11, 360  ;;  %1643 = vbcast.lane.b32.xlu0 %v1641_v32, 256 }
 0x393   : > { %1636 = vbcast.lane.b32.xlu1 %v1574_v11, 376  ;;  %1651 = vbcast.lane.b32.xlu0 %v1641_v32, 272 }
 0x397   : > { %1647 = vbcast.lane.b32.xlu1 %v1641_v32, 264  ;;  %1659 = vbcast.lane.b32.xlu0 %v1641_v32, 288 }
 0x39b   : > { %1655 = vbcast.lane.b32.xlu1 %v1641_v32, 280  ;;  %1667 = vbcast.lane.b32.xlu0 %v1641_v32, 304 }
 0x39f   : > { %1663 = vbcast.lane.b32.xlu1 %v1641_v32, 296  ;;  %1675 = vbcast.lane.b32.xlu0 %v1641_v32, 320 }
 0x3a3   : > { %1671 = vbcast.lane.b32.xlu1 %v1641_v32, 312  ;;  %1683 = vbcast.lane.b32.xlu0 %v1641_v32, 336 }
 0x3a5   : > { %v4054_v49 = vpop.permute.xlu1 %1446  ;;  %v4056_v50 = vpop.permute.xlu0 %1442 }
 0x3a7   : > { %1679 = vbcast.lane.b32.xlu1 %v1641_v32, 328  ;;  %1691 = vbcast.lane.b32.xlu0 %v1641_v32, 352 }
 0x3a9   : > { %v4058_v1 = vpop.permute.xlu1 %1450  ;;  %v4060_v47 = vpop.permute.xlu0 %1458 }
 0x3ab   : > { %1687 = vbcast.lane.b32.xlu1 %v1641_v32, 344  ;;  %1699 = vbcast.lane.b32.xlu0 %v1641_v32, 368 }
 0x3ad   : > { %v4062_v58 = vpop.permute.xlu1 %1454  ;;  %v4066_v42 = vpop.permute.xlu0 %1466 }
 0x3af   : > { %1695 = vbcast.lane.b32.xlu1 %v1641_v32, 360  ;;  %1998 = vbcast.lane.b32.xlu0 %v1996_v5, 256 }
 0x3b1   : > { %v4068_v56 = vpop.permute.xlu1 %1462  ;;  %v4070_v21 = vpop.permute.xlu0 %1474 }
 0x3b3   : > { %1703 = vbcast.lane.b32.xlu1 %v1641_v32, 376  ;;  %2006 = vbcast.lane.b32.xlu0 %v1996_v5, 272 }
 0x3b5   : > { %v4072_v14 = vpop.permute.xlu1 %1470  ;;  %v4074_v36 = vpop.permute.xlu0 %1482 }
 0x3b7   : > { %2002 = vbcast.lane.b32.xlu1 %v1996_v5, 264  ;;  %2014 = vbcast.lane.b32.xlu0 %v1996_v5, 288 }
 0x3b9   : > { %v4076_v3 = vpop.permute.xlu1 %1478  ;;  %v4078_v6 = vpop.permute.xlu0 %1490 }
 0x3bb   : > { %2010 = vbcast.lane.b32.xlu1 %v1996_v5, 280  ;;  %2022 = vbcast.lane.b32.xlu0 %v1996_v5, 304 }
 0x3bd   : > { %v4080_v54 = vpop.permute.xlu1 %1486  ;;  %v4082_v39 = vpop.permute.xlu0 %1498 }
 0x3bf   : > { %2018 = vbcast.lane.b32.xlu1 %v1996_v5, 296  ;;  %2030 = vbcast.lane.b32.xlu0 %v1996_v5, 320 }
 0x3c1   : > { %v4084_v24 = vpop.permute.xlu1 %1494  ;;  %v4086_v16 = vpop.permute.xlu0 %1509 }
 0x3c3   : > { %2026 = vbcast.lane.b32.xlu1 %v1996_v5, 312  ;;  %2038 = vbcast.lane.b32.xlu0 %v1996_v5, 336 }
 0x3c5   : > { %v4088_v59 = vpop.permute.xlu1 %1502  ;;  %v4090_v23 = vpop.permute.xlu0 %1517 }
 0x3c7   : > { %2034 = vbcast.lane.b32.xlu1 %v1996_v5, 328  ;;  %2046 = vbcast.lane.b32.xlu0 %v1996_v5, 352 }
 0x3c9   : > { %v4092_v8 = vpop.permute.xlu1 %1513  ;;  %v4094_v2 = vpop.permute.xlu0 %1525 }
 0x3cb   : > { %2042 = vbcast.lane.b32.xlu1 %v1996_v5, 344  ;;  %2054 = vbcast.lane.b32.xlu0 %v1996_v5, 368 }
 0x3cd   : > { %v4096_v15 = vpop.permute.xlu1 %1521  ;;  %v4100_v20 = vpop.permute.xlu0 %1533 }
 0x3cf   : > { %2050 = vbcast.lane.b32.xlu1 %v1996_v5, 360  ;;  %2065 = vbcast.lane.b32.xlu0 %v2063_v7, 256 }
 0x3d1   : > { %v4102_v25 = vpop.permute.xlu1 %1529  ;;  %v4104_v45 = vpop.permute.xlu0 %1541 }
 0x3d2   : > { %5131 = vst [vmem:[#allocation16_spill] sm:$0xff] %v4102_v25  ;;  %5132 = vst [vmem:[#allocation17_spill] sm:$0xff] %v4104_v45  ;;  %v4330_v25 = vld [vmem:[#allocation5 + $0x70] sm:$0xff] }
 0x3d3   : > { %2058 = vbcast.lane.b32.xlu1 %v1996_v5, 376  ;;  %2073 = vbcast.lane.b32.xlu0 %v2063_v7, 272  ;;  %v4198_v5 = vld [vmem:[#allocation5] sm:$0xff] }
 0x3d4   : > { %5169 = vst [vmem:[#allocation54_spill] sm:$0xff] %v4198_v5 }
 0x3d5   : > { %v4106_v4 = vpop.permute.xlu1 %1537  ;;  %v4108_v9 = vpop.permute.xlu0 %1549 }
 0x3d6   : > { %5133 = vst [vmem:[#allocation20_spill] sm:$0xff] %v4106_v4  ;;  %5134 = vst [vmem:[#allocation18_spill] sm:$0xff] %v4108_v9  ;;  %v4322_v9 = vld [vmem:[#allocation7 + $0x68] sm:$0xff] }
 0x3d7   : > { %2069 = vbcast.lane.b32.xlu1 %v2063_v7, 264  ;;  %2081 = vbcast.lane.b32.xlu0 %v2063_v7, 288  ;;  %5184 = vst [vmem:[#allocation69_spill] sm:$0xff] %v4322_v9 }
 0x3d9   : > { %v4110_v26 = vpop.permute.xlu1 %1545  ;;  %v4112_v22 = vpop.permute.xlu0 %1557 }
 0x3da   : > { %5135 = vst [vmem:[#allocation19_spill] sm:$0xff] %v4110_v26  ;;  %5136 = vst [vmem:[#allocation21_spill] sm:$0xff] %v4112_v22  ;;  %v4296_v22 = vld [vmem:[#allocation5 + $0x80] sm:$0xff] }
 0x3db   : > { %2077 = vbcast.lane.b32.xlu1 %v2063_v7, 280  ;;  %2089 = vbcast.lane.b32.xlu0 %v2063_v7, 304  ;;  %5179 = vst [vmem:[#allocation64_spill] sm:$0xff] %v4296_v22  ;;  %v1753_v4 = vmul.f32 %v4296_v22, %v4070_v21 }
 0x3dd   : > { %v4114_v29 = vpop.permute.xlu1 %1553  ;;  %v4116_v40 = vpop.permute.xlu0 %1565 }
 0x3de   : > { %5137 = vst [vmem:[#allocation22_spill] sm:$0xff] %v4114_v29  ;;  %5138 = vst [vmem:[#allocation23_spill] sm:$0xff] %v4116_v40  ;;  %v4290_v40 = vld [vmem:[#allocation5 + $0x58] sm:$0xff] }
 0x3df   : > { %2085 = vbcast.lane.b32.xlu1 %v2063_v7, 296  ;;  %2097 = vbcast.lane.b32.xlu0 %v2063_v7, 320  ;;  %5178 = vst [vmem:[#allocation63_spill] sm:$0xff] %v4290_v40 }
 0x3e1   : > { %v4118_v34 = vpop.permute.xlu1 %1561  ;;  %v4120_v57 = vpop.permute.xlu0 %1576 }
 0x3e2   : > { %5139 = vst [vmem:[#allocation24_spill] sm:$0xff] %v4118_v34  ;;  %5140 = vst [vmem:[#allocation25_spill] sm:$0xff] %v4120_v57  ;;  %v4288_v34 = vld [vmem:[#allocation5 + $0x50] sm:$0xff] }
 0x3e3   : > { %2093 = vbcast.lane.b32.xlu1 %v2063_v7, 312  ;;  %2105 = vbcast.lane.b32.xlu0 %v2063_v7, 336  ;;  %5177 = vst [vmem:[#allocation62_spill] sm:$0xff] %v4288_v34  ;;  %v1747_v26 = vmul.f32 %v4288_v34, %v4068_v56 }
 0x3e5   : > { %v4122_v38 = vpop.permute.xlu1 %1569  ;;  %v4124_v43 = vpop.permute.xlu0 %1584 }
 0x3e6   : > { %5141 = vst [vmem:[#allocation26_spill] sm:$0xff] %v4122_v38  ;;  %5142 = vst [vmem:[#allocation27_spill] sm:$0xff] %v4124_v43  ;;  %v4262_v43 = vld [vmem:[#allocation5 + $0x60] sm:$0xff]  ;;  %v2940_v38 = vld [vmem:[%s3546_s22 + $0x48] sm:$0xff] }
 0x3e7   : > { %2101 = vbcast.lane.b32.xlu1 %v2063_v7, 328  ;;  %2113 = vbcast.lane.b32.xlu0 %v2063_v7, 352 }
 0x3e9   : > { %v4126_v12 = vpop.permute.xlu1 %1580  ;;  %v4128_v51 = vpop.permute.xlu0 %1592 }
 0x3ea   : > { %5143 = vst [vmem:[#allocation28_spill] sm:$0xff] %v4126_v12  ;;  %5144 = vst [vmem:[#allocation29_spill] sm:$0xff] %v4128_v51  ;;  %v2936_v51 = vld [vmem:[%s3546_s22 + $0x28] sm:$0xff] }
 0x3eb   : > { %2109 = vbcast.lane.b32.xlu1 %v2063_v7, 344  ;;  %2121 = vbcast.lane.b32.xlu0 %v2063_v7, 368 }
 0x3ed   : > { %v4130_v35 = vpop.permute.xlu1 %1588  ;;  %v4132_v46 = vpop.permute.xlu0 %1600 }
 0x3ee   : > { %5145 = vst [vmem:[#allocation30_spill] sm:$0xff] %v4130_v35  ;;  %5146 = vst [vmem:[#allocation31_spill] sm:$0xff] %v4132_v46  ;;  %v2935_v46 = vld [vmem:[%s3546_s22 + $0x20] sm:$0xff] }
 0x3ef   : > { %2117 = vbcast.lane.b32.xlu1 %v2063_v7, 360  ;;  %2132 = vbcast.lane.b32.xlu0 %v4048_v61, 256 }
 0x3f1   : > { %v4135_v52 = vpop.permute.xlu1 %1596  ;;  %v4137_v13 = vpop.permute.xlu0 %1608 }
 0x3f2   : > { %5147 = vst [vmem:[#allocation32_spill] sm:$0xff] %v4135_v52  ;;  %5148 = vst [vmem:[#allocation33_spill] sm:$0xff] %v4137_v13  ;;  %v4256_v13 = vld [vmem:[#allocation5 + $0x30] sm:$0xff] }
 0x3f3   : > { %2125 = vbcast.lane.b32.xlu1 %v2063_v7, 376  ;;  %2140 = vbcast.lane.b32.xlu0 %v4048_v61, 272  ;;  %v4200_v7 = vld [vmem:[#allocation5 + $0x8] sm:$0xff] }
 0x3f4   : > { %5170 = vst [vmem:[#allocation55_spill] sm:$0xff] %v4200_v7 }
 0x3f5   : > { %v4140_v41 = vpop.permute.xlu1 %1604  ;;  %v4142_v17 = vpop.permute.xlu0 %1616 }
 0x3f6   : > { %5149 = vst [vmem:[#allocation34_spill] sm:$0xff] %v4140_v41  ;;  %5150 = vst [vmem:[#allocation35_spill] sm:$0xff] %v4142_v17 }
 0x3f7   : > { %2136 = vbcast.lane.b32.xlu1 %v4048_v61, 264  ;;  %2148 = vbcast.lane.b32.xlu0 %v4048_v61, 288 }
 0x3f9   : > { %v4146_v19 = vpop.permute.xlu1 %1612  ;;  %v4148_v27 = vpop.permute.xlu0 %1624 }
 0x3fa   : > { %5151 = vst [vmem:[#allocation36_spill] sm:$0xff] %v4146_v19  ;;  %5152 = vst [vmem:[#allocation37_spill] sm:$0xff] %v4148_v27 }
 0x3fb   : > { %2144 = vbcast.lane.b32.xlu1 %v4048_v61, 280  ;;  %2156 = vbcast.lane.b32.xlu0 %v4048_v61, 304 }
 0x3fd   : > { %v4152_v30 = vpop.permute.xlu1 %1620  ;;  %v4154_v33 = vpop.permute.xlu0 %1632 }
 0x3fe   : > { %5153 = vst [vmem:[#allocation38_spill] sm:$0xff] %v4152_v30  ;;  %5154 = vst [vmem:[#allocation39_spill] sm:$0xff] %v4154_v33 }
 0x3ff   : > { %2152 = vbcast.lane.b32.xlu1 %v4048_v61, 296  ;;  %2164 = vbcast.lane.b32.xlu0 %v4048_v61, 320 }
 0x401   : > { %v4158_v37 = vpop.permute.xlu1 %1628  ;;  %v4160_v28 = vpop.permute.xlu0 %1643 }
 0x402   : > { %5155 = vst [vmem:[#allocation40_spill] sm:$0xff] %v4158_v37  ;;  %5156 = vst [vmem:[#allocation41_spill] sm:$0xff] %v4160_v28  ;;  %v4232_v28 = vld [vmem:[#allocation5 + $0x48] sm:$0xff] }
 0x403   : > { %2160 = vbcast.lane.b32.xlu1 %v4048_v61, 312  ;;  %2172 = vbcast.lane.b32.xlu0 %v4048_v61, 336 }
 0x405   : > { %v4164_v55 = vpop.permute.xlu1 %1636  ;;  %v4166_v60 = vpop.permute.xlu0 %1651 }
 0x406   : > { %5157 = vst [vmem:[#allocation42_spill] sm:$0xff] %v4164_v55  ;;  %5158 = vst [vmem:[#allocation43_spill] sm:$0xff] %v4166_v60  ;;  %v4230_v55 = vld [vmem:[#allocation5 + $0x40] sm:$0xff] }
 0x407   : > { %2168 = vbcast.lane.b32.xlu1 %v4048_v61, 328  ;;  %2180 = vbcast.lane.b32.xlu0 %v4048_v61, 352 }
 0x409   : > { %v4170_v63 = vpop.permute.xlu1 %1647  ;;  %v4172_v62 = vpop.permute.xlu0 %1659 }
 0x40a   : > { %5159 = vst [vmem:[#allocation44_spill] sm:$0xff] %v4170_v63  ;;  %5160 = vst [vmem:[#allocation45_spill] sm:$0xff] %v4172_v62  ;;  %v2934_v63 = vld [vmem:[%s3546_s22 + $0x8] sm:$0xff] }
 0x40b   : > { %2176 = vbcast.lane.b32.xlu1 %v4048_v61, 344  ;;  %2188 = vbcast.lane.b32.xlu0 %v4048_v61, 368 }
 0x40d   : > { %v4176_v44 = vpop.permute.xlu1 %1655  ;;  %v4178_v31 = vpop.permute.xlu0 %1667 }
 0x40e   : > { %5161 = vst [vmem:[#allocation46_spill] sm:$0xff] %v4176_v44  ;;  %5162 = vst [vmem:[#allocation47_spill] sm:$0xff] %v4178_v31  ;;  %v4220_v31 = vld [vmem:[#allocation7 + $0x8] sm:$0xff]  ;;  %v4224_v44 = vld [vmem:[#allocation5 + $0x18] sm:$0xff] }
 0x40f   : > { %2184 = vbcast.lane.b32.xlu1 %v4048_v61, 360  ;;  %2199 = vbcast.lane.b32.xlu0 %v4051_v53, 256 }
 0x411   : > { %v4182_v48 = vpop.permute.xlu1 %1663  ;;  %v4184_v0 = vpop.permute.xlu0 %1675 }
 0x412   : > { %5163 = vst [vmem:[#allocation48_spill] sm:$0xff] %v4182_v48  ;;  %5164 = vst [vmem:[#allocation49_spill] sm:$0xff] %v4184_v0  ;;  %v4215_v0 = vld [vmem:[#allocation5 + $0x28] sm:$0xff]  ;;  %v4218_v48 = vld [vmem:[#allocation7] sm:$0xff] }
 0x413   : > { %2192 = vbcast.lane.b32.xlu1 %v4048_v61, 376  ;;  %2207 = vbcast.lane.b32.xlu0 %v4051_v53, 272  ;;  %v1742_v30 = vmul.f32 %v4215_v0, %v4058_v1 }
 0x415   : > { %v4188_v10 = vpop.permute.xlu1 %1671  ;;  %v4190_v18 = vpop.permute.xlu0 %1683  ;;  %v1870_v12 = vadd.f32 %v2936_v51, %v1742_v30  ;;  %v4275_v51 = vld [vmem:[#allocation7 + $0x18] sm:$0xff]  ;;  %v2937_v30 = vld [vmem:[%s3546_s22 + $0x10] sm:$0xff] }
 0x416   : > { %5165 = vst [vmem:[#allocation50_spill] sm:$0xff] %v4188_v10  ;;  %5166 = vst [vmem:[#allocation51_spill] sm:$0xff] %v4190_v18  ;;  %v1737_v18 = vmul.f32 %v4198_v5, %v4056_v50 }
 0x417   : > { %2203 = vbcast.lane.b32.xlu1 %v4051_v53, 264  ;;  %2215 = vbcast.lane.b32.xlu0 %v4051_v53, 288 }
 0x419   : > { %v4194_v11 = vpop.permute.xlu1 %1679  ;;  %v4196_v32 = vpop.permute.xlu0 %1691 }
 0x41a   : > { %5167 = vst [vmem:[#allocation52_spill] sm:$0xff] %v4194_v11  ;;  %5168 = vst [vmem:[#allocation53_spill] sm:$0xff] %v4196_v32  ;;  %v1738_v11 = vmul.f32 %v4200_v7, %v4056_v50  ;;  %v4212_v32 = vld [vmem:[#allocation5 + $0x20] sm:$0xff] }
 0x41b   : > { %2211 = vbcast.lane.b32.xlu1 %v4051_v53, 280  ;;  %2223 = vbcast.lane.b32.xlu0 %v4051_v53, 304  ;;  %v2933_v50 = vld [vmem:[%s3546_s22] sm:$0xff]  ;;  %v1741_v33 = vmul.f32 %v4212_v32, %v4058_v1  ;;  %v4248_v1 = vld [vmem:[#allocation7 + $0x28] sm:$0xff] }
 0x41c   : > { %v1866_v60 = vadd.f32 %v2934_v63, %v1738_v11  ;;  %v4246_v11 = vld [vmem:[#allocation7 + $0x20] sm:$0xff] }
 0x41d   : > { %v4204_v61 = vpop.permute.xlu1 %1687  ;;  %v4210_v10 = vpop.permute.xlu0 %1699  ;;  %v1869_v35 = vadd.f32 %v2935_v46, %v1741_v33  ;;  %v4273_v46 = vld [vmem:[#allocation7 + $0x10] sm:$0xff] }
 0x41e   : > { %5171 = vst [vmem:[#allocation56_spill] sm:$0xff] %v4204_v61  ;;  %5172 = vst [vmem:[#allocation57_spill] sm:$0xff] %v4210_v10  ;;  %v4222_v61 = vld [vmem:[#allocation5 + $0x10] sm:$0xff]  ;;  %v1865_v10 = vadd.f32 %v2933_v50, %v1737_v18  ;;  %v1740_v18 = vmul.f32 %v4224_v44, %v4054_v49  ;;  %v1745_v50 = vmul.f32 %v4230_v55, %v4060_v47 }
 0x41f   : > { %2219 = vbcast.lane.b32.xlu1 %v4051_v53, 296  ;;  %2231 = vbcast.lane.b32.xlu0 %v4051_v53, 320  ;;  %v1739_v63 = vmul.f32 %v4222_v61, %v4054_v49  ;;  %v4258_v49 = vld [vmem:[#allocation5 + $0x38] sm:$0xff] }
 0x420   : > { %v1744_v29 = vmul.f32 %v4258_v49, %v4062_v58 }
 0x421   : > { %v4226_v62 = vpop.permute.xlu1 %1695  ;;  %v1999_v37 = vpop.permute.xlu0 %1998  ;;  %v1867_v33 = vadd.f32 %v2937_v30, %v1739_v63 }
 0x422   : > { %5173 = vst [vmem:[#allocation58_spill] sm:$0xff] %v4226_v62  ;;  %v2293_v27 = vmul.f32 %v4218_v48, %v1999_v37  ;;  %v2294_v62 = vmul.f32 %v4220_v31, %v1999_v37  ;;  %v1746_v37 = vmul.f32 %v4232_v28, %v4060_v47 }
 0x423   : > { %2227 = vbcast.lane.b32.xlu1 %v4051_v53, 312  ;;  %2239 = vbcast.lane.b32.xlu0 %v4051_v53, 336 }
 0x424   : > { %v2421_v19 = vadd.f32 %v2293_v27, %v1865_v10  ;;  %v2422_v17 = vadd.f32 %v2294_v62, %v1866_v60  ;;  %v2938_v60 = vld [vmem:[%s3546_s22 + $0x18] sm:$0xff]  ;;  %v4279_v10 = vld [vmem:[#allocation5 + $0x68] sm:$0xff]  ;;  %v1874_v57 = vadd.f32 %v2940_v38, %v1746_v37 }
 0x425   : > { %v4254_v41 = vpop.permute.xlu1 %1703  ;;  %v2007_v52 = vpop.permute.xlu0 %2006  ;;  %v1868_v62 = vadd.f32 %v2938_v60, %v1740_v18  ;;  %v1743_v60 = vmul.f32 %v4256_v13, %v4062_v58 }
 0x426   : > { %5174 = vst [vmem:[#allocation59_spill] sm:$0xff] %v4254_v41  ;;  %2549 = vst [vmem:[%s4266_s12] sm:$0xff] %v2421_v19  ;;  %v2297_v47 = vmul.f32 %v4246_v11, %v2007_v52  ;;  %v2298_v27 = vmul.f32 %v4248_v1, %v2007_v52  ;;  %v4284_v19 = vld [vmem:[#allocation7 + $0x48] sm:$0xff]  ;;  %v2939_v41 = vld [vmem:[%s3546_s22 + $0x40] sm:$0xff] }
 0x427   : > { %2550 = vst [vmem:[%s4266_s12 + $0x8] sm:$0xff] %v2422_v17  ;;  %2235 = vbcast.lane.b32.xlu1 %v4051_v53, 328  ;;  %2247 = vbcast.lane.b32.xlu0 %v4051_v53, 352  ;;  %v4282_v17 = vld [vmem:[#allocation7 + $0x40] sm:$0xff]  ;;  %5176 = vst [vmem:[#allocation61_spill] sm:$0xff] %v4284_v19  ;;  %v1873_v52 = vadd.f32 %v2939_v41, %v1745_v50  ;;  %v4298_v41 = vld [vmem:[#allocation5 + $0x88] sm:$0xff] }
 0x428   : > { %5175 = vst [vmem:[#allocation60_spill] sm:$0xff] %v4282_v17  ;;  %v2425_v63 = vadd.f32 %v2297_v47, %v1869_v35  ;;  %v2426_v18 = vadd.f32 %v2298_v27, %v1870_v12  ;;  %5180 = vst [vmem:[#allocation65_spill] sm:$0xff] %v4298_v41  ;;  %v1749_v35 = vmul.f32 %v4262_v43, %v4066_v42  ;;  %v4311_v27 = vld [vmem:[#allocation7 + $0x30] sm:$0xff] }
 0x429   : > { %v2003_v30 = vpop.permute.xlu1 %2002  ;;  %v2015_v37 = vpop.permute.xlu0 %2014  ;;  %v1750_v12 = vmul.f32 %v4279_v10, %v4066_v42  ;;  %5181 = vst [vmem:[#allocation66_spill] sm:$0xff] %v4311_v27  ;;  %v1748_v42 = vmul.f32 %v4290_v40, %v4068_v56  ;;  %v1754_v45 = vmul.f32 %v4298_v41, %v4070_v21 }
 0x42a   : > { %v2295_v38 = vmul.f32 %v4273_v46, %v2003_v30  ;;  %v2296_v50 = vmul.f32 %v4275_v51, %v2003_v30  ;;  %2553 = vst [vmem:[%s4266_s12 + $0x20] sm:$0xff] %v2425_v63  ;;  %2554 = vst [vmem:[%s4266_s12 + $0x28] sm:$0xff] %v2426_v18  ;;  %v2301_v47 = vmul.f32 %v4282_v17, %v2015_v37  ;;  %v4313_v30 = vld [vmem:[#allocation7 + $0x38] sm:$0xff]  ;;  %v4361_v17 = vld [vmem:[#allocation5 + $0x90] sm:$0xff] }
 0x42b   : > { %v2302_v58 = vmul.f32 %v4284_v19, %v2015_v37  ;;  %2243 = vbcast.lane.b32.xlu1 %v4051_v53, 344  ;;  %5182 = vst [vmem:[#allocation67_spill] sm:$0xff] %v4313_v30  ;;  %2255 = vbcast.lane.b32.xlu0 %v4051_v53, 368  ;;  %v4320_v37 = vld [vmem:[#allocation7 + $0x60] sm:$0xff]  ;;  %v4332_v19 = vld [vmem:[#allocation5 + $0x78] sm:$0xff]  ;;  %5189 = vst [vmem:[#allocation74_spill] sm:$0xff] %v4361_v17 }
 0x42c   : > { %v2423_v63 = vadd.f32 %v2295_v38, %v1867_v33  ;;  %v2424_v18 = vadd.f32 %v2296_v50, %v1868_v62  ;;  %5183 = vst [vmem:[#allocation68_spill] sm:$0xff] %v4320_v37  ;;  %v2429_v34 = vadd.f32 %v2301_v47, %v1873_v52  ;;  %v2941_v38 = vld [vmem:[%s3546_s22 + $0x30] sm:$0xff]  ;;  %v2942_v50 = vld [vmem:[%s3546_s22 + $0x38] sm:$0xff]  ;;  %v2943_v52 = vld [vmem:[%s3546_s22 + $0x60] sm:$0xff] }
 0x42d   : > { %v2430_v56 = vadd.f32 %v2302_v58, %v1874_v57  ;;  %v2011_v33 = vpop.permute.xlu1 %2010  ;;  %v1871_v62 = vadd.f32 %v2941_v38, %v1743_v60  ;;  %v1872_v40 = vadd.f32 %v2942_v50, %v1744_v29  ;;  %v2023_v57 = vpop.permute.xlu0 %2022  ;;  %v1877_v47 = vadd.f32 %v2943_v52, %v1749_v35  ;;  %v2944_v58 = vld [vmem:[%s3546_s22 + $0x68] sm:$0xff]  ;;  %v4340_v38 = vld [vmem:[#allocation5 + $0xa0] sm:$0xff]  ;;  %v2945_v50 = vld [vmem:[%s3546_s22 + $0x50] sm:$0xff] }
 0x42e   : > { %2551 = vst [vmem:[%s4266_s12 + $0x10] sm:$0xff] %v2423_v63  ;;  %2552 = vst [vmem:[%s4266_s12 + $0x18] sm:$0xff] %v2424_v18  ;;  %v2299_v22 = vmul.f32 %v4311_v27, %v2011_v33  ;;  %v2300_v21 = vmul.f32 %v4313_v30, %v2011_v33  ;;  %v1878_v60 = vadd.f32 %v2944_v58, %v1750_v12  ;;  %v4347_v18 = vld [vmem:[#allocation7 + $0x50] sm:$0xff]  ;;  %v4349_v33 = vld [vmem:[#allocation7 + $0x58] sm:$0xff] }
 0x42f   : > { %5185 = vst [vmem:[#allocation70_spill] sm:$0xff] %v4340_v38  ;;  %2557 = vst [vmem:[%s4266_s12 + $0x40] sm:$0xff] %v2429_v34  ;;  %v2305_v29 = vmul.f32 %v4320_v37, %v2023_v57  ;;  %v2306_v63 = vmul.f32 %v4322_v9, %v2023_v57  ;;  %2251 = vbcast.lane.b32.xlu1 %v4051_v53, 360  ;;  %v1875_v35 = vadd.f32 %v2945_v50, %v1747_v26  ;;  %v2946_v52 = vld [vmem:[%s3546_s22 + $0x58] sm:$0xff]  ;;  %v4353_v58 = vld [vmem:[#allocation5 + $0xa8] sm:$0xff] }
 0x430   : > { %2558 = vst [vmem:[%s4266_s12 + $0x48] sm:$0xff] %v2430_v56  ;;  %v1876_v12 = vadd.f32 %v2946_v52, %v1748_v42  ;;  %5186 = vst [vmem:[#allocation71_spill] sm:$0xff] %v4353_v58  ;;  %v2427_v34 = vadd.f32 %v2299_v22, %v1871_v62  ;;  %v2428_v30 = vadd.f32 %v2300_v21, %v1872_v40  ;;  %v4355_v56 = vld [vmem:[#allocation7 + $0x80] sm:$0xff]  ;;  %v4357_v37 = vld [vmem:[#allocation7 + $0x88] sm:$0xff] }
 0x431   : > { %5187 = vst [vmem:[#allocation72_spill] sm:$0xff] %v4355_v56  ;;  %5188 = vst [vmem:[#allocation73_spill] sm:$0xff] %v4357_v37  ;;  %v2947_v57 = vld [vmem:[%s3546_s22 + $0x80] sm:$0xff]  ;;  %v2948_v27 = vld [vmem:[%s3546_s22 + $0x88] sm:$0xff]  ;;  %v2433_v42 = vadd.f32 %v2305_v29, %v1877_v47  ;;  %v2434_v50 = vadd.f32 %v2306_v63, %v1878_v60  ;;  %v2019_v22 = vpop.permute.xlu1 %2018  ;;  %v1751_v40 = vmul.f32 %v4330_v25, %v4072_v14  ;;  %v2031_v52 = vpop.permute.xlu0 %2030 }
 0x432   : > { %v1881_v9 = vadd.f32 %v2947_v57, %v1753_v4  ;;  %v1882_v41 = vadd.f32 %v2948_v27, %v1754_v45  ;;  %v4363_v26 = vld [vmem:[#allocation5 + $0x98] sm:$0xff]  ;;  %v1752_v62 = vmul.f32 %v4332_v19, %v4072_v14  ;;  %v4369_v21 = vld [vmem:[#allocation5 + $0xc0] sm:$0xff]  ;;  %v4371_v4 = vld [vmem:[#allocation5 + $0xc8] sm:$0xff]  ;;  %2555 = vst [vmem:[%s4266_s12 + $0x30] sm:$0xff] %v2427_v34  ;;  %v2303_v45 = vmul.f32 %v4347_v18, %v2019_v22 }
 0x433   : > { %5190 = vst [vmem:[#allocation75_spill] sm:$0xff] %v4363_v26  ;;  %5191 = vst [vmem:[#allocation76_spill] sm:$0xff] %v4369_v21  ;;  %v2304_v27 = vmul.f32 %v4349_v33, %v2019_v22  ;;  %v1757_v47 = vmul.f32 %v4340_v38, %v4074_v36  ;;  %v1758_v60 = vmul.f32 %v4353_v58, %v4074_v36  ;;  %2259 = vbcast.lane.b32.xlu1 %v4051_v53, 376  ;;  %v4388_v63 = vld [vmem:[#allocation7 + $0x78] sm:$0xff]  ;;  %v4396_v22 = vld [vmem:[#allocation7 + $0xa8] sm:$0xff] }
 0x434   : > { %5192 = vst [vmem:[#allocation77_spill] sm:$0xff] %v4371_v4  ;;  %2556 = vst [vmem:[%s4266_s12 + $0x38] sm:$0xff] %v2428_v30  ;;  %v2309_v14 = vmul.f32 %v4355_v56, %v2031_v52  ;;  %v2310_v29 = vmul.f32 %v4357_v37, %v2031_v52  ;;  %v4386_v30 = vld [vmem:[#allocation7 + $0x70] sm:$0xff]  ;;  %v1755_v34 = vmul.f32 %v4361_v17, %v4076_v3 }
 0x435   : > { %2561 = vst [vmem:[%s4266_s12 + $0x60] sm:$0xff] %v2433_v42  ;;  %2562 = vst [vmem:[%s4266_s12 + $0x68] sm:$0xff] %v2434_v50  ;;  %v1756_v36 = vmul.f32 %v4363_v26, %v4076_v3  ;;  %v2431_v57 = vadd.f32 %v2303_v45, %v1875_v35  ;;  %v2432_v42 = vadd.f32 %v2304_v27, %v1876_v12  ;;  %v4394_v50 = vld [vmem:[#allocation7 + $0xa0] sm:$0xff]  ;;  %v2027_v56 = vpop.permute.xlu1 %2026  ;;  %v2949_v3 = vld [vmem:[%s3546_s22 + $0x70] sm:$0xff] }
 0x436   : > { %5193 = vst [vmem:[#allocation78_spill] sm:$0xff] %v4386_v30  ;;  %5194 = vst [vmem:[#allocation79_spill] sm:$0xff] %v4388_v63  ;;  %v1761_v53 = vmul.f32 %v4369_v21, %v4078_v6  ;;  %v1762_v52 = vmul.f32 %v4371_v4, %v4078_v6  ;;  %v2437_v37 = vadd.f32 %v2309_v14, %v1881_v9  ;;  %v2950_v12 = vld [vmem:[%s3546_s22 + $0x78] sm:$0xff]  ;;  %v4404_v27 = vld [vmem:[#allocation5 + $0xb0] sm:$0xff]  ;;  %v2039_v9 = vpop.permute.xlu0 %2038 }
 0x437   : > { %5195 = vst [vmem:[#allocation80_spill] sm:$0xff] %v4394_v50  ;;  %5196 = vst [vmem:[#allocation81_spill] sm:$0xff] %v4396_v22  ;;  %v2438_v17 = vadd.f32 %v2310_v29, %v1882_v41  ;;  %v1879_v35 = vadd.f32 %v2949_v3, %v1751_v40  ;;  %v1880_v45 = vadd.f32 %v2950_v12, %v1752_v62  ;;  %v4406_v26 = vld [vmem:[#allocation5 + $0xb8] sm:$0xff]  ;;  %v2951_v41 = vld [vmem:[%s3546_s22 + $0xa0] sm:$0xff] }
 0x438   : > { %2559 = vst [vmem:[%s4266_s12 + $0x50] sm:$0xff] %v2431_v57  ;;  %2560 = vst [vmem:[%s4266_s12 + $0x58] sm:$0xff] %v2432_v42  ;;  %v2307_v21 = vmul.f32 %v4386_v30, %v2027_v56  ;;  %v2308_v6 = vmul.f32 %v4388_v63, %v2027_v56  ;;  %v1885_v14 = vadd.f32 %v2951_v41, %v1757_v47  ;;  %v2952_v29 = vld [vmem:[%s3546_s22 + $0xa8] sm:$0xff]  ;;  %v4414_v3 = vld [vmem:[#allocation5 + $0xe0] sm:$0xff] }
 0x439   : > { %v1886_v40 = vadd.f32 %v2952_v29, %v1758_v60  ;;  %2565 = vst [vmem:[%s4266_s12 + $0x80] sm:$0xff] %v2437_v37  ;;  %2566 = vst [vmem:[%s4266_s12 + $0x88] sm:$0xff] %v2438_v17  ;;  %v2313_v62 = vmul.f32 %v4394_v50, %v2039_v9  ;;  %v2314_v57 = vmul.f32 %v4396_v22, %v2039_v9  ;;  %v4420_v42 = vld [vmem:[#allocation7 + $0x90] sm:$0xff]  ;;  %v4422_v12 = vld [vmem:[#allocation7 + $0x98] sm:$0xff] }
 0x43a   : > { %v2953_v56 = vld [vmem:[%s3546_s22 + $0x90] sm:$0xff]  ;;  %v2954_v30 = vld [vmem:[%s3546_s22 + $0x98] sm:$0xff]  ;;  %v4426_v41 = vld [vmem:[#allocation5 + $0xe8] sm:$0xff]  ;;  %v2435_v60 = vadd.f32 %v2307_v21, %v1879_v35  ;;  %v2436_v37 = vadd.f32 %v2308_v6, %v1880_v45  ;;  %v1759_v21 = vmul.f32 %v4404_v27, %v4080_v54  ;;  %v1760_v35 = vmul.f32 %v4406_v26, %v4080_v54 }
 0x43b   : > { %v1883_v63 = vadd.f32 %v2953_v56, %v1755_v34  ;;  %v1884_v47 = vadd.f32 %v2954_v30, %v1756_v36  ;;  %5197 = vst [vmem:[#allocation82_spill] sm:$0xff] %v4426_v41  ;;  %v4428_v17 = vld [vmem:[#allocation7 + $0xc0] sm:$0xff]  ;;  %v4430_v29 = vld [vmem:[#allocation7 + $0xc8] sm:$0xff]  ;;  %v4434_v58 = vld [vmem:[#allocation5 + $0xd0] sm:$0xff]  ;;  %v2441_v30 = vadd.f32 %v2313_v62, %v1885_v14  ;;  %v2442_v36 = vadd.f32 %v2314_v57, %v1886_v40  ;;  %v2035_v56 = vpop.permute.xlu1 %2034 }
 0x43c   : > { %5198 = vst [vmem:[#allocation83_spill] sm:$0xff] %v4428_v17  ;;  %5199 = vst [vmem:[#allocation84_spill] sm:$0xff] %v4430_v29  ;;  %v2955_v50 = vld [vmem:[%s3546_s22 + $0xc0] sm:$0xff]  ;;  %v2956_v22 = vld [vmem:[%s3546_s22 + $0xc8] sm:$0xff]  ;;  %v1766_v45 = vmul.f32 %v4426_v41, %v4082_v39  ;;  %v1763_v62 = vmul.f32 %v4434_v58, %v4084_v24 }
 0x43d   : > { %v1889_v9 = vadd.f32 %v2955_v50, %v1761_v53  ;;  %v1890_v4 = vadd.f32 %v2956_v22, %v1762_v52  ;;  %5200 = vst [vmem:[#allocation85_spill] sm:$0xff] %v4434_v58  ;;  %v4436_v34 = vld [vmem:[#allocation5 + $0xd8] sm:$0xff]  ;;  %2563 = vst [vmem:[%s4266_s12 + $0x70] sm:$0xff] %v2435_v60  ;;  %v2311_v50 = vmul.f32 %v4420_v42, %v2035_v56  ;;  %v2047_v53 = vpop.permute.xlu0 %2046  ;;  %v4454_v14 = vld [vmem:[#allocation7 + $0xb0] sm:$0xff] }
 0x43e   : > { %5201 = vst [vmem:[#allocation86_spill] sm:$0xff] %v4436_v34  ;;  %2564 = vst [vmem:[%s4266_s12 + $0x78] sm:$0xff] %v2436_v37  ;;  %v2312_v22 = vmul.f32 %v4422_v12, %v2035_v56  ;;  %v1765_v52 = vmul.f32 %v4414_v3, %v4082_v39  ;;  %v2317_v6 = vmul.f32 %v4428_v17, %v2047_v53  ;;  %v4456_v40 = vld [vmem:[#allocation7 + $0xb8] sm:$0xff]  ;;  %v4462_v37 = vld [vmem:[#allocation7 + $0xe0] sm:$0xff] }
 0x43f   : > { %2569 = vst [vmem:[%s4266_s12 + $0xa0] sm:$0xff] %v2441_v30  ;;  %2570 = vst [vmem:[%s4266_s12 + $0xa8] sm:$0xff] %v2442_v36  ;;  %v2318_v54 = vmul.f32 %v4430_v29, %v2047_v53  ;;  %v1764_v57 = vmul.f32 %v4436_v34, %v4084_v24  ;;  %v2439_v39 = vadd.f32 %v2311_v50, %v1883_v63  ;;  %v4464_v30 = vld [vmem:[#allocation7 + $0xe8] sm:$0xff]  ;;  %v2043_v29 = vpop.permute.xlu1 %2042  ;;  %v2957_v24 = vld [vmem:[%s3546_s22 + $0xb0] sm:$0xff] }
 0x440   : > { %5202 = vst [vmem:[#allocation87_spill] sm:$0xff] %v4454_v14  ;;  %5203 = vst [vmem:[#allocation88_spill] sm:$0xff] %v4456_v40  ;;  %v2440_v60 = vadd.f32 %v2312_v22, %v1884_v47  ;;  %v1769_v36 = vmul.f32 %v4198_v5, %v4086_v16  ;;  %v1770_v56 = vmul.f32 %v4200_v7, %v4086_v16  ;;  %v2958_v47 = vld [vmem:[%s3546_s22 + $0xb8] sm:$0xff]  ;;  %v4472_v22 = vld [vmem:[#allocation5 + $0xf0] sm:$0xff] }
 0x441   : > { %5204 = vst [vmem:[#allocation89_spill] sm:$0xff] %v4462_v37  ;;  %5205 = vst [vmem:[#allocation90_spill] sm:$0xff] %v4464_v30  ;;  %v2445_v53 = vadd.f32 %v2317_v6, %v1889_v9  ;;  %v2446_v58 = vadd.f32 %v2318_v54, %v1890_v4  ;;  %v1887_v63 = vadd.f32 %v2957_v24, %v1759_v21  ;;  %v2055_v7 = vpop.permute.xlu0 %2054  ;;  %v2959_v9 = vld [vmem:[%s3546_s22 + $0xe0] sm:$0xff]  ;;  %v2960_v6 = vld [vmem:[%s3546_s22 + $0xe8] sm:$0xff] }
 0x442   : > { %v1888_v50 = vadd.f32 %v2958_v47, %v1760_v35  ;;  %2567 = vst [vmem:[%s4266_s12 + $0x90] sm:$0xff] %v2439_v39  ;;  %2568 = vst [vmem:[%s4266_s12 + $0x98] sm:$0xff] %v2440_v60  ;;  %v2315_v5 = vmul.f32 %v4454_v14, %v2043_v29  ;;  %v2316_v16 = vmul.f32 %v4456_v40, %v2043_v29  ;;  %v4480_v21 = vld [vmem:[#allocation5 + $0xf8] sm:$0xff]  ;;  %v4486_v60 = vld [vmem:[#allocation7 + $0xd0] sm:$0xff] }
 0x443   : > { %v1893_v4 = vadd.f32 %v2959_v9, %v1765_v52  ;;  %v1894_v54 = vadd.f32 %v2960_v6, %v1766_v45  ;;  %2573 = vst [vmem:[%s4266_s12 + $0xc0] sm:$0xff] %v2445_v53  ;;  %2574 = vst [vmem:[%s4266_s12 + $0xc8] sm:$0xff] %v2446_v58  ;;  %v2321_v35 = vmul.f32 %v4462_v37, %v2055_v7  ;;  %v4488_v24 = vld [vmem:[#allocation7 + $0xd8] sm:$0xff]  ;;  %v2961_v29 = vld [vmem:[%s3546_s22 + $0xd0] sm:$0xff] }
 0x444   : > { %v2322_v39 = vmul.f32 %v4464_v30, %v2055_v7  ;;  %v1891_v52 = vadd.f32 %v2961_v29, %v1763_v62  ;;  %v2962_v47 = vld [vmem:[%s3546_s22 + $0xd8] sm:$0xff]  ;;  %v2443_v45 = vadd.f32 %v2315_v5, %v1887_v63  ;;  %v2444_v6 = vadd.f32 %v2316_v16, %v1888_v50  ;;  %v2963_v40 = vld [vmem:[%s3546_s22 + $0x100] sm:$0xff]  ;;  %v2964_v58 = vld [vmem:[%s3546_s22 + $0x108] sm:$0xff]  ;;  %v2051_v30 = vpop.permute.xlu1 %2050 }
 0x445   : > { %v1892_v9 = vadd.f32 %v2962_v47, %v1764_v57  ;;  %v1897_v53 = vadd.f32 %v2963_v40, %v1769_v36  ;;  %v1898_v37 = vadd.f32 %v2964_v58, %v1770_v56  ;;  %v2449_v14 = vadd.f32 %v2321_v35, %v1893_v4  ;;  %v2066_v57 = vpop.permute.xlu0 %2065  ;;  %v4510_v63 = vld [vmem:[#allocation7 + $0xf0] sm:$0xff] }
 0x446   : > { %v2450_v7 = vadd.f32 %v2322_v39, %v1894_v54  ;;  %v1767_v34 = vmul.f32 %v4472_v22, %v4088_v59  ;;  %v1768_v17 = vmul.f32 %v4480_v21, %v4088_v59  ;;  %2571 = vst [vmem:[%s4266_s12 + $0xb0] sm:$0xff] %v2443_v45  ;;  %2572 = vst [vmem:[%s4266_s12 + $0xb8] sm:$0xff] %v2444_v6  ;;  %v2965_v47 = vld [vmem:[%s3546_s22 + $0xf0] sm:$0xff]  ;;  %v2966_v6 = vld [vmem:[%s3546_s22 + $0xf8] sm:$0xff] }
 0x447   : > { %v2319_v5 = vmul.f32 %v4486_v60, %v2051_v30  ;;  %v2320_v62 = vmul.f32 %v4488_v24, %v2051_v30  ;;  %v1773_v40 = vmul.f32 %v4212_v32, %v4090_v23  ;;  %v1774_v36 = vmul.f32 %v4215_v0, %v4090_v23  ;;  %2577 = vst [vmem:[%s4266_s12 + $0xe0] sm:$0xff] %v2449_v14  ;;  %v4512_v30 = vld [vmem:[#allocation7 + $0xf8] sm:$0xff] }
 0x448   : > { %2578 = vst [vmem:[%s4266_s12 + $0xe8] sm:$0xff] %v2450_v7  ;;  %v2325_v56 = vmul.f32 %v4218_v48, %v2066_v57  ;;  %v2326_v59 = vmul.f32 %v4220_v31, %v2066_v57  ;;  %v1771_v50 = vmul.f32 %v4222_v61, %v4092_v8  ;;  %v1772_v23 = vmul.f32 %v4224_v44, %v4092_v8  ;;  %v2059_v29 = vpop.permute.xlu1 %2058  ;;  %v2970_v57 = vld [vmem:[%s3546_s22 + $0x118] sm:$0xff] }
 0x449   : > { %v2447_v16 = vadd.f32 %v2319_v5, %v1891_v52  ;;  %v2448_v14 = vadd.f32 %v2320_v62, %v1892_v9  ;;  %v1777_v4 = vmul.f32 %v4230_v55, %v4094_v2  ;;  %v1778_v54 = vmul.f32 %v4232_v28, %v4094_v2  ;;  %v2074_v58 = vpop.permute.xlu0 %2073  ;;  %v2967_v2 = vld [vmem:[%s3546_s22 + $0x120] sm:$0xff]  ;;  %v2969_v5 = vld [vmem:[%s3546_s22 + $0x110] sm:$0xff] }
 0x44a   : > { %v2453_v35 = vadd.f32 %v2325_v56, %v1897_v53  ;;  %v2454_v39 = vadd.f32 %v2326_v59, %v1898_v37  ;;  %v1895_v45 = vadd.f32 %v2965_v47, %v1767_v34  ;;  %v1896_v8 = vadd.f32 %v2966_v6, %v1768_v17  ;;  %v2968_v37 = vld [vmem:[%s3546_s22 + $0x128] sm:$0xff] }
 0x44b   : > { %2575 = vst [vmem:[%s4266_s12 + $0xd0] sm:$0xff] %v2447_v16  ;;  %2576 = vst [vmem:[%s4266_s12 + $0xd8] sm:$0xff] %v2448_v14  ;;  %v2323_v52 = vmul.f32 %v4510_v63, %v2059_v29  ;;  %v2324_v9 = vmul.f32 %v4512_v30, %v2059_v29  ;;  %v1901_v53 = vadd.f32 %v2967_v2, %v1773_v40  ;;  %v2971_v14 = vld [vmem:[%s3546_s22 + $0x140] sm:$0xff]  ;;  %v2972_v40 = vld [vmem:[%s3546_s22 + $0x148] sm:$0xff] }
 0x44c   : > { %v1902_v7 = vadd.f32 %v2968_v37, %v1774_v36  ;;  %2581 = vst [vmem:[%s4266_s12 + $0x100] sm:$0xff] %v2453_v35  ;;  %2582 = vst [vmem:[%s4266_s12 + $0x108] sm:$0xff] %v2454_v39  ;;  %v2329_v34 = vmul.f32 %v4246_v11, %v2074_v58  ;;  %v2330_v17 = vmul.f32 %v4248_v1, %v2074_v58  ;;  %v2070_v47 = vpop.permute.xlu1 %2069  ;;  %v5208_v2 = vld [vmem:[#allocation16_spill] sm:$0xff] }
 0x44d   : > { %v1899_v62 = vadd.f32 %v2969_v5, %v1771_v50  ;;  %v1900_v56 = vadd.f32 %v2970_v57, %v1772_v23  ;;  %v2451_v59 = vadd.f32 %v2323_v52, %v1895_v45  ;;  %v2452_v16 = vadd.f32 %v2324_v9, %v1896_v8  ;;  %v2082_v45 = vpop.permute.xlu0 %2081  ;;  %v5206_v8 = vld [vmem:[#allocation60_spill] sm:$0xff]  ;;  %v5207_v52 = vld [vmem:[#allocation61_spill] sm:$0xff] }
 0x44e   : > { %v1905_v29 = vadd.f32 %v2971_v14, %v1777_v4  ;;  %v1906_v36 = vadd.f32 %v2972_v40, %v1778_v54  ;;  %v2457_v35 = vadd.f32 %v2329_v34, %v1901_v53  ;;  %v2458_v39 = vadd.f32 %v2330_v17, %v1902_v7  ;;  %v5209_v53 = vld [vmem:[#allocation62_spill] sm:$0xff]  ;;  %v5210_v7 = vld [vmem:[#allocation63_spill] sm:$0xff]  ;;  %v5211_v57 = vld [vmem:[#allocation17_spill] sm:$0xff] }
 0x44f   : > { %v1775_v6 = vmul.f32 %v4256_v13, %v4096_v15  ;;  %v1776_v58 = vmul.f32 %v4258_v49, %v4096_v15  ;;  %2579 = vst [vmem:[%s4266_s12 + $0xf0] sm:$0xff] %v2451_v59  ;;  %2580 = vst [vmem:[%s4266_s12 + $0xf8] sm:$0xff] %v2452_v16  ;;  %v2327_v50 = vmul.f32 %v4273_v46, %v2070_v47  ;;  %v5213_v16 = vld [vmem:[#allocation65_spill] sm:$0xff] }
 0x450   : > { %v2328_v23 = vmul.f32 %v4275_v51, %v2070_v47  ;;  %v1781_v4 = vmul.f32 %v4262_v43, %v4100_v20  ;;  %v1782_v54 = vmul.f32 %v4279_v10, %v4100_v20  ;;  %2585 = vst [vmem:[%s4266_s12 + $0x120] sm:$0xff] %v2457_v35  ;;  %2586 = vst [vmem:[%s4266_s12 + $0x128] sm:$0xff] %v2458_v39  ;;  %v5212_v20 = vld [vmem:[#allocation64_spill] sm:$0xff]  ;;  %v2078_v39 = vpop.permute.xlu1 %2077  ;;  %v2973_v47 = vld [vmem:[%s3546_s22 + $0x130] sm:$0xff] }
 0x451   : > { %v2333_v15 = vmul.f32 %v5206_v8, %v2082_v45  ;;  %v2334_v9 = vmul.f32 %v5207_v52, %v2082_v45  ;;  %v1779_v37 = vmul.f32 %v5209_v53, %v5208_v2  ;;  %v1780_v34 = vmul.f32 %v5210_v7, %v5208_v2  ;;  %v2974_v53 = vld [vmem:[%s3546_s22 + $0x138] sm:$0xff] }
 0x452   : > { %v2455_v17 = vadd.f32 %v2327_v50, %v1899_v62  ;;  %v2456_v5 = vadd.f32 %v2328_v23, %v1900_v56  ;;  %v1785_v59 = vmul.f32 %v5212_v20, %v5211_v57  ;;  %v1786_v14 = vmul.f32 %v5213_v16, %v5211_v57  ;;  %v5214_v62 = vld [vmem:[#allocation66_spill] sm:$0xff]  ;;  %v5215_v50 = vld [vmem:[#allocation67_spill] sm:$0xff]  ;;  %v2090_v20 = vpop.permute.xlu0 %2089  ;;  %v2975_v57 = vld [vmem:[%s3546_s22 + $0x160] sm:$0xff] }
 0x453   : > { %v2461_v40 = vadd.f32 %v2333_v15, %v1905_v29  ;;  %v2462_v35 = vadd.f32 %v2334_v9, %v1906_v36  ;;  %v1903_v45 = vadd.f32 %v2973_v47, %v1775_v6  ;;  %v1904_v2 = vadd.f32 %v2974_v53, %v1776_v58  ;;  %v2976_v36 = vld [vmem:[%s3546_s22 + $0x168] sm:$0xff]  ;;  %v5216_v6 = vld [vmem:[#allocation68_spill] sm:$0xff]  ;;  %v2977_v53 = vld [vmem:[%s3546_s22 + $0x150] sm:$0xff] }
 0x454   : > { %2583 = vst [vmem:[%s4266_s12 + $0x110] sm:$0xff] %v2455_v17  ;;  %2584 = vst [vmem:[%s4266_s12 + $0x118] sm:$0xff] %v2456_v5  ;;  %v2331_v56 = vmul.f32 %v5214_v62, %v2078_v39  ;;  %v2332_v23 = vmul.f32 %v5215_v50, %v2078_v39  ;;  %v1909_v29 = vadd.f32 %v2975_v57, %v1781_v4  ;;  %v5217_v47 = vld [vmem:[#allocation69_spill] sm:$0xff]  ;;  %v2978_v5 = vld [vmem:[%s3546_s22 + $0x158] sm:$0xff]  ;;  %v2086_v57 = vpop.permute.xlu1 %2085 }
 0x455   : > { %v1910_v15 = vadd.f32 %v2976_v36, %v1782_v54  ;;  %2589 = vst [vmem:[%s4266_s12 + $0x140] sm:$0xff] %v2461_v40  ;;  %2590 = vst [vmem:[%s4266_s12 + $0x148] sm:$0xff] %v2462_v35  ;;  %v2337_v9 = vmul.f32 %v5216_v6, %v2090_v20  ;;  %v2338_v58 = vmul.f32 %v5217_v47, %v2090_v20  ;;  %v2979_v16 = vld [vmem:[%s3546_s22 + $0x180] sm:$0xff]  ;;  %v2980_v4 = vld [vmem:[%s3546_s22 + $0x188] sm:$0xff] }
 0x456   : > { %v1907_v17 = vadd.f32 %v2977_v53, %v1779_v37  ;;  %v1908_v62 = vadd.f32 %v2978_v5, %v1780_v34  ;;  %v2459_v39 = vadd.f32 %v2331_v56, %v1903_v45  ;;  %v2460_v50 = vadd.f32 %v2332_v23, %v1904_v2  ;;  %v5218_v36 = vld [vmem:[#allocation20_spill] sm:$0xff]  ;;  %v2098_v45 = vpop.permute.xlu0 %2097  ;;  %v5225_v53 = vld [vmem:[#allocation75_spill] sm:$0xff] }
 0x457   : > { %v1913_v7 = vadd.f32 %v2979_v16, %v1785_v59  ;;  %v1914_v54 = vadd.f32 %v2980_v4, %v1786_v14  ;;  %v2465_v40 = vadd.f32 %v2337_v9, %v1909_v29  ;;  %v2466_v35 = vadd.f32 %v2338_v58, %v1910_v15  ;;  %v5219_v59 = vld [vmem:[#allocation18_spill] sm:$0xff]  ;;  %v5220_v14 = vld [vmem:[#allocation71_spill] sm:$0xff]  ;;  %v5221_v56 = vld [vmem:[#allocation72_spill] sm:$0xff] }
 0x458   : > { %v1783_v20 = vmul.f32 %v4330_v25, %v5218_v36  ;;  %v1784_v47 = vmul.f32 %v4332_v19, %v5218_v36  ;;  %2587 = vst [vmem:[%s4266_s12 + $0x130] sm:$0xff] %v2459_v39  ;;  %2588 = vst [vmem:[%s4266_s12 + $0x138] sm:$0xff] %v2460_v50  ;;  %v2335_v37 = vmul.f32 %v4347_v18, %v2086_v57  ;;  %v5222_v29 = vld [vmem:[#allocation73_spill] sm:$0xff]  ;;  %v5223_v15 = vld [vmem:[#allocation19_spill] sm:$0xff] }
 0x459   : > { %v2336_v34 = vmul.f32 %v4349_v33, %v2086_v57  ;;  %v1789_v16 = vmul.f32 %v4340_v38, %v5219_v59  ;;  %v1790_v2 = vmul.f32 %v5220_v14, %v5219_v59  ;;  %2593 = vst [vmem:[%s4266_s12 + $0x160] sm:$0xff] %v2465_v40  ;;  %2594 = vst [vmem:[%s4266_s12 + $0x168] sm:$0xff] %v2466_v35  ;;  %v5224_v9 = vld [vmem:[#allocation74_spill] sm:$0xff]  ;;  %v5226_v57 = vld [vmem:[#allocation21_spill] sm:$0xff] }
 0x45a   : > { %v2341_v23 = vmul.f32 %v5221_v56, %v2098_v45  ;;  %v2342_v50 = vmul.f32 %v5222_v29, %v2098_v45  ;;  %v1787_v58 = vmul.f32 %v5224_v9, %v5223_v15  ;;  %v1788_v5 = vmul.f32 %v5225_v53, %v5223_v15  ;;  %v5227_v36 = vld [vmem:[#allocation76_spill] sm:$0xff]  ;;  %v5228_v40 = vld [vmem:[#allocation77_spill] sm:$0xff]  ;;  %v2094_v45 = vpop.permute.xlu1 %2093  ;;  %v2981_v29 = vld [vmem:[%s3546_s22 + $0x170] sm:$0xff] }
 0x45b   : > { %v2463_v39 = vadd.f32 %v2335_v37, %v1907_v17  ;;  %v2464_v4 = vadd.f32 %v2336_v34, %v1908_v62  ;;  %v1793_v59 = vmul.f32 %v5227_v36, %v5226_v57  ;;  %v1794_v35 = vmul.f32 %v5228_v40, %v5226_v57  ;;  %v2982_v38 = vld [vmem:[%s3546_s22 + $0x178] sm:$0xff]  ;;  %v5229_v62 = vld [vmem:[#allocation78_spill] sm:$0xff]  ;;  %v2106_v36 = vpop.permute.xlu0 %2105  ;;  %v2983_v57 = vld [vmem:[%s3546_s22 + $0x1a0] sm:$0xff] }
 0x45c   : > { %v2469_v56 = vadd.f32 %v2341_v23, %v1913_v7  ;;  %v2470_v14 = vadd.f32 %v2342_v50, %v1914_v54  ;;  %v1911_v9 = vadd.f32 %v2981_v29, %v1783_v20  ;;  %v1912_v15 = vadd.f32 %v2982_v38, %v1784_v47  ;;  %v5230_v37 = vld [vmem:[#allocation79_spill] sm:$0xff]  ;;  %v2984_v54 = vld [vmem:[%s3546_s22 + $0x1a8] sm:$0xff]  ;;  %v5231_v20 = vld [vmem:[#allocation80_spill] sm:$0xff] }
 0x45d   : > { %2591 = vst [vmem:[%s4266_s12 + $0x150] sm:$0xff] %v2463_v39  ;;  %2592 = vst [vmem:[%s4266_s12 + $0x158] sm:$0xff] %v2464_v4  ;;  %v2339_v17 = vmul.f32 %v5229_v62, %v2094_v45  ;;  %v2340_v34 = vmul.f32 %v5230_v37, %v2094_v45  ;;  %v1917_v7 = vadd.f32 %v2983_v57, %v1789_v16  ;;  %v5232_v50 = vld [vmem:[#allocation81_spill] sm:$0xff]  ;;  %v2985_v47 = vld [vmem:[%s3546_s22 + $0x190] sm:$0xff] }
 0x45e   : > { %v1918_v23 = vadd.f32 %v2984_v54, %v1790_v2  ;;  %2597 = vst [vmem:[%s4266_s12 + $0x180] sm:$0xff] %v2469_v56  ;;  %2598 = vst [vmem:[%s4266_s12 + $0x188] sm:$0xff] %v2470_v14  ;;  %v2345_v29 = vmul.f32 %v5231_v20, %v2106_v36  ;;  %v2346_v38 = vmul.f32 %v5232_v50, %v2106_v36  ;;  %v2986_v4 = vld [vmem:[%s3546_s22 + $0x198] sm:$0xff]  ;;  %v2987_v40 = vld [vmem:[%s3546_s22 + $0x1c0] sm:$0xff]  ;;  %v2102_v57 = vpop.permute.xlu1 %2101 }
 0x45f   : > { %v1915_v39 = vadd.f32 %v2985_v47, %v1787_v58  ;;  %v1916_v62 = vadd.f32 %v2986_v4, %v1788_v5  ;;  %v2467_v45 = vadd.f32 %v2339_v17, %v1911_v9  ;;  %v2468_v37 = vadd.f32 %v2340_v34, %v1912_v15  ;;  %v2988_v16 = vld [vmem:[%s3546_s22 + $0x1c8] sm:$0xff]  ;;  %v5233_v54 = vld [vmem:[#allocation22_spill] sm:$0xff]  ;;  %v2114_v5 = vpop.permute.xlu0 %2113  ;;  %v5235_v15 = vld [vmem:[#allocation83_spill] sm:$0xff] }
 0x460   : > { %v1921_v53 = vadd.f32 %v2987_v40, %v1793_v59  ;;  %v1922_v2 = vadd.f32 %v2988_v16, %v1794_v35  ;;  %v2473_v56 = vadd.f32 %v2345_v29, %v1917_v7  ;;  %v2474_v14 = vadd.f32 %v2346_v38, %v1918_v23  ;;  %v5234_v59 = vld [vmem:[#allocation23_spill] sm:$0xff]  ;;  %v5236_v34 = vld [vmem:[#allocation84_spill] sm:$0xff]  ;;  %v5238_v23 = vld [vmem:[#allocation85_spill] sm:$0xff] }
 0x461   : > { %v1791_v36 = vmul.f32 %v4404_v27, %v5233_v54  ;;  %v1792_v50 = vmul.f32 %v4406_v26, %v5233_v54  ;;  %2595 = vst [vmem:[%s4266_s12 + $0x170] sm:$0xff] %v2467_v45  ;;  %2596 = vst [vmem:[%s4266_s12 + $0x178] sm:$0xff] %v2468_v37  ;;  %v2343_v9 = vmul.f32 %v4420_v42, %v2102_v57  ;;  %v5237_v7 = vld [vmem:[#allocation24_spill] sm:$0xff]  ;;  %v5239_v38 = vld [vmem:[#allocation86_spill] sm:$0xff] }
 0x462   : > { %v2344_v58 = vmul.f32 %v4422_v12, %v2102_v57  ;;  %v1797_v40 = vmul.f32 %v4414_v3, %v5234_v59  ;;  %v1798_v35 = vmul.f32 %v4426_v41, %v5234_v59  ;;  %2601 = vst [vmem:[%s4266_s12 + $0x1a0] sm:$0xff] %v2473_v56  ;;  %2602 = vst [vmem:[%s4266_s12 + $0x1a8] sm:$0xff] %v2474_v14  ;;  %v5240_v16 = vld [vmem:[#allocation25_spill] sm:$0xff]  ;;  %v5241_v57 = vld [vmem:[#allocation54_spill] sm:$0xff] }
 0x463   : > { %v2349_v17 = vmul.f32 %v5235_v15, %v2114_v5  ;;  %v2350_v37 = vmul.f32 %v5236_v34, %v2114_v5  ;;  %v1795_v29 = vmul.f32 %v5238_v23, %v5237_v7  ;;  %v1796_v47 = vmul.f32 %v5239_v38, %v5237_v7  ;;  %v5242_v56 = vld [vmem:[#allocation55_spill] sm:$0xff]  ;;  %v2110_v5 = vpop.permute.xlu1 %2109  ;;  %v2989_v34 = vld [vmem:[%s3546_s22 + $0x1b0] sm:$0xff] }
 0x464   : > { %v2471_v4 = vadd.f32 %v2343_v9, %v1915_v39  ;;  %v2472_v45 = vadd.f32 %v2344_v58, %v1916_v62  ;;  %v1801_v54 = vmul.f32 %v5241_v57, %v5240_v16  ;;  %v1802_v14 = vmul.f32 %v5242_v56, %v5240_v16  ;;  %v2990_v41 = vld [vmem:[%s3546_s22 + $0x1b8] sm:$0xff]  ;;  %v5244_v9 = vld [vmem:[#allocation88_spill] sm:$0xff]  ;;  %v2122_v57 = vpop.permute.xlu0 %2121 }
 0x465   : > { %v2477_v59 = vadd.f32 %v2349_v17, %v1921_v53  ;;  %v2478_v15 = vadd.f32 %v2350_v37, %v1922_v2  ;;  %v1919_v23 = vadd.f32 %v2989_v34, %v1791_v36  ;;  %v1920_v7 = vadd.f32 %v2990_v41, %v1792_v50  ;;  %v5243_v62 = vld [vmem:[#allocation87_spill] sm:$0xff]  ;;  %v2991_v16 = vld [vmem:[%s3546_s22 + $0x1e0] sm:$0xff]  ;;  %v2992_v2 = vld [vmem:[%s3546_s22 + $0x1e8] sm:$0xff] }
 0x466   : > { %2599 = vst [vmem:[%s4266_s12 + $0x190] sm:$0xff] %v2471_v4  ;;  %2600 = vst [vmem:[%s4266_s12 + $0x198] sm:$0xff] %v2472_v45  ;;  %v2347_v39 = vmul.f32 %v5243_v62, %v2110_v5  ;;  %v2348_v58 = vmul.f32 %v5244_v9, %v2110_v5  ;;  %v1925_v53 = vadd.f32 %v2991_v16, %v1797_v40  ;;  %v5245_v36 = vld [vmem:[#allocation89_spill] sm:$0xff]  ;;  %v5246_v37 = vld [vmem:[#allocation90_spill] sm:$0xff] }
 0x467   : > { %v1926_v17 = vadd.f32 %v2992_v2, %v1798_v35  ;;  %2605 = vst [vmem:[%s4266_s12 + $0x1c0] sm:$0xff] %v2477_v59  ;;  %2606 = vst [vmem:[%s4266_s12 + $0x1c8] sm:$0xff] %v2478_v15  ;;  %v2353_v34 = vmul.f32 %v5245_v36, %v2122_v57  ;;  %v2354_v41 = vmul.f32 %v5246_v37, %v2122_v57  ;;  %v2993_v50 = vld [vmem:[%s3546_s22 + $0x1d0] sm:$0xff]  ;;  %v2994_v45 = vld [vmem:[%s3546_s22 + $0x1d8] sm:$0xff]  ;;  %v2118_v16 = vpop.permute.xlu1 %2117 }
 0x468   : > { %v1923_v4 = vadd.f32 %v2993_v50, %v1795_v29  ;;  %v1924_v56 = vadd.f32 %v2994_v45, %v1796_v47  ;;  %v2475_v5 = vadd.f32 %v2347_v39, %v1919_v23  ;;  %v2476_v9 = vadd.f32 %v2348_v58, %v1920_v7  ;;  %v2995_v62 = vld [vmem:[%s3546_s22 + $0x200] sm:$0xff]  ;;  %v2996_v40 = vld [vmem:[%s3546_s22 + $0x208] sm:$0xff]  ;;  %v5247_v2 = vld [vmem:[#allocation26_spill] sm:$0xff]  ;;  %v2133_v47 = vpop.permute.xlu0 %2132 }
 0x469   : > { %v1929_v38 = vadd.f32 %v2995_v62, %v1801_v54  ;;  %v1930_v35 = vadd.f32 %v2996_v40, %v1802_v14  ;;  %v2481_v59 = vadd.f32 %v2353_v34, %v1925_v53  ;;  %v2482_v15 = vadd.f32 %v2354_v41, %v1926_v17  ;;  %v5248_v54 = vld [vmem:[#allocation27_spill] sm:$0xff]  ;;  %v5250_v34 = vld [vmem:[#allocation29_spill] sm:$0xff]  ;;  %v2997_v45 = vld [vmem:[%s3546_s22 + $0x1f0] sm:$0xff] }
 0x46a   : > { %v1799_v57 = vmul.f32 %v4472_v22, %v5247_v2  ;;  %v1800_v37 = vmul.f32 %v4480_v21, %v5247_v2  ;;  %2603 = vst [vmem:[%s4266_s12 + $0x1b0] sm:$0xff] %v2475_v5  ;;  %2604 = vst [vmem:[%s4266_s12 + $0x1b8] sm:$0xff] %v2476_v9  ;;  %v2351_v23 = vmul.f32 %v4486_v60, %v2118_v16  ;;  %v5249_v9 = vld [vmem:[#allocation28_spill] sm:$0xff]  ;;  %v2998_v5 = vld [vmem:[%s3546_s22 + $0x1f8] sm:$0xff] }
 0x46b   : > { %v2352_v29 = vmul.f32 %v4488_v24, %v2118_v16  ;;  %v1805_v14 = vmul.f32 %v4212_v32, %v5248_v54  ;;  %v1806_v7 = vmul.f32 %v4215_v0, %v5248_v54  ;;  %2609 = vst [vmem:[%s4266_s12 + $0x1e0] sm:$0xff] %v2481_v59  ;;  %2610 = vst [vmem:[%s4266_s12 + $0x1e8] sm:$0xff] %v2482_v15  ;;  %v3000_v40 = vld [vmem:[%s3546_s22 + $0x228] sm:$0xff]  ;;  %v3001_v15 = vld [vmem:[%s3546_s22 + $0x210] sm:$0xff] }
 0x46c   : > { %v2357_v62 = vmul.f32 %v4218_v48, %v2133_v47  ;;  %v2358_v39 = vmul.f32 %v4220_v31, %v2133_v47  ;;  %v1803_v58 = vmul.f32 %v4222_v61, %v5249_v9  ;;  %v1804_v53 = vmul.f32 %v4224_v44, %v5249_v9  ;;  %v2126_v31 = vpop.permute.xlu1 %2125  ;;  %v3002_v2 = vld [vmem:[%s3546_s22 + $0x218] sm:$0xff]  ;;  %v3003_v47 = vld [vmem:[%s3546_s22 + $0x240] sm:$0xff] }
 0x46d   : > { %v2479_v17 = vadd.f32 %v2351_v23, %v1923_v4  ;;  %v2480_v32 = vadd.f32 %v2352_v29, %v1924_v56  ;;  %v1809_v0 = vmul.f32 %v4230_v55, %v5250_v34  ;;  %v1810_v41 = vmul.f32 %v4232_v28, %v5250_v34  ;;  %v2141_v56 = vpop.permute.xlu0 %2140  ;;  %v2999_v28 = vld [vmem:[%s3546_s22 + $0x220] sm:$0xff]  ;;  %v5252_v34 = vld [vmem:[#allocation31_spill] sm:$0xff] }
 0x46e   : > { %v2485_v48 = vadd.f32 %v2357_v62, %v1929_v38  ;;  %v2486_v50 = vadd.f32 %v2358_v39, %v1930_v35  ;;  %v1927_v61 = vadd.f32 %v2997_v45, %v1799_v57  ;;  %v1928_v44 = vadd.f32 %v2998_v5, %v1800_v37 }
 0x46f   : > { %2607 = vst [vmem:[%s4266_s12 + $0x1d0] sm:$0xff] %v2479_v17  ;;  %2608 = vst [vmem:[%s4266_s12 + $0x1d8] sm:$0xff] %v2480_v32  ;;  %v2355_v4 = vmul.f32 %v4510_v63, %v2126_v31  ;;  %v2356_v55 = vmul.f32 %v4512_v30, %v2126_v31  ;;  %v1933_v38 = vadd.f32 %v2999_v28, %v1805_v14  ;;  %v3004_v14 = vld [vmem:[%s3546_s22 + $0x248] sm:$0xff] }
 0x470   : > { %v1934_v35 = vadd.f32 %v3000_v40, %v1806_v7  ;;  %2613 = vst [vmem:[%s4266_s12 + $0x200] sm:$0xff] %v2485_v48  ;;  %2614 = vst [vmem:[%s4266_s12 + $0x208] sm:$0xff] %v2486_v50  ;;  %v2361_v59 = vmul.f32 %v4246_v11, %v2141_v56  ;;  %v2362_v37 = vmul.f32 %v4248_v1, %v2141_v56  ;;  %v2137_v9 = vpop.permute.xlu1 %2136  ;;  %v5251_v11 = vld [vmem:[#allocation30_spill] sm:$0xff]  ;;  %v5255_v50 = vld [vmem:[#allocation63_spill] sm:$0xff] }
 0x471   : > { %v1931_v16 = vadd.f32 %v3001_v15, %v1803_v58  ;;  %v1932_v57 = vadd.f32 %v3002_v2, %v1804_v53  ;;  %v2483_v23 = vadd.f32 %v2355_v4, %v1927_v61  ;;  %v2484_v29 = vadd.f32 %v2356_v55, %v1928_v44  ;;  %v2149_v32 = vpop.permute.xlu0 %2148  ;;  %v5254_v48 = vld [vmem:[#allocation62_spill] sm:$0xff]  ;;  %v5256_v61 = vld [vmem:[#allocation33_spill] sm:$0xff]  ;;  %v3007_v2 = vld [vmem:[%s3546_s22 + $0x260] sm:$0xff] }
 0x472   : > { %v1937_v54 = vadd.f32 %v3003_v47, %v1809_v0  ;;  %v1938_v7 = vadd.f32 %v3004_v14, %v1810_v41  ;;  %v2489_v62 = vadd.f32 %v2361_v59, %v1933_v38  ;;  %v2490_v39 = vadd.f32 %v2362_v37, %v1934_v35  ;;  %v5258_v44 = vld [vmem:[#allocation65_spill] sm:$0xff]  ;;  %v3005_v56 = vld [vmem:[%s3546_s22 + $0x230] sm:$0xff]  ;;  %v3006_v38 = vld [vmem:[%s3546_s22 + $0x238] sm:$0xff] }
 0x473   : > { %v1807_v1 = vmul.f32 %v4256_v13, %v5251_v11  ;;  %v1808_v17 = vmul.f32 %v4258_v49, %v5251_v11  ;;  %2611 = vst [vmem:[%s4266_s12 + $0x1f0] sm:$0xff] %v2483_v23  ;;  %2612 = vst [vmem:[%s4266_s12 + $0x1f8] sm:$0xff] %v2484_v29  ;;  %v2359_v58 = vmul.f32 %v4273_v46, %v2137_v9  ;;  %v5253_v46 = vld [vmem:[#allocation32_spill] sm:$0xff]  ;;  %v5259_v35 = vld [vmem:[#allocation66_spill] sm:$0xff] }
 0x474   : > { %v2360_v53 = vmul.f32 %v4275_v51, %v2137_v9  ;;  %v1813_v0 = vmul.f32 %v4262_v43, %v5252_v34  ;;  %v1814_v41 = vmul.f32 %v4279_v10, %v5252_v34  ;;  %2617 = vst [vmem:[%s4266_s12 + $0x220] sm:$0xff] %v2489_v62  ;;  %2618 = vst [vmem:[%s4266_s12 + $0x228] sm:$0xff] %v2490_v39  ;;  %v5257_v10 = vld [vmem:[#allocation64_spill] sm:$0xff]  ;;  %v5260_v37 = vld [vmem:[#allocation67_spill] sm:$0xff] }
 0x475   : > { %v2365_v13 = vmul.f32 %v5206_v8, %v2149_v32  ;;  %v2366_v49 = vmul.f32 %v5207_v52, %v2149_v32  ;;  %v1811_v51 = vmul.f32 %v5254_v48, %v5253_v46  ;;  %v1812_v31 = vmul.f32 %v5255_v50, %v5253_v46  ;;  %v2145_v52 = vpop.permute.xlu1 %2144  ;;  %v3008_v23 = vld [vmem:[%s3546_s22 + $0x268] sm:$0xff]  ;;  %v3010_v39 = vld [vmem:[%s3546_s22 + $0x258] sm:$0xff] }
 0x476   : > { %v2487_v45 = vadd.f32 %v2359_v58, %v1931_v16  ;;  %v2488_v43 = vadd.f32 %v2360_v53, %v1932_v57  ;;  %v1817_v5 = vmul.f32 %v5257_v10, %v5256_v61  ;;  %v1818_v4 = vmul.f32 %v5258_v44, %v5256_v61  ;;  %v2157_v16 = vpop.permute.xlu0 %2156  ;;  %v3012_v53 = vld [vmem:[%s3546_s22 + $0x288] sm:$0xff]  ;;  %v5263_v50 = vld [vmem:[#allocation35_spill] sm:$0xff]  ;;  %v5269_v44 = vld [vmem:[#allocation74_spill] sm:$0xff] }
 0x477   : > { %v2493_v8 = vadd.f32 %v2365_v13, %v1937_v54  ;;  %v2494_v55 = vadd.f32 %v2366_v49, %v1938_v7  ;;  %v1935_v28 = vadd.f32 %v3005_v56, %v1807_v1  ;;  %v1936_v40 = vadd.f32 %v3006_v38, %v1808_v17  ;;  %v5261_v54 = vld [vmem:[#allocation69_spill] sm:$0xff]  ;;  %v3009_v7 = vld [vmem:[%s3546_s22 + $0x250] sm:$0xff]  ;;  %v3011_v17 = vld [vmem:[%s3546_s22 + $0x280] sm:$0xff] }
 0x478   : > { %2615 = vst [vmem:[%s4266_s12 + $0x210] sm:$0xff] %v2487_v45  ;;  %2616 = vst [vmem:[%s4266_s12 + $0x218] sm:$0xff] %v2488_v43  ;;  %v2363_v59 = vmul.f32 %v5259_v35, %v2145_v52  ;;  %v2364_v15 = vmul.f32 %v5260_v37, %v2145_v52  ;;  %v1941_v57 = vadd.f32 %v3007_v2, %v1813_v0  ;;  %v5265_v43 = vld [vmem:[#allocation71_spill] sm:$0xff]  ;;  %v5267_v10 = vld [vmem:[#allocation73_spill] sm:$0xff] }
 0x479   : > { %v1942_v29 = vadd.f32 %v3008_v23, %v1814_v41  ;;  %2621 = vst [vmem:[%s4266_s12 + $0x240] sm:$0xff] %v2493_v8  ;;  %2622 = vst [vmem:[%s4266_s12 + $0x248] sm:$0xff] %v2494_v55  ;;  %v2369_v47 = vmul.f32 %v5216_v6, %v2157_v16  ;;  %v2370_v14 = vmul.f32 %v5261_v54, %v2157_v16  ;;  %v2153_v41 = vpop.permute.xlu1 %2152  ;;  %v5262_v6 = vld [vmem:[#allocation34_spill] sm:$0xff]  ;;  %v5271_v56 = vld [vmem:[#allocation37_spill] sm:$0xff] }
 0x47a   : > { %v1939_v62 = vadd.f32 %v3009_v7, %v1811_v51  ;;  %v1940_v9 = vadd.f32 %v3010_v39, %v1812_v31  ;;  %v2491_v11 = vadd.f32 %v2363_v59, %v1935_v28  ;;  %v2492_v1 = vadd.f32 %v2364_v15, %v1936_v40  ;;  %v2165_v51 = vpop.permute.xlu0 %2164  ;;  %v5264_v31 = vld [vmem:[#allocation70_spill] sm:$0xff]  ;;  %v5272_v28 = vld [vmem:[#allocation76_spill] sm:$0xff]  ;;  %v5273_v40 = vld [vmem:[#allocation77_spill] sm:$0xff] }
 0x47b   : > { %v1945_v58 = vadd.f32 %v3011_v17, %v1817_v5  ;;  %v1946_v32 = vadd.f32 %v3012_v53, %v1818_v4  ;;  %v2497_v34 = vadd.f32 %v2369_v47, %v1941_v57  ;;  %v2498_v0 = vadd.f32 %v2370_v14, %v1942_v29  ;;  %v5270_v4 = vld [vmem:[#allocation75_spill] sm:$0xff]  ;;  %v3013_v16 = vld [vmem:[%s3546_s22 + $0x270] sm:$0xff]  ;;  %v5276_v17 = vld [vmem:[#allocation81_spill] sm:$0xff] }
 0x47c   : > { %v1815_v13 = vmul.f32 %v4330_v25, %v5262_v6  ;;  %v1816_v49 = vmul.f32 %v4332_v19, %v5262_v6  ;;  %2619 = vst [vmem:[%s4266_s12 + $0x230] sm:$0xff] %v2491_v11  ;;  %2620 = vst [vmem:[%s4266_s12 + $0x238] sm:$0xff] %v2492_v1  ;;  %v2367_v46 = vmul.f32 %v4347_v18, %v2153_v41  ;;  %v5266_v25 = vld [vmem:[#allocation72_spill] sm:$0xff]  ;;  %v3014_v57 = vld [vmem:[%s3546_s22 + $0x278] sm:$0xff] }
 0x47d   : > { %v2368_v48 = vmul.f32 %v4349_v33, %v2153_v41  ;;  %v1821_v45 = vmul.f32 %v5264_v31, %v5263_v50  ;;  %v1822_v61 = vmul.f32 %v5265_v43, %v5263_v50  ;;  %2625 = vst [vmem:[%s4266_s12 + $0x260] sm:$0xff] %v2497_v34  ;;  %2626 = vst [vmem:[%s4266_s12 + $0x268] sm:$0xff] %v2498_v0  ;;  %v5268_v18 = vld [vmem:[#allocation36_spill] sm:$0xff]  ;;  %v2161_v15 = vpop.permute.xlu1 %2160  ;;  %v5274_v29 = vld [vmem:[#allocation78_spill] sm:$0xff] }
 0x47e   : > { %v2373_v19 = vmul.f32 %v5266_v25, %v2165_v51  ;;  %v2374_v5 = vmul.f32 %v5267_v10, %v2165_v51  ;;  %v1819_v33 = vmul.f32 %v5269_v44, %v5268_v18  ;;  %v1820_v8 = vmul.f32 %v5270_v4, %v5268_v18  ;;  %v5275_v54 = vld [vmem:[#allocation79_spill] sm:$0xff]  ;;  %v2173_v7 = vpop.permute.xlu0 %2172  ;;  %v3017_v53 = vld [vmem:[%s3546_s22 + $0x290] sm:$0xff] }
 0x47f   : > { %v2495_v55 = vadd.f32 %v2367_v46, %v1939_v62  ;;  %v2496_v52 = vadd.f32 %v2368_v48, %v1940_v9  ;;  %v1825_v38 = vmul.f32 %v5272_v28, %v5271_v56  ;;  %v1826_v35 = vmul.f32 %v5273_v40, %v5271_v56  ;;  %v3015_v62 = vld [vmem:[%s3546_s22 + $0x2a0] sm:$0xff]  ;;  %v3016_v9 = vld [vmem:[%s3546_s22 + $0x2a8] sm:$0xff]  ;;  %v3018_v34 = vld [vmem:[%s3546_s22 + $0x298] sm:$0xff] }
 0x480   : > { %v2501_v59 = vadd.f32 %v2373_v19, %v1945_v58  ;;  %v2502_v37 = vadd.f32 %v2374_v5, %v1946_v32  ;;  %v1943_v2 = vadd.f32 %v3013_v16, %v1815_v13  ;;  %v1944_v23 = vadd.f32 %v3014_v57, %v1816_v49  ;;  %v3019_v13 = vld [vmem:[%s3546_s22 + $0x2c0] sm:$0xff]  ;;  %v3020_v46 = vld [vmem:[%s3546_s22 + $0x2c8] sm:$0xff]  ;;  %v5278_v10 = vld [vmem:[#allocation39_spill] sm:$0xff] }
 0x481   : > { %2623 = vst [vmem:[%s4266_s12 + $0x250] sm:$0xff] %v2495_v55  ;;  %2624 = vst [vmem:[%s4266_s12 + $0x258] sm:$0xff] %v2496_v52  ;;  %v2371_v47 = vmul.f32 %v5274_v29, %v2161_v15  ;;  %v2372_v14 = vmul.f32 %v5275_v54, %v2161_v15  ;;  %v1949_v39 = vadd.f32 %v3015_v62, %v1821_v45  ;;  %v2169_v31 = vpop.permute.xlu1 %2168  ;;  %v5279_v18 = vld [vmem:[#allocation82_spill] sm:$0xff]  ;;  %v5283_v55 = vld [vmem:[#allocation85_spill] sm:$0xff] }
 0x482   : > { %v1950_v11 = vadd.f32 %v3016_v9, %v1822_v61  ;;  %2629 = vst [vmem:[%s4266_s12 + $0x280] sm:$0xff] %v2501_v59  ;;  %2630 = vst [vmem:[%s4266_s12 + $0x288] sm:$0xff] %v2502_v37  ;;  %v2377_v1 = vmul.f32 %v5231_v20, %v2173_v7  ;;  %v2378_v58 = vmul.f32 %v5276_v17, %v2173_v7  ;;  %v5277_v20 = vld [vmem:[#allocation38_spill] sm:$0xff]  ;;  %v2181_v19 = vpop.permute.xlu0 %2180  ;;  %v3021_v28 = vld [vmem:[#allocation5] sm:$0xff] }
 0x483   : > { %v1947_v32 = vadd.f32 %v3017_v53, %v1819_v33  ;;  %v1948_v0 = vadd.f32 %v3018_v34, %v1820_v8  ;;  %v2499_v41 = vadd.f32 %v2371_v47, %v1943_v2  ;;  %v2500_v6 = vadd.f32 %v2372_v14, %v1944_v23  ;;  %v5282_v8 = vld [vmem:[#allocation40_spill] sm:$0xff]  ;;  %v3023_v2 = vld [vmem:[%s3546_s22 + $0x2b0] sm:$0xff]  ;;  %v3024_v23 = vld [vmem:[%s3546_s22 + $0x2b8] sm:$0xff] }
 0x484   : > { %v1953_v49 = vadd.f32 %v3019_v13, %v1825_v38  ;;  %v1954_v48 = vadd.f32 %v3020_v46, %v1826_v35  ;;  %v2505_v51 = vadd.f32 %v2377_v1, %v1949_v39  ;;  %v2506_v50 = vadd.f32 %v2378_v58, %v1950_v11  ;;  %v5285_v38 = vld [vmem:[#allocation41_spill] sm:$0xff]  ;;  %v5286_v47 = vld [vmem:[#allocation87_spill] sm:$0xff]  ;;  %v5287_v14 = vld [vmem:[#allocation88_spill] sm:$0xff] }
 0x485   : > { %v1823_v45 = vmul.f32 %v4404_v27, %v5277_v20  ;;  %v1824_v43 = vmul.f32 %v4406_v26, %v5277_v20  ;;  %2627 = vst [vmem:[%s4266_s12 + $0x270] sm:$0xff] %v2499_v41  ;;  %2628 = vst [vmem:[%s4266_s12 + $0x278] sm:$0xff] %v2500_v6  ;;  %v2375_v61 = vmul.f32 %v4420_v42, %v2169_v31  ;;  %v5280_v27 = vld [vmem:[#allocation83_spill] sm:$0xff]  ;;  %v5281_v26 = vld [vmem:[#allocation84_spill] sm:$0xff]  ;;  %v2177_v16 = vpop.permute.xlu1 %2176 }
 0x486   : > { %v2376_v25 = vmul.f32 %v4422_v12, %v2169_v31  ;;  %v1829_v5 = vmul.f32 %v4414_v3, %v5278_v10  ;;  %v1830_v44 = vmul.f32 %v5279_v18, %v5278_v10  ;;  %2633 = vst [vmem:[%s4266_s12 + $0x2a0] sm:$0xff] %v2505_v51  ;;  %2634 = vst [vmem:[%s4266_s12 + $0x2a8] sm:$0xff] %v2506_v50  ;;  %v5284_v12 = vld [vmem:[#allocation86_spill] sm:$0xff]  ;;  %v3022_v35 = vld [vmem:[#allocation5 + $0x8] sm:$0xff]  ;;  %v2189_v62 = vpop.permute.xlu0 %2188 }
 0x487   : > { %v2381_v33 = vmul.f32 %v5280_v27, %v2181_v19  ;;  %v2382_v4 = vmul.f32 %v5281_v26, %v2181_v19  ;;  %v1827_v42 = vmul.f32 %v5283_v55, %v5282_v8  ;;  %v1828_v52 = vmul.f32 %v5284_v12, %v5282_v8  ;;  %v3025_v39 = vld [vmem:[%s3546_s22 + $0x2e0] sm:$0xff]  ;;  %v3026_v11 = vld [vmem:[%s3546_s22 + $0x2e8] sm:$0xff]  ;;  %v5288_v58 = vld [vmem:[#allocation90_spill] sm:$0xff] }
 0x488   : > { %v2503_v3 = vadd.f32 %v2375_v61, %v1947_v32  ;;  %v2504_v56 = vadd.f32 %v2376_v25, %v1948_v0  ;;  %v1833_v40 = vmul.f32 %v3021_v28, %v5285_v38  ;;  %v1834_v59 = vmul.f32 %v3022_v35, %v5285_v38  ;;  %v3027_v32 = vld [vmem:[%s3546_s22 + $0x2d0] sm:$0xff]  ;;  %v3028_v0 = vld [vmem:[%s3546_s22 + $0x2d8] sm:$0xff]  ;;  %v3031_v10 = vld [vmem:[#allocation5 + $0x20] sm:$0xff] }
 0x489   : > { %v2509_v37 = vadd.f32 %v2381_v33, %v1953_v49  ;;  %v2510_v15 = vadd.f32 %v2382_v4, %v1954_v48  ;;  %v1951_v57 = vadd.f32 %v3023_v2, %v1823_v45  ;;  %v1952_v29 = vadd.f32 %v3024_v23, %v1824_v43  ;;  %v3029_v49 = vld [vmem:[%s3546_s22 + $0x300] sm:$0xff]  ;;  %v3030_v48 = vld [vmem:[%s3546_s22 + $0x308] sm:$0xff]  ;;  %v2185_v20 = vpop.permute.xlu1 %2184  ;;  %v3035_v4 = vld [vmem:[#allocation5 + $0x10] sm:$0xff] }
 0x48a   : > { %2631 = vst [vmem:[%s4266_s12 + $0x290] sm:$0xff] %v2503_v3  ;;  %2632 = vst [vmem:[%s4266_s12 + $0x298] sm:$0xff] %v2504_v56  ;;  %v2379_v54 = vmul.f32 %v5286_v47, %v2177_v16  ;;  %v2380_v7 = vmul.f32 %v5287_v14, %v2177_v16  ;;  %v1957_v9 = vadd.f32 %v3025_v39, %v1829_v5  ;;  %v2200_v19 = vpop.permute.xlu0 %2199  ;;  %v5290_v5 = vld [vmem:[#allocation43_spill] sm:$0xff]  ;;  %v3033_v33 = vld [vmem:[#allocation7] sm:$0xff] }
 0x48b   : > { %v1958_v1 = vadd.f32 %v3026_v11, %v1830_v44  ;;  %2637 = vst [vmem:[%s4266_s12 + $0x2c0] sm:$0xff] %v2509_v37  ;;  %2638 = vst [vmem:[%s4266_s12 + $0x2c8] sm:$0xff] %v2510_v15  ;;  %v2385_v17 = vmul.f32 %v5245_v36, %v2189_v62  ;;  %v2386_v53 = vmul.f32 %v5288_v58, %v2189_v62  ;;  %v5289_v36 = vld [vmem:[#allocation42_spill] sm:$0xff]  ;;  %v3032_v44 = vld [vmem:[#allocation5 + $0x28] sm:$0xff] }
 0x48c   : > { %v1955_v34 = vadd.f32 %v3027_v32, %v1827_v42  ;;  %v1956_v41 = vadd.f32 %v3028_v0, %v1828_v52  ;;  %v2507_v6 = vadd.f32 %v2379_v54, %v1951_v57  ;;  %v2508_v13 = vadd.f32 %v2380_v7, %v1952_v29  ;;  %v3034_v26 = vld [vmem:[#allocation7 + $0x8] sm:$0xff]  ;;  %v5291_v8 = vld [vmem:[#allocation44_spill] sm:$0xff]  ;;  %v3039_v37 = vld [vmem:[%s3546_s22 + $0x2f0] sm:$0xff] }
 0x48d   : > { %v1961_v46 = vadd.f32 %v3029_v49, %v1833_v40  ;;  %v1962_v51 = vadd.f32 %v3030_v48, %v1834_v59  ;;  %v2513_v50 = vadd.f32 %v2385_v17, %v1957_v9  ;;  %v2514_v31 = vadd.f32 %v2386_v53, %v1958_v1  ;;  %v3037_v52 = vld [vmem:[#allocation5 + $0x40] sm:$0xff]  ;;  %v5292_v3 = vld [vmem:[#allocation45_spill] sm:$0xff]  ;;  %v2193_v59 = vpop.permute.xlu1 %2192  ;;  %v3040_v16 = vld [vmem:[%s3546_s22 + $0x2f8] sm:$0xff] }
 0x48e   : > { %v1831_v45 = vmul.f32 %v4472_v22, %v5289_v36  ;;  %v1832_v43 = vmul.f32 %v4480_v21, %v5289_v36  ;;  %2635 = vst [vmem:[%s4266_s12 + $0x2b0] sm:$0xff] %v2507_v6  ;;  %2636 = vst [vmem:[%s4266_s12 + $0x2b8] sm:$0xff] %v2508_v13  ;;  %v2383_v61 = vmul.f32 %v4486_v60, %v2185_v20  ;;  %v3038_v28 = vld [vmem:[#allocation5 + $0x48] sm:$0xff]  ;;  %v2208_v29 = vpop.permute.xlu0 %2207  ;;  %v3041_v47 = vld [vmem:[%s3546_s22 + $0x320] sm:$0xff] }
 0x48f   : > { %v2384_v25 = vmul.f32 %v4488_v24, %v2185_v20  ;;  %v1837_v18 = vmul.f32 %v3031_v10, %v5290_v5  ;;  %v1838_v27 = vmul.f32 %v3032_v44, %v5290_v5  ;;  %2641 = vst [vmem:[%s4266_s12 + $0x2e0] sm:$0xff] %v2513_v50  ;;  %2642 = vst [vmem:[%s4266_s12 + $0x2e8] sm:$0xff] %v2514_v31  ;;  %v3036_v24 = vld [vmem:[#allocation5 + $0x18] sm:$0xff]  ;;  %v3042_v14 = vld [vmem:[%s3546_s22 + $0x328] sm:$0xff] }
 0x490   : > { %v2389_v22 = vmul.f32 %v3033_v33, %v2200_v19  ;;  %v2390_v21 = vmul.f32 %v3034_v26, %v2200_v19  ;;  %v1835_v60 = vmul.f32 %v3035_v4, %v5291_v8  ;;  %v1836_v55 = vmul.f32 %v3036_v24, %v5291_v8  ;;  %v3043_v62 = vld [vmem:[#allocation7 + $0x20] sm:$0xff]  ;;  %v3044_v9 = vld [vmem:[#allocation7 + $0x28] sm:$0xff]  ;;  %v3045_v1 = vld [vmem:[%s3546_s22 + $0x310] sm:$0xff] }
 0x491   : > { %v2511_v42 = vadd.f32 %v2383_v61, %v1955_v34  ;;  %v2512_v12 = vadd.f32 %v2384_v25, %v1956_v41  ;;  %v1841_v56 = vmul.f32 %v3037_v52, %v5292_v3  ;;  %v1842_v38 = vmul.f32 %v3038_v28, %v5292_v3  ;;  %v3046_v58 = vld [vmem:[%s3546_s22 + $0x318] sm:$0xff]  ;;  %v3047_v32 = vld [vmem:[%s3546_s22 + $0x340] sm:$0xff]  ;;  %v3048_v0 = vld [vmem:[%s3546_s22 + $0x348] sm:$0xff]  ;;  %v2204_v49 = vpop.permute.xlu1 %2203 }
 0x492   : > { %v2517_v40 = vadd.f32 %v2389_v22, %v1961_v46  ;;  %v2518_v35 = vadd.f32 %v2390_v21, %v1962_v51  ;;  %v1959_v15 = vadd.f32 %v3039_v37, %v1831_v45  ;;  %v1960_v2 = vadd.f32 %v3040_v16, %v1832_v43  ;;  %v3049_v46 = vld [vmem:[#allocation5 + $0x30] sm:$0xff]  ;;  %v3050_v50 = vld [vmem:[#allocation5 + $0x38] sm:$0xff]  ;;  %v2216_v61 = vpop.permute.xlu0 %2215  ;;  %v3053_v25 = vld [vmem:[#allocation5 + $0x60] sm:$0xff] }
 0x493   : > { %2639 = vst [vmem:[%s4266_s12 + $0x2d0] sm:$0xff] %v2511_v42  ;;  %2640 = vst [vmem:[%s4266_s12 + $0x2d8] sm:$0xff] %v2512_v12  ;;  %v2387_v57 = vmul.f32 %v4510_v63, %v2193_v59  ;;  %v2388_v23 = vmul.f32 %v4512_v30, %v2193_v59  ;;  %v1965_v54 = vadd.f32 %v3041_v47, %v1837_v18  ;;  %v5293_v48 = vld [vmem:[#allocation46_spill] sm:$0xff]  ;;  %v3052_v45 = vld [vmem:[#allocation7 + $0x18] sm:$0xff] }
 0x494   : > { %v1966_v7 = vadd.f32 %v3042_v14, %v1838_v27  ;;  %2645 = vst [vmem:[%s4266_s12 + $0x300] sm:$0xff] %v2517_v40  ;;  %2646 = vst [vmem:[%s4266_s12 + $0x308] sm:$0xff] %v2518_v35  ;;  %v2393_v39 = vmul.f32 %v3043_v62, %v2208_v29  ;;  %v2394_v11 = vmul.f32 %v3044_v9, %v2208_v29  ;;  %v3051_v20 = vld [vmem:[#allocation7 + $0x10] sm:$0xff]  ;;  %v5294_v19 = vld [vmem:[#allocation47_spill] sm:$0xff] }
 0x495   : > { %v1963_v17 = vadd.f32 %v3045_v1, %v1835_v60  ;;  %v1964_v63 = vadd.f32 %v3046_v58, %v1836_v55  ;;  %v2515_v30 = vadd.f32 %v2387_v57, %v1959_v15  ;;  %v2516_v53 = vadd.f32 %v2388_v23, %v1960_v2  ;;  %v3054_v5 = vld [vmem:[#allocation5 + $0x68] sm:$0xff]  ;;  %v3055_v44 = vld [vmem:[#allocation7 + $0x40] sm:$0xff]  ;;  %v3057_v26 = vld [vmem:[#allocation5 + $0x50] sm:$0xff]  ;;  %v2212_v40 = vpop.permute.xlu1 %2211 }
 0x496   : > { %v1969_v34 = vadd.f32 %v3047_v32, %v1841_v56  ;;  %v1970_v41 = vadd.f32 %v3048_v0, %v1842_v38  ;;  %v2521_v6 = vadd.f32 %v2393_v39, %v1965_v54  ;;  %v2522_v13 = vadd.f32 %v2394_v11, %v1966_v7  ;;  %v3056_v33 = vld [vmem:[#allocation7 + $0x48] sm:$0xff]  ;;  %v5295_v21 = vld [vmem:[#allocation48_spill] sm:$0xff]  ;;  %v3058_v8 = vld [vmem:[#allocation5 + $0x58] sm:$0xff]  ;;  %v2224_v29 = vpop.permute.xlu0 %2223 }
 0x497   : > { %v1839_v51 = vmul.f32 %v3049_v46, %v5293_v48  ;;  %v1840_v31 = vmul.f32 %v3050_v50, %v5293_v48  ;;  %2643 = vst [vmem:[%s4266_s12 + $0x2f0] sm:$0xff] %v2515_v30  ;;  %2644 = vst [vmem:[%s4266_s12 + $0x2f8] sm:$0xff] %v2516_v53  ;;  %v2391_v36 = vmul.f32 %v3051_v20, %v2204_v49  ;;  %v3059_v42 = vld [vmem:[#allocation5 + $0x80] sm:$0xff]  ;;  %v5296_v12 = vld [vmem:[#allocation49_spill] sm:$0xff] }
 0x498   : > { %v2392_v43 = vmul.f32 %v3052_v45, %v2204_v49  ;;  %v1845_v10 = vmul.f32 %v3053_v25, %v5294_v19  ;;  %v1846_v18 = vmul.f32 %v3054_v5, %v5294_v19  ;;  %2649 = vst [vmem:[%s4266_s12 + $0x320] sm:$0xff] %v2521_v6  ;;  %2650 = vst [vmem:[%s4266_s12 + $0x328] sm:$0xff] %v2522_v13  ;;  %v3060_v3 = vld [vmem:[#allocation5 + $0x88] sm:$0xff]  ;;  %v3061_v35 = vld [vmem:[%s3546_s22 + $0x330] sm:$0xff] }
 0x499   : > { %v2397_v27 = vmul.f32 %v3055_v44, %v2216_v61  ;;  %v2398_v22 = vmul.f32 %v3056_v33, %v2216_v61  ;;  %v1843_v4 = vmul.f32 %v3057_v26, %v5295_v21  ;;  %v1844_v60 = vmul.f32 %v3058_v8, %v5295_v21  ;;  %v3062_v37 = vld [vmem:[%s3546_s22 + $0x338] sm:$0xff]  ;;  %v3063_v16 = vld [vmem:[#allocation7 + $0x30] sm:$0xff]  ;;  %v3065_v47 = vld [vmem:[%s3546_s22 + $0x360] sm:$0xff]  ;;  %v2220_v49 = vpop.permute.xlu1 %2219 }
 0x49a   : > { %v2519_v24 = vadd.f32 %v2391_v36, %v1963_v17  ;;  %v2520_v55 = vadd.f32 %v2392_v43, %v1964_v63  ;;  %v1849_v52 = vmul.f32 %v3059_v42, %v5296_v12  ;;  %v1850_v56 = vmul.f32 %v3060_v3, %v5296_v12  ;;  %v3064_v57 = vld [vmem:[#allocation7 + $0x38] sm:$0xff]  ;;  %v3066_v14 = vld [vmem:[%s3546_s22 + $0x368] sm:$0xff]  ;;  %v3067_v62 = vld [vmem:[#allocation7 + $0x60] sm:$0xff]  ;;  %v2232_v61 = vpop.permute.xlu0 %2231 }
 0x49b   : > { %v2525_v28 = vadd.f32 %v2397_v27, %v1969_v34  ;;  %v2526_v38 = vadd.f32 %v2398_v22, %v1970_v41  ;;  %v1967_v59 = vadd.f32 %v3061_v35, %v1839_v51  ;;  %v1968_v15 = vadd.f32 %v3062_v37, %v1840_v31  ;;  %v3068_v9 = vld [vmem:[#allocation7 + $0x68] sm:$0xff]  ;;  %v3069_v1 = vld [vmem:[%s3546_s22 + $0x350] sm:$0xff]  ;;  %v3070_v58 = vld [vmem:[%s3546_s22 + $0x358] sm:$0xff] }
 0x49c   : > { %2647 = vst [vmem:[%s4266_s12 + $0x310] sm:$0xff] %v2519_v24  ;;  %2648 = vst [vmem:[%s4266_s12 + $0x318] sm:$0xff] %v2520_v55  ;;  %v2395_v2 = vmul.f32 %v3063_v16, %v2212_v40  ;;  %v2396_v23 = vmul.f32 %v3064_v57, %v2212_v40  ;;  %v1973_v54 = vadd.f32 %v3065_v47, %v1845_v10  ;;  %v3071_v32 = vld [vmem:[%s3546_s22 + $0x380] sm:$0xff]  ;;  %v3072_v0 = vld [vmem:[%s3546_s22 + $0x388] sm:$0xff] }
 0x49d   : > { %v1974_v7 = vadd.f32 %v3066_v14, %v1846_v18  ;;  %2653 = vst [vmem:[%s4266_s12 + $0x340] sm:$0xff] %v2525_v28  ;;  %2654 = vst [vmem:[%s4266_s12 + $0x348] sm:$0xff] %v2526_v38  ;;  %v2401_v39 = vmul.f32 %v3067_v62, %v2224_v29  ;;  %v2402_v11 = vmul.f32 %v3068_v9, %v2224_v29  ;;  %v3073_v46 = vld [vmem:[#allocation5 + $0x70] sm:$0xff]  ;;  %v3074_v50 = vld [vmem:[#allocation5 + $0x78] sm:$0xff]  ;;  %v2228_v40 = vpop.permute.xlu1 %2227 }
 0x49e   : > { %v1971_v17 = vadd.f32 %v3069_v1, %v1843_v4  ;;  %v1972_v63 = vadd.f32 %v3070_v58, %v1844_v60  ;;  %v2523_v30 = vadd.f32 %v2395_v2, %v1967_v59  ;;  %v2524_v53 = vadd.f32 %v2396_v23, %v1968_v15  ;;  %v5297_v48 = vld [vmem:[#allocation50_spill] sm:$0xff]  ;;  %v3076_v45 = vld [vmem:[#allocation7 + $0x58] sm:$0xff]  ;;  %v3077_v25 = vld [vmem:[#allocation5 + $0xa0] sm:$0xff]  ;;  %v2240_v29 = vpop.permute.xlu0 %2239 }
 0x49f   : > { %v1977_v34 = vadd.f32 %v3071_v32, %v1849_v52  ;;  %v1978_v41 = vadd.f32 %v3072_v0, %v1850_v56  ;;  %v2529_v6 = vadd.f32 %v2401_v39, %v1973_v54  ;;  %v2530_v13 = vadd.f32 %v2402_v11, %v1974_v7  ;;  %v3075_v20 = vld [vmem:[#allocation7 + $0x50] sm:$0xff]  ;;  %v5298_v19 = vld [vmem:[#allocation51_spill] sm:$0xff]  ;;  %v3078_v5 = vld [vmem:[#allocation5 + $0xa8] sm:$0xff] }
 0x4a0   : > { %v1847_v51 = vmul.f32 %v3073_v46, %v5297_v48  ;;  %v1848_v31 = vmul.f32 %v3074_v50, %v5297_v48  ;;  %2651 = vst [vmem:[%s4266_s12 + $0x330] sm:$0xff] %v2523_v30  ;;  %2652 = vst [vmem:[%s4266_s12 + $0x338] sm:$0xff] %v2524_v53  ;;  %v2399_v36 = vmul.f32 %v3075_v20, %v2220_v49  ;;  %v3079_v44 = vld [vmem:[#allocation7 + $0x80] sm:$0xff]  ;;  %v3080_v33 = vld [vmem:[#allocation7 + $0x88] sm:$0xff] }
 0x4a1   : > { %v2400_v43 = vmul.f32 %v3076_v45, %v2220_v49  ;;  %v1853_v10 = vmul.f32 %v3077_v25, %v5298_v19  ;;  %v1854_v18 = vmul.f32 %v3078_v5, %v5298_v19  ;;  %2657 = vst [vmem:[%s4266_s12 + $0x360] sm:$0xff] %v2529_v6  ;;  %2658 = vst [vmem:[%s4266_s12 + $0x368] sm:$0xff] %v2530_v13  ;;  %v3081_v26 = vld [vmem:[#allocation5 + $0x90] sm:$0xff]  ;;  %v5299_v21 = vld [vmem:[#allocation52_spill] sm:$0xff]  ;;  %v2236_v49 = vpop.permute.xlu1 %2235 }
 0x4a2   : > { %v2405_v27 = vmul.f32 %v3079_v44, %v2232_v61  ;;  %v2406_v22 = vmul.f32 %v3080_v33, %v2232_v61  ;;  %v1851_v4 = vmul.f32 %v3081_v26, %v5299_v21  ;;  %v3082_v8 = vld [vmem:[#allocation5 + $0x98] sm:$0xff]  ;;  %v2527_v24 = vadd.f32 %v2399_v36, %v1971_v17  ;;  %v3083_v42 = vld [vmem:[#allocation5 + $0xc0] sm:$0xff]  ;;  %v5300_v12 = vld [vmem:[#allocation53_spill] sm:$0xff]  ;;  %v2248_v61 = vpop.permute.xlu0 %2247 }
 0x4a3   : > { %v1852_v60 = vmul.f32 %v3082_v8, %v5299_v21  ;;  %v2528_v55 = vadd.f32 %v2400_v43, %v1972_v63  ;;  %v1857_v52 = vmul.f32 %v3083_v42, %v5300_v12  ;;  %v3084_v3 = vld [vmem:[#allocation5 + $0xc8] sm:$0xff]  ;;  %v3085_v35 = vld [vmem:[%s3546_s22 + $0x370] sm:$0xff]  ;;  %v3086_v37 = vld [vmem:[%s3546_s22 + $0x378] sm:$0xff] }
 0x4a4   : > { %v1858_v56 = vmul.f32 %v3084_v3, %v5300_v12  ;;  %v2533_v28 = vadd.f32 %v2405_v27, %v1977_v34  ;;  %v2534_v38 = vadd.f32 %v2406_v22, %v1978_v41  ;;  %v1975_v59 = vadd.f32 %v3085_v35, %v1847_v51  ;;  %2655 = vst [vmem:[%s4266_s12 + $0x350] sm:$0xff] %v2527_v24  ;;  %v3087_v16 = vld [vmem:[#allocation7 + $0x70] sm:$0xff]  ;;  %v3088_v57 = vld [vmem:[#allocation7 + $0x78] sm:$0xff]  ;;  %v3089_v47 = vld [vmem:[%s3546_s22 + $0x3a0] sm:$0xff] }
 0x4a5   : > { %v1976_v15 = vadd.f32 %v3086_v37, %v1848_v31  ;;  %2656 = vst [vmem:[%s4266_s12 + $0x358] sm:$0xff] %v2528_v55  ;;  %v2403_v2 = vmul.f32 %v3087_v16, %v2228_v40  ;;  %v2404_v23 = vmul.f32 %v3088_v57, %v2228_v40  ;;  %v1981_v54 = vadd.f32 %v3089_v47, %v1853_v10  ;;  %v3090_v14 = vld [vmem:[%s3546_s22 + $0x3a8] sm:$0xff]  ;;  %v3091_v62 = vld [vmem:[#allocation7 + $0xa0] sm:$0xff]  ;;  %v3093_v1 = vld [vmem:[%s3546_s22 + $0x390] sm:$0xff] }
 0x4a6   : > { %v1982_v7 = vadd.f32 %v3090_v14, %v1854_v18  ;;  %2661 = vst [vmem:[%s4266_s12 + $0x380] sm:$0xff] %v2533_v28  ;;  %2662 = vst [vmem:[%s4266_s12 + $0x388] sm:$0xff] %v2534_v38  ;;  %v2409_v39 = vmul.f32 %v3091_v62, %v2240_v29  ;;  %v3092_v9 = vld [vmem:[#allocation7 + $0xa8] sm:$0xff]  ;;  %v1979_v17 = vadd.f32 %v3093_v1, %v1851_v4  ;;  %v3094_v58 = vld [vmem:[%s3546_s22 + $0x398] sm:$0xff] }
 0x4a7   : > { %v2410_v11 = vmul.f32 %v3092_v9, %v2240_v29  ;;  %v1980_v63 = vadd.f32 %v3094_v58, %v1852_v60  ;;  %v2531_v30 = vadd.f32 %v2403_v2, %v1975_v59  ;;  %v2532_v53 = vadd.f32 %v2404_v23, %v1976_v15  ;;  %v3095_v32 = vld [vmem:[%s3546_s22 + $0x3c0] sm:$0xff]  ;;  %v3096_v0 = vld [vmem:[%s3546_s22 + $0x3c8] sm:$0xff]  ;;  %v3097_v46 = vld [vmem:[#allocation5 + $0xb0] sm:$0xff]  ;;  %v2256_v15 = vpop.permute.xlu0 %2255 }
 0x4a8   : > { %v1985_v34 = vadd.f32 %v3095_v32, %v1857_v52  ;;  %v1986_v41 = vadd.f32 %v3096_v0, %v1858_v56  ;;  %v2537_v6 = vadd.f32 %v2409_v39, %v1981_v54  ;;  %v5301_v48 = vld [vmem:[#allocation56_spill] sm:$0xff]  ;;  %v3098_v50 = vld [vmem:[#allocation5 + $0xb8] sm:$0xff]  ;;  %v3099_v20 = vld [vmem:[#allocation7 + $0x90] sm:$0xff]  ;;  %v2244_v52 = vpop.permute.xlu1 %2243 }
 0x4a9   : > { %v2538_v13 = vadd.f32 %v2410_v11, %v1982_v7  ;;  %v1855_v51 = vmul.f32 %v3097_v46, %v5301_v48  ;;  %v1856_v31 = vmul.f32 %v3098_v50, %v5301_v48  ;;  %2659 = vst [vmem:[%s4266_s12 + $0x370] sm:$0xff] %v2531_v30  ;;  %2660 = vst [vmem:[%s4266_s12 + $0x378] sm:$0xff] %v2532_v53  ;;  %v3100_v45 = vld [vmem:[#allocation7 + $0x98] sm:$0xff]  ;;  %v3101_v25 = vld [vmem:[#allocation5 + $0xe0] sm:$0xff] }
 0x4aa   : > { %v2407_v36 = vmul.f32 %v3099_v20, %v2236_v49  ;;  %v2408_v43 = vmul.f32 %v3100_v45, %v2236_v49  ;;  %v5302_v19 = vld [vmem:[#allocation57_spill] sm:$0xff]  ;;  %2665 = vst [vmem:[%s4266_s12 + $0x3a0] sm:$0xff] %v2537_v6  ;;  %v3103_v44 = vld [vmem:[#allocation7 + $0xc0] sm:$0xff]  ;;  %v3105_v4 = vld [vmem:[#allocation5 + $0xd0] sm:$0xff] }
 0x4ab   : > { %v1861_v10 = vmul.f32 %v3101_v25, %v5302_v19  ;;  %v3102_v5 = vld [vmem:[#allocation5 + $0xe8] sm:$0xff]  ;;  %2666 = vst [vmem:[%s4266_s12 + $0x3a8] sm:$0xff] %v2538_v13  ;;  %v2413_v27 = vmul.f32 %v3103_v44, %v2248_v61  ;;  %v5303_v8 = vld [vmem:[#allocation58_spill] sm:$0xff]  ;;  %v3106_v24 = vld [vmem:[#allocation5 + $0xd8] sm:$0xff] }
 0x4ac   : > { %v1862_v18 = vmul.f32 %v3102_v5, %v5302_v19  ;;  %v3104_v33 = vld [vmem:[#allocation7 + $0xc8] sm:$0xff]  ;;  %v2535_v26 = vadd.f32 %v2407_v36, %v1979_v17  ;;  %v2536_v21 = vadd.f32 %v2408_v43, %v1980_v63  ;;  %v1859_v60 = vmul.f32 %v3105_v4, %v5303_v8  ;;  %v3107_v3 = vld [vmem:[%s3546_s22 + $0x3b0] sm:$0xff]  ;;  %v3108_v28 = vld [vmem:[%s3546_s22 + $0x3b8] sm:$0xff]  ;;  %v2252_v63 = vpop.permute.xlu1 %2251 }
 0x4ad   : > { %v2414_v22 = vmul.f32 %v3104_v33, %v2248_v61  ;;  %v1860_v55 = vmul.f32 %v3106_v24, %v5303_v8  ;;  %v2541_v42 = vadd.f32 %v2413_v27, %v1985_v34  ;;  %v1983_v56 = vadd.f32 %v3107_v3, %v1855_v51  ;;  %v3109_v40 = vld [vmem:[#allocation7 + $0xb0] sm:$0xff]  ;;  %v3110_v59 = vld [vmem:[#allocation7 + $0xb8] sm:$0xff]  ;;  %v3111_v16 = vld [vmem:[%s3546_s22 + $0x3e0] sm:$0xff] }
 0x4ae   : > { %v1984_v38 = vadd.f32 %v3108_v28, %v1856_v31  ;;  %2663 = vst [vmem:[%s4266_s12 + $0x390] sm:$0xff] %v2535_v26  ;;  %2664 = vst [vmem:[%s4266_s12 + $0x398] sm:$0xff] %v2536_v21  ;;  %v2411_v35 = vmul.f32 %v3109_v40, %v2244_v52  ;;  %v2412_v37 = vmul.f32 %v3110_v59, %v2244_v52  ;;  %v3112_v57 = vld [vmem:[%s3546_s22 + $0x3e8] sm:$0xff]  ;;  %v3113_v29 = vld [vmem:[#allocation7 + $0xe0] sm:$0xff] }
 0x4af   : > { %v2542_v12 = vadd.f32 %v2414_v22, %v1986_v41  ;;  %v1989_v2 = vadd.f32 %v3111_v16, %v1861_v10  ;;  %v1990_v23 = vadd.f32 %v3112_v57, %v1862_v18  ;;  %2669 = vst [vmem:[%s4266_s12 + $0x3c0] sm:$0xff] %v2541_v42  ;;  %v2417_v47 = vmul.f32 %v3113_v29, %v2256_v15  ;;  %v3114_v54 = vld [vmem:[#allocation7 + $0xe8] sm:$0xff]  ;;  %v3115_v39 = vld [vmem:[%s3546_s22 + $0x3d0] sm:$0xff]  ;;  %v3116_v11 = vld [vmem:[%s3546_s22 + $0x3d8] sm:$0xff] }
 0x4b0   : > { %v2418_v14 = vmul.f32 %v3114_v54, %v2256_v15  ;;  %v2539_v7 = vadd.f32 %v2411_v35, %v1983_v56  ;;  %v2540_v62 = vadd.f32 %v2412_v37, %v1984_v38  ;;  %v1987_v9 = vadd.f32 %v3115_v39, %v1859_v60  ;;  %v3117_v30 = vld [vmem:[#allocation5 + $0xf0] sm:$0xff]  ;;  %v5304_v53 = vld [vmem:[#allocation59_spill] sm:$0xff]  ;;  %v2260_v51 = vpop.permute.xlu1 %2259 }
 0x4b1   : > { %2670 = vst [vmem:[%s4266_s12 + $0x3c8] sm:$0xff] %v2542_v12  ;;  %v1988_v1 = vadd.f32 %v3116_v11, %v1860_v55  ;;  %v2545_v17 = vadd.f32 %v2417_v47, %v1989_v2  ;;  %v1863_v32 = vmul.f32 %v3117_v30, %v5304_v53  ;;  %v3118_v34 = vld [vmem:[#allocation5 + $0xf8] sm:$0xff]  ;;  %v3119_v41 = vld [vmem:[#allocation7 + $0xd0] sm:$0xff] }
 0x4b2   : > { %v2546_v58 = vadd.f32 %v2418_v14, %v1990_v23  ;;  %v1864_v0 = vmul.f32 %v3118_v34, %v5304_v53  ;;  %2667 = vst [vmem:[%s4266_s12 + $0x3b0] sm:$0xff] %v2539_v7  ;;  %2668 = vst [vmem:[%s4266_s12 + $0x3b8] sm:$0xff] %v2540_v62  ;;  %v2415_v6 = vmul.f32 %v3119_v41, %v2252_v63  ;;  %v3120_v13 = vld [vmem:[#allocation7 + $0xd8] sm:$0xff]  ;;  %v3121_v50 = vld [vmem:[%s3546_s22 + $0x3f0] sm:$0xff] }
 0x4b3   : > { %v2416_v49 = vmul.f32 %v3120_v13, %v2252_v63  ;;  %2673 = vst [vmem:[%s4266_s12 + $0x3e0] sm:$0xff] %v2545_v17  ;;  %v1991_v31 = vadd.f32 %v3121_v50, %v1863_v32  ;;  %v3122_v20 = vld [vmem:[%s3546_s22 + $0x3f8] sm:$0xff]  ;;  %v3123_v45 = vld [vmem:[#allocation7 + $0xf0] sm:$0xff]  ;;  %s3263_s22 = scalar_lea.vmem %s3262_s11, 32768 }
 0x4b4   : > { %2674 = vst [vmem:[%s4266_s12 + $0x3e8] sm:$0xff] %v2546_v58  ;;  %v2543_v46 = vadd.f32 %v2415_v6, %v1987_v9  ;;  %v1992_v36 = vadd.f32 %v3122_v20, %v1864_v0  ;;  %v2419_v43 = vmul.f32 %v3123_v45, %v2260_v51  ;;  %v3124_v61 = vld [vmem:[#allocation7 + $0xf8] sm:$0xff]  ;;  %p3265_p0 = scmp.lt.s32.totalorder %s3263_s22, %s3257_s14 }
 0x4b5   : > { %v2544_v48 = vadd.f32 %v2416_v49, %v1988_v1  ;;  %v2420_v25 = vmul.f32 %v3124_v61, %v2260_v51 }
 0x4b6   : > { %2671 = vst [vmem:[%s4266_s12 + $0x3d0] sm:$0xff] %v2543_v46  ;;  %v2547_v19 = vadd.f32 %v2419_v43, %v1991_v31  ;;  %p3266_p11 = por %p3265_p0, %p3264_p13 }
 0x4b7   : > { %2672 = vst [vmem:[%s4266_s12 + $0x3d8] sm:$0xff] %v2544_v48  ;;  %v2548_v10 = vadd.f32 %v2420_v25, %v1992_v36 }
 0x4b8   : > { %2675 = vst [vmem:[%s4266_s12 + $0x3f0] sm:$0xff] %v2547_v19  ;;  %p3267_p5 = pnand %p3266_p11, %p3260_p1 }
 0x4b9   : > { %2676 = vst [vmem:[%s4266_s12 + $0x3f8] sm:$0xff] %v2548_v10 }
 0x4ba   : > { %3270 = shalt.err (!%p3267_p5)
}
 0x4bb   : > { %s3271_s30 = scalar_lea.hbm %s4929_s28, 16384  ;;  %s3275_s20 = scalar_lea.hbm %s4983_s7, 32768 }
 0x4bc   : > { %p3272_p6 = scmp.ne.s32.totalorder %s4929_s28, %s3271_s30  ;;  %p3276_p9 = scmp.lt.s32.totalorder %s4929_s28, %s4983_s7 }
 0x4bd   : > { %p3277_p2 = scmp.lt.s32.totalorder %s3275_s20, %s3271_s30 }
 0x4be   : > { %p3273_p4 = pnand %p3272_p6, %p5305_p12 }
 0x4bf   : > { %p3278_p3 = por %p3277_p2, %p3276_p9 }
 0x4c0   : > { %p3274_p8 = pneg %p3273_p4 }
 0x4c2   : > { %p3279_p10 = pnand %p3278_p3, %p3274_p8 }
 0x4c4   : > { %3282 = shalt.err (!%p3279_p10)
}
 0x4c5   : > { %s3340_s10 = smov 256   ;;  %s3341_s13 = smov 16  }
 0x4c6   : > { %2851 = dma.vmem_to_hbm [thread:$0]  (%p5305_p12), %s4931_s16, 16384, %s4929_s28, %s2678_s18, %s3340_s10, %s3340_s10, %s3341_s13  }
 0x4c7 PF: > { %s2707_s14 = sand.u32 1, %s3317_s24   ;;  %p5306_p7 = scmp.ne.s32.totalorder %s5101_s8, 0 }
 0x4c8   : > { %p5307_p1 = scmp.ge.s32.totalorder %s3329_s27, 2  ;;  %s2708_s1 = scalar_lea.sflag [#allocation4], %s2707_s14 }
 0x4ca   : > { %p2871_p13 = pnand %p5307_p1, %p5306_p7 }
 0x4cc   : > { %p2872_p0 = pneg %p2871_p13 }
 0x4ce   : > { %3312 = dma.done.wait (%p2872_p0), %s2708_s1, 16384  }
 0x4cf   : > { %3314 = vsyncadd (%p2872_p0), %s2708_s1, 4294950912  ;;  %p22_p11 = scmp.ge.s32.totalorder %s3482_s21, 4   ;;  %s5308_s24 = smov %s3321_s25 }
 0x4d0   : > { %s5309_s25 = smov %s3325_s26  ;;  %s5310_s26 = smov %s3498_s29 }
 0x4d1   : > { %s5311_s27 = smov %s3482_s21  ;;  %24 = sbr.rel (!%p22_p11) target bundleno = 9 (0x9), region = 109 }
 0x4d6   :  { %2713 = vsyncpa [#allocation3], 1 }
 0x4d7   :  { %2715 = vsyncpa [#allocation3 + $0x1], 1 }
 0x4d8   :  { %2716 = vsyncpa [#allocation6], 1 }
 0x4d9   :  { %2717 = vsyncpa [#allocation9], 1 }
 0x4da   :  { %2718 = vsyncpa [#allocation4], 1 }
 0x4db   :  { %2720 = vsyncpa [#allocation4 + $0x1], 1 }

// kernel: tpu_custom_call.1
= control target key start
LH: loop header
LB: loop body
LE: loop exit
PB: predicated region body
PF: predicated region fallthrough
CT: control target
= control target key end

     0   :  { %s4976_s0 = inlined_call_operand.hbm [shape: f32[8,128,256], index: 0, kind: input, shape index: {}]   ;;  %s4977_s1 = inlined_call_operand.hbm [shape: f32[128,256], index: 1, kind: input, shape index: {}]   ;;  %s4978_s2 = inlined_call_operand.hbm [shape: f32[128,256], index: 2, kind: input, shape index: {}]   ;;  %s4979_s3 = inlined_call_operand.hbm [shape: f32[128,256], index: 3, kind: input, shape index: {}]   ;;  %s4980_s4 = inlined_call_operand.vmem [shape: f32[1,256], index: 4, kind: input, shape index: {}]   ;;  %s4981_s5 = inlined_call_operand.hbm [shape: f32[256,256], index: 5, kind: input, shape index: {}]   ;;  %s4982_s6 = inlined_call_operand.vmem [shape: f32[1,256], index: 6, kind: input, shape index: {}]   ;;  %s4983_s7 = inlined_call_operand.hbm [shape: f32[8,128,256], index: 7, kind: output, shape index: {}]  }
   0x1   :  { %5099 = sst [smem:[#allocation91_spill]] %s4977_s1 }
   0x2   :  { %12 = vsyncpa [#allocation3], 0 }
   0x3   :  { %14 = vsyncpa [#allocation3 + $0x1], 0 }
   0x4   :  { %15 = vsyncpa [#allocation6], 0 }
   0x5   :  { %16 = vsyncpa [#allocation9], 0 }
   0x6   :  { %17 = vsyncpa [#allocation4], 0 }
   0x7   :  { %19 = vsyncpa [#allocation4 + $0x1], 0  ;;  %s3382_s24 = smov 0   ;;  %s3384_s25 = smov 0  }
   0x8   :  { %s3386_s26 = smov 0   ;;  %s3388_s27 = smov 0  }
   0x9 LB: > { %s3403_s28 = sadd.s32 4294967295, %s3329_s27   ;;  %s2803_s29 = sadd.s32 4294967294, %s3329_s27   ;;  %s3329_s27 = sphi %s3388_s27, %s5311_s27   ;;  %s3325_s26 = sphi %s3386_s26, %s5310_s26   ;;  %s3321_s25 = sphi %s3384_s25, %s5309_s25   ;;  %s3317_s24 = sphi %s3382_s24, %s5308_s24  }
   0xa   : > { %p45_p0 = scmp.ne.s32.totalorder %s3321_s25, %s3317_s24  ;;  %p4984_p1 = scmp.eq.s32.totalorder %s3403_s28, 0 }
   0xb   : > { %p195_p2 = scmp.eq.s32.totalorder %s3403_s28, 1  ;;  %p201_p3 = scmp.eq.s32.totalorder %s2803_s29, 1 }
   0xc   : > { %p3412_p4 = por %p4984_p1, %p45_p0  ;;  %p2804_p5 = scmp.ge.s32.totalorder %s3329_s27, 1 }
   0xd   : > { %p3417_p6 = por %p201_p3, %p45_p0  ;;  %p208_p7 = scmp.lt.s32.totalorder %s3329_s27, 3 }
   0xe   : > { %s5100_s30 = scalar_select %p3412_p4, 1, 0 }
   0xf   : > { %s5101_s8 = scalar_select %p3417_p6, 1, 0 }
  0x10   : > { %p3422_p8 = pnand %p2804_p5, %p208_p7  ;;  %s3331_s10 = smov [#allocation5]  }
  0x11   : > { %s220_s11 = sshll.u32 %s3331_s10, 4  ;;  %s3332_s13 = smov [#allocation8]   ;;  %s221_s11 = int_to_ptr.vmem [resolvable:$true] %s220_s11 }
  0x12   : > { %s5102_s9 = scalar_select %p3422_p8, 1, 0 }
  0x13   : > { %p2853_p9 = pneg %p3422_p8  ;;  %s246_s14 = sshll.u32 %s3332_s13, 4  ;;  %s247_s14 = int_to_ptr.vmem [resolvable:$true] %s246_s14 }
  0x14   : > { %s3333_s15 = smov [#allocation7]   ;;  %s3136_s17 = scalar_lea.vmem %s221_s11, 4096 }
  0x15   : > { %p3431_p11 = pnand %p2853_p9, %p4984_p1  ;;  %s233_s16 = sshll.u32 %s3333_s15, 4  ;;  %s234_s16 = int_to_ptr.vmem [resolvable:$true] %s233_s16 }
  0x16   : > { %p3137_p13 = scmp.ne.s32.totalorder %s221_s11, %s3136_s17  ;;  %p3144_p5 = scmp.lt.s32.totalorder %s221_s11, %s221_s11 }
  0x17   : > { %p3127_p12 = pneg %p3431_p11  ;;  %p3145_p7 = scmp.lt.s32.totalorder %s3136_s17, %s3136_s17 }
  0x19   : > { %p3139_p0 = pnand %p3137_p13, %p3127_p12  ;;  %p3146_p9 = por %p3145_p7, %p3144_p5 }
  0x1b   : > { %p3140_p3 = pneg %p3139_p0 }
  0x1d   : > { %p3147_p10 = pnand %p3146_p9, %p3140_p3 }
  0x1f   : > { %3150 = shalt.err (!%p3147_p10)
}
  0x20   : > { %s4985_s18 = smov 256   ;;  %s4986_s19 = smov 16  }
  0x21   : > { %s5104_s1 = sld [smem:[#allocation91_spill]]  ;;  %s3162_s22 = scalar_lea.vmem %s247_s14, 4096 }
  0x22   : > { %p3163_p13 = scmp.ne.s32.totalorder %s247_s14, %s3162_s22  ;;  %p3170_p3 = scmp.lt.s32.totalorder %s247_s14, %s247_s14 }
  0x23   : > { %p3171_p10 = scmp.lt.s32.totalorder %s3162_s22, %s3162_s22 }
  0x24   : > { %p3165_p0 = pnand %p3163_p13, %p3127_p12 }
  0x25   : > { %p3172_p7 = por %p3171_p10, %p3170_p3 }
  0x26   : > { %p3166_p5 = pneg %p3165_p0 }
  0x27   : > { %2856 = dma.hbm_to_vmem [thread:$0]  (!%p3431_p11), %s5104_s1, 4096, %s221_s11, [#allocation6], %s4985_s18, %s4985_s18, %s4986_s19  }
  0x28   : > { %p3173_p9 = pnand %p3172_p7, %p3166_p5 }
  0x2a   : > { %3176 = shalt.err (!%p3173_p9)
}
  0x2b   : > { %2862 = dma.hbm_to_vmem [thread:$0]  (!%p3431_p11), %s4979_s3, 4096, %s247_s14, [#allocation9], %s4985_s18, %s4985_s18, %s4986_s19  }
  0x2c   : > { %s3188_s10 = scalar_lea.vmem %s234_s16, 4096  ;;  %p3196_p3 = scmp.lt.s32.totalorder %s234_s16, %s234_s16 }
  0x2d   : > { %p3189_p1 = scmp.ne.s32.totalorder %s234_s16, %s3188_s10  ;;  %p3197_p5 = scmp.lt.s32.totalorder %s3188_s10, %s3188_s10 }
  0x2f   : > { %p3191_p13 = pnand %p3189_p1, %p3127_p12  ;;  %p3198_p10 = por %p3197_p5, %p3196_p3 }
  0x31   : > { %p3192_p0 = pneg %p3191_p13 }
  0x33   : > { %p3199_p7 = pnand %p3198_p10, %p3192_p0 }
  0x35   : > { %3202 = shalt.err (!%p3199_p7)
}
  0x36   : > { %2859 = dma.hbm_to_vmem [thread:$0]  (!%p3431_p11), %s4978_s2, 4096, %s234_s16, [#allocation6], %s4985_s18, %s4985_s18, %s4986_s19  }
  0x37   : > { %s3336_s14 = smov [#allocation10]  }
  0x38   : > { %s262_s15 = sshll.u32 %s3336_s14, 4  ;;  %s263_s15 = int_to_ptr.vmem [resolvable:$true] %s262_s15 }
  0x39   : > { %s3214_s17 = scalar_lea.vmem %s263_s15, 8192  ;;  %p3222_p0 = scmp.lt.s32.totalorder %s263_s15, %s263_s15 }
  0x3a   : > { %p3215_p1 = scmp.ne.s32.totalorder %s263_s15, %s3214_s17  ;;  %p3223_p3 = scmp.lt.s32.totalorder %s3214_s17, %s3214_s17 }
  0x3c   : > { %p3217_p9 = pnand %p3215_p1, %p3127_p12  ;;  %p3224_p5 = por %p3223_p3, %p3222_p0 }
  0x3e   : > { %p3218_p13 = pneg %p3217_p9 }
  0x40   : > { %p3225_p10 = pnand %p3224_p5, %p3218_p13 }
  0x42   : > { %3228 = shalt.err (!%p3225_p10)
}
  0x43   : > { %2865 = dma.hbm_to_vmem [thread:$0]  (!%p3431_p11), %s4981_s5, 8192, %s263_s15, [#allocation9], %s4985_s18, %s4985_s18, %s4986_s19  }
  0x44   : > { %s3482_s21 = sadd.s32 1, %s3329_s27   ;;  %s32_s12 = sadd.s32 1, %s3325_s26 }
  0x45   : > { %s29_s22 = ssub.s32 %s3329_s27, %s3482_s21  ;;  %p39_p12 = scmp.ne.s32.totalorder %s3325_s26, %s3321_s25 }
  0x46   : > { %p30_p7 = scmp.eq.s32.totalorder %s29_s22, 0  ;;  %p40_p1 = scmp.eq.s32.totalorder %s3329_s27, 0 }
  0x47   : > { %p3492_p9 = por %p195_p2, %p39_p12  ;;  %p2878_p13 = scmp.lt.s32.totalorder %s3329_s27, 2 }
  0x48   : > { %s3498_s29 = scalar_select %p30_p7, %s3325_s26, %s32_s12  }
  0x49   : > { %s5105_s23 = scalar_select %p3492_p9, 1, 0 }
  0x4a   : > { %p41_p0 = por %p40_p1, %p39_p12  ;;  %s279_s10 = sand.u32 1, %s3325_s26  }
  0x4b   : > { %s2810_s11 = sshll.u32 %s279_s10, 10  ;;  %s2830_s13 = sshll.u32 %s3329_s27, 14 }
  0x4c   : > { %s3505_s17 = scalar_lea.hbm %s4976_s0, %s2830_s13  ;;  %s283_s16 = scalar_lea.vmem [#allocation2], %s2810_s11 }
  0x4d   : > { %s291_s20 = sshll.u32 %s283_s16, 4  ;;  %p3509_p2 = pnand %p2878_p13, %p41_p0  ;;  %s3507_s20 = int_to_ptr.vmem [resolvable:$true] %s291_s20 }
  0x4e   : > { %s3513_s12 = scalar_lea.sflag [#allocation3], %s279_s10  ;;  %s3229_s18 = scalar_lea.hbm %s3505_s17, 16384 }
  0x4f   : > { %p3230_p11 = scmp.ne.s32.totalorder %s3505_s17, %s3229_s18  ;;  %p3231_p3 = pneg %p3509_p2 }
  0x50   : > { %s3234_s11 = scalar_lea.hbm %s4976_s0, 32768  ;;  %p3235_p12 = scmp.lt.s32.totalorder %s3505_s17, %s4976_s0 }
  0x51   : > { %p3232_p5 = pnand %p3231_p3, %p3230_p11  ;;  %p3236_p7 = scmp.lt.s32.totalorder %s3234_s11, %s3229_s18 }
  0x53   : > { %p3233_p10 = pneg %p3232_p5  ;;  %p3237_p1 = por %p3236_p7, %p3235_p12 }
  0x55   : > { %p3238_p13 = pnand %p3237_p1, %p3233_p10 }
  0x57   : > { %3241 = shalt.err (!%p3238_p13)
}
  0x58   : > { %s3242_s10 = scalar_lea.vmem %s3507_s20, 16384  ;;  %s3337_s19 = smov [#allocation2]  }
  0x59   : > { %p3243_p0 = scmp.ne.s32.totalorder %s3507_s20, %s3242_s10  ;;  %s3247_s1 = sshll.u32 %s3337_s19, 4  ;;  %s3248_s1 = int_to_ptr.vmem [resolvable:$false] %s3247_s1 }
  0x5a   : > { %s3249_s13 = scalar_lea.vmem %s3248_s1, 32768  ;;  %p3250_p5 = scmp.lt.s32.totalorder %s3507_s20, %s3248_s1 }
  0x5b   : > { %p3245_p6 = pnand %p3243_p0, %p3231_p3  ;;  %p3251_p9 = scmp.lt.s32.totalorder %s3249_s13, %s3242_s10 }
  0x5d   : > { %p3246_p11 = pneg %p3245_p6  ;;  %p3252_p4 = por %p3251_p9, %p3250_p5 }
  0x5f   : > { %p3253_p8 = pnand %p3252_p4, %p3246_p11 }
  0x61   : > { %3256 = shalt.err (!%p3253_p8)
}
  0x62   : > { %s5107_s18 = smov 16   ;;  %s5108_s14 = smov 256  }
  0x63   : > { %2869 = dma.hbm_to_vmem [thread:$0]  (!%p3509_p2), %s3505_s17, 16384, %s3507_s20, %s3513_s12, %s5108_s14, %s5108_s14, %s5107_s18  }
  0x64   : > { %p5109_p6 = scmp.ne.s32.totalorder %s5102_s9, 0 }
  0x66   : > { %303 = sbr.rel (%p5109_p6) target bundleno = 1223 (0x4c7), region = 48 }
  0x6b   : > { %s3540_s19 = sand.u32 1, %s3321_s25   ;;  %p5110_p4 = scmp.ne.s32.totalorder %s5100_s30, 0 }
  0x6c   : > { %s2815_s1 = sshll.u32 %s3540_s19, 10  ;;  %s306_s11 = scalar_lea.sflag [#allocation3], %s3540_s19 }
  0x6d   : > { %s3546_s22 = scalar_lea.vmem [#allocation2], %s2815_s1 }
  0x6e   : > { %3300 = dma.done.wait (%p5110_p4), %s306_s11, 16384  }
  0x6f   : > { %3302 = vsyncadd (%p5110_p4), %s306_s11, 4294950912  ;;  %p5111_p8 = scmp.eq.s32.totalorder %s3403_s28, 0 }
  0x71   : > { %3304 = dma.done.wait (%p5111_p8), [#allocation6], 8192   ;;  %p5112_p9 = pmov %p5111_p8 }
  0x72   : > { %p5113_p2 = pmov %p5111_p8 }
  0x73   : > { %3306 = vsyncadd (%p5112_p9), [#allocation6], 4294959104 }
  0x74   : > { %3308 = dma.done.wait (%p5113_p2), [#allocation9], 12288   ;;  %p5114_p3 = pmov %p5113_p2 }
  0x75   : > { %v390_v0 = vld [vmem:[%s3546_s22 + $0x100] sm:$0xff]  ;;  %v391_v1 = vld [vmem:[%s3546_s22 + $0x108] sm:$0xff]  ;;  %v392_v5 = vld [vmem:[%s3546_s22 + $0x110] sm:$0xff]  ;;  %vm861_vm0 = vcmask 130112   ;;  %vm868_vm1 = vcmask 195712   ;;  %vm875_vm2 = vcmask 261312  }
  0x76   : > { %3310 = vsyncadd (%p5114_p3), [#allocation9], 4294955008  ;;  %v358_v2 = vld [vmem:[%s3546_s22] sm:$0xff]  ;;  %v534_v3 = vadd.f32 %v391_v1, %v390_v0  ;;  %v359_v4 = vld [vmem:[%s3546_s22 + $0x8] sm:$0xff]  ;;  %vm882_vm3 = vcmask 326912   ;;  %vm889_vm4 = vcmask 392512  }
  0x77   : > { %v393_v6 = vld [vmem:[%s3546_s22 + $0x118] sm:$0xff]  ;;  %v486_v7 = vadd.f32 %v359_v4, %v358_v2  ;;  %v360_v8 = vld [vmem:[%s3546_s22 + $0x10] sm:$0xff]  ;;  %v394_v12 = vld [vmem:[%s3546_s22 + $0x120] sm:$0xff]  ;;  %vm896_vm5 = vcmask 458112   ;;  %vm903_vm6 = vcmask 523712   ;;  %vm910_vm7 = vcmask 589312  }
  0x78   : > { %v361_v9 = vld [vmem:[%s3546_s22 + $0x18] sm:$0xff]  ;;  %535 = vadd.xlane.f32.xlu1 %v534_v3  ;;  %v537_v10 = vadd.f32 %v393_v6, %v392_v5  ;;  %v395_v13 = vld [vmem:[%s3546_s22 + $0x128] sm:$0xff]  ;;  %v362_v14 = vld [vmem:[%s3546_s22 + $0x20] sm:$0xff]  ;;  %vm917_vm8 = vcmask 654912   ;;  %vm924_vm9 = vcmask 720512   ;;  %vm931_vm10 = vcmask 786112  }
  0x79   : > { %487 = vadd.xlane.f32.xlu0 %v486_v7  ;;  %v489_v11 = vadd.f32 %v361_v9, %v360_v8  ;;  %v363_v15 = vld [vmem:[%s3546_s22 + $0x28] sm:$0xff]  ;;  %v540_v16 = vadd.f32 %v395_v13, %v394_v12  ;;  %v424_v18 = vld [vmem:[%s3546_s22 + $0x210] sm:$0xff]  ;;  %v425_v19 = vld [vmem:[%s3546_s22 + $0x218] sm:$0xff]  ;;  %vm938_vm11 = vcmask 851712   ;;  %vm945_vm12 = vcmask 917312   ;;  %s4266_s12 = scalar_lea.vmem [#allocation11], %s2815_s1 }
  0x7a   : > { %v492_v17 = vadd.f32 %v363_v15, %v362_v14  ;;  %v422_v20 = vld [vmem:[%s3546_s22 + $0x200] sm:$0xff]  ;;  %v423_v21 = vld [vmem:[%s3546_s22 + $0x208] sm:$0xff]  ;;  %v585_v22 = vadd.f32 %v425_v19, %v424_v18  ;;  %v396_v24 = vld [vmem:[%s3546_s22 + $0x130] sm:$0xff]  ;;  %vm952_vm13 = vcmask 982912   ;;  %vm959_vm14 = vcmask 1048512   ;;  %s2832_s15 = sshll.u32 %s3403_s28, 14 }
  0x7b   : > { %v582_v23 = vadd.f32 %v423_v21, %v422_v20  ;;  %v397_v25 = vld [vmem:[%s3546_s22 + $0x138] sm:$0xff]  ;;  %v364_v26 = vld [vmem:[%s3546_s22 + $0x30] sm:$0xff]  ;;  %v454_v30 = vld [vmem:[%s3546_s22 + $0x300] sm:$0xff]  ;;  %vm1198_vm15 = vcmask 1041409   ;;  %s2692_s16 = sshll.u32 %s4266_s12, 4  ;;  %s4929_s28 = scalar_lea.hbm %s4983_s7, %s2832_s15  ;;  %s4931_s16 = int_to_ptr.vmem [resolvable:$true] %s2692_s16 }
  0x7c   : > { %538 = vadd.xlane.f32.xlu1 %v537_v10  ;;  %v365_v27 = vld [vmem:[%s3546_s22 + $0x38] sm:$0xff]  ;;  %v543_v28 = vadd.f32 %v397_v25, %v396_v24  ;;  %v455_v31 = vld [vmem:[%s3546_s22 + $0x308] sm:$0xff]  ;;  %v426_v32 = vld [vmem:[%s3546_s22 + $0x220] sm:$0xff]  ;;  %s2678_s18 = scalar_lea.sflag [#allocation4], %s3540_s19  ;;  %s3257_s14 = scalar_lea.vmem %s4931_s16, 16384 }
  0x7d   : > { %490 = vadd.xlane.f32.xlu0 %v489_v11  ;;  %v495_v29 = vadd.f32 %v365_v27, %v364_v26  ;;  %v427_v33 = vld [vmem:[%s3546_s22 + $0x228] sm:$0xff]  ;;  %v630_v34 = vadd.f32 %v455_v31, %v454_v30  ;;  %v366_v36 = vld [vmem:[%s3546_s22 + $0x40] sm:$0xff]  ;;  %v456_v38 = vld [vmem:[%s3546_s22 + $0x310] sm:$0xff]  ;;  %p3258_p10 = scmp.ne.s32.totalorder %s4931_s16, %s3257_s14  ;;  %p5305_p12 = scmp.ne.s32.totalorder %s5105_s23, 0 }
  0x7e   : > { %v588_v35 = vadd.f32 %v427_v33, %v426_v32  ;;  %v367_v37 = vld [vmem:[%s3546_s22 + $0x48] sm:$0xff]  ;;  %v457_v39 = vld [vmem:[%s3546_s22 + $0x318] sm:$0xff]  ;;  %v428_v42 = vld [vmem:[%s3546_s22 + $0x230] sm:$0xff]  ;;  %s3339_s1 = smov [#allocation11]  }
  0x7f   : > { %v498_v40 = vadd.f32 %v367_v37, %v366_v36  ;;  %v633_v41 = vadd.f32 %v457_v39, %v456_v38  ;;  %v429_v43 = vld [vmem:[%s3546_s22 + $0x238] sm:$0xff]  ;;  %v398_v44 = vld [vmem:[%s3546_s22 + $0x140] sm:$0xff]  ;;  %v399_v45 = vld [vmem:[%s3546_s22 + $0x148] sm:$0xff]  ;;  %p3259_p7 = pnand %p3258_p10, %p5305_p12  ;;  %s3261_s11 = sshll.u32 %s3339_s1, 4  ;;  %s3262_s11 = int_to_ptr.vmem [resolvable:$false] %s3261_s11 }
  0x80   : > { %541 = vadd.xlane.f32.xlu1 %v540_v16  ;;  %v591_v46 = vadd.f32 %v429_v43, %v428_v42  ;;  %v546_v47 = vadd.f32 %v399_v45, %v398_v44  ;;  %v368_v48 = vld [vmem:[%s3546_s22 + $0x50] sm:$0xff]  ;;  %v369_v49 = vld [vmem:[%s3546_s22 + $0x58] sm:$0xff]  ;;  %v458_v50 = vld [vmem:[%s3546_s22 + $0x320] sm:$0xff]  ;;  %p3264_p13 = scmp.lt.s32.totalorder %s4931_s16, %s3262_s11 }
  0x81   : > { %493 = vadd.xlane.f32.xlu0 %v492_v17  ;;  %v459_v51 = vld [vmem:[%s3546_s22 + $0x328] sm:$0xff]  ;;  %v501_v52 = vadd.f32 %v369_v49, %v368_v48  ;;  %v430_v54 = vld [vmem:[%s3546_s22 + $0x240] sm:$0xff]  ;;  %v400_v56 = vld [vmem:[%s3546_s22 + $0x150] sm:$0xff]  ;;  %p3260_p1 = pneg %p3259_p7 }
  0x82   : > { %v636_v53 = vadd.f32 %v459_v51, %v458_v50  ;;  %v431_v55 = vld [vmem:[%s3546_s22 + $0x248] sm:$0xff]  ;;  %v401_v57 = vld [vmem:[%s3546_s22 + $0x158] sm:$0xff]  ;;  %v370_v60 = vld [vmem:[%s3546_s22 + $0x60] sm:$0xff] }
  0x83   : > { %v594_v58 = vadd.f32 %v431_v55, %v430_v54  ;;  %v549_v59 = vadd.f32 %v401_v57, %v400_v56  ;;  %v371_v61 = vld [vmem:[%s3546_s22 + $0x68] sm:$0xff]  ;;  %v460_v62 = vld [vmem:[%s3546_s22 + $0x330] sm:$0xff]  ;;  %v461_v63 = vld [vmem:[%s3546_s22 + $0x338] sm:$0xff] }
  0x84   : > { %586 = vadd.xlane.f32.xlu1 %v585_v22  ;;  %v504_v0 = vadd.f32 %v371_v61, %v370_v60  ;;  %v639_v1 = vadd.f32 %v461_v63, %v460_v62  ;;  %v432_v2 = vld [vmem:[%s3546_s22 + $0x250] sm:$0xff]  ;;  %v433_v3 = vld [vmem:[%s3546_s22 + $0x258] sm:$0xff]  ;;  %v402_v4 = vld [vmem:[%s3546_s22 + $0x160] sm:$0xff] }
  0x85   : > { %583 = vadd.xlane.f32.xlu0 %v582_v23  ;;  %v403_v5 = vld [vmem:[%s3546_s22 + $0x168] sm:$0xff]  ;;  %v597_v6 = vadd.f32 %v433_v3, %v432_v2  ;;  %v372_v8 = vld [vmem:[%s3546_s22 + $0x70] sm:$0xff]  ;;  %v373_v9 = vld [vmem:[%s3546_s22 + $0x78] sm:$0xff] }
  0x86   : > { %v552_v7 = vadd.f32 %v403_v5, %v402_v4  ;;  %v462_v10 = vld [vmem:[%s3546_s22 + $0x340] sm:$0xff]  ;;  %v463_v11 = vld [vmem:[%s3546_s22 + $0x348] sm:$0xff]  ;;  %v507_v12 = vadd.f32 %v373_v9, %v372_v8  ;;  %v404_v16 = vld [vmem:[%s3546_s22 + $0x170] sm:$0xff] }
  0x87   : > { %v642_v13 = vadd.f32 %v463_v11, %v462_v10  ;;  %v434_v14 = vld [vmem:[%s3546_s22 + $0x260] sm:$0xff]  ;;  %v435_v15 = vld [vmem:[%s3546_s22 + $0x268] sm:$0xff]  ;;  %v405_v17 = vld [vmem:[%s3546_s22 + $0x178] sm:$0xff] }
  0x88   : > { %544 = vadd.xlane.f32.xlu1 %v543_v28  ;;  %v600_v18 = vadd.f32 %v435_v15, %v434_v14  ;;  %v555_v19 = vadd.f32 %v405_v17, %v404_v16  ;;  %v374_v20 = vld [vmem:[%s3546_s22 + $0x80] sm:$0xff]  ;;  %v375_v21 = vld [vmem:[%s3546_s22 + $0x88] sm:$0xff]  ;;  %v464_v22 = vld [vmem:[%s3546_s22 + $0x350] sm:$0xff] }
  0x89   : > { %496 = vadd.xlane.f32.xlu0 %v495_v29  ;;  %v465_v23 = vld [vmem:[%s3546_s22 + $0x358] sm:$0xff]  ;;  %v510_v24 = vadd.f32 %v375_v21, %v374_v20  ;;  %v436_v26 = vld [vmem:[%s3546_s22 + $0x270] sm:$0xff]  ;;  %v406_v28 = vld [vmem:[%s3546_s22 + $0x180] sm:$0xff] }
  0x8a   : > { %v645_v25 = vadd.f32 %v465_v23, %v464_v22  ;;  %v437_v27 = vld [vmem:[%s3546_s22 + $0x278] sm:$0xff]  ;;  %v407_v29 = vld [vmem:[%s3546_s22 + $0x188] sm:$0xff]  ;;  %v376_v32 = vld [vmem:[%s3546_s22 + $0x90] sm:$0xff] }
  0x8b   : > { %v603_v30 = vadd.f32 %v437_v27, %v436_v26  ;;  %v558_v31 = vadd.f32 %v407_v29, %v406_v28  ;;  %v377_v33 = vld [vmem:[%s3546_s22 + $0x98] sm:$0xff]  ;;  %v438_v38 = vld [vmem:[%s3546_s22 + $0x280] sm:$0xff]  ;;  %v439_v39 = vld [vmem:[%s3546_s22 + $0x288] sm:$0xff] }
  0x8c   : > { %631 = vadd.xlane.f32.xlu1 %v630_v34  ;;  %v466_v34 = vld [vmem:[%s3546_s22 + $0x360] sm:$0xff]  ;;  %v513_v36 = vadd.f32 %v377_v33, %v376_v32  ;;  %v606_v42 = vadd.f32 %v439_v39, %v438_v38  ;;  %v379_v45 = vld [vmem:[%s3546_s22 + $0xa8] sm:$0xff]  ;;  %v440_v50 = vld [vmem:[%s3546_s22 + $0x290] sm:$0xff] }
  0x8d   : > { %589 = vadd.xlane.f32.xlu0 %v588_v35  ;;  %v467_v35 = vld [vmem:[%s3546_s22 + $0x368] sm:$0xff]  ;;  %v378_v44 = vld [vmem:[%s3546_s22 + $0xa0] sm:$0xff]  ;;  %v441_v51 = vld [vmem:[%s3546_s22 + $0x298] sm:$0xff] }
  0x8e   : > { %v648_v37 = vadd.f32 %v467_v35, %v466_v34  ;;  %v516_v48 = vadd.f32 %v379_v45, %v378_v44  ;;  %v609_v54 = vadd.f32 %v441_v51, %v440_v50  ;;  %v380_v56 = vld [vmem:[%s3546_s22 + $0xb0] sm:$0xff]  ;;  %v381_v57 = vld [vmem:[%s3546_s22 + $0xb8] sm:$0xff]  ;;  %v442_v62 = vld [vmem:[%s3546_s22 + $0x2a0] sm:$0xff] }
  0x8f   : > { %v519_v60 = vadd.f32 %v381_v57, %v380_v56  ;;  %v443_v63 = vld [vmem:[%s3546_s22 + $0x2a8] sm:$0xff]  ;;  %v382_v4 = vld [vmem:[%s3546_s22 + $0xc0] sm:$0xff]  ;;  %v444_v10 = vld [vmem:[%s3546_s22 + $0x2b0] sm:$0xff] }
  0x90   : > { %499 = vadd.xlane.f32.xlu1 %v498_v40  ;;  %v408_v40 = vld [vmem:[%s3546_s22 + $0x190] sm:$0xff]  ;;  %v612_v2 = vadd.f32 %v443_v63, %v442_v62  ;;  %v383_v5 = vld [vmem:[%s3546_s22 + $0xc8] sm:$0xff]  ;;  %v445_v11 = vld [vmem:[%s3546_s22 + $0x2b8] sm:$0xff] }
  0x91   : > { %634 = vadd.xlane.f32.xlu0 %v633_v41  ;;  %v409_v41 = vld [vmem:[%s3546_s22 + $0x198] sm:$0xff]  ;;  %v522_v8 = vadd.f32 %v383_v5, %v382_v4  ;;  %v615_v14 = vadd.f32 %v445_v11, %v444_v10  ;;  %v384_v16 = vld [vmem:[%s3546_s22 + $0xd0] sm:$0xff]  ;;  %v446_v22 = vld [vmem:[%s3546_s22 + $0x2c0] sm:$0xff] }
  0x92   : > { %v561_v43 = vadd.f32 %v409_v41, %v408_v40  ;;  %v385_v17 = vld [vmem:[%s3546_s22 + $0xd8] sm:$0xff]  ;;  %v447_v23 = vld [vmem:[%s3546_s22 + $0x2c8] sm:$0xff]  ;;  %v386_v28 = vld [vmem:[%s3546_s22 + $0xe0] sm:$0xff] }
  0x93   : > { %v525_v20 = vadd.f32 %v385_v17, %v384_v16  ;;  %v618_v26 = vadd.f32 %v447_v23, %v446_v22  ;;  %v387_v29 = vld [vmem:[%s3546_s22 + $0xe8] sm:$0xff]  ;;  %v448_v34 = vld [vmem:[%s3546_s22 + $0x2d0] sm:$0xff]  ;;  %v449_v35 = vld [vmem:[%s3546_s22 + $0x2d8] sm:$0xff] }
  0x94   : > { %592 = vadd.xlane.f32.xlu1 %v591_v46  ;;  %v468_v46 = vld [vmem:[%s3546_s22 + $0x370] sm:$0xff]  ;;  %v528_v32 = vadd.f32 %v387_v29, %v386_v28  ;;  %v621_v38 = vadd.f32 %v449_v35, %v448_v34  ;;  %v389_v41 = vld [vmem:[%s3546_s22 + $0xf8] sm:$0xff]  ;;  %v767_v62 = vld [vmem:[#allocation8 + $0xc8] sm:$0xff]  ;;  %v3338_v34 = vmov 0.0  }
  0x95   : > { %547 = vadd.xlane.f32.xlu0 %v546_v47  ;;  %v469_v47 = vld [vmem:[%s3546_s22 + $0x378] sm:$0xff]  ;;  %v388_v40 = vld [vmem:[%s3546_s22 + $0xf0] sm:$0xff]  ;;  %v482_v5 = vld [vmem:[%s3546_s22 + $0x3e0] sm:$0xff]  ;;  %1269 = vmatprep.mubr.f32.mxu0 %v3338_v34 }
  0x96   : > { %v651_v49 = vadd.f32 %v469_v47, %v468_v46  ;;  %v531_v44 = vadd.f32 %v389_v41, %v388_v40  ;;  %v450_v46 = vld [vmem:[%s3546_s22 + $0x2e0] sm:$0xff]  ;;  %v451_v47 = vld [vmem:[%s3546_s22 + $0x2e8] sm:$0xff]  ;;  %v421_v50 = vld [vmem:[%s3546_s22 + $0x1f8] sm:$0xff] }
  0x97   : > { %v772_v51 = vld [vmem:[#allocation8 + $0xf0] sm:$0xff]  ;;  %v453_v57 = vld [vmem:[%s3546_s22 + $0x2f8] sm:$0xff]  ;;  %v762_v10 = vld [vmem:[#allocation8 + $0xa0] sm:$0xff] }
  0x98   : > { %502 = vadd.xlane.f32.xlu1 %v501_v52  ;;  %v410_v52 = vld [vmem:[%s3546_s22 + $0x1a0] sm:$0xff]  ;;  %v452_v56 = vld [vmem:[%s3546_s22 + $0x2f0] sm:$0xff]  ;;  %v765_v4 = vld [vmem:[#allocation8 + $0xb8] sm:$0xff] }
  0x99   : > { %637 = vadd.xlane.f32.xlu0 %v636_v53  ;;  %v411_v53 = vld [vmem:[%s3546_s22 + $0x1a8] sm:$0xff]  ;;  %v627_v63 = vadd.f32 %v453_v57, %v452_v56  ;;  %v757_v16 = vld [vmem:[#allocation8 + $0x78] sm:$0xff]  ;;  %v756_v17 = vld [vmem:[#allocation8 + $0x70] sm:$0xff] }
  0x9a   : > { %v564_v55 = vadd.f32 %v411_v53, %v410_v52  ;;  %v771_v52 = vld [vmem:[#allocation8 + $0xe8] sm:$0xff]  ;;  %v624_v53 = vadd.f32 %v451_v47, %v450_v46  ;;  %v750_v23 = vld [vmem:[#allocation8 + $0x40] sm:$0xff]  ;;  %v745_v29 = vld [vmem:[#allocation8 + $0x18] sm:$0xff] }
  0x9b   : > { %v751_v22 = vld [vmem:[#allocation8 + $0x48] sm:$0xff]  ;;  %v1306_v40 = vld [vmem:[#allocation10 + $0xe0] sm:$0xff]  ;;  %v1305_v41 = vld [vmem:[#allocation10 + $0xd8] sm:$0xff] }
  0x9c   : > { %595 = vadd.xlane.f32.xlu1 %v594_v58  ;;  %v470_v58 = vld [vmem:[%s3546_s22 + $0x380] sm:$0xff]  ;;  %v1301_v47 = vld [vmem:[#allocation10 + $0xb8] sm:$0xff]  ;;  %v1295_v57 = vld [vmem:[#allocation10 + $0x88] sm:$0xff] }
  0x9d   : > { %550 = vadd.xlane.f32.xlu0 %v549_v59  ;;  %v471_v59 = vld [vmem:[%s3546_s22 + $0x388] sm:$0xff]  ;;  %v1302_v46 = vld [vmem:[#allocation10 + $0xc0] sm:$0xff] }
  0x9e   : > { %v654_v61 = vadd.f32 %v471_v59, %v470_v58  ;;  %v769_v58 = vld [vmem:[#allocation8 + $0xd8] sm:$0xff]  ;;  %v480_v59 = vld [vmem:[%s3546_s22 + $0x3d0] sm:$0xff] }
  0xa0   : > { %505 = vadd.xlane.f32.xlu1 %v504_v0  ;;  %v412_v0 = vld [vmem:[%s3546_s22 + $0x1b0] sm:$0xff] }
  0xa1   : > { %640 = vadd.xlane.f32.xlu0 %v639_v1  ;;  %v413_v1 = vld [vmem:[%s3546_s22 + $0x1b8] sm:$0xff] }
  0xa2   : > { %v567_v3 = vadd.f32 %v413_v1, %v412_v0  ;;  %v766_v0 = vld [vmem:[#allocation8 + $0xc0] sm:$0xff] }
  0xa4   : > { %598 = vadd.xlane.f32.xlu1 %v597_v6  ;;  %v472_v6 = vld [vmem:[%s3546_s22 + $0x390] sm:$0xff] }
  0xa5   : > { %553 = vadd.xlane.f32.xlu0 %v552_v7  ;;  %v473_v7 = vld [vmem:[%s3546_s22 + $0x398] sm:$0xff] }
  0xa6   : > { %v657_v9 = vadd.f32 %v473_v7, %v472_v6  ;;  %v483_v6 = vld [vmem:[%s3546_s22 + $0x3e8] sm:$0xff]  ;;  %v764_v7 = vld [vmem:[#allocation8 + $0xb0] sm:$0xff] }
  0xa7   : > { %v672_v11 = vadd.f32 %v483_v6, %v482_v5  ;;  %v1287_v5 = vld [vmem:[#allocation10 + $0x48] sm:$0xff]  ;;  %v1286_v6 = vld [vmem:[#allocation10 + $0x40] sm:$0xff] }
  0xa8   : > { %508 = vadd.xlane.f32.xlu1 %v507_v12  ;;  %v414_v12 = vld [vmem:[%s3546_s22 + $0x1c0] sm:$0xff] }
  0xa9   : > { %643 = vadd.xlane.f32.xlu0 %v642_v13  ;;  %v415_v13 = vld [vmem:[%s3546_s22 + $0x1c8] sm:$0xff] }
  0xaa   : > { %v570_v15 = vadd.f32 %v415_v13, %v414_v12  ;;  %v761_v12 = vld [vmem:[#allocation8 + $0x98] sm:$0xff]  ;;  %v760_v13 = vld [vmem:[#allocation8 + $0x90] sm:$0xff] }
  0xac   : > { %601 = vadd.xlane.f32.xlu1 %v600_v18  ;;  %v474_v18 = vld [vmem:[%s3546_s22 + $0x3a0] sm:$0xff] }
  0xad   : > { %556 = vadd.xlane.f32.xlu0 %v555_v19  ;;  %v475_v19 = vld [vmem:[%s3546_s22 + $0x3a8] sm:$0xff] }
  0xae   : > { %v660_v21 = vadd.f32 %v475_v19, %v474_v18  ;;  %v755_v18 = vld [vmem:[#allocation8 + $0x68] sm:$0xff]  ;;  %v754_v19 = vld [vmem:[#allocation8 + $0x60] sm:$0xff] }
  0xb0   : > { %511 = vadd.xlane.f32.xlu1 %v510_v24  ;;  %v416_v24 = vld [vmem:[%s3546_s22 + $0x1d0] sm:$0xff] }
  0xb1   : > { %646 = vadd.xlane.f32.xlu0 %v645_v25  ;;  %v417_v25 = vld [vmem:[%s3546_s22 + $0x1d8] sm:$0xff] }
  0xb2   : > { %v573_v27 = vadd.f32 %v417_v25, %v416_v24  ;;  %v749_v24 = vld [vmem:[#allocation8 + $0x38] sm:$0xff]  ;;  %v748_v25 = vld [vmem:[#allocation8 + $0x30] sm:$0xff] }
  0xb4   : > { %604 = vadd.xlane.f32.xlu1 %v603_v30  ;;  %v476_v30 = vld [vmem:[%s3546_s22 + $0x3b0] sm:$0xff] }
  0xb5   : > { %559 = vadd.xlane.f32.xlu0 %v558_v31  ;;  %v477_v31 = vld [vmem:[%s3546_s22 + $0x3b8] sm:$0xff] }
  0xb6   : > { %v663_v33 = vadd.f32 %v477_v31, %v476_v30  ;;  %v744_v30 = vld [vmem:[#allocation8 + $0x10] sm:$0xff]  ;;  %v743_v31 = vld [vmem:[#allocation8 + $0x8] sm:$0xff] }
  0xb8   : > { %514 = vadd.xlane.f32.xlu1 %v513_v36  ;;  %v418_v36 = vld [vmem:[%s3546_s22 + $0x1e0] sm:$0xff] }
  0xb9   : > { %649 = vadd.xlane.f32.xlu0 %v648_v37  ;;  %v419_v37 = vld [vmem:[%s3546_s22 + $0x1e8] sm:$0xff] }
  0xba   : > { %v576_v39 = vadd.f32 %v419_v37, %v418_v36  ;;  %v1309_v37 = vld [vmem:[#allocation10 + $0xf8] sm:$0xff] }
  0xbb   : > { %1354 = vmatprep.subr.mxu1 %v1309_v37  ;;  %v1332_v37 = vld [vmem:[#allocation10 + $0x1b0] sm:$0xff] }
  0xbc   : > { %607 = vadd.xlane.f32.xlu1 %v606_v42  ;;  %v478_v42 = vld [vmem:[%s3546_s22 + $0x3c0] sm:$0xff] }
  0xbd   : > { %562 = vadd.xlane.f32.xlu0 %v561_v43  ;;  %v479_v43 = vld [vmem:[%s3546_s22 + $0x3c8] sm:$0xff] }
  0xbe   : > { %v666_v45 = vadd.f32 %v479_v43, %v478_v42  ;;  %v1304_v43 = vld [vmem:[#allocation10 + $0xd0] sm:$0xff] }
  0xc0   : > { %517 = vadd.xlane.f32.xlu1 %v516_v48  ;;  %v773_v48 = vld [vmem:[#allocation8 + $0xf8] sm:$0xff] }
  0xc1   : > { %652 = vadd.xlane.f32.xlu0 %v651_v49  ;;  %v420_v49 = vld [vmem:[%s3546_s22 + $0x1f0] sm:$0xff]  ;;  %1205 = vmatprep.subr.mxu0 %v773_v48 }
  0xc2   : > { %1206 = vmatpush1.msra.mxu0 %v772_v51  ;;  %v1299_v51 = vld [vmem:[#allocation10 + $0xa8] sm:$0xff] }
  0xc3   : > { %1207 = vmatprep.subr.mxu0 %v771_v52  ;;  %v1298_v52 = vld [vmem:[#allocation10 + $0xa0] sm:$0xff] }
  0xc4   : > { %610 = vadd.xlane.f32.xlu1 %v609_v54  ;;  %v770_v54 = vld [vmem:[#allocation8 + $0xe0] sm:$0xff] }
  0xc5   : > { %565 = vadd.xlane.f32.xlu0 %v564_v55  ;;  %v579_v55 = vadd.f32 %v421_v50, %v420_v49  ;;  %1208 = vmatpush1.msra.mxu0 %v770_v54  ;;  %v1300_v49 = vld [vmem:[#allocation10 + $0xb0] sm:$0xff] }
  0xc6   : > { %1209 = vmatprep.subr.mxu0 %v769_v58  ;;  %v1294_v58 = vld [vmem:[#allocation10 + $0x80] sm:$0xff] }
  0xc8   : > { %520 = vadd.xlane.f32.xlu1 %v519_v60  ;;  %v481_v60 = vld [vmem:[%s3546_s22 + $0x3d8] sm:$0xff] }
  0xc9   : > { %655 = vadd.xlane.f32.xlu0 %v654_v61  ;;  %v768_v61 = vld [vmem:[#allocation8 + $0xd0] sm:$0xff]  ;;  %v669_v1 = vadd.f32 %v481_v60, %v480_v59  ;;  %v1293_v59 = vld [vmem:[#allocation10 + $0x78] sm:$0xff] }
  0xca   : > { %1210 = vmatpush1.msra.mxu0 %v768_v61  ;;  %v1292_v61 = vld [vmem:[#allocation10 + $0x70] sm:$0xff] }
  0xcb   : > { %1211 = vmatprep.subr.mxu0 %v767_v62 }
  0xcc   : > { %613 = vadd.xlane.f32.xlu1 %v612_v2  ;;  %v484_v2 = vld [vmem:[%s3546_s22 + $0x3f0] sm:$0xff]  ;;  %1212 = vmatpush1.msra.mxu0 %v766_v0  ;;  %v1290_v0 = vld [vmem:[#allocation10 + $0x60] sm:$0xff] }
  0xcd   : > { %568 = vadd.xlane.f32.xlu0 %v567_v3  ;;  %v485_v3 = vld [vmem:[%s3546_s22 + $0x3f8] sm:$0xff]  ;;  %1213 = vmatprep.subr.mxu0 %v765_v4 }
  0xce   : > { %1214 = vmatpush1.msra.mxu0 %v764_v7  ;;  %v1285_v7 = vld [vmem:[#allocation10 + $0x38] sm:$0xff] }
  0xd0   : > { %523 = vadd.xlane.f32.xlu1 %v522_v8  ;;  %v763_v8 = vld [vmem:[#allocation8 + $0xa8] sm:$0xff] }
  0xd1   : > { %658 = vadd.xlane.f32.xlu0 %v657_v9  ;;  %v675_v9 = vadd.f32 %v485_v3, %v484_v2  ;;  %1215 = vmatprep.subr.mxu0 %v763_v8  ;;  %v1288_v3 = vld [vmem:[#allocation10 + $0x50] sm:$0xff] }
  0xd2   : > { %1216 = vmatpush1.msra.mxu0 %v762_v10 }
  0xd3   : > { %1217 = vmatprep.subr.mxu0 %v761_v12  ;;  %v1282_v12 = vld [vmem:[#allocation10 + $0x20] sm:$0xff] }
  0xd4   : > { %616 = vadd.xlane.f32.xlu1 %v615_v14  ;;  %1218 = vmatpush1.msra.mxu0 %v760_v13  ;;  %v759_v14 = vld [vmem:[#allocation8 + $0x88] sm:$0xff]  ;;  %v1281_v13 = vld [vmem:[#allocation10 + $0x18] sm:$0xff] }
  0xd5   : > { %571 = vadd.xlane.f32.xlu0 %v570_v15  ;;  %1219 = vmatprep.subr.mxu0 %v759_v14  ;;  %v758_v15 = vld [vmem:[#allocation8 + $0x80] sm:$0xff] }
  0xd6   : > { %1220 = vmatpush1.msra.mxu0 %v758_v15  ;;  %v1280_v15 = vld [vmem:[#allocation10 + $0x10] sm:$0xff] }
  0xd7   : > { %1221 = vmatprep.subr.mxu0 %v757_v16 }
  0xd8   : > { %526 = vadd.xlane.f32.xlu1 %v525_v20  ;;  %1222 = vmatpush1.msra.mxu0 %v756_v17  ;;  %v753_v20 = vld [vmem:[#allocation8 + $0x58] sm:$0xff]  ;;  %v1279_v17 = vld [vmem:[#allocation10 + $0x8] sm:$0xff] }
  0xd9   : > { %661 = vadd.xlane.f32.xlu0 %v660_v21  ;;  %1223 = vmatprep.subr.mxu0 %v755_v18  ;;  %v752_v21 = vld [vmem:[#allocation8 + $0x50] sm:$0xff]  ;;  %v1278_v18 = vld [vmem:[#allocation10] sm:$0xff] }
  0xda   : > { %1224 = vmatpush1.msra.mxu0 %v754_v19  ;;  %v1341_v19 = vld [vmem:[#allocation10 + $0x1f8] sm:$0xff] }
  0xdb   : > { %1225 = vmatprep.subr.mxu0 %v753_v20 }
  0xdc   : > { %619 = vadd.xlane.f32.xlu1 %v618_v26  ;;  %1226 = vmatpush1.msra.mxu0 %v752_v21  ;;  %v747_v26 = vld [vmem:[#allocation8 + $0x28] sm:$0xff]  ;;  %v1340_v21 = vld [vmem:[#allocation10 + $0x1f0] sm:$0xff] }
  0xdd   : > { %574 = vadd.xlane.f32.xlu0 %v573_v27  ;;  %1227 = vmatprep.subr.mxu0 %v751_v22  ;;  %v746_v27 = vld [vmem:[#allocation8 + $0x20] sm:$0xff] }
  0xde   : > { %1228 = vmatpush1.msra.mxu0 %v750_v23  ;;  %v1339_v23 = vld [vmem:[#allocation10 + $0x1e8] sm:$0xff] }
  0xdf   : > { %1229 = vmatprep.subr.mxu0 %v749_v24  ;;  %v1338_v24 = vld [vmem:[#allocation10 + $0x1e0] sm:$0xff] }
  0xe0   : > { %529 = vadd.xlane.f32.xlu1 %v528_v32  ;;  %1230 = vmatpush1.msra.mxu0 %v748_v25  ;;  %v1337_v25 = vld [vmem:[#allocation10 + $0x1d8] sm:$0xff] }
  0xe1   : > { %664 = vadd.xlane.f32.xlu0 %v663_v33  ;;  %1231 = vmatprep.subr.mxu0 %v747_v26  ;;  %v742_v33 = vld [vmem:[#allocation8] sm:$0xff] }
  0xe2   : > { %1232 = vmatpush1.msra.mxu0 %v746_v27  ;;  %v1336_v27 = vld [vmem:[#allocation10 + $0x1d0] sm:$0xff] }
  0xe3   : > { %1233 = vmatprep.subr.mxu0 %v745_v29 }
  0xe4   : > { %622 = vadd.xlane.f32.xlu1 %v621_v38  ;;  %1234 = vmatpush1.msra.mxu0 %v744_v30  ;;  %v1308_v38 = vld [vmem:[#allocation10 + $0xf0] sm:$0xff]  ;;  %v1335_v30 = vld [vmem:[#allocation10 + $0x1c8] sm:$0xff] }
  0xe5   : > { %577 = vadd.xlane.f32.xlu0 %v576_v39  ;;  %1235 = vmatprep.subr.mxu0 %v743_v31  ;;  %v1307_v39 = vld [vmem:[#allocation10 + $0xe8] sm:$0xff]  ;;  %v1334_v31 = vld [vmem:[#allocation10 + $0x1c0] sm:$0xff] }
  0xe6   : > { %1236 = vmatpush1.msra.mxu0 %v742_v33  ;;  %1355 = vmatpush1.msra.mxu1 %v1308_v38  ;;  %v1333_v33 = vld [vmem:[#allocation10 + $0x1b8] sm:$0xff] }
  0xe7   : > { %1356 = vmatprep.subr.mxu1 %v1307_v39  ;;  %v1331_v39 = vld [vmem:[#allocation10 + $0x1a8] sm:$0xff] }
  0xe8   : > { %532 = vadd.xlane.f32.xlu1 %v531_v44  ;;  %1357 = vmatpush1.msra.mxu1 %v1306_v40  ;;  %v1330_v40 = vld [vmem:[#allocation10 + $0x1a0] sm:$0xff] }
  0xe9   : > { %667 = vadd.xlane.f32.xlu0 %v666_v45  ;;  %v1303_v45 = vld [vmem:[#allocation10 + $0xc8] sm:$0xff]  ;;  %1358 = vmatprep.subr.mxu1 %v1305_v41  ;;  %v1329_v41 = vld [vmem:[#allocation10 + $0x198] sm:$0xff] }
  0xea   : > { %1359 = vmatpush1.msra.mxu1 %v1304_v43 }
  0xeb   : > { %1360 = vmatprep.subr.mxu1 %v1303_v45  ;;  %v1328_v45 = vld [vmem:[#allocation10 + $0x190] sm:$0xff] }
  0xec   : > { %625 = vadd.xlane.f32.xlu1 %v624_v53  ;;  %1361 = vmatpush1.msra.mxu1 %v1302_v46  ;;  %v1297_v53 = vld [vmem:[#allocation10 + $0x98] sm:$0xff] }
  0xed   : > { %580 = vadd.xlane.f32.xlu0 %v579_v55  ;;  %1362 = vmatprep.subr.mxu1 %v1301_v47  ;;  %v1296_v55 = vld [vmem:[#allocation10 + $0x90] sm:$0xff]  ;;  %v1327_v47 = vld [vmem:[#allocation10 + $0x188] sm:$0xff] }
  0xee   : > { %1363 = vmatpush1.msra.mxu1 %v1300_v49  ;;  %v1326_v49 = vld [vmem:[#allocation10 + $0x180] sm:$0xff] }
  0xef   : > { %1364 = vmatprep.subr.mxu1 %v1299_v51  ;;  %v1325_v51 = vld [vmem:[#allocation10 + $0x178] sm:$0xff] }
  0xf0   : > { %628 = vadd.xlane.f32.xlu1 %v627_v63  ;;  %1365 = vmatpush1.msra.mxu1 %v1298_v52  ;;  %v1291_v63 = vld [vmem:[#allocation10 + $0x68] sm:$0xff] }
  0xf1   : > { %670 = vadd.xlane.f32.xlu0 %v669_v1  ;;  %1366 = vmatprep.subr.mxu1 %v1297_v53  ;;  %v1289_v1 = vld [vmem:[#allocation10 + $0x58] sm:$0xff]  ;;  %v1324_v53 = vld [vmem:[#allocation10 + $0x170] sm:$0xff] }
  0xf2   : > { %1367 = vmatpush1.msra.mxu1 %v1296_v55 }
  0xf3   : > { %1368 = vmatprep.subr.mxu1 %v1295_v57  ;;  %v1323_v57 = vld [vmem:[#allocation10 + $0x168] sm:$0xff] }
  0xf4   : > { %676 = vadd.xlane.f32.xlu1 %v675_v9  ;;  %1369 = vmatpush1.msra.mxu1 %v1294_v58  ;;  %v1284_v9 = vld [vmem:[#allocation10 + $0x30] sm:$0xff]  ;;  %v1322_v58 = vld [vmem:[#allocation10 + $0x160] sm:$0xff] }
  0xf5   : > { %673 = vadd.xlane.f32.xlu0 %v672_v11  ;;  %1370 = vmatprep.subr.mxu1 %v1293_v59  ;;  %v1283_v11 = vld [vmem:[#allocation10 + $0x28] sm:$0xff]  ;;  %v1321_v59 = vld [vmem:[#allocation10 + $0x158] sm:$0xff] }
  0xf6   : > { %1371 = vmatpush1.msra.mxu1 %v1292_v61 }
  0xf7   : > { %1372 = vmatprep.subr.mxu1 %v1291_v63  ;;  %v1320_v63 = vld [vmem:[#allocation10 + $0x150] sm:$0xff] }
  0xf8   : > { %1373 = vmatpush1.msra.mxu1 %v1290_v0 }
  0xf9   : > { %1374 = vmatprep.subr.mxu1 %v1289_v1  ;;  %v1319_v1 = vld [vmem:[#allocation10 + $0x148] sm:$0xff] }
  0xfa   : > { %1375 = vmatpush1.msra.mxu1 %v1288_v3  ;;  %v1318_v3 = vld [vmem:[#allocation10 + $0x140] sm:$0xff] }
  0xfb   : > { %1376 = vmatprep.subr.mxu1 %v1287_v5 }
  0xfc   : > { %1377 = vmatpush1.msra.mxu1 %v1286_v6 }
  0xfd   : > { %1378 = vmatprep.subr.mxu1 %v1285_v7 }
  0xfe   : > { %1379 = vmatpush1.msra.mxu1 %v1284_v9 }
  0xff   : > { %1380 = vmatprep.subr.mxu1 %v1283_v11  ;;  %v776_v11 = vlaneseq }
 0x100   : > { %1381 = vmatpush1.msra.mxu1 %v1282_v12 }
 0x101   : > { %v3688_v28 = vpop.xlane.xlu1 %535  ;;  %1382 = vmatprep.subr.mxu1 %v1281_v13 }
 0x102   : > { %v3690_v32 = vpop.xlane.xlu0 %487  ;;  %1383 = vmatpush1.msra.mxu1 %v1280_v15  ;;  %v851_v15 = vand.u32 127, %v776_v11 }
 0x103   : > { %1384 = vmatprep.subr.mxu1 %v1279_v17 }
 0x104   : > { %1385 = vmatpush1.msra.mxu1 %v1278_v18  ;;  %v3762_v18 = vshrl.u32 %v776_v11, 7 }
 0x105   : > { %v3692_v35 = vpop.xlane.xlu1 %538  ;;  %1386 = vmatprep.subr.mxu1 %v1341_v19 }
 0x106   : > { %v3694_v36 = vpop.xlane.xlu0 %490  ;;  %1387 = vmatpush2.msra.mxu1 %v1340_v21  ;;  %v856_v21 = vadd.s32 4294967288, %v851_v15 }
 0x107   : > { %1388 = vmatprep.subr.mxu1 %v1339_v23  ;;  %v863_v23 = vadd.s32 4294967280, %v851_v15 }
 0x108   : > { %1389 = vmatpush2.msra.mxu1 %v1338_v24  ;;  %v870_v24 = vadd.s32 4294967272, %v851_v15 }
 0x109   : > { %v3696_v42 = vpop.xlane.xlu1 %541  ;;  %1390 = vmatprep.subr.mxu1 %v1337_v25  ;;  %v877_v25 = vadd.s32 4294967264, %v851_v15 }
 0x10a   : > { %v3698_v44 = vpop.xlane.xlu0 %493  ;;  %1391 = vmatpush2.msra.mxu1 %v1336_v27  ;;  %v884_v27 = vadd.s32 4294967256, %v851_v15 }
 0x10b   : > { %1392 = vmatprep.subr.mxu1 %v1335_v30  ;;  %v891_v30 = vadd.s32 4294967248, %v851_v15 }
 0x10c   : > { %1393 = vmatpush2.msra.mxu1 %v1334_v31  ;;  %v898_v31 = vadd.s32 4294967240, %v851_v15 }
 0x10d   : > { %v3700_v48 = vpop.xlane.xlu1 %586  ;;  %1394 = vmatprep.subr.mxu1 %v1333_v33  ;;  %v905_v33 = vadd.s32 4294967232, %v851_v15 }
 0x10e   : > { %v3702_v50 = vpop.xlane.xlu0 %583  ;;  %1395 = vmatpush2.msra.mxu1 %v1332_v37 }
 0x10f   : > { %1396 = vmatprep.subr.mxu1 %v1331_v39  ;;  %v3769_v39 = vsub.s32 %v851_v15, %v3762_v18 }
 0x110   : > { %1397 = vmatpush2.msra.mxu1 %v1330_v40  ;;  %v912_v40 = vadd.s32 4294967224, %v851_v15 }
 0x111   : > { %v3704_v54 = vpop.xlane.xlu1 %544  ;;  %1398 = vmatprep.subr.mxu1 %v1329_v41  ;;  %v919_v41 = vadd.s32 4294967216, %v851_v15 }
 0x112   : > { %v3706_v56 = vpop.xlane.xlu0 %496  ;;  %1399 = vmatpush2.msra.mxu1 %v1328_v45 }
 0x113   : > { %1400 = vmatprep.subr.mxu1 %v1327_v47  ;;  %v926_v47 = vadd.s32 4294967208, %v851_v15 }
 0x114   : > { %1401 = vmatpush2.msra.mxu1 %v1326_v49  ;;  %v3774_v49 = vsub.s32 %v856_v21, %v3762_v18  ;;  %v940_v21 = vadd.s32 4294967192, %v851_v15 }
 0x115   : > { %v3708_v60 = vpop.xlane.xlu1 %631  ;;  %1402 = vmatprep.subr.mxu1 %v1325_v51  ;;  %v3777_v51 = vsub.s32 %v863_v23, %v3762_v18  ;;  %v947_v23 = vadd.s32 4294967184, %v851_v15 }
 0x116   : > { %v3710_v62 = vpop.xlane.xlu0 %589  ;;  %1403 = vmatpush2.msra.mxu1 %v1324_v53  ;;  %v933_v53 = vadd.s32 4294967200, %v851_v15 }
 0x117   : > { %1404 = vmatprep.subr.mxu1 %v1323_v57  ;;  %v3780_v57 = vsub.s32 %v870_v24, %v3762_v18  ;;  %v695_v24 = vmul.f32 0.00390625, %v3692_v35 }
 0x118   : > { %1405 = vmatpush2.msra.mxu1 %v1322_v58  ;;  %v3783_v58 = vsub.s32 %v877_v25, %v3762_v18  ;;  %v3801_v25 = vsub.s32 %v912_v40, %v3762_v18  ;;  %v3815_v35 = vsub.s32 %v933_v53, %v3762_v18  ;;  %v680_v40 = vmul.f32 0.00390625, %v3698_v44 }
 0x119   : > { %v3712_v2 = vpop.xlane.xlu1 %499  ;;  %1406 = vmatprep.subr.mxu1 %v1321_v59  ;;  %v3786_v59 = vsub.s32 %v884_v27, %v3762_v18  ;;  %v3804_v27 = vsub.s32 %v919_v41, %v3762_v18  ;;  %v711_v41 = vmul.f32 0.00390625, %v3700_v48  ;;  %v968_v44 = vrot.slane %v695_v24, %v3774_v49 }
 0x11a   : > { %v3714_v4 = vpop.xlane.xlu0 %634  ;;  %1407 = vmatpush2.msra.mxu1 %v1320_v63  ;;  %v3789_v63 = vsub.s32 %v891_v30, %v3762_v18  ;;  %v3807_v30 = vsub.s32 %v926_v47, %v3762_v18  ;;  %5120 = vst [vmem:[#allocation21_spill] sm:$0xff] %v3815_v35  ;;  %v697_v47 = vmul.f32 0.00390625, %v3704_v54  ;;  %v712_v48 = vmul.f32 0.00390625, %v3710_v62 }
 0x11b   : > { %1408 = vmatprep.subr.mxu1 %v1319_v1  ;;  %v3792_v1 = vsub.s32 %v898_v31, %v3762_v18  ;;  %5117 = vst [vmem:[#allocation18_spill] sm:$0xff] %v3804_v27  ;;  %v710_v27 = vmul.f32 0.00390625, %v3702_v50  ;;  %v682_v50 = vmul.f32 0.00390625, %v3712_v2  ;;  %v954_v54 = vadd.s32 4294967176, %v851_v15 }
 0x11c   : > { %1409 = vmatpush2.msra.mxu1 %v1318_v3  ;;  %v3795_v3 = vsub.s32 %v905_v33, %v3762_v18  ;;  %5118 = vst [vmem:[#allocation19_spill] sm:$0xff] %v3807_v30  ;;  %v694_v33 = vmul.f32 0.00390625, %v3688_v28  ;;  %v678_v30 = vmul.f32 0.00390625, %v3690_v32  ;;  %v681_v28 = vmul.f32 0.00390625, %v3706_v56 }
 0x11d   : > { %v3716_v8 = vpop.xlane.xlu1 %592  ;;  %v1043_v24 = vrot.slane %v710_v27, %v3769_v39  ;;  %v978_v62 = vrot.slane %v697_v47, %v3780_v57 }
 0x11e   : > { %v3718_v10 = vpop.xlane.xlu0 %547  ;;  %v964_v32 = vrot.slane %v694_v33, %v3769_v39  ;;  %v855_v2 = vrot.slane %v678_v30, %v3769_v39  ;;  %v874_v15 = vrot.slane %v681_v28, %v3780_v57  ;;  %v726_v33 = vmul.f32 0.00390625, %v3708_v60 }
 0x11f   : > { %v698_v27 = vmul.f32 0.00390625, %v3718_v10 }
 0x121   : > { %v3720_v14 = vpop.xlane.xlu1 %502 }
 0x122   : > { %v3722_v16 = vpop.xlane.xlu0 %637 }
 0x125   : > { %v3724_v20 = vpop.xlane.xlu1 %595 }
 0x126   : > { %v3726_v22 = vpop.xlane.xlu0 %550 }
 0x129   : > { %v3728_v26 = vpop.xlane.xlu1 %505 }
 0x12a   : > { %v3730_v29 = vpop.xlane.xlu0 %640 }
 0x12d   : > { %v3732_v34 = vpop.xlane.xlu1 %598 }
 0x12e   : > { %v3734_v38 = vpop.xlane.xlu0 %553 }
 0x131   : > { %v3736_v43 = vpop.xlane.xlu1 %508 }
 0x132   : > { %v3738_v46 = vpop.xlane.xlu0 %643 }
 0x135   : > { %v3740_v52 = vpop.xlane.xlu1 %601 }
 0x136   : > { %v3742_v55 = vpop.xlane.xlu0 %556 }
 0x139   : > { %v3744_v61 = vpop.xlane.xlu1 %511 }
 0x13a   : > { %v3746_v0 = vpop.xlane.xlu0 %646 }
 0x13d   : > { %v3748_v5 = vpop.xlane.xlu1 %604 }
 0x13e   : > { %v3750_v6 = vpop.xlane.xlu0 %559 }
 0x141   : > { %v3752_v7 = vpop.xlane.xlu1 %514 }
 0x142   : > { %v3754_v9 = vpop.xlane.xlu0 %649 }
 0x145   : > { %v3756_v12 = vpop.xlane.xlu1 %607 }
 0x146   : > { %v3758_v13 = vpop.xlane.xlu0 %562 }
 0x149   : > { %v3760_v17 = vpop.xlane.xlu1 %517 }
 0x14a   : > { %v3764_v19 = vpop.xlane.xlu0 %652 }
 0x14d   : > { %v3766_v37 = vpop.xlane.xlu1 %610 }
 0x14e   : > { %v3771_v45 = vpop.xlane.xlu0 %565 }
 0x14f   : > { %5115 = vst [vmem:[#allocation16_spill] sm:$0xff] %v3771_v45  ;;  %v679_v45 = vmul.f32 0.00390625, %v3694_v36  ;;  %v3826_v36 = vsub.s32 %v940_v21, %v3762_v18  ;;  %v727_v21 = vmul.f32 0.00390625, %v3714_v4  ;;  %v969_v4 = vsel %vm861_vm0, %v968_v44, %v964_v32 }
 0x150   : > { %v1122_v32 = vrot.slane %v726_v33, %v3769_v39  ;;  %v699_v39 = vmul.f32 0.00390625, %v3726_v22  ;;  %v685_v33 = vmul.f32 0.00390625, %v3736_v43  ;;  %v716_v22 = vmul.f32 0.00390625, %v3740_v52 }
 0x151   : > { %v3797_v11 = vpop.xlane.xlu1 %520  ;;  %5121 = vst [vmem:[#allocation22_spill] sm:$0xff] %v3826_v36  ;;  %v860_v56 = vrot.slane %v679_v45, %v3774_v49  ;;  %v713_v45 = vmul.f32 0.00390625, %v3716_v8  ;;  %v1126_v60 = vrot.slane %v727_v21, %v3774_v49  ;;  %v3860_v8 = vsub.s32 %v954_v54, %v3762_v18 }
 0x152   : > { %5116 = vst [vmem:[#allocation17_spill] sm:$0xff] %v3797_v11  ;;  %v3809_v31 = vpop.xlane.xlu0 %655  ;;  %v696_v11 = vmul.f32 0.00390625, %v3696_v42  ;;  %v3829_v42 = vsub.s32 %v947_v23, %v3762_v18  ;;  %v867_v23 = vrot.slane %v680_v40, %v3777_v51  ;;  %v1052_v40 = vrot.slane %v712_v48, %v3777_v51 }
 0x153   : > { %5119 = vst [vmem:[#allocation20_spill] sm:$0xff] %v3809_v31  ;;  %v862_v30 = vsel %vm861_vm0, %v860_v56, %v855_v2  ;;  %v983_v21 = vrot.slane %v698_v27, %v3783_v58  ;;  %v715_v2 = vmul.f32 0.00390625, %v3732_v34  ;;  %v701_v34 = vmul.f32 0.00390625, %v3742_v55 }
 0x154   : > { %5122 = vst [vmem:[#allocation23_spill] sm:$0xff] %v3829_v42  ;;  %v973_v35 = vrot.slane %v696_v11, %v3777_v51  ;;  %v1047_v42 = vrot.slane %v711_v41, %v3774_v49  ;;  %v881_v41 = vrot.slane %v682_v50, %v3783_v58  ;;  %v869_v36 = vsel %vm868_vm1, %v867_v23, %v862_v30 }
 0x155   : > { %v3823_v31 = vpop.xlane.xlu1 %613  ;;  %v683_v50 = vmul.f32 0.00390625, %v3720_v14  ;;  %v876_v10 = vsel %vm875_vm2, %v874_v15, %v869_v36  ;;  %v728_v49 = vmul.f32 0.00390625, %v3722_v16  ;;  %v714_v14 = vmul.f32 0.00390625, %v3724_v20 }
 0x156   : > { %v3834_v53 = vpop.xlane.xlu0 %568  ;;  %v974_v28 = vsel %vm868_vm1, %v973_v35, %v969_v4  ;;  %v1048_v44 = vsel %vm861_vm0, %v1047_v42, %v1043_v24  ;;  %v1057_v35 = vrot.slane %v713_v45, %v3780_v57  ;;  %v883_v42 = vsel %vm882_vm3, %v881_v41, %v876_v10 }
 0x157   : > { %v979_v48 = vsel %vm875_vm2, %v978_v62, %v974_v28  ;;  %v1053_v56 = vsel %vm868_vm1, %v1052_v40, %v1048_v44  ;;  %v1127_v36 = vsel %vm861_vm0, %v1126_v60, %v1122_v32  ;;  %v684_v24 = vmul.f32 0.00390625, %v3728_v26 }
 0x158   : > { %v729_v16 = vmul.f32 0.00390625, %v3730_v29  ;;  %v888_v62 = vrot.slane %v683_v50, %v3786_v59  ;;  %v700_v15 = vmul.f32 0.00390625, %v3734_v38  ;;  %v1058_v20 = vsel %vm875_vm2, %v1057_v35, %v1053_v56 }
 0x159   : > { %v3848_v11 = vpop.xlane.xlu1 %523  ;;  %v1131_v45 = vrot.slane %v728_v49, %v3777_v51  ;;  %v730_v4 = vmul.f32 0.00390625, %v3738_v46  ;;  %v984_v29 = vsel %vm882_vm3, %v983_v21, %v979_v48  ;;  %v1062_v40 = vrot.slane %v714_v14, %v3783_v58 }
 0x15a   : > { %v3854_v47 = vpop.xlane.xlu0 %658  ;;  %v686_v38 = vmul.f32 0.00390625, %v3744_v61  ;;  %v988_v43 = vrot.slane %v699_v39, %v3786_v59  ;;  %v895_v51 = vrot.slane %v684_v24, %v3789_v63  ;;  %v1136_v46 = vrot.slane %v729_v16, %v3780_v57 }
 0x15b   : > { %v731_v52 = vmul.f32 0.00390625, %v3746_v0  ;;  %v890_v27 = vsel %vm889_vm4, %v888_v62, %v883_v42  ;;  %v1067_v30 = vrot.slane %v715_v2, %v3786_v59  ;;  %v993_v28 = vrot.slane %v700_v15, %v3789_v63 }
 0x15c   : > { %v902_v55 = vrot.slane %v685_v33, %v3792_v1  ;;  %v1132_v61 = vsel %vm868_vm1, %v1131_v45, %v1127_v36  ;;  %v1141_v60 = vrot.slane %v730_v4, %v3783_v58  ;;  %v1072_v44 = vrot.slane %v716_v22, %v3789_v63 }
 0x15d   : > { %v3870_v54 = vpop.xlane.xlu1 %616  ;;  %v717_v48 = vmul.f32 0.00390625, %v3748_v5  ;;  %v1063_v0 = vsel %vm882_vm3, %v1062_v40, %v1058_v20  ;;  %v998_v50 = vrot.slane %v701_v34, %v3792_v1  ;;  %v909_v10 = vrot.slane %v686_v38, %v3795_v3  ;;  %v5123_v40 = vld [vmem:[#allocation16_spill] sm:$0xff]  ;;  %v5124_v38 = vld [vmem:[#allocation17_spill] sm:$0xff] }
 0x15e   : > { %v3876_v23 = vpop.xlane.xlu0 %571  ;;  %v702_v32 = vmul.f32 0.00390625, %v3750_v6  ;;  %v989_v49 = vsel %vm889_vm4, %v988_v43, %v984_v29  ;;  %v897_v58 = vsel %vm896_vm5, %v895_v51, %v890_v27  ;;  %v1137_v56 = vsel %vm875_vm2, %v1136_v46, %v1132_v61  ;;  %v5125_v46 = vld [vmem:[#allocation20_spill] sm:$0xff]  ;;  %v5126_v61 = vld [vmem:[#allocation18_spill] sm:$0xff] }
 0x15f   : > { %v1146_v5 = vrot.slane %v731_v52, %v3786_v59  ;;  %v1068_v42 = vsel %vm889_vm4, %v1067_v30, %v1063_v0  ;;  %v994_v21 = vsel %vm896_vm5, %v993_v28, %v989_v49  ;;  %v904_v14 = vsel %vm903_vm6, %v902_v55, %v897_v58 }
 0x160   : > { %v687_v36 = vmul.f32 0.00390625, %v3752_v7  ;;  %v1142_v6 = vsel %vm882_vm3, %v1141_v60, %v1137_v56  ;;  %v1073_v39 = vsel %vm896_vm5, %v1072_v44, %v1068_v42  ;;  %v1077_v24 = vrot.slane %v717_v48, %v3792_v1  ;;  %v5128_v56 = vld [vmem:[#allocation21_spill] sm:$0xff] }
 0x161   : > { %v3890_v26 = vpop.xlane.xlu1 %526  ;;  %v732_v16 = vmul.f32 0.00390625, %v3754_v9  ;;  %v999_v59 = vsel %vm903_vm6, %v998_v50, %v994_v21  ;;  %v911_v2 = vsel %vm910_vm7, %v909_v10, %v904_v14  ;;  %v1003_v15 = vrot.slane %v702_v32, %v3795_v3  ;;  %v5127_v50 = vld [vmem:[#allocation19_spill] sm:$0xff] }
 0x162   : > { %v3896_v41 = vpop.xlane.xlu0 %661  ;;  %v718_v7 = vmul.f32 0.00390625, %v3756_v12  ;;  %v1147_v20 = vsel %vm889_vm4, %v1146_v5, %v1142_v6  ;;  %v703_v45 = vmul.f32 0.00390625, %v3758_v13  ;;  %v688_v4 = vmul.f32 0.00390625, %v3760_v17 }
 0x163   : > { %v733_v9 = vmul.f32 0.00390625, %v3764_v19  ;;  %v916_v22 = vrot.slane %v687_v36, %v3801_v25  ;;  %v719_v29 = vmul.f32 0.00390625, %v3766_v37  ;;  %v704_v34 = vmul.f32 0.00390625, %v5123_v40 }
 0x164   : > { %v689_v43 = vmul.f32 0.00390625, %v5124_v38  ;;  %v1078_v12 = vsel %vm903_vm6, %v1077_v24, %v1073_v39  ;;  %v1151_v51 = vrot.slane %v732_v16, %v3789_v63  ;;  %v734_v52 = vmul.f32 0.00390625, %v5125_v46 }
 0x165   : > { %v3910_v57 = vpop.xlane.xlu1 %619  ;;  %v720_v13 = vmul.f32 0.00390625, %v3823_v31  ;;  %v1004_v19 = vsel %vm910_vm7, %v1003_v15, %v999_v59  ;;  %v1082_v27 = vrot.slane %v718_v7, %v3795_v3  ;;  %v705_v30 = vmul.f32 0.00390625, %v3834_v53 }
 0x166   : > { %v3916_v35 = vpop.xlane.xlu0 %574  ;;  %v690_v37 = vmul.f32 0.00390625, %v3848_v11  ;;  %v1008_v55 = vrot.slane %v703_v45, %v3801_v25  ;;  %v923_v60 = vrot.slane %v688_v4, %v5126_v61  ;;  %v1156_v63 = vrot.slane %v733_v9, %v3792_v1 }
 0x167   : > { %v735_v44 = vmul.f32 0.00390625, %v3854_v47  ;;  %v918_v31 = vsel %vm917_vm8, %v916_v22, %v911_v2  ;;  %v1087_v48 = vrot.slane %v719_v29, %v3801_v25  ;;  %v1013_v0 = vrot.slane %v704_v34, %v5126_v61  ;;  %v5129_v34 = vld [vmem:[#allocation22_spill] sm:$0xff] }
 0x168   : > { %v930_v10 = vrot.slane %v689_v43, %v5127_v50  ;;  %v1152_v53 = vsel %vm896_vm5, %v1151_v51, %v1147_v20  ;;  %v1161_v11 = vrot.slane %v734_v52, %v3795_v3  ;;  %v1092_v32 = vrot.slane %v720_v13, %v5126_v61 }
 0x169   : > { %v3930_v62 = vpop.xlane.xlu1 %529  ;;  %v721_v49 = vmul.f32 0.00390625, %v3870_v54  ;;  %v1083_v47 = vsel %vm910_vm7, %v1082_v27, %v1078_v12  ;;  %v1018_v58 = vrot.slane %v705_v30, %v5127_v50  ;;  %v937_v5 = vrot.slane %v690_v37, %v5128_v56 }
 0x16a   : > { %v3936_v33 = vpop.xlane.xlu0 %664  ;;  %v706_v42 = vmul.f32 0.00390625, %v3876_v23  ;;  %v1009_v14 = vsel %vm917_vm8, %v1008_v55, %v1004_v19  ;;  %v925_v36 = vsel %vm924_vm9, %v923_v60, %v918_v31  ;;  %v1157_v3 = vsel %vm903_vm6, %v1156_v63, %v1152_v53 }
 0x16b   : > { %v1166_v6 = vrot.slane %v735_v44, %v3801_v25  ;;  %v1088_v54 = vsel %vm917_vm8, %v1087_v48, %v1083_v47  ;;  %v1014_v39 = vsel %vm924_vm9, %v1013_v0, %v1009_v14  ;;  %v932_v24 = vsel %vm931_vm10, %v930_v10, %v925_v36 }
 0x16c   : > { %v691_v16 = vmul.f32 0.00390625, %v3890_v26  ;;  %v1162_v59 = vsel %vm910_vm7, %v1161_v11, %v1157_v3  ;;  %v1093_v23 = vsel %vm924_vm9, %v1092_v32, %v1088_v54  ;;  %v1097_v2 = vrot.slane %v721_v49, %v5127_v50 }
 0x16d   : > { %v623_v17 = vpop.xlane.xlu1 %622  ;;  %v722_v15 = vmul.f32 0.00390625, %v3910_v57  ;;  %v1019_v20 = vsel %vm931_vm10, %v1018_v58, %v1014_v39  ;;  %v939_v25 = vsel %vm938_vm11, %v937_v5, %v932_v24  ;;  %v1023_v45 = vrot.slane %v706_v42, %v5128_v56 }
 0x16e   : > { %v578_v28 = vpop.xlane.xlu0 %577  ;;  %v707_v4 = vmul.f32 0.00390625, %v3916_v35  ;;  %v1167_v26 = vsel %vm917_vm8, %v1166_v6, %v1162_v59  ;;  %v736_v22 = vmul.f32 0.00390625, %v3896_v41  ;;  %v723_v29 = vmul.f32 0.00390625, %v623_v17 }
 0x16f   : > { %v708_v40 = vmul.f32 0.00390625, %v578_v28  ;;  %v944_v57 = vrot.slane %v691_v16, %v5129_v34  ;;  %v737_v38 = vmul.f32 0.00390625, %v3936_v33  ;;  %v1098_v51 = vsel %vm931_vm10, %v1097_v2, %v1093_v23  ;;  %v5130_v28 = vld [vmem:[#allocation23_spill] sm:$0xff] }
 0x170   : > { %v1102_v35 = vrot.slane %v722_v15, %v5128_v56  ;;  %v692_v46 = vmul.f32 0.00390625, %v3930_v62  ;;  %vm1200_vm0 = vcmask 1042434   ;;  %v1024_v41 = vsel %vm938_vm11, %v1023_v45, %v1019_v20  ;;  %v1316_v20 = vld [vmem:[#allocation10 + $0x130] sm:$0xff]  ;;  %v1314_v45 = vld [vmem:[#allocation10 + $0x120] sm:$0xff] }
 0x171   : > { %v533_v1 = vpop.xlane.xlu1 %532  ;;  %v1028_v17 = vrot.slane %v707_v4, %v5129_v34  ;;  %v1171_v33 = vrot.slane %v736_v22, %v5126_v61  ;;  %v1107_v37 = vrot.slane %v723_v29, %v5129_v34  ;;  %v1033_v55 = vrot.slane %v708_v40, %v5130_v28  ;;  %v1313_v4 = vld [vmem:[#allocation10 + $0x118] sm:$0xff]  ;;  %v1310_v22 = vld [vmem:[#allocation10 + $0x100] sm:$0xff] }
 0x172   : > { %v668_v21 = vpop.xlane.xlu0 %667  ;;  %v693_v19 = vmul.f32 0.00390625, %v533_v1  ;;  %v946_v63 = vsel %vm945_vm12, %v944_v57, %v939_v25  ;;  %v1176_v62 = vrot.slane %v737_v38, %v5127_v50  ;;  %v1103_v48 = vsel %vm938_vm11, %v1102_v35, %v1098_v51  ;;  %v1315_v25 = vld [vmem:[#allocation10 + $0x128] sm:$0xff]  ;;  %v774_v40 = vld [vmem:[%s4980_s4] sm:$0x3] }
 0x173   : > { %v738_v52 = vmul.f32 0.00390625, %v668_v21  ;;  %v951_v0 = vrot.slane %v692_v46, %v5130_v28  ;;  %v1029_v11 = vsel %vm945_vm12, %v1028_v17, %v1024_v41  ;;  %v1172_v47 = vsel %vm924_vm9, %v1171_v33, %v1167_v26  ;;  %v1311_v26 = vld [vmem:[#allocation10 + $0x108] sm:$0xff] }
 0x174   : > { %v958_v32 = vrot.slane %v693_v19, %v3860_v8  ;;  %v1108_v58 = vsel %vm945_vm12, %v1107_v37, %v1103_v48  ;;  %v1034_v5 = vsel %vm952_vm13, %v1033_v55, %v1029_v11  ;;  %vm1202_vm1 = vcmask 1043459  }
 0x175   : > { %v626_v7 = vpop.xlane.xlu1 %625  ;;  %v1181_v10 = vrot.slane %v738_v52, %v5128_v56  ;;  %v1177_v56 = vsel %vm931_vm10, %v1176_v62, %v1172_v47  ;;  %v953_v3 = vsel %vm952_vm13, %v951_v0, %v946_v63  ;;  %v4027_v29 = vsub.s32 0, %v3762_v18 }
 0x176   : > { %v581_v9 = vpop.xlane.xlu0 %580  ;;  %v724_v43 = vmul.f32 0.00390625, %v626_v7  ;;  %v960_v16 = vsel %vm959_vm14, %v958_v32, %v953_v3  ;;  %v1317_v7 = vld [vmem:[#allocation10 + $0x138] sm:$0xff]  ;;  %v1573_v48 = vsub.s32 2, %v3762_v18  ;;  %v1640_v0 = vsub.s32 3, %v3762_v18 }
 0x177   : > { %v709_v12 = vmul.f32 0.00390625, %v581_v9  ;;  %v1182_v6 = vsel %vm938_vm11, %v1181_v10, %v1177_v56  ;;  %1410 = vmatprep.subr.mxu1 %v1317_v7  ;;  %v1312_v9 = vld [vmem:[#allocation10 + $0x110] sm:$0xff]  ;;  %v779_v57 = vrot.slane %v774_v40, %v4027_v29 }
 0x178   : > { %v1112_v44 = vrot.slane %v724_v43, %v5130_v28  ;;  %1411 = vmatpush2.msra.mxu1 %v1316_v20 }
 0x179   : > { %v629_v13 = vpop.xlane.xlu1 %628  ;;  %v1038_v31 = vrot.slane %v709_v12, %v3860_v8  ;;  %1412 = vmatprep.subr.mxu1 %v1315_v25 }
 0x17a   : > { %v725_v27 = vmul.f32 0.00390625, %v629_v13  ;;  %v671_v30 = vpop.xlane.xlu0 %670  ;;  %v1113_v21 = vsel %vm952_vm13, %v1112_v44, %v1108_v58  ;;  %1413 = vmatpush2.msra.mxu1 %v1314_v45  ;;  %v1342_v13 = vld [vmem:[%s4982_s6] sm:$0x3] }
 0x17b   : > { %v739_v60 = vmul.f32 0.00390625, %v671_v30  ;;  %v1039_v36 = vsel %vm959_vm14, %v1038_v31, %v1034_v5  ;;  %1414 = vmatprep.subr.mxu1 %v1313_v4  ;;  %v1347_v41 = vrot.slane %v1342_v13, %v4027_v29 }
 0x17c   : > { %v1117_v61 = vrot.slane %v725_v27, %v3860_v8  ;;  %v1199_v23 = vsel %vm1198_vm15, %v1039_v36, %v960_v16  ;;  %1415 = vmatpush2.msra.mxu1 %v1312_v9 }
 0x17d   : > { %v677_v53 = vpop.xlane.xlu1 %676  ;;  %v1186_v49 = vrot.slane %v739_v60, %v5129_v34  ;;  %1416 = vmatprep.subr.mxu1 %v1311_v26  ;;  %v4033_v34 = vsub.s32 1, %v3762_v18 }
 0x17e   : > { %v674_v50 = vpop.xlane.xlu0 %673  ;;  %v741_v1 = vmul.f32 0.00390625, %v677_v53  ;;  %v1118_v39 = vsel %vm959_vm14, %v1117_v61, %v1113_v21  ;;  %1417 = vmatpush2.msra.mxu1 %v1310_v22 }
 0x17f   : > { %v740_v42 = vmul.f32 0.00390625, %v674_v50  ;;  %v1187_v24 = vsel %vm945_vm12, %v1186_v49, %v1182_v6  ;;  %v1201_v2 = vsel %vm1200_vm0, %v1118_v39, %v1199_v23  ;;  %v783_v38 = vrot.slane %v774_v40, %v4033_v34 }
 0x180   : > { %v1196_v14 = vrot.slane %v741_v1, %v3860_v8  ;;  %v1351_v17 = vrot.slane %v1342_v13, %v4033_v34 }
 0x181   : > { %v1191_v54 = vrot.slane %v740_v42, %v5130_v28 }
 0x183   : > { %v1192_v59 = vsel %vm952_vm13, %v1191_v54, %v1187_v24 }
 0x184   : > { %v1197_v8 = vsel %vm959_vm14, %v1196_v14, %v1192_v59 }
 0x185   : > { %v1203_v15 = vsel %vm1202_vm1, %v1197_v8, %v1201_v2 }
 0x186   : > { %1270 = vmatmul.mubr.f32.vlgmr.msra.gmra.mxu0 %v1203_v15 }
 0x246   : > { %v1271_v43 = vpop.f32.mrf.mxu0 }
 0x247   : > { %v1272_v12 = vadd.f32 %v1271_v43, %v779_v57 }
 0x248   : > { %v1273_v51 = vpop.f32.mrf.mxu0 }
 0x249   : > { %v1274_v35 = vadd.f32 %v1273_v51, %v783_v38  ;;  %v1276_v52 = vmax.f32 %v1272_v12, 0.0 }
 0x24b   : > { %v1277_v46 = vmax.f32 %v1274_v35, 0.0 }
 0x24d   : > { %1418 = vmatprep.mubr.f32.mxu1 %v1277_v46 }
 0x24e   : > { %1419 = vmatmul.mubr.f32.vlgmr.msra.gmra.mxu1 %v1276_v52 }
 0x30e   : > { %v1420_v19 = vpop.f32.mrf.mxu1 }
 0x30f   : > { %v1421_v27 = vadd.f32 %v1420_v19, %v1347_v41 }
 0x310   : > { %v1422_v30 = vpop.f32.mrf.mxu1 }
 0x311   : > { %v2821_v33 = vmul.f32 -1.442695, %v1421_v27  ;;  %v1423_v37 = vadd.f32 %v1422_v30, %v1351_v17 }
 0x313   : > { %2925 = vpow2.f32 %v2821_v33  ;;  %v2822_v28 = vmul.f32 -1.442695, %v1423_v37 }
 0x315   : > { %2927 = vpow2.f32 %v2822_v28 }
 0x320   : > { %v2926_v55 = vpop.eup %2925 }
 0x321   : > { %v1431_v60 = vadd.f32 1.0, %v2926_v55 }
 0x322   : > { %v2928_v63 = vpop.eup %2927 }
 0x323   : > { %2929 = vrcp.f32 %v1431_v60  ;;  %v1432_v62 = vadd.f32 1.0, %v2928_v63 }
 0x325   : > { %2931 = vrcp.f32 %v1432_v62 }
 0x330   : > { %v2930_v44 = vpop.eup %2929 }
 0x331   : > { %v1440_v31 = vrot.slane %v2930_v44, %v4027_v29  ;;  %v1507_v18 = vrot.slane %v2930_v44, %v4033_v34  ;;  %v1574_v11 = vrot.slane %v2930_v44, %v1573_v48  ;;  %v1641_v32 = vrot.slane %v2930_v44, %v1640_v0 }
 0x332   : > { %v4045_v10 = vpop.eup %2931 }
 0x333   : > { %v4048_v61 = vrot.slane %v4045_v10, %v1573_v48  ;;  %v4051_v53 = vrot.slane %v4045_v10, %v1640_v0  ;;  %1446 = vbcast.lane.b32.xlu1 %v1440_v31, 264  ;;  %1442 = vbcast.lane.b32.xlu0 %v1440_v31, 256  ;;  %v1996_v5 = vrot.slane %v4045_v10, %v4027_v29 }
 0x334   : > { %v2063_v7 = vrot.slane %v4045_v10, %v4033_v34 }
 0x337   : > { %1450 = vbcast.lane.b32.xlu1 %v1440_v31, 272  ;;  %1458 = vbcast.lane.b32.xlu0 %v1440_v31, 288 }
 0x33b   : > { %1454 = vbcast.lane.b32.xlu1 %v1440_v31, 280  ;;  %1466 = vbcast.lane.b32.xlu0 %v1440_v31, 304 }
 0x33f   : > { %1462 = vbcast.lane.b32.xlu1 %v1440_v31, 296  ;;  %1474 = vbcast.lane.b32.xlu0 %v1440_v31, 320 }
 0x343   : > { %1470 = vbcast.lane.b32.xlu1 %v1440_v31, 312  ;;  %1482 = vbcast.lane.b32.xlu0 %v1440_v31, 336 }
 0x347   : > { %1478 = vbcast.lane.b32.xlu1 %v1440_v31, 328  ;;  %1490 = vbcast.lane.b32.xlu0 %v1440_v31, 352 }
 0x34b   : > { %1486 = vbcast.lane.b32.xlu1 %v1440_v31, 344  ;;  %1498 = vbcast.lane.b32.xlu0 %v1440_v31, 368 }
 0x34f   : > { %1494 = vbcast.lane.b32.xlu1 %v1440_v31, 360  ;;  %1509 = vbcast.lane.b32.xlu0 %v1507_v18, 256 }
 0x353   : > { %1502 = vbcast.lane.b32.xlu1 %v1440_v31, 376  ;;  %1517 = vbcast.lane.b32.xlu0 %v1507_v18, 272 }
 0x357   : > { %1513 = vbcast.lane.b32.xlu1 %v1507_v18, 264  ;;  %1525 = vbcast.lane.b32.xlu0 %v1507_v18, 288 }
 0x35b   : > { %1521 = vbcast.lane.b32.xlu1 %v1507_v18, 280  ;;  %1533 = vbcast.lane.b32.xlu0 %v1507_v18, 304 }
 0x35f   : > { %1529 = vbcast.lane.b32.xlu1 %v1507_v18, 296  ;;  %1541 = vbcast.lane.b32.xlu0 %v1507_v18, 320 }
 0x363   : > { %1537 = vbcast.lane.b32.xlu1 %v1507_v18, 312  ;;  %1549 = vbcast.lane.b32.xlu0 %v1507_v18, 336 }
 0x367   : > { %1545 = vbcast.lane.b32.xlu1 %v1507_v18, 328  ;;  %1557 = vbcast.lane.b32.xlu0 %v1507_v18, 352 }
 0x36b   : > { %1553 = vbcast.lane.b32.xlu1 %v1507_v18, 344  ;;  %1565 = vbcast.lane.b32.xlu0 %v1507_v18, 368 }
 0x36f   : > { %1561 = vbcast.lane.b32.xlu1 %v1507_v18, 360  ;;  %1576 = vbcast.lane.b32.xlu0 %v1574_v11, 256 }
 0x373   : > { %1569 = vbcast.lane.b32.xlu1 %v1507_v18, 376  ;;  %1584 = vbcast.lane.b32.xlu0 %v1574_v11, 272 }
 0x377   : > { %1580 = vbcast.lane.b32.xlu1 %v1574_v11, 264  ;;  %1592 = vbcast.lane.b32.xlu0 %v1574_v11, 288 }
 0x37b   : > { %1588 = vbcast.lane.b32.xlu1 %v1574_v11, 280  ;;  %1600 = vbcast.lane.b32.xlu0 %v1574_v11, 304 }
 0x37f   : > { %1596 = vbcast.lane.b32.xlu1 %v1574_v11, 296  ;;  %1608 = vbcast.lane.b32.xlu0 %v1574_v11, 320 }
 0x383   : > { %1604 = vbcast.lane.b32.xlu1 %v1574_v11, 312  ;;  %1616 = vbcast.lane.b32.xlu0 %v1574_v11, 336 }
 0x387   : > { %1612 = vbcast.lane.b32.xlu1 %v1574_v11, 328  ;;  %1624 = vbcast.lane.b32.xlu0 %v1574_v11, 352 }
 0x38b   : > { %1620 = vbcast.lane.b32.xlu1 %v1574_v11, 344  ;;  %1632 = vbcast.lane.b32.xlu0 %v1574_v11, 368 }
 0x38f   : > { %1628 = vbcast.lane.b32.xlu1 %v1574_v11, 360  ;;  %1643 = vbcast.lane.b32.xlu0 %v1641_v32, 256 }
 0x393   : > { %1636 = vbcast.lane.b32.xlu1 %v1574_v11, 376  ;;  %1651 = vbcast.lane.b32.xlu0 %v1641_v32, 272 }
 0x397   : > { %1647 = vbcast.lane.b32.xlu1 %v1641_v32, 264  ;;  %1659 = vbcast.lane.b32.xlu0 %v1641_v32, 288 }
 0x39b   : > { %1655 = vbcast.lane.b32.xlu1 %v1641_v32, 280  ;;  %1667 = vbcast.lane.b32.xlu0 %v1641_v32, 304 }
 0x39f   : > { %1663 = vbcast.lane.b32.xlu1 %v1641_v32, 296  ;;  %1675 = vbcast.lane.b32.xlu0 %v1641_v32, 320 }
 0x3a3   : > { %1671 = vbcast.lane.b32.xlu1 %v1641_v32, 312  ;;  %1683 = vbcast.lane.b32.xlu0 %v1641_v32, 336 }
 0x3a5   : > { %v4054_v49 = vpop.permute.xlu1 %1446  ;;  %v4056_v50 = vpop.permute.xlu0 %1442 }
 0x3a7   : > { %1679 = vbcast.lane.b32.xlu1 %v1641_v32, 328  ;;  %1691 = vbcast.lane.b32.xlu0 %v1641_v32, 352 }
 0x3a9   : > { %v4058_v1 = vpop.permute.xlu1 %1450  ;;  %v4060_v47 = vpop.permute.xlu0 %1458 }
 0x3ab   : > { %1687 = vbcast.lane.b32.xlu1 %v1641_v32, 344  ;;  %1699 = vbcast.lane.b32.xlu0 %v1641_v32, 368 }
 0x3ad   : > { %v4062_v58 = vpop.permute.xlu1 %1454  ;;  %v4066_v42 = vpop.permute.xlu0 %1466 }
 0x3af   : > { %1695 = vbcast.lane.b32.xlu1 %v1641_v32, 360  ;;  %1998 = vbcast.lane.b32.xlu0 %v1996_v5, 256 }
 0x3b1   : > { %v4068_v56 = vpop.permute.xlu1 %1462  ;;  %v4070_v21 = vpop.permute.xlu0 %1474 }
 0x3b3   : > { %1703 = vbcast.lane.b32.xlu1 %v1641_v32, 376  ;;  %2006 = vbcast.lane.b32.xlu0 %v1996_v5, 272 }
 0x3b5   : > { %v4072_v14 = vpop.permute.xlu1 %1470  ;;  %v4074_v36 = vpop.permute.xlu0 %1482 }
 0x3b7   : > { %2002 = vbcast.lane.b32.xlu1 %v1996_v5, 264  ;;  %2014 = vbcast.lane.b32.xlu0 %v1996_v5, 288 }
 0x3b9   : > { %v4076_v3 = vpop.permute.xlu1 %1478  ;;  %v4078_v6 = vpop.permute.xlu0 %1490 }
 0x3bb   : > { %2010 = vbcast.lane.b32.xlu1 %v1996_v5, 280  ;;  %2022 = vbcast.lane.b32.xlu0 %v1996_v5, 304 }
 0x3bd   : > { %v4080_v54 = vpop.permute.xlu1 %1486  ;;  %v4082_v39 = vpop.permute.xlu0 %1498 }
 0x3bf   : > { %2018 = vbcast.lane.b32.xlu1 %v1996_v5, 296  ;;  %2030 = vbcast.lane.b32.xlu0 %v1996_v5, 320 }
 0x3c1   : > { %v4084_v24 = vpop.permute.xlu1 %1494  ;;  %v4086_v16 = vpop.permute.xlu0 %1509 }
 0x3c3   : > { %2026 = vbcast.lane.b32.xlu1 %v1996_v5, 312  ;;  %2038 = vbcast.lane.b32.xlu0 %v1996_v5, 336 }
 0x3c5   : > { %v4088_v59 = vpop.permute.xlu1 %1502  ;;  %v4090_v23 = vpop.permute.xlu0 %1517 }
 0x3c7   : > { %2034 = vbcast.lane.b32.xlu1 %v1996_v5, 328  ;;  %2046 = vbcast.lane.b32.xlu0 %v1996_v5, 352 }
 0x3c9   : > { %v4092_v8 = vpop.permute.xlu1 %1513  ;;  %v4094_v2 = vpop.permute.xlu0 %1525 }
 0x3cb   : > { %2042 = vbcast.lane.b32.xlu1 %v1996_v5, 344  ;;  %2054 = vbcast.lane.b32.xlu0 %v1996_v5, 368 }
 0x3cd   : > { %v4096_v15 = vpop.permute.xlu1 %1521  ;;  %v4100_v20 = vpop.permute.xlu0 %1533 }
 0x3cf   : > { %2050 = vbcast.lane.b32.xlu1 %v1996_v5, 360  ;;  %2065 = vbcast.lane.b32.xlu0 %v2063_v7, 256 }
 0x3d1   : > { %v4102_v25 = vpop.permute.xlu1 %1529  ;;  %v4104_v45 = vpop.permute.xlu0 %1541 }
 0x3d2   : > { %5131 = vst [vmem:[#allocation16_spill] sm:$0xff] %v4102_v25  ;;  %5132 = vst [vmem:[#allocation17_spill] sm:$0xff] %v4104_v45  ;;  %v4330_v25 = vld [vmem:[#allocation5 + $0x70] sm:$0xff] }
 0x3d3   : > { %2058 = vbcast.lane.b32.xlu1 %v1996_v5, 376  ;;  %2073 = vbcast.lane.b32.xlu0 %v2063_v7, 272  ;;  %v4198_v5 = vld [vmem:[#allocation5] sm:$0xff] }
 0x3d4   : > { %5169 = vst [vmem:[#allocation54_spill] sm:$0xff] %v4198_v5 }
 0x3d5   : > { %v4106_v4 = vpop.permute.xlu1 %1537  ;;  %v4108_v9 = vpop.permute.xlu0 %1549 }
 0x3d6   : > { %5133 = vst [vmem:[#allocation20_spill] sm:$0xff] %v4106_v4  ;;  %5134 = vst [vmem:[#allocation18_spill] sm:$0xff] %v4108_v9  ;;  %v4322_v9 = vld [vmem:[#allocation7 + $0x68] sm:$0xff] }
 0x3d7   : > { %2069 = vbcast.lane.b32.xlu1 %v2063_v7, 264  ;;  %2081 = vbcast.lane.b32.xlu0 %v2063_v7, 288  ;;  %5184 = vst [vmem:[#allocation69_spill] sm:$0xff] %v4322_v9 }
 0x3d9   : > { %v4110_v26 = vpop.permute.xlu1 %1545  ;;  %v4112_v22 = vpop.permute.xlu0 %1557 }
 0x3da   : > { %5135 = vst [vmem:[#allocation19_spill] sm:$0xff] %v4110_v26  ;;  %5136 = vst [vmem:[#allocation21_spill] sm:$0xff] %v4112_v22  ;;  %v4296_v22 = vld [vmem:[#allocation5 + $0x80] sm:$0xff] }
 0x3db   : > { %2077 = vbcast.lane.b32.xlu1 %v2063_v7, 280  ;;  %2089 = vbcast.lane.b32.xlu0 %v2063_v7, 304  ;;  %5179 = vst [vmem:[#allocation64_spill] sm:$0xff] %v4296_v22  ;;  %v1753_v4 = vmul.f32 %v4296_v22, %v4070_v21 }
 0x3dd   : > { %v4114_v29 = vpop.permute.xlu1 %1553  ;;  %v4116_v40 = vpop.permute.xlu0 %1565 }
 0x3de   : > { %5137 = vst [vmem:[#allocation22_spill] sm:$0xff] %v4114_v29  ;;  %5138 = vst [vmem:[#allocation23_spill] sm:$0xff] %v4116_v40  ;;  %v4290_v40 = vld [vmem:[#allocation5 + $0x58] sm:$0xff] }
 0x3df   : > { %2085 = vbcast.lane.b32.xlu1 %v2063_v7, 296  ;;  %2097 = vbcast.lane.b32.xlu0 %v2063_v7, 320  ;;  %5178 = vst [vmem:[#allocation63_spill] sm:$0xff] %v4290_v40 }
 0x3e1   : > { %v4118_v34 = vpop.permute.xlu1 %1561  ;;  %v4120_v57 = vpop.permute.xlu0 %1576 }
 0x3e2   : > { %5139 = vst [vmem:[#allocation24_spill] sm:$0xff] %v4118_v34  ;;  %5140 = vst [vmem:[#allocation25_spill] sm:$0xff] %v4120_v57  ;;  %v4288_v34 = vld [vmem:[#allocation5 + $0x50] sm:$0xff] }
 0x3e3   : > { %2093 = vbcast.lane.b32.xlu1 %v2063_v7, 312  ;;  %2105 = vbcast.lane.b32.xlu0 %v2063_v7, 336  ;;  %5177 = vst [vmem:[#allocation62_spill] sm:$0xff] %v4288_v34  ;;  %v1747_v26 = vmul.f32 %v4288_v34, %v4068_v56 }
 0x3e5   : > { %v4122_v38 = vpop.permute.xlu1 %1569  ;;  %v4124_v43 = vpop.permute.xlu0 %1584 }
 0x3e6   : > { %5141 = vst [vmem:[#allocation26_spill] sm:$0xff] %v4122_v38  ;;  %5142 = vst [vmem:[#allocation27_spill] sm:$0xff] %v4124_v43  ;;  %v4262_v43 = vld [vmem:[#allocation5 + $0x60] sm:$0xff]  ;;  %v2940_v38 = vld [vmem:[%s3546_s22 + $0x48] sm:$0xff] }
 0x3e7   : > { %2101 = vbcast.lane.b32.xlu1 %v2063_v7, 328  ;;  %2113 = vbcast.lane.b32.xlu0 %v2063_v7, 352 }
 0x3e9   : > { %v4126_v12 = vpop.permute.xlu1 %1580  ;;  %v4128_v51 = vpop.permute.xlu0 %1592 }
 0x3ea   : > { %5143 = vst [vmem:[#allocation28_spill] sm:$0xff] %v4126_v12  ;;  %5144 = vst [vmem:[#allocation29_spill] sm:$0xff] %v4128_v51  ;;  %v2936_v51 = vld [vmem:[%s3546_s22 + $0x28] sm:$0xff] }
 0x3eb   : > { %2109 = vbcast.lane.b32.xlu1 %v2063_v7, 344  ;;  %2121 = vbcast.lane.b32.xlu0 %v2063_v7, 368 }
 0x3ed   : > { %v4130_v35 = vpop.permute.xlu1 %1588  ;;  %v4132_v46 = vpop.permute.xlu0 %1600 }
 0x3ee   : > { %5145 = vst [vmem:[#allocation30_spill] sm:$0xff] %v4130_v35  ;;  %5146 = vst [vmem:[#allocation31_spill] sm:$0xff] %v4132_v46  ;;  %v2935_v46 = vld [vmem:[%s3546_s22 + $0x20] sm:$0xff] }
 0x3ef   : > { %2117 = vbcast.lane.b32.xlu1 %v2063_v7, 360  ;;  %2132 = vbcast.lane.b32.xlu0 %v4048_v61, 256 }
 0x3f1   : > { %v4135_v52 = vpop.permute.xlu1 %1596  ;;  %v4137_v13 = vpop.permute.xlu0 %1608 }
 0x3f2   : > { %5147 = vst [vmem:[#allocation32_spill] sm:$0xff] %v4135_v52  ;;  %5148 = vst [vmem:[#allocation33_spill] sm:$0xff] %v4137_v13  ;;  %v4256_v13 = vld [vmem:[#allocation5 + $0x30] sm:$0xff] }
 0x3f3   : > { %2125 = vbcast.lane.b32.xlu1 %v2063_v7, 376  ;;  %2140 = vbcast.lane.b32.xlu0 %v4048_v61, 272  ;;  %v4200_v7 = vld [vmem:[#allocation5 + $0x8] sm:$0xff] }
 0x3f4   : > { %5170 = vst [vmem:[#allocation55_spill] sm:$0xff] %v4200_v7 }
 0x3f5   : > { %v4140_v41 = vpop.permute.xlu1 %1604  ;;  %v4142_v17 = vpop.permute.xlu0 %1616 }
 0x3f6   : > { %5149 = vst [vmem:[#allocation34_spill] sm:$0xff] %v4140_v41  ;;  %5150 = vst [vmem:[#allocation35_spill] sm:$0xff] %v4142_v17 }
 0x3f7   : > { %2136 = vbcast.lane.b32.xlu1 %v4048_v61, 264  ;;  %2148 = vbcast.lane.b32.xlu0 %v4048_v61, 288 }
 0x3f9   : > { %v4146_v19 = vpop.permute.xlu1 %1612  ;;  %v4148_v27 = vpop.permute.xlu0 %1624 }
 0x3fa   : > { %5151 = vst [vmem:[#allocation36_spill] sm:$0xff] %v4146_v19  ;;  %5152 = vst [vmem:[#allocation37_spill] sm:$0xff] %v4148_v27 }
 0x3fb   : > { %2144 = vbcast.lane.b32.xlu1 %v4048_v61, 280  ;;  %2156 = vbcast.lane.b32.xlu0 %v4048_v61, 304 }
 0x3fd   : > { %v4152_v30 = vpop.permute.xlu1 %1620  ;;  %v4154_v33 = vpop.permute.xlu0 %1632 }
 0x3fe   : > { %5153 = vst [vmem:[#allocation38_spill] sm:$0xff] %v4152_v30  ;;  %5154 = vst [vmem:[#allocation39_spill] sm:$0xff] %v4154_v33 }
 0x3ff   : > { %2152 = vbcast.lane.b32.xlu1 %v4048_v61, 296  ;;  %2164 = vbcast.lane.b32.xlu0 %v4048_v61, 320 }
 0x401   : > { %v4158_v37 = vpop.permute.xlu1 %1628  ;;  %v4160_v28 = vpop.permute.xlu0 %1643 }
 0x402   : > { %5155 = vst [vmem:[#allocation40_spill] sm:$0xff] %v4158_v37  ;;  %5156 = vst [vmem:[#allocation41_spill] sm:$0xff] %v4160_v28  ;;  %v4232_v28 = vld [vmem:[#allocation5 + $0x48] sm:$0xff] }
 0x403   : > { %2160 = vbcast.lane.b32.xlu1 %v4048_v61, 312  ;;  %2172 = vbcast.lane.b32.xlu0 %v4048_v61, 336 }
 0x405   : > { %v4164_v55 = vpop.permute.xlu1 %1636  ;;  %v4166_v60 = vpop.permute.xlu0 %1651 }
 0x406   : > { %5157 = vst [vmem:[#allocation42_spill] sm:$0xff] %v4164_v55  ;;  %5158 = vst [vmem:[#allocation43_spill] sm:$0xff] %v4166_v60  ;;  %v4230_v55 = vld [vmem:[#allocation5 + $0x40] sm:$0xff] }
 0x407   : > { %2168 = vbcast.lane.b32.xlu1 %v4048_v61, 328  ;;  %2180 = vbcast.lane.b32.xlu0 %v4048_v61, 352 }
 0x409   : > { %v4170_v63 = vpop.permute.xlu1 %1647  ;;  %v4172_v62 = vpop.permute.xlu0 %1659 }
 0x40a   : > { %5159 = vst [vmem:[#allocation44_spill] sm:$0xff] %v4170_v63  ;;  %5160 = vst [vmem:[#allocation45_spill] sm:$0xff] %v4172_v62  ;;  %v2934_v63 = vld [vmem:[%s3546_s22 + $0x8] sm:$0xff] }
 0x40b   : > { %2176 = vbcast.lane.b32.xlu1 %v4048_v61, 344  ;;  %2188 = vbcast.lane.b32.xlu0 %v4048_v61, 368 }
 0x40d   : > { %v4176_v44 = vpop.permute.xlu1 %1655  ;;  %v4178_v31 = vpop.permute.xlu0 %1667 }
 0x40e   : > { %5161 = vst [vmem:[#allocation46_spill] sm:$0xff] %v4176_v44  ;;  %5162 = vst [vmem:[#allocation47_spill] sm:$0xff] %v4178_v31  ;;  %v4220_v31 = vld [vmem:[#allocation7 + $0x8] sm:$0xff]  ;;  %v4224_v44 = vld [vmem:[#allocation5 + $0x18] sm:$0xff] }
 0x40f   : > { %2184 = vbcast.lane.b32.xlu1 %v4048_v61, 360  ;;  %2199 = vbcast.lane.b32.xlu0 %v4051_v53, 256 }
 0x411   : > { %v4182_v48 = vpop.permute.xlu1 %1663  ;;  %v4184_v0 = vpop.permute.xlu0 %1675 }
 0x412   : > { %5163 = vst [vmem:[#allocation48_spill] sm:$0xff] %v4182_v48  ;;  %5164 = vst [vmem:[#allocation49_spill] sm:$0xff] %v4184_v0  ;;  %v4215_v0 = vld [vmem:[#allocation5 + $0x28] sm:$0xff]  ;;  %v4218_v48 = vld [vmem:[#allocation7] sm:$0xff] }
 0x413   : > { %2192 = vbcast.lane.b32.xlu1 %v4048_v61, 376  ;;  %2207 = vbcast.lane.b32.xlu0 %v4051_v53, 272  ;;  %v1742_v30 = vmul.f32 %v4215_v0, %v4058_v1 }
 0x415   : > { %v4188_v10 = vpop.permute.xlu1 %1671  ;;  %v4190_v18 = vpop.permute.xlu0 %1683  ;;  %v1870_v12 = vadd.f32 %v2936_v51, %v1742_v30  ;;  %v4275_v51 = vld [vmem:[#allocation7 + $0x18] sm:$0xff]  ;;  %v2937_v30 = vld [vmem:[%s3546_s22 + $0x10] sm:$0xff] }
 0x416   : > { %5165 = vst [vmem:[#allocation50_spill] sm:$0xff] %v4188_v10  ;;  %5166 = vst [vmem:[#allocation51_spill] sm:$0xff] %v4190_v18  ;;  %v1737_v18 = vmul.f32 %v4198_v5, %v4056_v50 }
 0x417   : > { %2203 = vbcast.lane.b32.xlu1 %v4051_v53, 264  ;;  %2215 = vbcast.lane.b32.xlu0 %v4051_v53, 288 }
 0x419   : > { %v4194_v11 = vpop.permute.xlu1 %1679  ;;  %v4196_v32 = vpop.permute.xlu0 %1691 }
 0x41a   : > { %5167 = vst [vmem:[#allocation52_spill] sm:$0xff] %v4194_v11  ;;  %5168 = vst [vmem:[#allocation53_spill] sm:$0xff] %v4196_v32  ;;  %v1738_v11 = vmul.f32 %v4200_v7, %v4056_v50  ;;  %v4212_v32 = vld [vmem:[#allocation5 + $0x20] sm:$0xff] }
 0x41b   : > { %2211 = vbcast.lane.b32.xlu1 %v4051_v53, 280  ;;  %2223 = vbcast.lane.b32.xlu0 %v4051_v53, 304  ;;  %v2933_v50 = vld [vmem:[%s3546_s22] sm:$0xff]  ;;  %v1741_v33 = vmul.f32 %v4212_v32, %v4058_v1  ;;  %v4248_v1 = vld [vmem:[#allocation7 + $0x28] sm:$0xff] }
 0x41c   : > { %v1866_v60 = vadd.f32 %v2934_v63, %v1738_v11  ;;  %v4246_v11 = vld [vmem:[#allocation7 + $0x20] sm:$0xff] }
 0x41d   : > { %v4204_v61 = vpop.permute.xlu1 %1687  ;;  %v4210_v10 = vpop.permute.xlu0 %1699  ;;  %v1869_v35 = vadd.f32 %v2935_v46, %v1741_v33  ;;  %v4273_v46 = vld [vmem:[#allocation7 + $0x10] sm:$0xff] }
 0x41e   : > { %5171 = vst [vmem:[#allocation56_spill] sm:$0xff] %v4204_v61  ;;  %5172 = vst [vmem:[#allocation57_spill] sm:$0xff] %v4210_v10  ;;  %v4222_v61 = vld [vmem:[#allocation5 + $0x10] sm:$0xff]  ;;  %v1865_v10 = vadd.f32 %v2933_v50, %v1737_v18  ;;  %v1740_v18 = vmul.f32 %v4224_v44, %v4054_v49  ;;  %v1745_v50 = vmul.f32 %v4230_v55, %v4060_v47 }
 0x41f   : > { %2219 = vbcast.lane.b32.xlu1 %v4051_v53, 296  ;;  %2231 = vbcast.lane.b32.xlu0 %v4051_v53, 320  ;;  %v1739_v63 = vmul.f32 %v4222_v61, %v4054_v49  ;;  %v4258_v49 = vld [vmem:[#allocation5 + $0x38] sm:$0xff] }
 0x420   : > { %v1744_v29 = vmul.f32 %v4258_v49, %v4062_v58 }
 0x421   : > { %v4226_v62 = vpop.permute.xlu1 %1695  ;;  %v1999_v37 = vpop.permute.xlu0 %1998  ;;  %v1867_v33 = vadd.f32 %v2937_v30, %v1739_v63 }
 0x422   : > { %5173 = vst [vmem:[#allocation58_spill] sm:$0xff] %v4226_v62  ;;  %v2293_v27 = vmul.f32 %v4218_v48, %v1999_v37  ;;  %v2294_v62 = vmul.f32 %v4220_v31, %v1999_v37  ;;  %v1746_v37 = vmul.f32 %v4232_v28, %v4060_v47 }
 0x423   : > { %2227 = vbcast.lane.b32.xlu1 %v4051_v53, 312  ;;  %2239 = vbcast.lane.b32.xlu0 %v4051_v53, 336 }
 0x424   : > { %v2421_v19 = vadd.f32 %v2293_v27, %v1865_v10  ;;  %v2422_v17 = vadd.f32 %v2294_v62, %v1866_v60  ;;  %v2938_v60 = vld [vmem:[%s3546_s22 + $0x18] sm:$0xff]  ;;  %v4279_v10 = vld [vmem:[#allocation5 + $0x68] sm:$0xff]  ;;  %v1874_v57 = vadd.f32 %v2940_v38, %v1746_v37 }
 0x425   : > { %v4254_v41 = vpop.permute.xlu1 %1703  ;;  %v2007_v52 = vpop.permute.xlu0 %2006  ;;  %v1868_v62 = vadd.f32 %v2938_v60, %v1740_v18  ;;  %v1743_v60 = vmul.f32 %v4256_v13, %v4062_v58 }
 0x426   : > { %5174 = vst [vmem:[#allocation59_spill] sm:$0xff] %v4254_v41  ;;  %2549 = vst [vmem:[%s4266_s12] sm:$0xff] %v2421_v19  ;;  %v2297_v47 = vmul.f32 %v4246_v11, %v2007_v52  ;;  %v2298_v27 = vmul.f32 %v4248_v1, %v2007_v52  ;;  %v4284_v19 = vld [vmem:[#allocation7 + $0x48] sm:$0xff]  ;;  %v2939_v41 = vld [vmem:[%s3546_s22 + $0x40] sm:$0xff] }
 0x427   : > { %2550 = vst [vmem:[%s4266_s12 + $0x8] sm:$0xff] %v2422_v17  ;;  %2235 = vbcast.lane.b32.xlu1 %v4051_v53, 328  ;;  %2247 = vbcast.lane.b32.xlu0 %v4051_v53, 352  ;;  %v4282_v17 = vld [vmem:[#allocation7 + $0x40] sm:$0xff]  ;;  %5176 = vst [vmem:[#allocation61_spill] sm:$0xff] %v4284_v19  ;;  %v1873_v52 = vadd.f32 %v2939_v41, %v1745_v50  ;;  %v4298_v41 = vld [vmem:[#allocation5 + $0x88] sm:$0xff] }
 0x428   : > { %5175 = vst [vmem:[#allocation60_spill] sm:$0xff] %v4282_v17  ;;  %v2425_v63 = vadd.f32 %v2297_v47, %v1869_v35  ;;  %v2426_v18 = vadd.f32 %v2298_v27, %v1870_v12  ;;  %5180 = vst [vmem:[#allocation65_spill] sm:$0xff] %v4298_v41  ;;  %v1749_v35 = vmul.f32 %v4262_v43, %v4066_v42  ;;  %v4311_v27 = vld [vmem:[#allocation7 + $0x30] sm:$0xff] }
 0x429   : > { %v2003_v30 = vpop.permute.xlu1 %2002  ;;  %v2015_v37 = vpop.permute.xlu0 %2014  ;;  %v1750_v12 = vmul.f32 %v4279_v10, %v4066_v42  ;;  %5181 = vst [vmem:[#allocation66_spill] sm:$0xff] %v4311_v27  ;;  %v1748_v42 = vmul.f32 %v4290_v40, %v4068_v56  ;;  %v1754_v45 = vmul.f32 %v4298_v41, %v4070_v21 }
 0x42a   : > { %v2295_v38 = vmul.f32 %v4273_v46, %v2003_v30  ;;  %v2296_v50 = vmul.f32 %v4275_v51, %v2003_v30  ;;  %2553 = vst [vmem:[%s4266_s12 + $0x20] sm:$0xff] %v2425_v63  ;;  %2554 = vst [vmem:[%s4266_s12 + $0x28] sm:$0xff] %v2426_v18  ;;  %v2301_v47 = vmul.f32 %v4282_v17, %v2015_v37  ;;  %v4313_v30 = vld [vmem:[#allocation7 + $0x38] sm:$0xff]  ;;  %v4361_v17 = vld [vmem:[#allocation5 + $0x90] sm:$0xff] }
 0x42b   : > { %v2302_v58 = vmul.f32 %v4284_v19, %v2015_v37  ;;  %2243 = vbcast.lane.b32.xlu1 %v4051_v53, 344  ;;  %5182 = vst [vmem:[#allocation67_spill] sm:$0xff] %v4313_v30  ;;  %2255 = vbcast.lane.b32.xlu0 %v4051_v53, 368  ;;  %v4320_v37 = vld [vmem:[#allocation7 + $0x60] sm:$0xff]  ;;  %v4332_v19 = vld [vmem:[#allocation5 + $0x78] sm:$0xff]  ;;  %5189 = vst [vmem:[#allocation74_spill] sm:$0xff] %v4361_v17 }
 0x42c   : > { %v2423_v63 = vadd.f32 %v2295_v38, %v1867_v33  ;;  %v2424_v18 = vadd.f32 %v2296_v50, %v1868_v62  ;;  %5183 = vst [vmem:[#allocation68_spill] sm:$0xff] %v4320_v37  ;;  %v2429_v34 = vadd.f32 %v2301_v47, %v1873_v52  ;;  %v2941_v38 = vld [vmem:[%s3546_s22 + $0x30] sm:$0xff]  ;;  %v2942_v50 = vld [vmem:[%s3546_s22 + $0x38] sm:$0xff]  ;;  %v2943_v52 = vld [vmem:[%s3546_s22 + $0x60] sm:$0xff] }
 0x42d   : > { %v2430_v56 = vadd.f32 %v2302_v58, %v1874_v57  ;;  %v2011_v33 = vpop.permute.xlu1 %2010  ;;  %v1871_v62 = vadd.f32 %v2941_v38, %v1743_v60  ;;  %v1872_v40 = vadd.f32 %v2942_v50, %v1744_v29  ;;  %v2023_v57 = vpop.permute.xlu0 %2022  ;;  %v1877_v47 = vadd.f32 %v2943_v52, %v1749_v35  ;;  %v2944_v58 = vld [vmem:[%s3546_s22 + $0x68] sm:$0xff]  ;;  %v4340_v38 = vld [vmem:[#allocation5 + $0xa0] sm:$0xff]  ;;  %v2945_v50 = vld [vmem:[%s3546_s22 + $0x50] sm:$0xff] }
 0x42e   : > { %2551 = vst [vmem:[%s4266_s12 + $0x10] sm:$0xff] %v2423_v63  ;;  %2552 = vst [vmem:[%s4266_s12 + $0x18] sm:$0xff] %v2424_v18  ;;  %v2299_v22 = vmul.f32 %v4311_v27, %v2011_v33  ;;  %v2300_v21 = vmul.f32 %v4313_v30, %v2011_v33  ;;  %v1878_v60 = vadd.f32 %v2944_v58, %v1750_v12  ;;  %v4347_v18 = vld [vmem:[#allocation7 + $0x50] sm:$0xff]  ;;  %v4349_v33 = vld [vmem:[#allocation7 + $0x58] sm:$0xff] }
 0x42f   : > { %5185 = vst [vmem:[#allocation70_spill] sm:$0xff] %v4340_v38  ;;  %2557 = vst [vmem:[%s4266_s12 + $0x40] sm:$0xff] %v2429_v34  ;;  %v2305_v29 = vmul.f32 %v4320_v37, %v2023_v57  ;;  %v2306_v63 = vmul.f32 %v4322_v9, %v2023_v57  ;;  %2251 = vbcast.lane.b32.xlu1 %v4051_v53, 360  ;;  %v1875_v35 = vadd.f32 %v2945_v50, %v1747_v26  ;;  %v2946_v52 = vld [vmem:[%s3546_s22 + $0x58] sm:$0xff]  ;;  %v4353_v58 = vld [vmem:[#allocation5 + $0xa8] sm:$0xff] }
 0x430   : > { %2558 = vst [vmem:[%s4266_s12 + $0x48] sm:$0xff] %v2430_v56  ;;  %v1876_v12 = vadd.f32 %v2946_v52, %v1748_v42  ;;  %5186 = vst [vmem:[#allocation71_spill] sm:$0xff] %v4353_v58  ;;  %v2427_v34 = vadd.f32 %v2299_v22, %v1871_v62  ;;  %v2428_v30 = vadd.f32 %v2300_v21, %v1872_v40  ;;  %v4355_v56 = vld [vmem:[#allocation7 + $0x80] sm:$0xff]  ;;  %v4357_v37 = vld [vmem:[#allocation7 + $0x88] sm:$0xff] }
 0x431   : > { %5187 = vst [vmem:[#allocation72_spill] sm:$0xff] %v4355_v56  ;;  %5188 = vst [vmem:[#allocation73_spill] sm:$0xff] %v4357_v37  ;;  %v2947_v57 = vld [vmem:[%s3546_s22 + $0x80] sm:$0xff]  ;;  %v2948_v27 = vld [vmem:[%s3546_s22 + $0x88] sm:$0xff]  ;;  %v2433_v42 = vadd.f32 %v2305_v29, %v1877_v47  ;;  %v2434_v50 = vadd.f32 %v2306_v63, %v1878_v60  ;;  %v2019_v22 = vpop.permute.xlu1 %2018  ;;  %v1751_v40 = vmul.f32 %v4330_v25, %v4072_v14  ;;  %v2031_v52 = vpop.permute.xlu0 %2030 }
 0x432   : > { %v1881_v9 = vadd.f32 %v2947_v57, %v1753_v4  ;;  %v1882_v41 = vadd.f32 %v2948_v27, %v1754_v45  ;;  %v4363_v26 = vld [vmem:[#allocation5 + $0x98] sm:$0xff]  ;;  %v1752_v62 = vmul.f32 %v4332_v19, %v4072_v14  ;;  %v4369_v21 = vld [vmem:[#allocation5 + $0xc0] sm:$0xff]  ;;  %v4371_v4 = vld [vmem:[#allocation5 + $0xc8] sm:$0xff]  ;;  %2555 = vst [vmem:[%s4266_s12 + $0x30] sm:$0xff] %v2427_v34  ;;  %v2303_v45 = vmul.f32 %v4347_v18, %v2019_v22 }
 0x433   : > { %5190 = vst [vmem:[#allocation75_spill] sm:$0xff] %v4363_v26  ;;  %5191 = vst [vmem:[#allocation76_spill] sm:$0xff] %v4369_v21  ;;  %v2304_v27 = vmul.f32 %v4349_v33, %v2019_v22  ;;  %v1757_v47 = vmul.f32 %v4340_v38, %v4074_v36  ;;  %v1758_v60 = vmul.f32 %v4353_v58, %v4074_v36  ;;  %2259 = vbcast.lane.b32.xlu1 %v4051_v53, 376  ;;  %v4388_v63 = vld [vmem:[#allocation7 + $0x78] sm:$0xff]  ;;  %v4396_v22 = vld [vmem:[#allocation7 + $0xa8] sm:$0xff] }
 0x434   : > { %5192 = vst [vmem:[#allocation77_spill] sm:$0xff] %v4371_v4  ;;  %2556 = vst [vmem:[%s4266_s12 + $0x38] sm:$0xff] %v2428_v30  ;;  %v2309_v14 = vmul.f32 %v4355_v56, %v2031_v52  ;;  %v2310_v29 = vmul.f32 %v4357_v37, %v2031_v52  ;;  %v4386_v30 = vld [vmem:[#allocation7 + $0x70] sm:$0xff]  ;;  %v1755_v34 = vmul.f32 %v4361_v17, %v4076_v3 }
 0x435   : > { %2561 = vst [vmem:[%s4266_s12 + $0x60] sm:$0xff] %v2433_v42  ;;  %2562 = vst [vmem:[%s4266_s12 + $0x68] sm:$0xff] %v2434_v50  ;;  %v1756_v36 = vmul.f32 %v4363_v26, %v4076_v3  ;;  %v2431_v57 = vadd.f32 %v2303_v45, %v1875_v35  ;;  %v2432_v42 = vadd.f32 %v2304_v27, %v1876_v12  ;;  %v4394_v50 = vld [vmem:[#allocation7 + $0xa0] sm:$0xff]  ;;  %v2027_v56 = vpop.permute.xlu1 %2026  ;;  %v2949_v3 = vld [vmem:[%s3546_s22 + $0x70] sm:$0xff] }
 0x436   : > { %5193 = vst [vmem:[#allocation78_spill] sm:$0xff] %v4386_v30  ;;  %5194 = vst [vmem:[#allocation79_spill] sm:$0xff] %v4388_v63  ;;  %v1761_v53 = vmul.f32 %v4369_v21, %v4078_v6  ;;  %v1762_v52 = vmul.f32 %v4371_v4, %v4078_v6  ;;  %v2437_v37 = vadd.f32 %v2309_v14, %v1881_v9  ;;  %v2950_v12 = vld [vmem:[%s3546_s22 + $0x78] sm:$0xff]  ;;  %v4404_v27 = vld [vmem:[#allocation5 + $0xb0] sm:$0xff]  ;;  %v2039_v9 = vpop.permute.xlu0 %2038 }
 0x437   : > { %5195 = vst [vmem:[#allocation80_spill] sm:$0xff] %v4394_v50  ;;  %5196 = vst [vmem:[#allocation81_spill] sm:$0xff] %v4396_v22  ;;  %v2438_v17 = vadd.f32 %v2310_v29, %v1882_v41  ;;  %v1879_v35 = vadd.f32 %v2949_v3, %v1751_v40  ;;  %v1880_v45 = vadd.f32 %v2950_v12, %v1752_v62  ;;  %v4406_v26 = vld [vmem:[#allocation5 + $0xb8] sm:$0xff]  ;;  %v2951_v41 = vld [vmem:[%s3546_s22 + $0xa0] sm:$0xff] }
 0x438   : > { %2559 = vst [vmem:[%s4266_s12 + $0x50] sm:$0xff] %v2431_v57  ;;  %2560 = vst [vmem:[%s4266_s12 + $0x58] sm:$0xff] %v2432_v42  ;;  %v2307_v21 = vmul.f32 %v4386_v30, %v2027_v56  ;;  %v2308_v6 = vmul.f32 %v4388_v63, %v2027_v56  ;;  %v1885_v14 = vadd.f32 %v2951_v41, %v1757_v47  ;;  %v2952_v29 = vld [vmem:[%s3546_s22 + $0xa8] sm:$0xff]  ;;  %v4414_v3 = vld [vmem:[#allocation5 + $0xe0] sm:$0xff] }
 0x439   : > { %v1886_v40 = vadd.f32 %v2952_v29, %v1758_v60  ;;  %2565 = vst [vmem:[%s4266_s12 + $0x80] sm:$0xff] %v2437_v37  ;;  %2566 = vst [vmem:[%s4266_s12 + $0x88] sm:$0xff] %v2438_v17  ;;  %v2313_v62 = vmul.f32 %v4394_v50, %v2039_v9  ;;  %v2314_v57 = vmul.f32 %v4396_v22, %v2039_v9  ;;  %v4420_v42 = vld [vmem:[#allocation7 + $0x90] sm:$0xff]  ;;  %v4422_v12 = vld [vmem:[#allocation7 + $0x98] sm:$0xff] }
 0x43a   : > { %v2953_v56 = vld [vmem:[%s3546_s22 + $0x90] sm:$0xff]  ;;  %v2954_v30 = vld [vmem:[%s3546_s22 + $0x98] sm:$0xff]  ;;  %v4426_v41 = vld [vmem:[#allocation5 + $0xe8] sm:$0xff]  ;;  %v2435_v60 = vadd.f32 %v2307_v21, %v1879_v35  ;;  %v2436_v37 = vadd.f32 %v2308_v6, %v1880_v45  ;;  %v1759_v21 = vmul.f32 %v4404_v27, %v4080_v54  ;;  %v1760_v35 = vmul.f32 %v4406_v26, %v4080_v54 }
 0x43b   : > { %v1883_v63 = vadd.f32 %v2953_v56, %v1755_v34  ;;  %v1884_v47 = vadd.f32 %v2954_v30, %v1756_v36  ;;  %5197 = vst [vmem:[#allocation82_spill] sm:$0xff] %v4426_v41  ;;  %v4428_v17 = vld [vmem:[#allocation7 + $0xc0] sm:$0xff]  ;;  %v4430_v29 = vld [vmem:[#allocation7 + $0xc8] sm:$0xff]  ;;  %v4434_v58 = vld [vmem:[#allocation5 + $0xd0] sm:$0xff]  ;;  %v2441_v30 = vadd.f32 %v2313_v62, %v1885_v14  ;;  %v2442_v36 = vadd.f32 %v2314_v57, %v1886_v40  ;;  %v2035_v56 = vpop.permute.xlu1 %2034 }
 0x43c   : > { %5198 = vst [vmem:[#allocation83_spill] sm:$0xff] %v4428_v17  ;;  %5199 = vst [vmem:[#allocation84_spill] sm:$0xff] %v4430_v29  ;;  %v2955_v50 = vld [vmem:[%s3546_s22 + $0xc0] sm:$0xff]  ;;  %v2956_v22 = vld [vmem:[%s3546_s22 + $0xc8] sm:$0xff]  ;;  %v1766_v45 = vmul.f32 %v4426_v41, %v4082_v39  ;;  %v1763_v62 = vmul.f32 %v4434_v58, %v4084_v24 }
 0x43d   : > { %v1889_v9 = vadd.f32 %v2955_v50, %v1761_v53  ;;  %v1890_v4 = vadd.f32 %v2956_v22, %v1762_v52  ;;  %5200 = vst [vmem:[#allocation85_spill] sm:$0xff] %v4434_v58  ;;  %v4436_v34 = vld [vmem:[#allocation5 + $0xd8] sm:$0xff]  ;;  %2563 = vst [vmem:[%s4266_s12 + $0x70] sm:$0xff] %v2435_v60  ;;  %v2311_v50 = vmul.f32 %v4420_v42, %v2035_v56  ;;  %v2047_v53 = vpop.permute.xlu0 %2046  ;;  %v4454_v14 = vld [vmem:[#allocation7 + $0xb0] sm:$0xff] }
 0x43e   : > { %5201 = vst [vmem:[#allocation86_spill] sm:$0xff] %v4436_v34  ;;  %2564 = vst [vmem:[%s4266_s12 + $0x78] sm:$0xff] %v2436_v37  ;;  %v2312_v22 = vmul.f32 %v4422_v12, %v2035_v56  ;;  %v1765_v52 = vmul.f32 %v4414_v3, %v4082_v39  ;;  %v2317_v6 = vmul.f32 %v4428_v17, %v2047_v53  ;;  %v4456_v40 = vld [vmem:[#allocation7 + $0xb8] sm:$0xff]  ;;  %v4462_v37 = vld [vmem:[#allocation7 + $0xe0] sm:$0xff] }
 0x43f   : > { %2569 = vst [vmem:[%s4266_s12 + $0xa0] sm:$0xff] %v2441_v30  ;;  %2570 = vst [vmem:[%s4266_s12 + $0xa8] sm:$0xff] %v2442_v36  ;;  %v2318_v54 = vmul.f32 %v4430_v29, %v2047_v53  ;;  %v1764_v57 = vmul.f32 %v4436_v34, %v4084_v24  ;;  %v2439_v39 = vadd.f32 %v2311_v50, %v1883_v63  ;;  %v4464_v30 = vld [vmem:[#allocation7 + $0xe8] sm:$0xff]  ;;  %v2043_v29 = vpop.permute.xlu1 %2042  ;;  %v2957_v24 = vld [vmem:[%s3546_s22 + $0xb0] sm:$0xff] }
 0x440   : > { %5202 = vst [vmem:[#allocation87_spill] sm:$0xff] %v4454_v14  ;;  %5203 = vst [vmem:[#allocation88_spill] sm:$0xff] %v4456_v40  ;;  %v2440_v60 = vadd.f32 %v2312_v22, %v1884_v47  ;;  %v1769_v36 = vmul.f32 %v4198_v5, %v4086_v16  ;;  %v1770_v56 = vmul.f32 %v4200_v7, %v4086_v16  ;;  %v2958_v47 = vld [vmem:[%s3546_s22 + $0xb8] sm:$0xff]  ;;  %v4472_v22 = vld [vmem:[#allocation5 + $0xf0] sm:$0xff] }
 0x441   : > { %5204 = vst [vmem:[#allocation89_spill] sm:$0xff] %v4462_v37  ;;  %5205 = vst [vmem:[#allocation90_spill] sm:$0xff] %v4464_v30  ;;  %v2445_v53 = vadd.f32 %v2317_v6, %v1889_v9  ;;  %v2446_v58 = vadd.f32 %v2318_v54, %v1890_v4  ;;  %v1887_v63 = vadd.f32 %v2957_v24, %v1759_v21  ;;  %v2055_v7 = vpop.permute.xlu0 %2054  ;;  %v2959_v9 = vld [vmem:[%s3546_s22 + $0xe0] sm:$0xff]  ;;  %v2960_v6 = vld [vmem:[%s3546_s22 + $0xe8] sm:$0xff] }
 0x442   : > { %v1888_v50 = vadd.f32 %v2958_v47, %v1760_v35  ;;  %2567 = vst [vmem:[%s4266_s12 + $0x90] sm:$0xff] %v2439_v39  ;;  %2568 = vst [vmem:[%s4266_s12 + $0x98] sm:$0xff] %v2440_v60  ;;  %v2315_v5 = vmul.f32 %v4454_v14, %v2043_v29  ;;  %v2316_v16 = vmul.f32 %v4456_v40, %v2043_v29  ;;  %v4480_v21 = vld [vmem:[#allocation5 + $0xf8] sm:$0xff]  ;;  %v4486_v60 = vld [vmem:[#allocation7 + $0xd0] sm:$0xff] }
 0x443   : > { %v1893_v4 = vadd.f32 %v2959_v9, %v1765_v52  ;;  %v1894_v54 = vadd.f32 %v2960_v6, %v1766_v45  ;;  %2573 = vst [vmem:[%s4266_s12 + $0xc0] sm:$0xff] %v2445_v53  ;;  %2574 = vst [vmem:[%s4266_s12 + $0xc8] sm:$0xff] %v2446_v58  ;;  %v2321_v35 = vmul.f32 %v4462_v37, %v2055_v7  ;;  %v4488_v24 = vld [vmem:[#allocation7 + $0xd8] sm:$0xff]  ;;  %v2961_v29 = vld [vmem:[%s3546_s22 + $0xd0] sm:$0xff] }
 0x444   : > { %v2322_v39 = vmul.f32 %v4464_v30, %v2055_v7  ;;  %v1891_v52 = vadd.f32 %v2961_v29, %v1763_v62  ;;  %v2962_v47 = vld [vmem:[%s3546_s22 + $0xd8] sm:$0xff]  ;;  %v2443_v45 = vadd.f32 %v2315_v5, %v1887_v63  ;;  %v2444_v6 = vadd.f32 %v2316_v16, %v1888_v50  ;;  %v2963_v40 = vld [vmem:[%s3546_s22 + $0x100] sm:$0xff]  ;;  %v2964_v58 = vld [vmem:[%s3546_s22 + $0x108] sm:$0xff]  ;;  %v2051_v30 = vpop.permute.xlu1 %2050 }
 0x445   : > { %v1892_v9 = vadd.f32 %v2962_v47, %v1764_v57  ;;  %v1897_v53 = vadd.f32 %v2963_v40, %v1769_v36  ;;  %v1898_v37 = vadd.f32 %v2964_v58, %v1770_v56  ;;  %v2449_v14 = vadd.f32 %v2321_v35, %v1893_v4  ;;  %v2066_v57 = vpop.permute.xlu0 %2065  ;;  %v4510_v63 = vld [vmem:[#allocation7 + $0xf0] sm:$0xff] }
 0x446   : > { %v2450_v7 = vadd.f32 %v2322_v39, %v1894_v54  ;;  %v1767_v34 = vmul.f32 %v4472_v22, %v4088_v59  ;;  %v1768_v17 = vmul.f32 %v4480_v21, %v4088_v59  ;;  %2571 = vst [vmem:[%s4266_s12 + $0xb0] sm:$0xff] %v2443_v45  ;;  %2572 = vst [vmem:[%s4266_s12 + $0xb8] sm:$0xff] %v2444_v6  ;;  %v2965_v47 = vld [vmem:[%s3546_s22 + $0xf0] sm:$0xff]  ;;  %v2966_v6 = vld [vmem:[%s3546_s22 + $0xf8] sm:$0xff] }
 0x447   : > { %v2319_v5 = vmul.f32 %v4486_v60, %v2051_v30  ;;  %v2320_v62 = vmul.f32 %v4488_v24, %v2051_v30  ;;  %v1773_v40 = vmul.f32 %v4212_v32, %v4090_v23  ;;  %v1774_v36 = vmul.f32 %v4215_v0, %v4090_v23  ;;  %2577 = vst [vmem:[%s4266_s12 + $0xe0] sm:$0xff] %v2449_v14  ;;  %v4512_v30 = vld [vmem:[#allocation7 + $0xf8] sm:$0xff] }
 0x448   : > { %2578 = vst [vmem:[%s4266_s12 + $0xe8] sm:$0xff] %v2450_v7  ;;  %v2325_v56 = vmul.f32 %v4218_v48, %v2066_v57  ;;  %v2326_v59 = vmul.f32 %v4220_v31, %v2066_v57  ;;  %v1771_v50 = vmul.f32 %v4222_v61, %v4092_v8  ;;  %v1772_v23 = vmul.f32 %v4224_v44, %v4092_v8  ;;  %v2059_v29 = vpop.permute.xlu1 %2058  ;;  %v2970_v57 = vld [vmem:[%s3546_s22 + $0x118] sm:$0xff] }
 0x449   : > { %v2447_v16 = vadd.f32 %v2319_v5, %v1891_v52  ;;  %v2448_v14 = vadd.f32 %v2320_v62, %v1892_v9  ;;  %v1777_v4 = vmul.f32 %v4230_v55, %v4094_v2  ;;  %v1778_v54 = vmul.f32 %v4232_v28, %v4094_v2  ;;  %v2074_v58 = vpop.permute.xlu0 %2073  ;;  %v2967_v2 = vld [vmem:[%s3546_s22 + $0x120] sm:$0xff]  ;;  %v2969_v5 = vld [vmem:[%s3546_s22 + $0x110] sm:$0xff] }
 0x44a   : > { %v2453_v35 = vadd.f32 %v2325_v56, %v1897_v53  ;;  %v2454_v39 = vadd.f32 %v2326_v59, %v1898_v37  ;;  %v1895_v45 = vadd.f32 %v2965_v47, %v1767_v34  ;;  %v1896_v8 = vadd.f32 %v2966_v6, %v1768_v17  ;;  %v2968_v37 = vld [vmem:[%s3546_s22 + $0x128] sm:$0xff] }
 0x44b   : > { %2575 = vst [vmem:[%s4266_s12 + $0xd0] sm:$0xff] %v2447_v16  ;;  %2576 = vst [vmem:[%s4266_s12 + $0xd8] sm:$0xff] %v2448_v14  ;;  %v2323_v52 = vmul.f32 %v4510_v63, %v2059_v29  ;;  %v2324_v9 = vmul.f32 %v4512_v30, %v2059_v29  ;;  %v1901_v53 = vadd.f32 %v2967_v2, %v1773_v40  ;;  %v2971_v14 = vld [vmem:[%s3546_s22 + $0x140] sm:$0xff]  ;;  %v2972_v40 = vld [vmem:[%s3546_s22 + $0x148] sm:$0xff] }
 0x44c   : > { %v1902_v7 = vadd.f32 %v2968_v37, %v1774_v36  ;;  %2581 = vst [vmem:[%s4266_s12 + $0x100] sm:$0xff] %v2453_v35  ;;  %2582 = vst [vmem:[%s4266_s12 + $0x108] sm:$0xff] %v2454_v39  ;;  %v2329_v34 = vmul.f32 %v4246_v11, %v2074_v58  ;;  %v2330_v17 = vmul.f32 %v4248_v1, %v2074_v58  ;;  %v2070_v47 = vpop.permute.xlu1 %2069  ;;  %v5208_v2 = vld [vmem:[#allocation16_spill] sm:$0xff] }
 0x44d   : > { %v1899_v62 = vadd.f32 %v2969_v5, %v1771_v50  ;;  %v1900_v56 = vadd.f32 %v2970_v57, %v1772_v23  ;;  %v2451_v59 = vadd.f32 %v2323_v52, %v1895_v45  ;;  %v2452_v16 = vadd.f32 %v2324_v9, %v1896_v8  ;;  %v2082_v45 = vpop.permute.xlu0 %2081  ;;  %v5206_v8 = vld [vmem:[#allocation60_spill] sm:$0xff]  ;;  %v5207_v52 = vld [vmem:[#allocation61_spill] sm:$0xff] }
 0x44e   : > { %v1905_v29 = vadd.f32 %v2971_v14, %v1777_v4  ;;  %v1906_v36 = vadd.f32 %v2972_v40, %v1778_v54  ;;  %v2457_v35 = vadd.f32 %v2329_v34, %v1901_v53  ;;  %v2458_v39 = vadd.f32 %v2330_v17, %v1902_v7  ;;  %v5209_v53 = vld [vmem:[#allocation62_spill] sm:$0xff]  ;;  %v5210_v7 = vld [vmem:[#allocation63_spill] sm:$0xff]  ;;  %v5211_v57 = vld [vmem:[#allocation17_spill] sm:$0xff] }
 0x44f   : > { %v1775_v6 = vmul.f32 %v4256_v13, %v4096_v15  ;;  %v1776_v58 = vmul.f32 %v4258_v49, %v4096_v15  ;;  %2579 = vst [vmem:[%s4266_s12 + $0xf0] sm:$0xff] %v2451_v59  ;;  %2580 = vst [vmem:[%s4266_s12 + $0xf8] sm:$0xff] %v2452_v16  ;;  %v2327_v50 = vmul.f32 %v4273_v46, %v2070_v47  ;;  %v5213_v16 = vld [vmem:[#allocation65_spill] sm:$0xff] }
 0x450   : > { %v2328_v23 = vmul.f32 %v4275_v51, %v2070_v47  ;;  %v1781_v4 = vmul.f32 %v4262_v43, %v4100_v20  ;;  %v1782_v54 = vmul.f32 %v4279_v10, %v4100_v20  ;;  %2585 = vst [vmem:[%s4266_s12 + $0x120] sm:$0xff] %v2457_v35  ;;  %2586 = vst [vmem:[%s4266_s12 + $0x128] sm:$0xff] %v2458_v39  ;;  %v5212_v20 = vld [vmem:[#allocation64_spill] sm:$0xff]  ;;  %v2078_v39 = vpop.permute.xlu1 %2077  ;;  %v2973_v47 = vld [vmem:[%s3546_s22 + $0x130] sm:$0xff] }
 0x451   : > { %v2333_v15 = vmul.f32 %v5206_v8, %v2082_v45  ;;  %v2334_v9 = vmul.f32 %v5207_v52, %v2082_v45  ;;  %v1779_v37 = vmul.f32 %v5209_v53, %v5208_v2  ;;  %v1780_v34 = vmul.f32 %v5210_v7, %v5208_v2  ;;  %v2974_v53 = vld [vmem:[%s3546_s22 + $0x138] sm:$0xff] }
 0x452   : > { %v2455_v17 = vadd.f32 %v2327_v50, %v1899_v62  ;;  %v2456_v5 = vadd.f32 %v2328_v23, %v1900_v56  ;;  %v1785_v59 = vmul.f32 %v5212_v20, %v5211_v57  ;;  %v1786_v14 = vmul.f32 %v5213_v16, %v5211_v57  ;;  %v5214_v62 = vld [vmem:[#allocation66_spill] sm:$0xff]  ;;  %v5215_v50 = vld [vmem:[#allocation67_spill] sm:$0xff]  ;;  %v2090_v20 = vpop.permute.xlu0 %2089  ;;  %v2975_v57 = vld [vmem:[%s3546_s22 + $0x160] sm:$0xff] }
 0x453   : > { %v2461_v40 = vadd.f32 %v2333_v15, %v1905_v29  ;;  %v2462_v35 = vadd.f32 %v2334_v9, %v1906_v36  ;;  %v1903_v45 = vadd.f32 %v2973_v47, %v1775_v6  ;;  %v1904_v2 = vadd.f32 %v2974_v53, %v1776_v58  ;;  %v2976_v36 = vld [vmem:[%s3546_s22 + $0x168] sm:$0xff]  ;;  %v5216_v6 = vld [vmem:[#allocation68_spill] sm:$0xff]  ;;  %v2977_v53 = vld [vmem:[%s3546_s22 + $0x150] sm:$0xff] }
 0x454   : > { %2583 = vst [vmem:[%s4266_s12 + $0x110] sm:$0xff] %v2455_v17  ;;  %2584 = vst [vmem:[%s4266_s12 + $0x118] sm:$0xff] %v2456_v5  ;;  %v2331_v56 = vmul.f32 %v5214_v62, %v2078_v39  ;;  %v2332_v23 = vmul.f32 %v5215_v50, %v2078_v39  ;;  %v1909_v29 = vadd.f32 %v2975_v57, %v1781_v4  ;;  %v5217_v47 = vld [vmem:[#allocation69_spill] sm:$0xff]  ;;  %v2978_v5 = vld [vmem:[%s3546_s22 + $0x158] sm:$0xff]  ;;  %v2086_v57 = vpop.permute.xlu1 %2085 }
 0x455   : > { %v1910_v15 = vadd.f32 %v2976_v36, %v1782_v54  ;;  %2589 = vst [vmem:[%s4266_s12 + $0x140] sm:$0xff] %v2461_v40  ;;  %2590 = vst [vmem:[%s4266_s12 + $0x148] sm:$0xff] %v2462_v35  ;;  %v2337_v9 = vmul.f32 %v5216_v6, %v2090_v20  ;;  %v2338_v58 = vmul.f32 %v5217_v47, %v2090_v20  ;;  %v2979_v16 = vld [vmem:[%s3546_s22 + $0x180] sm:$0xff]  ;;  %v2980_v4 = vld [vmem:[%s3546_s22 + $0x188] sm:$0xff] }
 0x456   : > { %v1907_v17 = vadd.f32 %v2977_v53, %v1779_v37  ;;  %v1908_v62 = vadd.f32 %v2978_v5, %v1780_v34  ;;  %v2459_v39 = vadd.f32 %v2331_v56, %v1903_v45  ;;  %v2460_v50 = vadd.f32 %v2332_v23, %v1904_v2  ;;  %v5218_v36 = vld [vmem:[#allocation20_spill] sm:$0xff]  ;;  %v2098_v45 = vpop.permute.xlu0 %2097  ;;  %v5225_v53 = vld [vmem:[#allocation75_spill] sm:$0xff] }
 0x457   : > { %v1913_v7 = vadd.f32 %v2979_v16, %v1785_v59  ;;  %v1914_v54 = vadd.f32 %v2980_v4, %v1786_v14  ;;  %v2465_v40 = vadd.f32 %v2337_v9, %v1909_v29  ;;  %v2466_v35 = vadd.f32 %v2338_v58, %v1910_v15  ;;  %v5219_v59 = vld [vmem:[#allocation18_spill] sm:$0xff]  ;;  %v5220_v14 = vld [vmem:[#allocation71_spill] sm:$0xff]  ;;  %v5221_v56 = vld [vmem:[#allocation72_spill] sm:$0xff] }
 0x458   : > { %v1783_v20 = vmul.f32 %v4330_v25, %v5218_v36  ;;  %v1784_v47 = vmul.f32 %v4332_v19, %v5218_v36  ;;  %2587 = vst [vmem:[%s4266_s12 + $0x130] sm:$0xff] %v2459_v39  ;;  %2588 = vst [vmem:[%s4266_s12 + $0x138] sm:$0xff] %v2460_v50  ;;  %v2335_v37 = vmul.f32 %v4347_v18, %v2086_v57  ;;  %v5222_v29 = vld [vmem:[#allocation73_spill] sm:$0xff]  ;;  %v5223_v15 = vld [vmem:[#allocation19_spill] sm:$0xff] }
 0x459   : > { %v2336_v34 = vmul.f32 %v4349_v33, %v2086_v57  ;;  %v1789_v16 = vmul.f32 %v4340_v38, %v5219_v59  ;;  %v1790_v2 = vmul.f32 %v5220_v14, %v5219_v59  ;;  %2593 = vst [vmem:[%s4266_s12 + $0x160] sm:$0xff] %v2465_v40  ;;  %2594 = vst [vmem:[%s4266_s12 + $0x168] sm:$0xff] %v2466_v35  ;;  %v5224_v9 = vld [vmem:[#allocation74_spill] sm:$0xff]  ;;  %v5226_v57 = vld [vmem:[#allocation21_spill] sm:$0xff] }
 0x45a   : > { %v2341_v23 = vmul.f32 %v5221_v56, %v2098_v45  ;;  %v2342_v50 = vmul.f32 %v5222_v29, %v2098_v45  ;;  %v1787_v58 = vmul.f32 %v5224_v9, %v5223_v15  ;;  %v1788_v5 = vmul.f32 %v5225_v53, %v5223_v15  ;;  %v5227_v36 = vld [vmem:[#allocation76_spill] sm:$0xff]  ;;  %v5228_v40 = vld [vmem:[#allocation77_spill] sm:$0xff]  ;;  %v2094_v45 = vpop.permute.xlu1 %2093  ;;  %v2981_v29 = vld [vmem:[%s3546_s22 + $0x170] sm:$0xff] }
 0x45b   : > { %v2463_v39 = vadd.f32 %v2335_v37, %v1907_v17  ;;  %v2464_v4 = vadd.f32 %v2336_v34, %v1908_v62  ;;  %v1793_v59 = vmul.f32 %v5227_v36, %v5226_v57  ;;  %v1794_v35 = vmul.f32 %v5228_v40, %v5226_v57  ;;  %v2982_v38 = vld [vmem:[%s3546_s22 + $0x178] sm:$0xff]  ;;  %v5229_v62 = vld [vmem:[#allocation78_spill] sm:$0xff]  ;;  %v2106_v36 = vpop.permute.xlu0 %2105  ;;  %v2983_v57 = vld [vmem:[%s3546_s22 + $0x1a0] sm:$0xff] }
 0x45c   : > { %v2469_v56 = vadd.f32 %v2341_v23, %v1913_v7  ;;  %v2470_v14 = vadd.f32 %v2342_v50, %v1914_v54  ;;  %v1911_v9 = vadd.f32 %v2981_v29, %v1783_v20  ;;  %v1912_v15 = vadd.f32 %v2982_v38, %v1784_v47  ;;  %v5230_v37 = vld [vmem:[#allocation79_spill] sm:$0xff]  ;;  %v2984_v54 = vld [vmem:[%s3546_s22 + $0x1a8] sm:$0xff]  ;;  %v5231_v20 = vld [vmem:[#allocation80_spill] sm:$0xff] }
 0x45d   : > { %2591 = vst [vmem:[%s4266_s12 + $0x150] sm:$0xff] %v2463_v39  ;;  %2592 = vst [vmem:[%s4266_s12 + $0x158] sm:$0xff] %v2464_v4  ;;  %v2339_v17 = vmul.f32 %v5229_v62, %v2094_v45  ;;  %v2340_v34 = vmul.f32 %v5230_v37, %v2094_v45  ;;  %v1917_v7 = vadd.f32 %v2983_v57, %v1789_v16  ;;  %v5232_v50 = vld [vmem:[#allocation81_spill] sm:$0xff]  ;;  %v2985_v47 = vld [vmem:[%s3546_s22 + $0x190] sm:$0xff] }
 0x45e   : > { %v1918_v23 = vadd.f32 %v2984_v54, %v1790_v2  ;;  %2597 = vst [vmem:[%s4266_s12 + $0x180] sm:$0xff] %v2469_v56  ;;  %2598 = vst [vmem:[%s4266_s12 + $0x188] sm:$0xff] %v2470_v14  ;;  %v2345_v29 = vmul.f32 %v5231_v20, %v2106_v36  ;;  %v2346_v38 = vmul.f32 %v5232_v50, %v2106_v36  ;;  %v2986_v4 = vld [vmem:[%s3546_s22 + $0x198] sm:$0xff]  ;;  %v2987_v40 = vld [vmem:[%s3546_s22 + $0x1c0] sm:$0xff]  ;;  %v2102_v57 = vpop.permute.xlu1 %2101 }
 0x45f   : > { %v1915_v39 = vadd.f32 %v2985_v47, %v1787_v58  ;;  %v1916_v62 = vadd.f32 %v2986_v4, %v1788_v5  ;;  %v2467_v45 = vadd.f32 %v2339_v17, %v1911_v9  ;;  %v2468_v37 = vadd.f32 %v2340_v34, %v1912_v15  ;;  %v2988_v16 = vld [vmem:[%s3546_s22 + $0x1c8] sm:$0xff]  ;;  %v5233_v54 = vld [vmem:[#allocation22_spill] sm:$0xff]  ;;  %v2114_v5 = vpop.permute.xlu0 %2113  ;;  %v5235_v15 = vld [vmem:[#allocation83_spill] sm:$0xff] }
 0x460   : > { %v1921_v53 = vadd.f32 %v2987_v40, %v1793_v59  ;;  %v1922_v2 = vadd.f32 %v2988_v16, %v1794_v35  ;;  %v2473_v56 = vadd.f32 %v2345_v29, %v1917_v7  ;;  %v2474_v14 = vadd.f32 %v2346_v38, %v1918_v23  ;;  %v5234_v59 = vld [vmem:[#allocation23_spill] sm:$0xff]  ;;  %v5236_v34 = vld [vmem:[#allocation84_spill] sm:$0xff]  ;;  %v5238_v23 = vld [vmem:[#allocation85_spill] sm:$0xff] }
 0x461   : > { %v1791_v36 = vmul.f32 %v4404_v27, %v5233_v54  ;;  %v1792_v50 = vmul.f32 %v4406_v26, %v5233_v54  ;;  %2595 = vst [vmem:[%s4266_s12 + $0x170] sm:$0xff] %v2467_v45  ;;  %2596 = vst [vmem:[%s4266_s12 + $0x178] sm:$0xff] %v2468_v37  ;;  %v2343_v9 = vmul.f32 %v4420_v42, %v2102_v57  ;;  %v5237_v7 = vld [vmem:[#allocation24_spill] sm:$0xff]  ;;  %v5239_v38 = vld [vmem:[#allocation86_spill] sm:$0xff] }
 0x462   : > { %v2344_v58 = vmul.f32 %v4422_v12, %v2102_v57  ;;  %v1797_v40 = vmul.f32 %v4414_v3, %v5234_v59  ;;  %v1798_v35 = vmul.f32 %v4426_v41, %v5234_v59  ;;  %2601 = vst [vmem:[%s4266_s12 + $0x1a0] sm:$0xff] %v2473_v56  ;;  %2602 = vst [vmem:[%s4266_s12 + $0x1a8] sm:$0xff] %v2474_v14  ;;  %v5240_v16 = vld [vmem:[#allocation25_spill] sm:$0xff]  ;;  %v5241_v57 = vld [vmem:[#allocation54_spill] sm:$0xff] }
 0x463   : > { %v2349_v17 = vmul.f32 %v5235_v15, %v2114_v5  ;;  %v2350_v37 = vmul.f32 %v5236_v34, %v2114_v5  ;;  %v1795_v29 = vmul.f32 %v5238_v23, %v5237_v7  ;;  %v1796_v47 = vmul.f32 %v5239_v38, %v5237_v7  ;;  %v5242_v56 = vld [vmem:[#allocation55_spill] sm:$0xff]  ;;  %v2110_v5 = vpop.permute.xlu1 %2109  ;;  %v2989_v34 = vld [vmem:[%s3546_s22 + $0x1b0] sm:$0xff] }
 0x464   : > { %v2471_v4 = vadd.f32 %v2343_v9, %v1915_v39  ;;  %v2472_v45 = vadd.f32 %v2344_v58, %v1916_v62  ;;  %v1801_v54 = vmul.f32 %v5241_v57, %v5240_v16  ;;  %v1802_v14 = vmul.f32 %v5242_v56, %v5240_v16  ;;  %v2990_v41 = vld [vmem:[%s3546_s22 + $0x1b8] sm:$0xff]  ;;  %v5244_v9 = vld [vmem:[#allocation88_spill] sm:$0xff]  ;;  %v2122_v57 = vpop.permute.xlu0 %2121 }
 0x465   : > { %v2477_v59 = vadd.f32 %v2349_v17, %v1921_v53  ;;  %v2478_v15 = vadd.f32 %v2350_v37, %v1922_v2  ;;  %v1919_v23 = vadd.f32 %v2989_v34, %v1791_v36  ;;  %v1920_v7 = vadd.f32 %v2990_v41, %v1792_v50  ;;  %v5243_v62 = vld [vmem:[#allocation87_spill] sm:$0xff]  ;;  %v2991_v16 = vld [vmem:[%s3546_s22 + $0x1e0] sm:$0xff]  ;;  %v2992_v2 = vld [vmem:[%s3546_s22 + $0x1e8] sm:$0xff] }
 0x466   : > { %2599 = vst [vmem:[%s4266_s12 + $0x190] sm:$0xff] %v2471_v4  ;;  %2600 = vst [vmem:[%s4266_s12 + $0x198] sm:$0xff] %v2472_v45  ;;  %v2347_v39 = vmul.f32 %v5243_v62, %v2110_v5  ;;  %v2348_v58 = vmul.f32 %v5244_v9, %v2110_v5  ;;  %v1925_v53 = vadd.f32 %v2991_v16, %v1797_v40  ;;  %v5245_v36 = vld [vmem:[#allocation89_spill] sm:$0xff]  ;;  %v5246_v37 = vld [vmem:[#allocation90_spill] sm:$0xff] }
 0x467   : > { %v1926_v17 = vadd.f32 %v2992_v2, %v1798_v35  ;;  %2605 = vst [vmem:[%s4266_s12 + $0x1c0] sm:$0xff] %v2477_v59  ;;  %2606 = vst [vmem:[%s4266_s12 + $0x1c8] sm:$0xff] %v2478_v15  ;;  %v2353_v34 = vmul.f32 %v5245_v36, %v2122_v57  ;;  %v2354_v41 = vmul.f32 %v5246_v37, %v2122_v57  ;;  %v2993_v50 = vld [vmem:[%s3546_s22 + $0x1d0] sm:$0xff]  ;;  %v2994_v45 = vld [vmem:[%s3546_s22 + $0x1d8] sm:$0xff]  ;;  %v2118_v16 = vpop.permute.xlu1 %2117 }
 0x468   : > { %v1923_v4 = vadd.f32 %v2993_v50, %v1795_v29  ;;  %v1924_v56 = vadd.f32 %v2994_v45, %v1796_v47  ;;  %v2475_v5 = vadd.f32 %v2347_v39, %v1919_v23  ;;  %v2476_v9 = vadd.f32 %v2348_v58, %v1920_v7  ;;  %v2995_v62 = vld [vmem:[%s3546_s22 + $0x200] sm:$0xff]  ;;  %v2996_v40 = vld [vmem:[%s3546_s22 + $0x208] sm:$0xff]  ;;  %v5247_v2 = vld [vmem:[#allocation26_spill] sm:$0xff]  ;;  %v2133_v47 = vpop.permute.xlu0 %2132 }
 0x469   : > { %v1929_v38 = vadd.f32 %v2995_v62, %v1801_v54  ;;  %v1930_v35 = vadd.f32 %v2996_v40, %v1802_v14  ;;  %v2481_v59 = vadd.f32 %v2353_v34, %v1925_v53  ;;  %v2482_v15 = vadd.f32 %v2354_v41, %v1926_v17  ;;  %v5248_v54 = vld [vmem:[#allocation27_spill] sm:$0xff]  ;;  %v5250_v34 = vld [vmem:[#allocation29_spill] sm:$0xff]  ;;  %v2997_v45 = vld [vmem:[%s3546_s22 + $0x1f0] sm:$0xff] }
 0x46a   : > { %v1799_v57 = vmul.f32 %v4472_v22, %v5247_v2  ;;  %v1800_v37 = vmul.f32 %v4480_v21, %v5247_v2  ;;  %2603 = vst [vmem:[%s4266_s12 + $0x1b0] sm:$0xff] %v2475_v5  ;;  %2604 = vst [vmem:[%s4266_s12 + $0x1b8] sm:$0xff] %v2476_v9  ;;  %v2351_v23 = vmul.f32 %v4486_v60, %v2118_v16  ;;  %v5249_v9 = vld [vmem:[#allocation28_spill] sm:$0xff]  ;;  %v2998_v5 = vld [vmem:[%s3546_s22 + $0x1f8] sm:$0xff] }
 0x46b   : > { %v2352_v29 = vmul.f32 %v4488_v24, %v2118_v16  ;;  %v1805_v14 = vmul.f32 %v4212_v32, %v5248_v54  ;;  %v1806_v7 = vmul.f32 %v4215_v0, %v5248_v54  ;;  %2609 = vst [vmem:[%s4266_s12 + $0x1e0] sm:$0xff] %v2481_v59  ;;  %2610 = vst [vmem:[%s4266_s12 + $0x1e8] sm:$0xff] %v2482_v15  ;;  %v3000_v40 = vld [vmem:[%s3546_s22 + $0x228] sm:$0xff]  ;;  %v3001_v15 = vld [vmem:[%s3546_s22 + $0x210] sm:$0xff] }
 0x46c   : > { %v2357_v62 = vmul.f32 %v4218_v48, %v2133_v47  ;;  %v2358_v39 = vmul.f32 %v4220_v31, %v2133_v47  ;;  %v1803_v58 = vmul.f32 %v4222_v61, %v5249_v9  ;;  %v1804_v53 = vmul.f32 %v4224_v44, %v5249_v9  ;;  %v2126_v31 = vpop.permute.xlu1 %2125  ;;  %v3002_v2 = vld [vmem:[%s3546_s22 + $0x218] sm:$0xff]  ;;  %v3003_v47 = vld [vmem:[%s3546_s22 + $0x240] sm:$0xff] }
 0x46d   : > { %v2479_v17 = vadd.f32 %v2351_v23, %v1923_v4  ;;  %v2480_v32 = vadd.f32 %v2352_v29, %v1924_v56  ;;  %v1809_v0 = vmul.f32 %v4230_v55, %v5250_v34  ;;  %v1810_v41 = vmul.f32 %v4232_v28, %v5250_v34  ;;  %v2141_v56 = vpop.permute.xlu0 %2140  ;;  %v2999_v28 = vld [vmem:[%s3546_s22 + $0x220] sm:$0xff]  ;;  %v5252_v34 = vld [vmem:[#allocation31_spill] sm:$0xff] }
 0x46e   : > { %v2485_v48 = vadd.f32 %v2357_v62, %v1929_v38  ;;  %v2486_v50 = vadd.f32 %v2358_v39, %v1930_v35  ;;  %v1927_v61 = vadd.f32 %v2997_v45, %v1799_v57  ;;  %v1928_v44 = vadd.f32 %v2998_v5, %v1800_v37 }
 0x46f   : > { %2607 = vst [vmem:[%s4266_s12 + $0x1d0] sm:$0xff] %v2479_v17  ;;  %2608 = vst [vmem:[%s4266_s12 + $0x1d8] sm:$0xff] %v2480_v32  ;;  %v2355_v4 = vmul.f32 %v4510_v63, %v2126_v31  ;;  %v2356_v55 = vmul.f32 %v4512_v30, %v2126_v31  ;;  %v1933_v38 = vadd.f32 %v2999_v28, %v1805_v14  ;;  %v3004_v14 = vld [vmem:[%s3546_s22 + $0x248] sm:$0xff] }
 0x470   : > { %v1934_v35 = vadd.f32 %v3000_v40, %v1806_v7  ;;  %2613 = vst [vmem:[%s4266_s12 + $0x200] sm:$0xff] %v2485_v48  ;;  %2614 = vst [vmem:[%s4266_s12 + $0x208] sm:$0xff] %v2486_v50  ;;  %v2361_v59 = vmul.f32 %v4246_v11, %v2141_v56  ;;  %v2362_v37 = vmul.f32 %v4248_v1, %v2141_v56  ;;  %v2137_v9 = vpop.permute.xlu1 %2136  ;;  %v5251_v11 = vld [vmem:[#allocation30_spill] sm:$0xff]  ;;  %v5255_v50 = vld [vmem:[#allocation63_spill] sm:$0xff] }
 0x471   : > { %v1931_v16 = vadd.f32 %v3001_v15, %v1803_v58  ;;  %v1932_v57 = vadd.f32 %v3002_v2, %v1804_v53  ;;  %v2483_v23 = vadd.f32 %v2355_v4, %v1927_v61  ;;  %v2484_v29 = vadd.f32 %v2356_v55, %v1928_v44  ;;  %v2149_v32 = vpop.permute.xlu0 %2148  ;;  %v5254_v48 = vld [vmem:[#allocation62_spill] sm:$0xff]  ;;  %v5256_v61 = vld [vmem:[#allocation33_spill] sm:$0xff]  ;;  %v3007_v2 = vld [vmem:[%s3546_s22 + $0x260] sm:$0xff] }
 0x472   : > { %v1937_v54 = vadd.f32 %v3003_v47, %v1809_v0  ;;  %v1938_v7 = vadd.f32 %v3004_v14, %v1810_v41  ;;  %v2489_v62 = vadd.f32 %v2361_v59, %v1933_v38  ;;  %v2490_v39 = vadd.f32 %v2362_v37, %v1934_v35  ;;  %v5258_v44 = vld [vmem:[#allocation65_spill] sm:$0xff]  ;;  %v3005_v56 = vld [vmem:[%s3546_s22 + $0x230] sm:$0xff]  ;;  %v3006_v38 = vld [vmem:[%s3546_s22 + $0x238] sm:$0xff] }
 0x473   : > { %v1807_v1 = vmul.f32 %v4256_v13, %v5251_v11  ;;  %v1808_v17 = vmul.f32 %v4258_v49, %v5251_v11  ;;  %2611 = vst [vmem:[%s4266_s12 + $0x1f0] sm:$0xff] %v2483_v23  ;;  %2612 = vst [vmem:[%s4266_s12 + $0x1f8] sm:$0xff] %v2484_v29  ;;  %v2359_v58 = vmul.f32 %v4273_v46, %v2137_v9  ;;  %v5253_v46 = vld [vmem:[#allocation32_spill] sm:$0xff]  ;;  %v5259_v35 = vld [vmem:[#allocation66_spill] sm:$0xff] }
 0x474   : > { %v2360_v53 = vmul.f32 %v4275_v51, %v2137_v9  ;;  %v1813_v0 = vmul.f32 %v4262_v43, %v5252_v34  ;;  %v1814_v41 = vmul.f32 %v4279_v10, %v5252_v34  ;;  %2617 = vst [vmem:[%s4266_s12 + $0x220] sm:$0xff] %v2489_v62  ;;  %2618 = vst [vmem:[%s4266_s12 + $0x228] sm:$0xff] %v2490_v39  ;;  %v5257_v10 = vld [vmem:[#allocation64_spill] sm:$0xff]  ;;  %v5260_v37 = vld [vmem:[#allocation67_spill] sm:$0xff] }
 0x475   : > { %v2365_v13 = vmul.f32 %v5206_v8, %v2149_v32  ;;  %v2366_v49 = vmul.f32 %v5207_v52, %v2149_v32  ;;  %v1811_v51 = vmul.f32 %v5254_v48, %v5253_v46  ;;  %v1812_v31 = vmul.f32 %v5255_v50, %v5253_v46  ;;  %v2145_v52 = vpop.permute.xlu1 %2144  ;;  %v3008_v23 = vld [vmem:[%s3546_s22 + $0x268] sm:$0xff]  ;;  %v3010_v39 = vld [vmem:[%s3546_s22 + $0x258] sm:$0xff] }
 0x476   : > { %v2487_v45 = vadd.f32 %v2359_v58, %v1931_v16  ;;  %v2488_v43 = vadd.f32 %v2360_v53, %v1932_v57  ;;  %v1817_v5 = vmul.f32 %v5257_v10, %v5256_v61  ;;  %v1818_v4 = vmul.f32 %v5258_v44, %v5256_v61  ;;  %v2157_v16 = vpop.permute.xlu0 %2156  ;;  %v3012_v53 = vld [vmem:[%s3546_s22 + $0x288] sm:$0xff]  ;;  %v5263_v50 = vld [vmem:[#allocation35_spill] sm:$0xff]  ;;  %v5269_v44 = vld [vmem:[#allocation74_spill] sm:$0xff] }
 0x477   : > { %v2493_v8 = vadd.f32 %v2365_v13, %v1937_v54  ;;  %v2494_v55 = vadd.f32 %v2366_v49, %v1938_v7  ;;  %v1935_v28 = vadd.f32 %v3005_v56, %v1807_v1  ;;  %v1936_v40 = vadd.f32 %v3006_v38, %v1808_v17  ;;  %v5261_v54 = vld [vmem:[#allocation69_spill] sm:$0xff]  ;;  %v3009_v7 = vld [vmem:[%s3546_s22 + $0x250] sm:$0xff]  ;;  %v3011_v17 = vld [vmem:[%s3546_s22 + $0x280] sm:$0xff] }
 0x478   : > { %2615 = vst [vmem:[%s4266_s12 + $0x210] sm:$0xff] %v2487_v45  ;;  %2616 = vst [vmem:[%s4266_s12 + $0x218] sm:$0xff] %v2488_v43  ;;  %v2363_v59 = vmul.f32 %v5259_v35, %v2145_v52  ;;  %v2364_v15 = vmul.f32 %v5260_v37, %v2145_v52  ;;  %v1941_v57 = vadd.f32 %v3007_v2, %v1813_v0  ;;  %v5265_v43 = vld [vmem:[#allocation71_spill] sm:$0xff]  ;;  %v5267_v10 = vld [vmem:[#allocation73_spill] sm:$0xff] }
 0x479   : > { %v1942_v29 = vadd.f32 %v3008_v23, %v1814_v41  ;;  %2621 = vst [vmem:[%s4266_s12 + $0x240] sm:$0xff] %v2493_v8  ;;  %2622 = vst [vmem:[%s4266_s12 + $0x248] sm:$0xff] %v2494_v55  ;;  %v2369_v47 = vmul.f32 %v5216_v6, %v2157_v16  ;;  %v2370_v14 = vmul.f32 %v5261_v54, %v2157_v16  ;;  %v2153_v41 = vpop.permute.xlu1 %2152  ;;  %v5262_v6 = vld [vmem:[#allocation34_spill] sm:$0xff]  ;;  %v5271_v56 = vld [vmem:[#allocation37_spill] sm:$0xff] }
 0x47a   : > { %v1939_v62 = vadd.f32 %v3009_v7, %v1811_v51  ;;  %v1940_v9 = vadd.f32 %v3010_v39, %v1812_v31  ;;  %v2491_v11 = vadd.f32 %v2363_v59, %v1935_v28  ;;  %v2492_v1 = vadd.f32 %v2364_v15, %v1936_v40  ;;  %v2165_v51 = vpop.permute.xlu0 %2164  ;;  %v5264_v31 = vld [vmem:[#allocation70_spill] sm:$0xff]  ;;  %v5272_v28 = vld [vmem:[#allocation76_spill] sm:$0xff]  ;;  %v5273_v40 = vld [vmem:[#allocation77_spill] sm:$0xff] }
 0x47b   : > { %v1945_v58 = vadd.f32 %v3011_v17, %v1817_v5  ;;  %v1946_v32 = vadd.f32 %v3012_v53, %v1818_v4  ;;  %v2497_v34 = vadd.f32 %v2369_v47, %v1941_v57  ;;  %v2498_v0 = vadd.f32 %v2370_v14, %v1942_v29  ;;  %v5270_v4 = vld [vmem:[#allocation75_spill] sm:$0xff]  ;;  %v3013_v16 = vld [vmem:[%s3546_s22 + $0x270] sm:$0xff]  ;;  %v5276_v17 = vld [vmem:[#allocation81_spill] sm:$0xff] }
 0x47c   : > { %v1815_v13 = vmul.f32 %v4330_v25, %v5262_v6  ;;  %v1816_v49 = vmul.f32 %v4332_v19, %v5262_v6  ;;  %2619 = vst [vmem:[%s4266_s12 + $0x230] sm:$0xff] %v2491_v11  ;;  %2620 = vst [vmem:[%s4266_s12 + $0x238] sm:$0xff] %v2492_v1  ;;  %v2367_v46 = vmul.f32 %v4347_v18, %v2153_v41  ;;  %v5266_v25 = vld [vmem:[#allocation72_spill] sm:$0xff]  ;;  %v3014_v57 = vld [vmem:[%s3546_s22 + $0x278] sm:$0xff] }
 0x47d   : > { %v2368_v48 = vmul.f32 %v4349_v33, %v2153_v41  ;;  %v1821_v45 = vmul.f32 %v5264_v31, %v5263_v50  ;;  %v1822_v61 = vmul.f32 %v5265_v43, %v5263_v50  ;;  %2625 = vst [vmem:[%s4266_s12 + $0x260] sm:$0xff] %v2497_v34  ;;  %2626 = vst [vmem:[%s4266_s12 + $0x268] sm:$0xff] %v2498_v0  ;;  %v5268_v18 = vld [vmem:[#allocation36_spill] sm:$0xff]  ;;  %v2161_v15 = vpop.permute.xlu1 %2160  ;;  %v5274_v29 = vld [vmem:[#allocation78_spill] sm:$0xff] }
 0x47e   : > { %v2373_v19 = vmul.f32 %v5266_v25, %v2165_v51  ;;  %v2374_v5 = vmul.f32 %v5267_v10, %v2165_v51  ;;  %v1819_v33 = vmul.f32 %v5269_v44, %v5268_v18  ;;  %v1820_v8 = vmul.f32 %v5270_v4, %v5268_v18  ;;  %v5275_v54 = vld [vmem:[#allocation79_spill] sm:$0xff]  ;;  %v2173_v7 = vpop.permute.xlu0 %2172  ;;  %v3017_v53 = vld [vmem:[%s3546_s22 + $0x290] sm:$0xff] }
 0x47f   : > { %v2495_v55 = vadd.f32 %v2367_v46, %v1939_v62  ;;  %v2496_v52 = vadd.f32 %v2368_v48, %v1940_v9  ;;  %v1825_v38 = vmul.f32 %v5272_v28, %v5271_v56  ;;  %v1826_v35 = vmul.f32 %v5273_v40, %v5271_v56  ;;  %v3015_v62 = vld [vmem:[%s3546_s22 + $0x2a0] sm:$0xff]  ;;  %v3016_v9 = vld [vmem:[%s3546_s22 + $0x2a8] sm:$0xff]  ;;  %v3018_v34 = vld [vmem:[%s3546_s22 + $0x298] sm:$0xff] }
 0x480   : > { %v2501_v59 = vadd.f32 %v2373_v19, %v1945_v58  ;;  %v2502_v37 = vadd.f32 %v2374_v5, %v1946_v32  ;;  %v1943_v2 = vadd.f32 %v3013_v16, %v1815_v13  ;;  %v1944_v23 = vadd.f32 %v3014_v57, %v1816_v49  ;;  %v3019_v13 = vld [vmem:[%s3546_s22 + $0x2c0] sm:$0xff]  ;;  %v3020_v46 = vld [vmem:[%s3546_s22 + $0x2c8] sm:$0xff]  ;;  %v5278_v10 = vld [vmem:[#allocation39_spill] sm:$0xff] }
 0x481   : > { %2623 = vst [vmem:[%s4266_s12 + $0x250] sm:$0xff] %v2495_v55  ;;  %2624 = vst [vmem:[%s4266_s12 + $0x258] sm:$0xff] %v2496_v52  ;;  %v2371_v47 = vmul.f32 %v5274_v29, %v2161_v15  ;;  %v2372_v14 = vmul.f32 %v5275_v54, %v2161_v15  ;;  %v1949_v39 = vadd.f32 %v3015_v62, %v1821_v45  ;;  %v2169_v31 = vpop.permute.xlu1 %2168  ;;  %v5279_v18 = vld [vmem:[#allocation82_spill] sm:$0xff]  ;;  %v5283_v55 = vld [vmem:[#allocation85_spill] sm:$0xff] }
 0x482   : > { %v1950_v11 = vadd.f32 %v3016_v9, %v1822_v61  ;;  %2629 = vst [vmem:[%s4266_s12 + $0x280] sm:$0xff] %v2501_v59  ;;  %2630 = vst [vmem:[%s4266_s12 + $0x288] sm:$0xff] %v2502_v37  ;;  %v2377_v1 = vmul.f32 %v5231_v20, %v2173_v7  ;;  %v2378_v58 = vmul.f32 %v5276_v17, %v2173_v7  ;;  %v5277_v20 = vld [vmem:[#allocation38_spill] sm:$0xff]  ;;  %v2181_v19 = vpop.permute.xlu0 %2180  ;;  %v3021_v28 = vld [vmem:[#allocation5] sm:$0xff] }
 0x483   : > { %v1947_v32 = vadd.f32 %v3017_v53, %v1819_v33  ;;  %v1948_v0 = vadd.f32 %v3018_v34, %v1820_v8  ;;  %v2499_v41 = vadd.f32 %v2371_v47, %v1943_v2  ;;  %v2500_v6 = vadd.f32 %v2372_v14, %v1944_v23  ;;  %v5282_v8 = vld [vmem:[#allocation40_spill] sm:$0xff]  ;;  %v3023_v2 = vld [vmem:[%s3546_s22 + $0x2b0] sm:$0xff]  ;;  %v3024_v23 = vld [vmem:[%s3546_s22 + $0x2b8] sm:$0xff] }
 0x484   : > { %v1953_v49 = vadd.f32 %v3019_v13, %v1825_v38  ;;  %v1954_v48 = vadd.f32 %v3020_v46, %v1826_v35  ;;  %v2505_v51 = vadd.f32 %v2377_v1, %v1949_v39  ;;  %v2506_v50 = vadd.f32 %v2378_v58, %v1950_v11  ;;  %v5285_v38 = vld [vmem:[#allocation41_spill] sm:$0xff]  ;;  %v5286_v47 = vld [vmem:[#allocation87_spill] sm:$0xff]  ;;  %v5287_v14 = vld [vmem:[#allocation88_spill] sm:$0xff] }
 0x485   : > { %v1823_v45 = vmul.f32 %v4404_v27, %v5277_v20  ;;  %v1824_v43 = vmul.f32 %v4406_v26, %v5277_v20  ;;  %2627 = vst [vmem:[%s4266_s12 + $0x270] sm:$0xff] %v2499_v41  ;;  %2628 = vst [vmem:[%s4266_s12 + $0x278] sm:$0xff] %v2500_v6  ;;  %v2375_v61 = vmul.f32 %v4420_v42, %v2169_v31  ;;  %v5280_v27 = vld [vmem:[#allocation83_spill] sm:$0xff]  ;;  %v5281_v26 = vld [vmem:[#allocation84_spill] sm:$0xff]  ;;  %v2177_v16 = vpop.permute.xlu1 %2176 }
 0x486   : > { %v2376_v25 = vmul.f32 %v4422_v12, %v2169_v31  ;;  %v1829_v5 = vmul.f32 %v4414_v3, %v5278_v10  ;;  %v1830_v44 = vmul.f32 %v5279_v18, %v5278_v10  ;;  %2633 = vst [vmem:[%s4266_s12 + $0x2a0] sm:$0xff] %v2505_v51  ;;  %2634 = vst [vmem:[%s4266_s12 + $0x2a8] sm:$0xff] %v2506_v50  ;;  %v5284_v12 = vld [vmem:[#allocation86_spill] sm:$0xff]  ;;  %v3022_v35 = vld [vmem:[#allocation5 + $0x8] sm:$0xff]  ;;  %v2189_v62 = vpop.permute.xlu0 %2188 }
 0x487   : > { %v2381_v33 = vmul.f32 %v5280_v27, %v2181_v19  ;;  %v2382_v4 = vmul.f32 %v5281_v26, %v2181_v19  ;;  %v1827_v42 = vmul.f32 %v5283_v55, %v5282_v8  ;;  %v1828_v52 = vmul.f32 %v5284_v12, %v5282_v8  ;;  %v3025_v39 = vld [vmem:[%s3546_s22 + $0x2e0] sm:$0xff]  ;;  %v3026_v11 = vld [vmem:[%s3546_s22 + $0x2e8] sm:$0xff]  ;;  %v5288_v58 = vld [vmem:[#allocation90_spill] sm:$0xff] }
 0x488   : > { %v2503_v3 = vadd.f32 %v2375_v61, %v1947_v32  ;;  %v2504_v56 = vadd.f32 %v2376_v25, %v1948_v0  ;;  %v1833_v40 = vmul.f32 %v3021_v28, %v5285_v38  ;;  %v1834_v59 = vmul.f32 %v3022_v35, %v5285_v38  ;;  %v3027_v32 = vld [vmem:[%s3546_s22 + $0x2d0] sm:$0xff]  ;;  %v3028_v0 = vld [vmem:[%s3546_s22 + $0x2d8] sm:$0xff]  ;;  %v3031_v10 = vld [vmem:[#allocation5 + $0x20] sm:$0xff] }
 0x489   : > { %v2509_v37 = vadd.f32 %v2381_v33, %v1953_v49  ;;  %v2510_v15 = vadd.f32 %v2382_v4, %v1954_v48  ;;  %v1951_v57 = vadd.f32 %v3023_v2, %v1823_v45  ;;  %v1952_v29 = vadd.f32 %v3024_v23, %v1824_v43  ;;  %v3029_v49 = vld [vmem:[%s3546_s22 + $0x300] sm:$0xff]  ;;  %v3030_v48 = vld [vmem:[%s3546_s22 + $0x308] sm:$0xff]  ;;  %v2185_v20 = vpop.permute.xlu1 %2184  ;;  %v3035_v4 = vld [vmem:[#allocation5 + $0x10] sm:$0xff] }
 0x48a   : > { %2631 = vst [vmem:[%s4266_s12 + $0x290] sm:$0xff] %v2503_v3  ;;  %2632 = vst [vmem:[%s4266_s12 + $0x298] sm:$0xff] %v2504_v56  ;;  %v2379_v54 = vmul.f32 %v5286_v47, %v2177_v16  ;;  %v2380_v7 = vmul.f32 %v5287_v14, %v2177_v16  ;;  %v1957_v9 = vadd.f32 %v3025_v39, %v1829_v5  ;;  %v2200_v19 = vpop.permute.xlu0 %2199  ;;  %v5290_v5 = vld [vmem:[#allocation43_spill] sm:$0xff]  ;;  %v3033_v33 = vld [vmem:[#allocation7] sm:$0xff] }
 0x48b   : > { %v1958_v1 = vadd.f32 %v3026_v11, %v1830_v44  ;;  %2637 = vst [vmem:[%s4266_s12 + $0x2c0] sm:$0xff] %v2509_v37  ;;  %2638 = vst [vmem:[%s4266_s12 + $0x2c8] sm:$0xff] %v2510_v15  ;;  %v2385_v17 = vmul.f32 %v5245_v36, %v2189_v62  ;;  %v2386_v53 = vmul.f32 %v5288_v58, %v2189_v62  ;;  %v5289_v36 = vld [vmem:[#allocation42_spill] sm:$0xff]  ;;  %v3032_v44 = vld [vmem:[#allocation5 + $0x28] sm:$0xff] }
 0x48c   : > { %v1955_v34 = vadd.f32 %v3027_v32, %v1827_v42  ;;  %v1956_v41 = vadd.f32 %v3028_v0, %v1828_v52  ;;  %v2507_v6 = vadd.f32 %v2379_v54, %v1951_v57  ;;  %v2508_v13 = vadd.f32 %v2380_v7, %v1952_v29  ;;  %v3034_v26 = vld [vmem:[#allocation7 + $0x8] sm:$0xff]  ;;  %v5291_v8 = vld [vmem:[#allocation44_spill] sm:$0xff]  ;;  %v3039_v37 = vld [vmem:[%s3546_s22 + $0x2f0] sm:$0xff] }
 0x48d   : > { %v1961_v46 = vadd.f32 %v3029_v49, %v1833_v40  ;;  %v1962_v51 = vadd.f32 %v3030_v48, %v1834_v59  ;;  %v2513_v50 = vadd.f32 %v2385_v17, %v1957_v9  ;;  %v2514_v31 = vadd.f32 %v2386_v53, %v1958_v1  ;;  %v3037_v52 = vld [vmem:[#allocation5 + $0x40] sm:$0xff]  ;;  %v5292_v3 = vld [vmem:[#allocation45_spill] sm:$0xff]  ;;  %v2193_v59 = vpop.permute.xlu1 %2192  ;;  %v3040_v16 = vld [vmem:[%s3546_s22 + $0x2f8] sm:$0xff] }
 0x48e   : > { %v1831_v45 = vmul.f32 %v4472_v22, %v5289_v36  ;;  %v1832_v43 = vmul.f32 %v4480_v21, %v5289_v36  ;;  %2635 = vst [vmem:[%s4266_s12 + $0x2b0] sm:$0xff] %v2507_v6  ;;  %2636 = vst [vmem:[%s4266_s12 + $0x2b8] sm:$0xff] %v2508_v13  ;;  %v2383_v61 = vmul.f32 %v4486_v60, %v2185_v20  ;;  %v3038_v28 = vld [vmem:[#allocation5 + $0x48] sm:$0xff]  ;;  %v2208_v29 = vpop.permute.xlu0 %2207  ;;  %v3041_v47 = vld [vmem:[%s3546_s22 + $0x320] sm:$0xff] }
 0x48f   : > { %v2384_v25 = vmul.f32 %v4488_v24, %v2185_v20  ;;  %v1837_v18 = vmul.f32 %v3031_v10, %v5290_v5  ;;  %v1838_v27 = vmul.f32 %v3032_v44, %v5290_v5  ;;  %2641 = vst [vmem:[%s4266_s12 + $0x2e0] sm:$0xff] %v2513_v50  ;;  %2642 = vst [vmem:[%s4266_s12 + $0x2e8] sm:$0xff] %v2514_v31  ;;  %v3036_v24 = vld [vmem:[#allocation5 + $0x18] sm:$0xff]  ;;  %v3042_v14 = vld [vmem:[%s3546_s22 + $0x328] sm:$0xff] }
 0x490   : > { %v2389_v22 = vmul.f32 %v3033_v33, %v2200_v19  ;;  %v2390_v21 = vmul.f32 %v3034_v26, %v2200_v19  ;;  %v1835_v60 = vmul.f32 %v3035_v4, %v5291_v8  ;;  %v1836_v55 = vmul.f32 %v3036_v24, %v5291_v8  ;;  %v3043_v62 = vld [vmem:[#allocation7 + $0x20] sm:$0xff]  ;;  %v3044_v9 = vld [vmem:[#allocation7 + $0x28] sm:$0xff]  ;;  %v3045_v1 = vld [vmem:[%s3546_s22 + $0x310] sm:$0xff] }
 0x491   : > { %v2511_v42 = vadd.f32 %v2383_v61, %v1955_v34  ;;  %v2512_v12 = vadd.f32 %v2384_v25, %v1956_v41  ;;  %v1841_v56 = vmul.f32 %v3037_v52, %v5292_v3  ;;  %v1842_v38 = vmul.f32 %v3038_v28, %v5292_v3  ;;  %v3046_v58 = vld [vmem:[%s3546_s22 + $0x318] sm:$0xff]  ;;  %v3047_v32 = vld [vmem:[%s3546_s22 + $0x340] sm:$0xff]  ;;  %v3048_v0 = vld [vmem:[%s3546_s22 + $0x348] sm:$0xff]  ;;  %v2204_v49 = vpop.permute.xlu1 %2203 }
 0x492   : > { %v2517_v40 = vadd.f32 %v2389_v22, %v1961_v46  ;;  %v2518_v35 = vadd.f32 %v2390_v21, %v1962_v51  ;;  %v1959_v15 = vadd.f32 %v3039_v37, %v1831_v45  ;;  %v1960_v2 = vadd.f32 %v3040_v16, %v1832_v43  ;;  %v3049_v46 = vld [vmem:[#allocation5 + $0x30] sm:$0xff]  ;;  %v3050_v50 = vld [vmem:[#allocation5 + $0x38] sm:$0xff]  ;;  %v2216_v61 = vpop.permute.xlu0 %2215  ;;  %v3053_v25 = vld [vmem:[#allocation5 + $0x60] sm:$0xff] }
 0x493   : > { %2639 = vst [vmem:[%s4266_s12 + $0x2d0] sm:$0xff] %v2511_v42  ;;  %2640 = vst [vmem:[%s4266_s12 + $0x2d8] sm:$0xff] %v2512_v12  ;;  %v2387_v57 = vmul.f32 %v4510_v63, %v2193_v59  ;;  %v2388_v23 = vmul.f32 %v4512_v30, %v2193_v59  ;;  %v1965_v54 = vadd.f32 %v3041_v47, %v1837_v18  ;;  %v5293_v48 = vld [vmem:[#allocation46_spill] sm:$0xff]  ;;  %v3052_v45 = vld [vmem:[#allocation7 + $0x18] sm:$0xff] }
 0x494   : > { %v1966_v7 = vadd.f32 %v3042_v14, %v1838_v27  ;;  %2645 = vst [vmem:[%s4266_s12 + $0x300] sm:$0xff] %v2517_v40  ;;  %2646 = vst [vmem:[%s4266_s12 + $0x308] sm:$0xff] %v2518_v35  ;;  %v2393_v39 = vmul.f32 %v3043_v62, %v2208_v29  ;;  %v2394_v11 = vmul.f32 %v3044_v9, %v2208_v29  ;;  %v3051_v20 = vld [vmem:[#allocation7 + $0x10] sm:$0xff]  ;;  %v5294_v19 = vld [vmem:[#allocation47_spill] sm:$0xff] }
 0x495   : > { %v1963_v17 = vadd.f32 %v3045_v1, %v1835_v60  ;;  %v1964_v63 = vadd.f32 %v3046_v58, %v1836_v55  ;;  %v2515_v30 = vadd.f32 %v2387_v57, %v1959_v15  ;;  %v2516_v53 = vadd.f32 %v2388_v23, %v1960_v2  ;;  %v3054_v5 = vld [vmem:[#allocation5 + $0x68] sm:$0xff]  ;;  %v3055_v44 = vld [vmem:[#allocation7 + $0x40] sm:$0xff]  ;;  %v3057_v26 = vld [vmem:[#allocation5 + $0x50] sm:$0xff]  ;;  %v2212_v40 = vpop.permute.xlu1 %2211 }
 0x496   : > { %v1969_v34 = vadd.f32 %v3047_v32, %v1841_v56  ;;  %v1970_v41 = vadd.f32 %v3048_v0, %v1842_v38  ;;  %v2521_v6 = vadd.f32 %v2393_v39, %v1965_v54  ;;  %v2522_v13 = vadd.f32 %v2394_v11, %v1966_v7  ;;  %v3056_v33 = vld [vmem:[#allocation7 + $0x48] sm:$0xff]  ;;  %v5295_v21 = vld [vmem:[#allocation48_spill] sm:$0xff]  ;;  %v3058_v8 = vld [vmem:[#allocation5 + $0x58] sm:$0xff]  ;;  %v2224_v29 = vpop.permute.xlu0 %2223 }
 0x497   : > { %v1839_v51 = vmul.f32 %v3049_v46, %v5293_v48  ;;  %v1840_v31 = vmul.f32 %v3050_v50, %v5293_v48  ;;  %2643 = vst [vmem:[%s4266_s12 + $0x2f0] sm:$0xff] %v2515_v30  ;;  %2644 = vst [vmem:[%s4266_s12 + $0x2f8] sm:$0xff] %v2516_v53  ;;  %v2391_v36 = vmul.f32 %v3051_v20, %v2204_v49  ;;  %v3059_v42 = vld [vmem:[#allocation5 + $0x80] sm:$0xff]  ;;  %v5296_v12 = vld [vmem:[#allocation49_spill] sm:$0xff] }
 0x498   : > { %v2392_v43 = vmul.f32 %v3052_v45, %v2204_v49  ;;  %v1845_v10 = vmul.f32 %v3053_v25, %v5294_v19  ;;  %v1846_v18 = vmul.f32 %v3054_v5, %v5294_v19  ;;  %2649 = vst [vmem:[%s4266_s12 + $0x320] sm:$0xff] %v2521_v6  ;;  %2650 = vst [vmem:[%s4266_s12 + $0x328] sm:$0xff] %v2522_v13  ;;  %v3060_v3 = vld [vmem:[#allocation5 + $0x88] sm:$0xff]  ;;  %v3061_v35 = vld [vmem:[%s3546_s22 + $0x330] sm:$0xff] }
 0x499   : > { %v2397_v27 = vmul.f32 %v3055_v44, %v2216_v61  ;;  %v2398_v22 = vmul.f32 %v3056_v33, %v2216_v61  ;;  %v1843_v4 = vmul.f32 %v3057_v26, %v5295_v21  ;;  %v1844_v60 = vmul.f32 %v3058_v8, %v5295_v21  ;;  %v3062_v37 = vld [vmem:[%s3546_s22 + $0x338] sm:$0xff]  ;;  %v3063_v16 = vld [vmem:[#allocation7 + $0x30] sm:$0xff]  ;;  %v3065_v47 = vld [vmem:[%s3546_s22 + $0x360] sm:$0xff]  ;;  %v2220_v49 = vpop.permute.xlu1 %2219 }
 0x49a   : > { %v2519_v24 = vadd.f32 %v2391_v36, %v1963_v17  ;;  %v2520_v55 = vadd.f32 %v2392_v43, %v1964_v63  ;;  %v1849_v52 = vmul.f32 %v3059_v42, %v5296_v12  ;;  %v1850_v56 = vmul.f32 %v3060_v3, %v5296_v12  ;;  %v3064_v57 = vld [vmem:[#allocation7 + $0x38] sm:$0xff]  ;;  %v3066_v14 = vld [vmem:[%s3546_s22 + $0x368] sm:$0xff]  ;;  %v3067_v62 = vld [vmem:[#allocation7 + $0x60] sm:$0xff]  ;;  %v2232_v61 = vpop.permute.xlu0 %2231 }
 0x49b   : > { %v2525_v28 = vadd.f32 %v2397_v27, %v1969_v34  ;;  %v2526_v38 = vadd.f32 %v2398_v22, %v1970_v41  ;;  %v1967_v59 = vadd.f32 %v3061_v35, %v1839_v51  ;;  %v1968_v15 = vadd.f32 %v3062_v37, %v1840_v31  ;;  %v3068_v9 = vld [vmem:[#allocation7 + $0x68] sm:$0xff]  ;;  %v3069_v1 = vld [vmem:[%s3546_s22 + $0x350] sm:$0xff]  ;;  %v3070_v58 = vld [vmem:[%s3546_s22 + $0x358] sm:$0xff] }
 0x49c   : > { %2647 = vst [vmem:[%s4266_s12 + $0x310] sm:$0xff] %v2519_v24  ;;  %2648 = vst [vmem:[%s4266_s12 + $0x318] sm:$0xff] %v2520_v55  ;;  %v2395_v2 = vmul.f32 %v3063_v16, %v2212_v40  ;;  %v2396_v23 = vmul.f32 %v3064_v57, %v2212_v40  ;;  %v1973_v54 = vadd.f32 %v3065_v47, %v1845_v10  ;;  %v3071_v32 = vld [vmem:[%s3546_s22 + $0x380] sm:$0xff]  ;;  %v3072_v0 = vld [vmem:[%s3546_s22 + $0x388] sm:$0xff] }
 0x49d   : > { %v1974_v7 = vadd.f32 %v3066_v14, %v1846_v18  ;;  %2653 = vst [vmem:[%s4266_s12 + $0x340] sm:$0xff] %v2525_v28  ;;  %2654 = vst [vmem:[%s4266_s12 + $0x348] sm:$0xff] %v2526_v38  ;;  %v2401_v39 = vmul.f32 %v3067_v62, %v2224_v29  ;;  %v2402_v11 = vmul.f32 %v3068_v9, %v2224_v29  ;;  %v3073_v46 = vld [vmem:[#allocation5 + $0x70] sm:$0xff]  ;;  %v3074_v50 = vld [vmem:[#allocation5 + $0x78] sm:$0xff]  ;;  %v2228_v40 = vpop.permute.xlu1 %2227 }
 0x49e   : > { %v1971_v17 = vadd.f32 %v3069_v1, %v1843_v4  ;;  %v1972_v63 = vadd.f32 %v3070_v58, %v1844_v60  ;;  %v2523_v30 = vadd.f32 %v2395_v2, %v1967_v59  ;;  %v2524_v53 = vadd.f32 %v2396_v23, %v1968_v15  ;;  %v5297_v48 = vld [vmem:[#allocation50_spill] sm:$0xff]  ;;  %v3076_v45 = vld [vmem:[#allocation7 + $0x58] sm:$0xff]  ;;  %v3077_v25 = vld [vmem:[#allocation5 + $0xa0] sm:$0xff]  ;;  %v2240_v29 = vpop.permute.xlu0 %2239 }
 0x49f   : > { %v1977_v34 = vadd.f32 %v3071_v32, %v1849_v52  ;;  %v1978_v41 = vadd.f32 %v3072_v0, %v1850_v56  ;;  %v2529_v6 = vadd.f32 %v2401_v39, %v1973_v54  ;;  %v2530_v13 = vadd.f32 %v2402_v11, %v1974_v7  ;;  %v3075_v20 = vld [vmem:[#allocation7 + $0x50] sm:$0xff]  ;;  %v5298_v19 = vld [vmem:[#allocation51_spill] sm:$0xff]  ;;  %v3078_v5 = vld [vmem:[#allocation5 + $0xa8] sm:$0xff] }
 0x4a0   : > { %v1847_v51 = vmul.f32 %v3073_v46, %v5297_v48  ;;  %v1848_v31 = vmul.f32 %v3074_v50, %v5297_v48  ;;  %2651 = vst [vmem:[%s4266_s12 + $0x330] sm:$0xff] %v2523_v30  ;;  %2652 = vst [vmem:[%s4266_s12 + $0x338] sm:$0xff] %v2524_v53  ;;  %v2399_v36 = vmul.f32 %v3075_v20, %v2220_v49  ;;  %v3079_v44 = vld [vmem:[#allocation7 + $0x80] sm:$0xff]  ;;  %v3080_v33 = vld [vmem:[#allocation7 + $0x88] sm:$0xff] }
 0x4a1   : > { %v2400_v43 = vmul.f32 %v3076_v45, %v2220_v49  ;;  %v1853_v10 = vmul.f32 %v3077_v25, %v5298_v19  ;;  %v1854_v18 = vmul.f32 %v3078_v5, %v5298_v19  ;;  %2657 = vst [vmem:[%s4266_s12 + $0x360] sm:$0xff] %v2529_v6  ;;  %2658 = vst [vmem:[%s4266_s12 + $0x368] sm:$0xff] %v2530_v13  ;;  %v3081_v26 = vld [vmem:[#allocation5 + $0x90] sm:$0xff]  ;;  %v5299_v21 = vld [vmem:[#allocation52_spill] sm:$0xff]  ;;  %v2236_v49 = vpop.permute.xlu1 %2235 }
 0x4a2   : > { %v2405_v27 = vmul.f32 %v3079_v44, %v2232_v61  ;;  %v2406_v22 = vmul.f32 %v3080_v33, %v2232_v61  ;;  %v1851_v4 = vmul.f32 %v3081_v26, %v5299_v21  ;;  %v3082_v8 = vld [vmem:[#allocation5 + $0x98] sm:$0xff]  ;;  %v2527_v24 = vadd.f32 %v2399_v36, %v1971_v17  ;;  %v3083_v42 = vld [vmem:[#allocation5 + $0xc0] sm:$0xff]  ;;  %v5300_v12 = vld [vmem:[#allocation53_spill] sm:$0xff]  ;;  %v2248_v61 = vpop.permute.xlu0 %2247 }
 0x4a3   : > { %v1852_v60 = vmul.f32 %v3082_v8, %v5299_v21  ;;  %v2528_v55 = vadd.f32 %v2400_v43, %v1972_v63  ;;  %v1857_v52 = vmul.f32 %v3083_v42, %v5300_v12  ;;  %v3084_v3 = vld [vmem:[#allocation5 + $0xc8] sm:$0xff]  ;;  %v3085_v35 = vld [vmem:[%s3546_s22 + $0x370] sm:$0xff]  ;;  %v3086_v37 = vld [vmem:[%s3546_s22 + $0x378] sm:$0xff] }
 0x4a4   : > { %v1858_v56 = vmul.f32 %v3084_v3, %v5300_v12  ;;  %v2533_v28 = vadd.f32 %v2405_v27, %v1977_v34  ;;  %v2534_v38 = vadd.f32 %v2406_v22, %v1978_v41  ;;  %v1975_v59 = vadd.f32 %v3085_v35, %v1847_v51  ;;  %2655 = vst [vmem:[%s4266_s12 + $0x350] sm:$0xff] %v2527_v24  ;;  %v3087_v16 = vld [vmem:[#allocation7 + $0x70] sm:$0xff]  ;;  %v3088_v57 = vld [vmem:[#allocation7 + $0x78] sm:$0xff]  ;;  %v3089_v47 = vld [vmem:[%s3546_s22 + $0x3a0] sm:$0xff] }
 0x4a5   : > { %v1976_v15 = vadd.f32 %v3086_v37, %v1848_v31  ;;  %2656 = vst [vmem:[%s4266_s12 + $0x358] sm:$0xff] %v2528_v55  ;;  %v2403_v2 = vmul.f32 %v3087_v16, %v2228_v40  ;;  %v2404_v23 = vmul.f32 %v3088_v57, %v2228_v40  ;;  %v1981_v54 = vadd.f32 %v3089_v47, %v1853_v10  ;;  %v3090_v14 = vld [vmem:[%s3546_s22 + $0x3a8] sm:$0xff]  ;;  %v3091_v62 = vld [vmem:[#allocation7 + $0xa0] sm:$0xff]  ;;  %v3093_v1 = vld [vmem:[%s3546_s22 + $0x390] sm:$0xff] }
 0x4a6   : > { %v1982_v7 = vadd.f32 %v3090_v14, %v1854_v18  ;;  %2661 = vst [vmem:[%s4266_s12 + $0x380] sm:$0xff] %v2533_v28  ;;  %2662 = vst [vmem:[%s4266_s12 + $0x388] sm:$0xff] %v2534_v38  ;;  %v2409_v39 = vmul.f32 %v3091_v62, %v2240_v29  ;;  %v3092_v9 = vld [vmem:[#allocation7 + $0xa8] sm:$0xff]  ;;  %v1979_v17 = vadd.f32 %v3093_v1, %v1851_v4  ;;  %v3094_v58 = vld [vmem:[%s3546_s22 + $0x398] sm:$0xff] }
 0x4a7   : > { %v2410_v11 = vmul.f32 %v3092_v9, %v2240_v29  ;;  %v1980_v63 = vadd.f32 %v3094_v58, %v1852_v60  ;;  %v2531_v30 = vadd.f32 %v2403_v2, %v1975_v59  ;;  %v2532_v53 = vadd.f32 %v2404_v23, %v1976_v15  ;;  %v3095_v32 = vld [vmem:[%s3546_s22 + $0x3c0] sm:$0xff]  ;;  %v3096_v0 = vld [vmem:[%s3546_s22 + $0x3c8] sm:$0xff]  ;;  %v3097_v46 = vld [vmem:[#allocation5 + $0xb0] sm:$0xff]  ;;  %v2256_v15 = vpop.permute.xlu0 %2255 }
 0x4a8   : > { %v1985_v34 = vadd.f32 %v3095_v32, %v1857_v52  ;;  %v1986_v41 = vadd.f32 %v3096_v0, %v1858_v56  ;;  %v2537_v6 = vadd.f32 %v2409_v39, %v1981_v54  ;;  %v5301_v48 = vld [vmem:[#allocation56_spill] sm:$0xff]  ;;  %v3098_v50 = vld [vmem:[#allocation5 + $0xb8] sm:$0xff]  ;;  %v3099_v20 = vld [vmem:[#allocation7 + $0x90] sm:$0xff]  ;;  %v2244_v52 = vpop.permute.xlu1 %2243 }
 0x4a9   : > { %v2538_v13 = vadd.f32 %v2410_v11, %v1982_v7  ;;  %v1855_v51 = vmul.f32 %v3097_v46, %v5301_v48  ;;  %v1856_v31 = vmul.f32 %v3098_v50, %v5301_v48  ;;  %2659 = vst [vmem:[%s4266_s12 + $0x370] sm:$0xff] %v2531_v30  ;;  %2660 = vst [vmem:[%s4266_s12 + $0x378] sm:$0xff] %v2532_v53  ;;  %v3100_v45 = vld [vmem:[#allocation7 + $0x98] sm:$0xff]  ;;  %v3101_v25 = vld [vmem:[#allocation5 + $0xe0] sm:$0xff] }
 0x4aa   : > { %v2407_v36 = vmul.f32 %v3099_v20, %v2236_v49  ;;  %v2408_v43 = vmul.f32 %v3100_v45, %v2236_v49  ;;  %v5302_v19 = vld [vmem:[#allocation57_spill] sm:$0xff]  ;;  %2665 = vst [vmem:[%s4266_s12 + $0x3a0] sm:$0xff] %v2537_v6  ;;  %v3103_v44 = vld [vmem:[#allocation7 + $0xc0] sm:$0xff]  ;;  %v3105_v4 = vld [vmem:[#allocation5 + $0xd0] sm:$0xff] }
 0x4ab   : > { %v1861_v10 = vmul.f32 %v3101_v25, %v5302_v19  ;;  %v3102_v5 = vld [vmem:[#allocation5 + $0xe8] sm:$0xff]  ;;  %2666 = vst [vmem:[%s4266_s12 + $0x3a8] sm:$0xff] %v2538_v13  ;;  %v2413_v27 = vmul.f32 %v3103_v44, %v2248_v61  ;;  %v5303_v8 = vld [vmem:[#allocation58_spill] sm:$0xff]  ;;  %v3106_v24 = vld [vmem:[#allocation5 + $0xd8] sm:$0xff] }
 0x4ac   : > { %v1862_v18 = vmul.f32 %v3102_v5, %v5302_v19  ;;  %v3104_v33 = vld [vmem:[#allocation7 + $0xc8] sm:$0xff]  ;;  %v2535_v26 = vadd.f32 %v2407_v36, %v1979_v17  ;;  %v2536_v21 = vadd.f32 %v2408_v43, %v1980_v63  ;;  %v1859_v60 = vmul.f32 %v3105_v4, %v5303_v8  ;;  %v3107_v3 = vld [vmem:[%s3546_s22 + $0x3b0] sm:$0xff]  ;;  %v3108_v28 = vld [vmem:[%s3546_s22 + $0x3b8] sm:$0xff]  ;;  %v2252_v63 = vpop.permute.xlu1 %2251 }
 0x4ad   : > { %v2414_v22 = vmul.f32 %v3104_v33, %v2248_v61  ;;  %v1860_v55 = vmul.f32 %v3106_v24, %v5303_v8  ;;  %v2541_v42 = vadd.f32 %v2413_v27, %v1985_v34  ;;  %v1983_v56 = vadd.f32 %v3107_v3, %v1855_v51  ;;  %v3109_v40 = vld [vmem:[#allocation7 + $0xb0] sm:$0xff]  ;;  %v3110_v59 = vld [vmem:[#allocation7 + $0xb8] sm:$0xff]  ;;  %v3111_v16 = vld [vmem:[%s3546_s22 + $0x3e0] sm:$0xff] }
 0x4ae   : > { %v1984_v38 = vadd.f32 %v3108_v28, %v1856_v31  ;;  %2663 = vst [vmem:[%s4266_s12 + $0x390] sm:$0xff] %v2535_v26  ;;  %2664 = vst [vmem:[%s4266_s12 + $0x398] sm:$0xff] %v2536_v21  ;;  %v2411_v35 = vmul.f32 %v3109_v40, %v2244_v52  ;;  %v2412_v37 = vmul.f32 %v3110_v59, %v2244_v52  ;;  %v3112_v57 = vld [vmem:[%s3546_s22 + $0x3e8] sm:$0xff]  ;;  %v3113_v29 = vld [vmem:[#allocation7 + $0xe0] sm:$0xff] }
 0x4af   : > { %v2542_v12 = vadd.f32 %v2414_v22, %v1986_v41  ;;  %v1989_v2 = vadd.f32 %v3111_v16, %v1861_v10  ;;  %v1990_v23 = vadd.f32 %v3112_v57, %v1862_v18  ;;  %2669 = vst [vmem:[%s4266_s12 + $0x3c0] sm:$0xff] %v2541_v42  ;;  %v2417_v47 = vmul.f32 %v3113_v29, %v2256_v15  ;;  %v3114_v54 = vld [vmem:[#allocation7 + $0xe8] sm:$0xff]  ;;  %v3115_v39 = vld [vmem:[%s3546_s22 + $0x3d0] sm:$0xff]  ;;  %v3116_v11 = vld [vmem:[%s3546_s22 + $0x3d8] sm:$0xff] }
 0x4b0   : > { %v2418_v14 = vmul.f32 %v3114_v54, %v2256_v15  ;;  %v2539_v7 = vadd.f32 %v2411_v35, %v1983_v56  ;;  %v2540_v62 = vadd.f32 %v2412_v37, %v1984_v38  ;;  %v1987_v9 = vadd.f32 %v3115_v39, %v1859_v60  ;;  %v3117_v30 = vld [vmem:[#allocation5 + $0xf0] sm:$0xff]  ;;  %v5304_v53 = vld [vmem:[#allocation59_spill] sm:$0xff]  ;;  %v2260_v51 = vpop.permute.xlu1 %2259 }
 0x4b1   : > { %2670 = vst [vmem:[%s4266_s12 + $0x3c8] sm:$0xff] %v2542_v12  ;;  %v1988_v1 = vadd.f32 %v3116_v11, %v1860_v55  ;;  %v2545_v17 = vadd.f32 %v2417_v47, %v1989_v2  ;;  %v1863_v32 = vmul.f32 %v3117_v30, %v5304_v53  ;;  %v3118_v34 = vld [vmem:[#allocation5 + $0xf8] sm:$0xff]  ;;  %v3119_v41 = vld [vmem:[#allocation7 + $0xd0] sm:$0xff] }
 0x4b2   : > { %v2546_v58 = vadd.f32 %v2418_v14, %v1990_v23  ;;  %v1864_v0 = vmul.f32 %v3118_v34, %v5304_v53  ;;  %2667 = vst [vmem:[%s4266_s12 + $0x3b0] sm:$0xff] %v2539_v7  ;;  %2668 = vst [vmem:[%s4266_s12 + $0x3b8] sm:$0xff] %v2540_v62  ;;  %v2415_v6 = vmul.f32 %v3119_v41, %v2252_v63  ;;  %v3120_v13 = vld [vmem:[#allocation7 + $0xd8] sm:$0xff]  ;;  %v3121_v50 = vld [vmem:[%s3546_s22 + $0x3f0] sm:$0xff] }
 0x4b3   : > { %v2416_v49 = vmul.f32 %v3120_v13, %v2252_v63  ;;  %2673 = vst [vmem:[%s4266_s12 + $0x3e0] sm:$0xff] %v2545_v17  ;;  %v1991_v31 = vadd.f32 %v3121_v50, %v1863_v32  ;;  %v3122_v20 = vld [vmem:[%s3546_s22 + $0x3f8] sm:$0xff]  ;;  %v3123_v45 = vld [vmem:[#allocation7 + $0xf0] sm:$0xff]  ;;  %s3263_s22 = scalar_lea.vmem %s3262_s11, 32768 }
 0x4b4   : > { %2674 = vst [vmem:[%s4266_s12 + $0x3e8] sm:$0xff] %v2546_v58  ;;  %v2543_v46 = vadd.f32 %v2415_v6, %v1987_v9  ;;  %v1992_v36 = vadd.f32 %v3122_v20, %v1864_v0  ;;  %v2419_v43 = vmul.f32 %v3123_v45, %v2260_v51  ;;  %v3124_v61 = vld [vmem:[#allocation7 + $0xf8] sm:$0xff]  ;;  %p3265_p0 = scmp.lt.s32.totalorder %s3263_s22, %s3257_s14 }
 0x4b5   : > { %v2544_v48 = vadd.f32 %v2416_v49, %v1988_v1  ;;  %v2420_v25 = vmul.f32 %v3124_v61, %v2260_v51 }
 0x4b6   : > { %2671 = vst [vmem:[%s4266_s12 + $0x3d0] sm:$0xff] %v2543_v46  ;;  %v2547_v19 = vadd.f32 %v2419_v43, %v1991_v31  ;;  %p3266_p11 = por %p3265_p0, %p3264_p13 }
 0x4b7   : > { %2672 = vst [vmem:[%s4266_s12 + $0x3d8] sm:$0xff] %v2544_v48  ;;  %v2548_v10 = vadd.f32 %v2420_v25, %v1992_v36 }
 0x4b8   : > { %2675 = vst [vmem:[%s4266_s12 + $0x3f0] sm:$0xff] %v2547_v19  ;;  %p3267_p5 = pnand %p3266_p11, %p3260_p1 }
 0x4b9   : > { %2676 = vst [vmem:[%s4266_s12 + $0x3f8] sm:$0xff] %v2548_v10 }
 0x4ba   : > { %3270 = shalt.err (!%p3267_p5)
}
 0x4bb   : > { %s3271_s30 = scalar_lea.hbm %s4929_s28, 16384  ;;  %s3275_s20 = scalar_lea.hbm %s4983_s7, 32768 }
 0x4bc   : > { %p3272_p6 = scmp.ne.s32.totalorder %s4929_s28, %s3271_s30  ;;  %p3276_p9 = scmp.lt.s32.totalorder %s4929_s28, %s4983_s7 }
 0x4bd   : > { %p3277_p2 = scmp.lt.s32.totalorder %s3275_s20, %s3271_s30 }
 0x4be   : > { %p3273_p4 = pnand %p3272_p6, %p5305_p12 }
 0x4bf   : > { %p3278_p3 = por %p3277_p2, %p3276_p9 }
 0x4c0   : > { %p3274_p8 = pneg %p3273_p4 }
 0x4c2   : > { %p3279_p10 = pnand %p3278_p3, %p3274_p8 }
 0x4c4   : > { %3282 = shalt.err (!%p3279_p10)
}
 0x4c5   : > { %s3340_s10 = smov 256   ;;  %s3341_s13 = smov 16  }
 0x4c6   : > { %2851 = dma.vmem_to_hbm [thread:$0]  (%p5305_p12), %s4931_s16, 16384, %s4929_s28, %s2678_s18, %s3340_s10, %s3340_s10, %s3341_s13  }
 0x4c7 PF: > { %s2707_s14 = sand.u32 1, %s3317_s24   ;;  %p5306_p7 = scmp.ne.s32.totalorder %s5101_s8, 0 }
 0x4c8   : > { %p5307_p1 = scmp.ge.s32.totalorder %s3329_s27, 2  ;;  %s2708_s1 = scalar_lea.sflag [#allocation4], %s2707_s14 }
 0x4ca   : > { %p2871_p13 = pnand %p5307_p1, %p5306_p7 }
 0x4cc   : > { %p2872_p0 = pneg %p2871_p13 }
 0x4ce   : > { %3312 = dma.done.wait (%p2872_p0), %s2708_s1, 16384  }
 0x4cf   : > { %3314 = vsyncadd (%p2872_p0), %s2708_s1, 4294950912  ;;  %p22_p11 = scmp.ge.s32.totalorder %s3482_s21, 4   ;;  %s5308_s24 = smov %s3321_s25 }
 0x4d0   : > { %s5309_s25 = smov %s3325_s26  ;;  %s5310_s26 = smov %s3498_s29 }
 0x4d1   : > { %s5311_s27 = smov %s3482_s21  ;;  %24 = sbr.rel (!%p22_p11) target bundleno = 9 (0x9), region = 109 }
 0x4d6   :  { %2713 = vsyncpa [#allocation3], 1 }
 0x4d7   :  { %2715 = vsyncpa [#allocation3 + $0x1], 1 }
 0x4d8   :  { %2716 = vsyncpa [#allocation6], 1 }
 0x4d9   :  { %2717 = vsyncpa [#allocation9], 1 }
 0x4da   :  { %2718 = vsyncpa [#allocation4], 1 }
 0x4db   :  { %2720 = vsyncpa [#allocation4 + $0x1], 1 }

</bundles_post_ra>
